<compile_context>
chip_gen: v5e
topology: v5e:2x2
jax: 0.10.0
libtpu: 0.0.40
codegen_flags: <defaults>
</compile_context>

<pallas_src>
import jax
import jax.numpy as jnp
from jax.experimental import pallas as pl
from jax.experimental.pallas import tpu as pltpu


def _gat_layer(adjt_ref, x, wext_ref, b_ref, res, acc_ref, *, heads, fout, apply_act):
    """One dense masked multi-head GATConv layer on VMEM-resident values.

    adjt_ref : (N, N) ref, adj_t[dst, src] in {0, 1}
    x        : (N, Din) layer input (value)
    wext_ref : (Din, H*F + 1 + 2H) ref, columns [Wfc | 0 | Wal_all | War_all]
    b_ref    : (1, H*F) ref, head-concatenated bias row
    res      : (N, H*F) residual term (value)
    acc_ref  : (N, H*F) f32 VMEM scratch accumulator
    Returns the lane-dense (N, H*F) activated layer output.
    """
    hf = heads * fout
    width = hf + 1 + 2 * heads

    # One fused MXU pass: features, attention logits, and (after the one-hot row add)
    # an all-ones column that becomes the softmax denominator after aggregation.
    #   [:, :hf]            head-concatenated features (lane-dense)
    #   [:, hf]             1.0 (denominator column)
    #   [:, hf+1:hf+1+H]    el  (source logits,  x . (W_h @ a_l,h))
    #   [:, hf+1+H:]        er  (dest   logits,  x . (W_h @ a_r,h))
    lane = jax.lax.broadcasted_iota(jnp.int32, (1, width), 1)
    feat_ext = (jnp.dot(x, wext_ref[...], preferred_element_type=jnp.float32)
                + jnp.where(lane == hf, 1.0, 0.0))

    # One XLU transpose per layer for the src-side logits (v1 did one per head).
    el_t = jnp.transpose(feat_ext[:, hf + 1:hf + 1 + heads])          # (H, N)

    # Per-head column-block masks, hoisted (JAX does not CSE broadcast_in_dim).
    col = jax.lax.broadcasted_iota(jnp.int32, (1, hf), 1)
    masks = [jnp.where((col >= h * fout) & (col < (h + 1) * fout), 1.0, 0.0)
             for h in range(heads)]

    # Initialize the accumulator with residual + bias (bounds their live ranges).
    acc_ref[...] = res + b_ref[...]

    for h in range(heads):                                            # static unroll
        er = feat_ext[:, hf + 1 + heads + h:hf + 2 + heads + h]       # (N, 1)
        # scores[dst, src] = leaky_relu(er[dst] + el[src], slope=0.2)
        s = er + el_t[h:h + 1, :]                                     # (N, N)
        s = jnp.maximum(s, 0.2 * s)
        # numerically-stable exp; mask AFTER exp (self loops keep rows non-empty)
        m = jnp.max(s, axis=1, keepdims=True)
        p = jnp.exp(s - m) * adjt_ref[...]        # re-read adj per head (vld slack)
        # Un-normalized aggregation on the MXU; the ones column of feat_ext makes
        # part[:, hf] the softmax denominator (no XLU row-sum, no (N,N) alpha mul).
        part = jnp.dot(p, feat_ext, preferred_element_type=jnp.float32)
        scale = pl.reciprocal(part[:, hf:hf + 1], approx=True)        # (N, 1)
        acc_ref[...] += part[:, :hf] * scale * masks[h]

    out = acc_ref[...]
    if apply_act:
        # ELU. TODO(synk): jnp.expm1 would be marginally more accurate for small
        # negative inputs; exp(x)-1 keeps the guaranteed Mosaic lowering.
        out = jnp.where(out > 0.0, out, jnp.exp(out) - 1.0)
    return out


def make_gat_kernel(cfg):
    """cfg = ((heads0, fout0), (heads1, fout1), (heads2, fout2)) -- static."""
    (h0, f0), (h1, f1), (h2, f2) = cfg

    def kernel(x_ref, adjt_ref,
               wext0_ref, wres0_ref, b0_ref,
               wext1_ref, b1_ref,
               wext2_ref, wres2_ref, b2_ref,
               mavg_ref, out_ref,
               acc0_ref, acc1_ref, acc2_ref):
        x = x_ref[...]                                               # (N, Din0)

        # layer 0: 4 heads, projected residual, ELU
        res0 = jnp.dot(x, wres0_ref[...], preferred_element_type=jnp.float32)
        a1 = _gat_layer(adjt_ref, x, wext0_ref, b0_ref, res0, acc0_ref,
                        heads=h0, fout=f0, apply_act=True)

        # layer 1: 4 heads, identity residual (Din == H*F), ELU
        a2 = _gat_layer(adjt_ref, a1, wext1_ref, b1_ref, a1, acc1_ref,
                        heads=h1, fout=f1, apply_act=True)

        # layer 2: 6 heads, projected residual, no activation
        res2 = jnp.dot(a2, wres2_ref[...], preferred_element_type=jnp.float32)
        o = _gat_layer(adjt_ref, a2, wext2_ref, b2_ref, res2, acc2_ref,
                       heads=h2, fout=f2, apply_act=False)

        # torch.mean(out, 1) over heads as one tiny (H*F, F) averaging matmul
        out_ref[...] = jnp.dot(o, mavg_ref[...],
                               preferred_element_type=jnp.float32).astype(out_ref.dtype)

    return kernel


def gat_model_forward(x, adj_t, kparams):
    """Run the fully fused 3-layer GAT model in one pallas_call (grid=(1,))."""
    folded, mavg = kparams
    l0, l1, l2 = folded
    args = (x, adj_t,
            l0["wext"], l0["wres"], l0["b"],
            l1["wext"], l1["b"],
            l2["wext"], l2["wres"], l2["b"],
            mavg)
    n = x.shape[0]
    out_dim = mavg.shape[1]

    def _cfg(d):
        hf = d["b"].shape[1]
        heads = (d["wext"].shape[1] - hf - 1) // 2
        return heads, hf // heads

    cfg = (_cfg(l0), _cfg(l1), _cfg(l2))

    def _full(a):
        nd = a.ndim
        return pl.BlockSpec(a.shape, lambda i, _nd=nd: (0,) * _nd)

    return pl.pallas_call(
        make_gat_kernel(cfg),
        out_shape=jax.ShapeDtypeStruct((n, out_dim), jnp.float32),
        grid_spec=pltpu.PrefetchScalarGridSpec(
            num_scalar_prefetch=0,
            grid=(1,),                       # whole model in one VMEM-resident step
            in_specs=[_full(a) for a in args],
            out_specs=pl.BlockSpec((n, out_dim), lambda i: (0, 0)),
            scratch_shapes=[pltpu.VMEM((n, l0["b"].shape[1]), jnp.float32),
                            pltpu.VMEM((n, l1["b"].shape[1]), jnp.float32),
                            pltpu.VMEM((n, l2["b"].shape[1]), jnp.float32)],
        ),
        compiler_params=pltpu.CompilerParams(
            dimension_semantics=("arbitrary",)),
    )(*args)


def init_gatconv_params(key, din, heads, fout):
    """Deterministic synthetic GATConv parameters (DGL GATConv layout)."""
    k_w, k_al, k_ar, k_res = jax.random.split(key, 4)
    p = {
        "w": 0.1 * jax.random.normal(k_w, (heads, din, fout), jnp.float32),
        "al": 0.1 * jax.random.normal(k_al, (heads, fout), jnp.float32),
        "ar": 0.1 * jax.random.normal(k_ar, (heads, fout), jnp.float32),
        "b": jnp.zeros((heads, fout), jnp.float32),            # DGL init: zeros
    }
    if din != heads * fout:
        # res_fc = Linear(din, heads*fout, bias=False), stored as (din, heads*fout)
        p["wres"] = 0.1 * jax.random.normal(k_res, (din, heads * fout), jnp.float32)
    else:
        p["wres"] = None                                        # res_fc = Identity
    return p


def fold_params_for_kernel(layer_params, output_size):
    """Fold DGL per-head params into the fused, lane-dense kernel layout."""
    folded = []
    for p in layer_params:
        heads, din, fout = p["w"].shape
        hf = heads * fout
        # fc weights for all heads fused into one (Din, H*F) block-dense RHS
        wfc = jnp.transpose(p["w"], (1, 0, 2)).reshape(din, hf)
        # fold attention vectors into the fc weights: el_h = x @ (W_h @ a_l,h)
        wal = jnp.einsum("hdf,hf->dh", p["w"], p["al"])          # (Din, H)
        war = jnp.einsum("hdf,hf->dh", p["w"], p["ar"])          # (Din, H)
        zcol = jnp.zeros((din, 1), jnp.float32)  # kernel forces this column to 1.0
        d = {
            "wext": jnp.concatenate([wfc, zcol, wal, war], axis=1),  # (Din, HF+1+2H)
            "b": p["b"].reshape(1, hf),
        }
        if p["wres"] is not None:
            d["wres"] = p["wres"]
        folded.append(d)
    heads_last = layer_params[-1]["w"].shape[0]
    # (H*out, out) block matrix of (1/H) * I  ->  mean over heads as one matmul
    mavg = jnp.concatenate([jnp.eye(output_size, dtype=jnp.float32)] * heads_last,
                           axis=0) / heads_last
    return folded, mavg


def _reference_forward(x, adj_t, layer_params):
    """Pure-JAX reference with DGL GATConv semantics (correctness check)."""
    def layer(h, p, apply_act):
        heads, _, fout = p["w"].shape
        feat = jnp.einsum("nd,hdf->nhf", h, p["w"], precision="highest")
        el = jnp.einsum("nhf,hf->nh", feat, p["al"], precision="highest")
        er = jnp.einsum("nhf,hf->nh", feat, p["ar"], precision="highest")
        e = er[:, None, :] + el[None, :, :]                    # (dst, src, H)
        e = jnp.where(e > 0.0, e, 0.2 * e)
        e = jnp.where(adj_t[:, :, None] > 0.0, e, -jnp.inf)
        alpha = jax.nn.softmax(e, axis=1)                      # over incoming edges
        out = jnp.einsum("dsh,shf->dhf", alpha, feat, precision="highest")
        if p["wres"] is not None:
            res = jnp.dot(h, p["wres"], precision="highest").reshape(-1, heads, fout)
        else:
            res = h.reshape(-1, heads, fout)
        out = (out + res + p["b"][None, :, :]).reshape(-1, heads * fout)
        return jax.nn.elu(out) if apply_act else out

    h = layer(x, layer_params[0], True)
    h = layer(h, layer_params[1], True)
    o = layer(h, layer_params[2], False)
    heads_last = layer_params[2]["w"].shape[0]
    return jnp.mean(o.reshape(o.shape[0], heads_last, -1), axis=1)


if __name__ == "__main__":
    N = 128            # nodes
    INPUT_SIZE = 16
    HIDDEN_SIZE = 16
    OUTPUT_SIZE = 8

    root = jax.random.PRNGKey(0)
    k_x, k_adj, k_l0, k_l1, k_l2 = jax.random.split(root, 5)

    # node features
    x = jax.random.normal(k_x, (N, INPUT_SIZE), jnp.float32)

    # random directed graph + self loops; adj_t[dst, src]
    a = (jax.random.uniform(k_adj, (N, N)) < 0.1).astype(jnp.float32)
    a = jnp.maximum(a, jnp.eye(N, dtype=jnp.float32))
    adj_t = jnp.transpose(a)

    layer_params = [
        init_gatconv_params(k_l0, INPUT_SIZE, 4, HIDDEN_SIZE),
        init_gatconv_params(k_l1, 4 * HIDDEN_SIZE, 4, HIDDEN_SIZE),
        init_gatconv_params(k_l2, 4 * HIDDEN_SIZE, 6, OUTPUT_SIZE),
    ]
    kparams = fold_params_for_kernel(layer_params, OUTPUT_SIZE)

    fwd = jax.jit(gat_model_forward)
    out = fwd(x, adj_t, kparams)
    jax.block_until_ready(out)

    assert out.shape == (N, OUTPUT_SIZE)
    assert bool(jnp.all(jnp.isfinite(out)))
    ref = _reference_forward(x, adj_t, layer_params)
    max_err = float(jnp.max(jnp.abs(out - ref)))
    assert max_err < 2e-2, f"kernel vs reference max abs err {max_err}"
    print("KERNEL_OK")
</pallas_src>

<mosaic_0001>
module attributes {stable_mosaic.version = 11 : i64} {
  func.func @kernel(%arg0: i32, %arg1: memref<128x16xf32, #tpu.memory_space<vmem>>, %arg2: memref<128x128xf32, #tpu.memory_space<vmem>>, %arg3: memref<16x73xf32, #tpu.memory_space<vmem>>, %arg4: memref<16x64xf32, #tpu.memory_space<vmem>>, %arg5: memref<1x64xf32, #tpu.memory_space<vmem>>, %arg6: memref<64x73xf32, #tpu.memory_space<vmem>>, %arg7: memref<1x64xf32, #tpu.memory_space<vmem>>, %arg8: memref<64x61xf32, #tpu.memory_space<vmem>>, %arg9: memref<64x48xf32, #tpu.memory_space<vmem>>, %arg10: memref<1x48xf32, #tpu.memory_space<vmem>>, %arg11: memref<48x8xf32, #tpu.memory_space<vmem>>, %arg12: memref<128x8xf32, #tpu.memory_space<vmem>>, %arg13: memref<128x64xf32, #tpu.memory_space<vmem>>, %arg14: memref<128x64xf32, #tpu.memory_space<vmem>>, %arg15: memref<128x48xf32, #tpu.memory_space<vmem>>) attributes {dimension_semantics = [#tpu.dimension_semantics<arbitrary>], iteration_bounds = array<i64: 1>, scalar_prefetch = 0 : i64, scratch_operands = 3 : i64, tpu.core_type = #tpu.core_type<tc>, window_params = [{pipeline_mode = #tpu.pipeline_mode<synchronous>, transform_indices = @transform_0, window_bounds = array<i64: 128, 16>}, {pipeline_mode = #tpu.pipeline_mode<synchronous>, transform_indices = @transform_1, window_bounds = array<i64: 128, 128>}, {pipeline_mode = #tpu.pipeline_mode<synchronous>, transform_indices = @transform_2, window_bounds = array<i64: 16, 73>}, {pipeline_mode = #tpu.pipeline_mode<synchronous>, transform_indices = @transform_3, window_bounds = array<i64: 16, 64>}, {pipeline_mode = #tpu.pipeline_mode<synchronous>, transform_indices = @transform_4, window_bounds = array<i64: 1, 64>}, {pipeline_mode = #tpu.pipeline_mode<synchronous>, transform_indices = @transform_5, window_bounds = array<i64: 64, 73>}, {pipeline_mode = #tpu.pipeline_mode<synchronous>, transform_indices = @transform_6, window_bounds = array<i64: 1, 64>}, {pipeline_mode = #tpu.pipeline_mode<synchronous>, transform_indices = @transform_7, window_bounds = array<i64: 64, 61>}, {pipeline_mode = #tpu.pipeline_mode<synchronous>, transform_indices = @transform_8, window_bounds = array<i64: 64, 48>}, {pipeline_mode = #tpu.pipeline_mode<synchronous>, transform_indices = @transform_9, window_bounds = array<i64: 1, 48>}, {pipeline_mode = #tpu.pipeline_mode<synchronous>, transform_indices = @transform_10, window_bounds = array<i64: 48, 8>}, {pipeline_mode = #tpu.pipeline_mode<synchronous>, transform_indices = @transform_11, window_bounds = array<i64: 128, 8>}]} {
    %c0 = arith.constant 0 : index
    %c0_0 = arith.constant 0 : index
    %0 = vector.load %arg1[%c0, %c0_0] : memref<128x16xf32, #tpu.memory_space<vmem>>, vector<128x16xf32>
    %c0_1 = arith.constant 0 : index
    %c0_2 = arith.constant 0 : index
    %1 = vector.load %arg4[%c0_1, %c0_2] : memref<16x64xf32, #tpu.memory_space<vmem>>, vector<16x64xf32>
    %cst = arith.constant dense<0.000000e+00> : vector<128x64xf32>
    %2 = tpu.matmul %0, %1, %cst {dimension_numbers = #tpu.dot_dimension_numbers<[1], [0], [0], [1], [0, 0, 1, 1], [], []>} : vector<128x16xf32>, vector<16x64xf32>, vector<128x64xf32> -> vector<128x64xf32>
    %3 = tpu.iota {dimensions = array<i32: 1>} : vector<1x73xi32>
    %c0_3 = arith.constant 0 : index
    %c0_4 = arith.constant 0 : index
    %4 = vector.load %arg3[%c0_3, %c0_4] : memref<16x73xf32, #tpu.memory_space<vmem>>, vector<16x73xf32>
    %cst_5 = arith.constant dense<0.000000e+00> : vector<128x73xf32>
    %5 = tpu.matmul %0, %4, %cst_5 {dimension_numbers = #tpu.dot_dimension_numbers<[1], [0], [0], [1], [0, 0, 1, 1], [], []>} : vector<128x16xf32>, vector<16x73xf32>, vector<128x73xf32> -> vector<128x73xf32>
    %c64_i32 = arith.constant 64 : i32
    %6 = vector.broadcast %c64_i32 : i32 to vector<1x73xi32>
    %7 = arith.cmpi eq, %3, %6 : vector<1x73xi32>
    %cst_6 = arith.constant 1.000000e+00 : f32
    %cst_7 = arith.constant 0.000000e+00 : f32
    %8 = vector.broadcast %cst_6 : f32 to vector<1x73xf32>
    %9 = vector.broadcast %cst_7 : f32 to vector<1x73xf32>
    %10 = arith.select %7, %8, %9 : vector<1x73xi1>, vector<1x73xf32>
    %11 = vector.broadcast %10 : vector<1x73xf32> to vector<128x73xf32>
    %12 = arith.addf %5, %11 : vector<128x73xf32>
    %13 = vector.extract_strided_slice %12 {offsets = [0, 65], sizes = [128, 4], strides = [1, 1]} : vector<128x73xf32> to vector<128x4xf32>
    %14 = tpu.transpose %13, [1, 0] : vector<128x4xf32> -> vector<4x128xf32>
    %15 = tpu.iota {dimensions = array<i32: 1>} : vector<1x64xi32>
    %c0_i32 = arith.constant 0 : i32
    %16 = vector.broadcast %c0_i32 : i32 to vector<1x64xi32>
    %17 = arith.cmpi sge, %15, %16 : vector<1x64xi32>
    %c16_i32 = arith.constant 16 : i32
    %18 = vector.broadcast %c16_i32 : i32 to vector<1x64xi32>
    %19 = arith.cmpi slt, %15, %18 : vector<1x64xi32>
    %20 = arith.andi %17, %19 : vector<1x64xi1>
    %cst_8 = arith.constant 1.000000e+00 : f32
    %cst_9 = arith.constant 0.000000e+00 : f32
    %21 = vector.broadcast %cst_8 : f32 to vector<1x64xf32>
    %22 = vector.broadcast %cst_9 : f32 to vector<1x64xf32>
    %23 = arith.select %20, %21, %22 : vector<1x64xi1>, vector<1x64xf32>
    %c16_i32_10 = arith.constant 16 : i32
    %24 = vector.broadcast %c16_i32_10 : i32 to vector<1x64xi32>
    %25 = arith.cmpi sge, %15, %24 : vector<1x64xi32>
    %c32_i32 = arith.constant 32 : i32
    %26 = vector.broadcast %c32_i32 : i32 to vector<1x64xi32>
    %27 = arith.cmpi slt, %15, %26 : vector<1x64xi32>
    %28 = arith.andi %25, %27 : vector<1x64xi1>
    %cst_11 = arith.constant 1.000000e+00 : f32
    %cst_12 = arith.constant 0.000000e+00 : f32
    %29 = vector.broadcast %cst_11 : f32 to vector<1x64xf32>
    %30 = vector.broadcast %cst_12 : f32 to vector<1x64xf32>
    %31 = arith.select %28, %29, %30 : vector<1x64xi1>, vector<1x64xf32>
    %c32_i32_13 = arith.constant 32 : i32
    %32 = vector.broadcast %c32_i32_13 : i32 to vector<1x64xi32>
    %33 = arith.cmpi sge, %15, %32 : vector<1x64xi32>
    %c48_i32 = arith.constant 48 : i32
    %34 = vector.broadcast %c48_i32 : i32 to vector<1x64xi32>
    %35 = arith.cmpi slt, %15, %34 : vector<1x64xi32>
    %36 = arith.andi %33, %35 : vector<1x64xi1>
    %cst_14 = arith.constant 1.000000e+00 : f32
    %cst_15 = arith.constant 0.000000e+00 : f32
    %37 = vector.broadcast %cst_14 : f32 to vector<1x64xf32>
    %38 = vector.broadcast %cst_15 : f32 to vector<1x64xf32>
    %39 = arith.select %36, %37, %38 : vector<1x64xi1>, vector<1x64xf32>
    %c48_i32_16 = arith.constant 48 : i32
    %40 = vector.broadcast %c48_i32_16 : i32 to vector<1x64xi32>
    %41 = arith.cmpi sge, %15, %40 : vector<1x64xi32>
    %c64_i32_17 = arith.constant 64 : i32
    %42 = vector.broadcast %c64_i32_17 : i32 to vector<1x64xi32>
    %43 = arith.cmpi slt, %15, %42 : vector<1x64xi32>
    %44 = arith.andi %41, %43 : vector<1x64xi1>
    %cst_18 = arith.constant 1.000000e+00 : f32
    %cst_19 = arith.constant 0.000000e+00 : f32
    %45 = vector.broadcast %cst_18 : f32 to vector<1x64xf32>
    %46 = vector.broadcast %cst_19 : f32 to vector<1x64xf32>
    %47 = arith.select %44, %45, %46 : vector<1x64xi1>, vector<1x64xf32>
    %c0_20 = arith.constant 0 : index
    %c0_21 = arith.constant 0 : index
    %48 = vector.load %arg5[%c0_20, %c0_21] : memref<1x64xf32, #tpu.memory_space<vmem>>, vector<1x64xf32>
    %49 = vector.broadcast %48 : vector<1x64xf32> to vector<128x64xf32>
    %50 = arith.addf %2, %49 : vector<128x64xf32>
    %c0_22 = arith.constant 0 : index
    %c0_23 = arith.constant 0 : index
    %51 = vector.load %arg13[%c0_22, %c0_23] : memref<128x64xf32, #tpu.memory_space<vmem>>, vector<128x64xf32>
    tpu.vector_store %arg13[%c0_22, %c0_23], %50 {strides = array<i32>} : memref<128x64xf32, #tpu.memory_space<vmem>>, vector<128x64xf32>,
    %52 = vector.extract_strided_slice %12 {offsets = [0, 69], sizes = [128, 1], strides = [1, 1]} : vector<128x73xf32> to vector<128x1xf32>
    %53 = vector.extract_strided_slice %14 {offsets = [0, 0], sizes = [1, 128], strides = [1, 1]} : vector<4x128xf32> to vector<1x128xf32>
    %54 = vector.broadcast %52 : vector<128x1xf32> to vector<128x128xf32>
    %55 = vector.broadcast %53 : vector<1x128xf32> to vector<128x128xf32>
    %56 = arith.addf %54, %55 : vector<128x128xf32>
    %cst_24 = arith.constant 2.000000e-01 : f32
    %57 = vector.broadcast %cst_24 : f32 to vector<128x128xf32>
    %58 = arith.mulf %57, %56 : vector<128x128xf32>
    %59 = arith.maximumf %56, %58 : vector<128x128xf32>
    %cst_25 = arith.constant dense<0xFF800000> : vector<128xf32>
    %60 = vector.multi_reduction <maximumf>, %59, %cst_25 [1] : vector<128x128xf32> to vector<128xf32>
    %61 = vector.shape_cast %60 : vector<128xf32> to vector<128x1xf32>
    %62 = vector.broadcast %61 : vector<128x1xf32> to vector<128x128xf32>
    %63 = arith.subf %59, %62 : vector<128x128xf32>
    %64 = math.exp %63 : vector<128x128xf32>
    %c0_26 = arith.constant 0 : index
    %c0_27 = arith.constant 0 : index
    %65 = vector.load %arg2[%c0_26, %c0_27] : memref<128x128xf32, #tpu.memory_space<vmem>>, vector<128x128xf32>
    %66 = arith.mulf %64, %65 : vector<128x128xf32>
    %cst_28 = arith.constant dense<0.000000e+00> : vector<128x73xf32>
    %67 = tpu.matmul %66, %12, %cst_28 {dimension_numbers = #tpu.dot_dimension_numbers<[1], [0], [0], [1], [0, 0, 1, 1], [], []>} : vector<128x128xf32>, vector<128x73xf32>, vector<128x73xf32> -> vector<128x73xf32>
    %68 = vector.extract_strided_slice %67 {offsets = [0, 64], sizes = [128, 1], strides = [1, 1]} : vector<128x73xf32> to vector<128x1xf32>
    %69 = tpu.reciprocal %68 {approx = true} : vector<128x1xf32> -> vector<128x1xf32>
    %c0_29 = arith.constant 0 : index
    %c0_30 = arith.constant 0 : index
    %70 = vector.load %arg13[%c0_29, %c0_30] : memref<128x64xf32, #tpu.memory_space<vmem>>, vector<128x64xf32>
    %71 = vector.extract_strided_slice %67 {offsets = [0, 0], sizes = [128, 64], strides = [1, 1]} : vector<128x73xf32> to vector<128x64xf32>
    %72 = vector.broadcast %69 : vector<128x1xf32> to vector<128x64xf32>
    %73 = arith.mulf %71, %72 : vector<128x64xf32>
    %74 = vector.broadcast %23 : vector<1x64xf32> to vector<128x64xf32>
    %75 = arith.mulf %73, %74 : vector<128x64xf32>
    %76 = arith.addf %70, %75 : vector<128x64xf32>
    %c0_31 = arith.constant 0 : index
    %c0_32 = arith.constant 0 : index
    %77 = vector.load %arg13[%c0_31, %c0_32] : memref<128x64xf32, #tpu.memory_space<vmem>>, vector<128x64xf32>
    tpu.vector_store %arg13[%c0_31, %c0_32], %76 {strides = array<i32>} : memref<128x64xf32, #tpu.memory_space<vmem>>, vector<128x64xf32>,
    %78 = vector.extract_strided_slice %12 {offsets = [0, 70], sizes = [128, 1], strides = [1, 1]} : vector<128x73xf32> to vector<128x1xf32>
    %79 = vector.extract_strided_slice %14 {offsets = [1, 0], sizes = [1, 128], strides = [1, 1]} : vector<4x128xf32> to vector<1x128xf32>
    %80 = vector.broadcast %78 : vector<128x1xf32> to vector<128x128xf32>
    %81 = vector.broadcast %79 : vector<1x128xf32> to vector<128x128xf32>
    %82 = arith.addf %80, %81 : vector<128x128xf32>
    %cst_33 = arith.constant 2.000000e-01 : f32
    %83 = vector.broadcast %cst_33 : f32 to vector<128x128xf32>
    %84 = arith.mulf %83, %82 : vector<128x128xf32>
    %85 = arith.maximumf %82, %84 : vector<128x128xf32>
    %cst_34 = arith.constant dense<0xFF800000> : vector<128xf32>
    %86 = vector.multi_reduction <maximumf>, %85, %cst_34 [1] : vector<128x128xf32> to vector<128xf32>
    %87 = vector.shape_cast %86 : vector<128xf32> to vector<128x1xf32>
    %88 = vector.broadcast %87 : vector<128x1xf32> to vector<128x128xf32>
    %89 = arith.subf %85, %88 : vector<128x128xf32>
    %90 = math.exp %89 : vector<128x128xf32>
    %c0_35 = arith.constant 0 : index
    %c0_36 = arith.constant 0 : index
    %91 = vector.load %arg2[%c0_35, %c0_36] : memref<128x128xf32, #tpu.memory_space<vmem>>, vector<128x128xf32>
    %92 = arith.mulf %90, %91 : vector<128x128xf32>
    %cst_37 = arith.constant dense<0.000000e+00> : vector<128x73xf32>
    %93 = tpu.matmul %92, %12, %cst_37 {dimension_numbers = #tpu.dot_dimension_numbers<[1], [0], [0], [1], [0, 0, 1, 1], [], []>} : vector<128x128xf32>, vector<128x73xf32>, vector<128x73xf32> -> vector<128x73xf32>
    %94 = vector.extract_strided_slice %93 {offsets = [0, 64], sizes = [128, 1], strides = [1, 1]} : vector<128x73xf32> to vector<128x1xf32>
    %95 = tpu.reciprocal %94 {approx = true} : vector<128x1xf32> -> vector<128x1xf32>
    %c0_38 = arith.constant 0 : index
    %c0_39 = arith.constant 0 : index
    %96 = vector.load %arg13[%c0_38, %c0_39] : memref<128x64xf32, #tpu.memory_space<vmem>>, vector<128x64xf32>
    %97 = vector.extract_strided_slice %93 {offsets = [0, 0], sizes = [128, 64], strides = [1, 1]} : vector<128x73xf32> to vector<128x64xf32>
    %98 = vector.broadcast %95 : vector<128x1xf32> to vector<128x64xf32>
    %99 = arith.mulf %97, %98 : vector<128x64xf32>
    %100 = vector.broadcast %31 : vector<1x64xf32> to vector<128x64xf32>
    %101 = arith.mulf %99, %100 : vector<128x64xf32>
    %102 = arith.addf %96, %101 : vector<128x64xf32>
    %c0_40 = arith.constant 0 : index
    %c0_41 = arith.constant 0 : index
    %103 = vector.load %arg13[%c0_40, %c0_41] : memref<128x64xf32, #tpu.memory_space<vmem>>, vector<128x64xf32>
    tpu.vector_store %arg13[%c0_40, %c0_41], %102 {strides = array<i32>} : memref<128x64xf32, #tpu.memory_space<vmem>>, vector<128x64xf32>,
    %104 = vector.extract_strided_slice %12 {offsets = [0, 71], sizes = [128, 1], strides = [1, 1]} : vector<128x73xf32> to vector<128x1xf32>
    %105 = vector.extract_strided_slice %14 {offsets = [2, 0], sizes = [1, 128], strides = [1, 1]} : vector<4x128xf32> to vector<1x128xf32>
    %106 = vector.broadcast %104 : vector<128x1xf32> to vector<128x128xf32>
    %107 = vector.broadcast %105 : vector<1x128xf32> to vector<128x128xf32>
    %108 = arith.addf %106, %107 : vector<128x128xf32>
    %cst_42 = arith.constant 2.000000e-01 : f32
    %109 = vector.broadcast %cst_42 : f32 to vector<128x128xf32>
    %110 = arith.mulf %109, %108 : vector<128x128xf32>
    %111 = arith.maximumf %108, %110 : vector<128x128xf32>
    %cst_43 = arith.constant dense<0xFF800000> : vector<128xf32>
    %112 = vector.multi_reduction <maximumf>, %111, %cst_43 [1] : vector<128x128xf32> to vector<128xf32>
    %113 = vector.shape_cast %112 : vector<128xf32> to vector<128x1xf32>
    %114 = vector.broadcast %113 : vector<128x1xf32> to vector<128x128xf32>
    %115 = arith.subf %111, %114 : vector<128x128xf32>
    %116 = math.exp %115 : vector<128x128xf32>
    %c0_44 = arith.constant 0 : index
    %c0_45 = arith.constant 0 : index
    %117 = vector.load %arg2[%c0_44, %c0_45] : memref<128x128xf32, #tpu.memory_space<vmem>>, vector<128x128xf32>
    %118 = arith.mulf %116, %117 : vector<128x128xf32>
    %cst_46 = arith.constant dense<0.000000e+00> : vector<128x73xf32>
    %119 = tpu.matmul %118, %12, %cst_46 {dimension_numbers = #tpu.dot_dimension_numbers<[1], [0], [0], [1], [0, 0, 1, 1], [], []>} : vector<128x128xf32>, vector<128x73xf32>, vector<128x73xf32> -> vector<128x73xf32>
    %120 = vector.extract_strided_slice %119 {offsets = [0, 64], sizes = [128, 1], strides = [1, 1]} : vector<128x73xf32> to vector<128x1xf32>
    %121 = tpu.reciprocal %120 {approx = true} : vector<128x1xf32> -> vector<128x1xf32>
    %c0_47 = arith.constant 0 : index
    %c0_48 = arith.constant 0 : index
    %122 = vector.load %arg13[%c0_47, %c0_48] : memref<128x64xf32, #tpu.memory_space<vmem>>, vector<128x64xf32>
    %123 = vector.extract_strided_slice %119 {offsets = [0, 0], sizes = [128, 64], strides = [1, 1]} : vector<128x73xf32> to vector<128x64xf32>
    %124 = vector.broadcast %121 : vector<128x1xf32> to vector<128x64xf32>
    %125 = arith.mulf %123, %124 : vector<128x64xf32>
    %126 = vector.broadcast %39 : vector<1x64xf32> to vector<128x64xf32>
    %127 = arith.mulf %125, %126 : vector<128x64xf32>
    %128 = arith.addf %122, %127 : vector<128x64xf32>
    %c0_49 = arith.constant 0 : index
    %c0_50 = arith.constant 0 : index
    %129 = vector.load %arg13[%c0_49, %c0_50] : memref<128x64xf32, #tpu.memory_space<vmem>>, vector<128x64xf32>
    tpu.vector_store %arg13[%c0_49, %c0_50], %128 {strides = array<i32>} : memref<128x64xf32, #tpu.memory_space<vmem>>, vector<128x64xf32>,
    %130 = vector.extract_strided_slice %12 {offsets = [0, 72], sizes = [128, 1], strides = [1, 1]} : vector<128x73xf32> to vector<128x1xf32>
    %131 = vector.extract_strided_slice %14 {offsets = [3, 0], sizes = [1, 128], strides = [1, 1]} : vector<4x128xf32> to vector<1x128xf32>
    %132 = vector.broadcast %130 : vector<128x1xf32> to vector<128x128xf32>
    %133 = vector.broadcast %131 : vector<1x128xf32> to vector<128x128xf32>
    %134 = arith.addf %132, %133 : vector<128x128xf32>
    %cst_51 = arith.constant 2.000000e-01 : f32
    %135 = vector.broadcast %cst_51 : f32 to vector<128x128xf32>
    %136 = arith.mulf %135, %134 : vector<128x128xf32>
    %137 = arith.maximumf %134, %136 : vector<128x128xf32>
    %cst_52 = arith.constant dense<0xFF800000> : vector<128xf32>
    %138 = vector.multi_reduction <maximumf>, %137, %cst_52 [1] : vector<128x128xf32> to vector<128xf32>
    %139 = vector.shape_cast %138 : vector<128xf32> to vector<128x1xf32>
    %140 = vector.broadcast %139 : vector<128x1xf32> to vector<128x128xf32>
    %141 = arith.subf %137, %140 : vector<128x128xf32>
    %142 = math.exp %141 : vector<128x128xf32>
    %c0_53 = arith.constant 0 : index
    %c0_54 = arith.constant 0 : index
    %143 = vector.load %arg2[%c0_53, %c0_54] : memref<128x128xf32, #tpu.memory_space<vmem>>, vector<128x128xf32>
    %144 = arith.mulf %142, %143 : vector<128x128xf32>
    %cst_55 = arith.constant dense<0.000000e+00> : vector<128x73xf32>
    %145 = tpu.matmul %144, %12, %cst_55 {dimension_numbers = #tpu.dot_dimension_numbers<[1], [0], [0], [1], [0, 0, 1, 1], [], []>} : vector<128x128xf32>, vector<128x73xf32>, vector<128x73xf32> -> vector<128x73xf32>
    %146 = vector.extract_strided_slice %145 {offsets = [0, 64], sizes = [128, 1], strides = [1, 1]} : vector<128x73xf32> to vector<128x1xf32>
    %147 = tpu.reciprocal %146 {approx = true} : vector<128x1xf32> -> vector<128x1xf32>
    %c0_56 = arith.constant 0 : index
    %c0_57 = arith.constant 0 : index
    %148 = vector.load %arg13[%c0_56, %c0_57] : memref<128x64xf32, #tpu.memory_space<vmem>>, vector<128x64xf32>
    %149 = vector.extract_strided_slice %145 {offsets = [0, 0], sizes = [128, 64], strides = [1, 1]} : vector<128x73xf32> to vector<128x64xf32>
    %150 = vector.broadcast %147 : vector<128x1xf32> to vector<128x64xf32>
    %151 = arith.mulf %149, %150 : vector<128x64xf32>
    %152 = vector.broadcast %47 : vector<1x64xf32> to vector<128x64xf32>
    %153 = arith.mulf %151, %152 : vector<128x64xf32>
    %154 = arith.addf %148, %153 : vector<128x64xf32>
    %c0_58 = arith.constant 0 : index
    %c0_59 = arith.constant 0 : index
    %155 = vector.load %arg13[%c0_58, %c0_59] : memref<128x64xf32, #tpu.memory_space<vmem>>, vector<128x64xf32>
    tpu.vector_store %arg13[%c0_58, %c0_59], %154 {strides = array<i32>} : memref<128x64xf32, #tpu.memory_space<vmem>>, vector<128x64xf32>,
    %c0_60 = arith.constant 0 : index
    %c0_61 = arith.constant 0 : index
    %156 = vector.load %arg13[%c0_60, %c0_61] : memref<128x64xf32, #tpu.memory_space<vmem>>, vector<128x64xf32>
    %cst_62 = arith.constant 0.000000e+00 : f32
    %157 = vector.broadcast %cst_62 : f32 to vector<128x64xf32>
    %158 = arith.cmpf ogt, %156, %157 : vector<128x64xf32>
    %159 = math.exp %156 : vector<128x64xf32>
    %cst_63 = arith.constant 1.000000e+00 : f32
    %160 = vector.broadcast %cst_63 : f32 to vector<128x64xf32>
    %161 = arith.subf %159, %160 : vector<128x64xf32>
    %162 = arith.select %158, %156, %161 : vector<128x64xi1>, vector<128x64xf32>
    %163 = tpu.iota {dimensions = array<i32: 1>} : vector<1x73xi32>
    %c0_64 = arith.constant 0 : index
    %c0_65 = arith.constant 0 : index
    %164 = vector.load %arg6[%c0_64, %c0_65] : memref<64x73xf32, #tpu.memory_space<vmem>>, vector<64x73xf32>
    %cst_66 = arith.constant dense<0.000000e+00> : vector<128x73xf32>
    %165 = tpu.matmul %162, %164, %cst_66 {dimension_numbers = #tpu.dot_dimension_numbers<[1], [0], [0], [1], [0, 0, 1, 1], [], []>} : vector<128x64xf32>, vector<64x73xf32>, vector<128x73xf32> -> vector<128x73xf32>
    %c64_i32_67 = arith.constant 64 : i32
    %166 = vector.broadcast %c64_i32_67 : i32 to vector<1x73xi32>
    %167 = arith.cmpi eq, %163, %166 : vector<1x73xi32>
    %cst_68 = arith.constant 1.000000e+00 : f32
    %cst_69 = arith.constant 0.000000e+00 : f32
    %168 = vector.broadcast %cst_68 : f32 to vector<1x73xf32>
    %169 = vector.broadcast %cst_69 : f32 to vector<1x73xf32>
    %170 = arith.select %167, %168, %169 : vector<1x73xi1>, vector<1x73xf32>
    %171 = vector.broadcast %170 : vector<1x73xf32> to vector<128x73xf32>
    %172 = arith.addf %165, %171 : vector<128x73xf32>
    %173 = vector.extract_strided_slice %172 {offsets = [0, 65], sizes = [128, 4], strides = [1, 1]} : vector<128x73xf32> to vector<128x4xf32>
    %174 = tpu.transpose %173, [1, 0] : vector<128x4xf32> -> vector<4x128xf32>
    %175 = tpu.iota {dimensions = array<i32: 1>} : vector<1x64xi32>
    %c0_i32_70 = arith.constant 0 : i32
    %176 = vector.broadcast %c0_i32_70 : i32 to vector<1x64xi32>
    %177 = arith.cmpi sge, %175, %176 : vector<1x64xi32>
    %c16_i32_71 = arith.constant 16 : i32
    %178 = vector.broadcast %c16_i32_71 : i32 to vector<1x64xi32>
    %179 = arith.cmpi slt, %175, %178 : vector<1x64xi32>
    %180 = arith.andi %177, %179 : vector<1x64xi1>
    %cst_72 = arith.constant 1.000000e+00 : f32
    %cst_73 = arith.constant 0.000000e+00 : f32
    %181 = vector.broadcast %cst_72 : f32 to vector<1x64xf32>
    %182 = vector.broadcast %cst_73 : f32 to vector<1x64xf32>
    %183 = arith.select %180, %181, %182 : vector<1x64xi1>, vector<1x64xf32>
    %c16_i32_74 = arith.constant 16 : i32
    %184 = vector.broadcast %c16_i32_74 : i32 to vector<1x64xi32>
    %185 = arith.cmpi sge, %175, %184 : vector<1x64xi32>
    %c32_i32_75 = arith.constant 32 : i32
    %186 = vector.broadcast %c32_i32_75 : i32 to vector<1x64xi32>
    %187 = arith.cmpi slt, %175, %186 : vector<1x64xi32>
    %188 = arith.andi %185, %187 : vector<1x64xi1>
    %cst_76 = arith.constant 1.000000e+00 : f32
    %cst_77 = arith.constant 0.000000e+00 : f32
    %189 = vector.broadcast %cst_76 : f32 to vector<1x64xf32>
    %190 = vector.broadcast %cst_77 : f32 to vector<1x64xf32>
    %191 = arith.select %188, %189, %190 : vector<1x64xi1>, vector<1x64xf32>
    %c32_i32_78 = arith.constant 32 : i32
    %192 = vector.broadcast %c32_i32_78 : i32 to vector<1x64xi32>
    %193 = arith.cmpi sge, %175, %192 : vector<1x64xi32>
    %c48_i32_79 = arith.constant 48 : i32
    %194 = vector.broadcast %c48_i32_79 : i32 to vector<1x64xi32>
    %195 = arith.cmpi slt, %175, %194 : vector<1x64xi32>
    %196 = arith.andi %193, %195 : vector<1x64xi1>
    %cst_80 = arith.constant 1.000000e+00 : f32
    %cst_81 = arith.constant 0.000000e+00 : f32
    %197 = vector.broadcast %cst_80 : f32 to vector<1x64xf32>
    %198 = vector.broadcast %cst_81 : f32 to vector<1x64xf32>
    %199 = arith.select %196, %197, %198 : vector<1x64xi1>, vector<1x64xf32>
    %c48_i32_82 = arith.constant 48 : i32
    %200 = vector.broadcast %c48_i32_82 : i32 to vector<1x64xi32>
    %201 = arith.cmpi sge, %175, %200 : vector<1x64xi32>
    %c64_i32_83 = arith.constant 64 : i32
    %202 = vector.broadcast %c64_i32_83 : i32 to vector<1x64xi32>
    %203 = arith.cmpi slt, %175, %202 : vector<1x64xi32>
    %204 = arith.andi %201, %203 : vector<1x64xi1>
    %cst_84 = arith.constant 1.000000e+00 : f32
    %cst_85 = arith.constant 0.000000e+00 : f32
    %205 = vector.broadcast %cst_84 : f32 to vector<1x64xf32>
    %206 = vector.broadcast %cst_85 : f32 to vector<1x64xf32>
    %207 = arith.select %204, %205, %206 : vector<1x64xi1>, vector<1x64xf32>
    %c0_86 = arith.constant 0 : index
    %c0_87 = arith.constant 0 : index
    %208 = vector.load %arg7[%c0_86, %c0_87] : memref<1x64xf32, #tpu.memory_space<vmem>>, vector<1x64xf32>
    %209 = vector.broadcast %208 : vector<1x64xf32> to vector<128x64xf32>
    %210 = arith.addf %162, %209 : vector<128x64xf32>
    %c0_88 = arith.constant 0 : index
    %c0_89 = arith.constant 0 : index
    %211 = vector.load %arg14[%c0_88, %c0_89] : memref<128x64xf32, #tpu.memory_space<vmem>>, vector<128x64xf32>
    tpu.vector_store %arg14[%c0_88, %c0_89], %210 {strides = array<i32>} : memref<128x64xf32, #tpu.memory_space<vmem>>, vector<128x64xf32>,
    %212 = vector.extract_strided_slice %172 {offsets = [0, 69], sizes = [128, 1], strides = [1, 1]} : vector<128x73xf32> to vector<128x1xf32>
    %213 = vector.extract_strided_slice %174 {offsets = [0, 0], sizes = [1, 128], strides = [1, 1]} : vector<4x128xf32> to vector<1x128xf32>
    %214 = vector.broadcast %212 : vector<128x1xf32> to vector<128x128xf32>
    %215 = vector.broadcast %213 : vector<1x128xf32> to vector<128x128xf32>
    %216 = arith.addf %214, %215 : vector<128x128xf32>
    %cst_90 = arith.constant 2.000000e-01 : f32
    %217 = vector.broadcast %cst_90 : f32 to vector<128x128xf32>
    %218 = arith.mulf %217, %216 : vector<128x128xf32>
    %219 = arith.maximumf %216, %218 : vector<128x128xf32>
    %cst_91 = arith.constant dense<0xFF800000> : vector<128xf32>
    %220 = vector.multi_reduction <maximumf>, %219, %cst_91 [1] : vector<128x128xf32> to vector<128xf32>
    %221 = vector.shape_cast %220 : vector<128xf32> to vector<128x1xf32>
    %222 = vector.broadcast %221 : vector<128x1xf32> to vector<128x128xf32>
    %223 = arith.subf %219, %222 : vector<128x128xf32>
    %224 = math.exp %223 : vector<128x128xf32>
    %c0_92 = arith.constant 0 : index
    %c0_93 = arith.constant 0 : index
    %225 = vector.load %arg2[%c0_92, %c0_93] : memref<128x128xf32, #tpu.memory_space<vmem>>, vector<128x128xf32>
    %226 = arith.mulf %224, %225 : vector<128x128xf32>
    %cst_94 = arith.constant dense<0.000000e+00> : vector<128x73xf32>
    %227 = tpu.matmul %226, %172, %cst_94 {dimension_numbers = #tpu.dot_dimension_numbers<[1], [0], [0], [1], [0, 0, 1, 1], [], []>} : vector<128x128xf32>, vector<128x73xf32>, vector<128x73xf32> -> vector<128x73xf32>
    %228 = vector.extract_strided_slice %227 {offsets = [0, 64], sizes = [128, 1], strides = [1, 1]} : vector<128x73xf32> to vector<128x1xf32>
    %229 = tpu.reciprocal %228 {approx = true} : vector<128x1xf32> -> vector<128x1xf32>
    %c0_95 = arith.constant 0 : index
    %c0_96 = arith.constant 0 : index
    %230 = vector.load %arg14[%c0_95, %c0_96] : memref<128x64xf32, #tpu.memory_space<vmem>>, vector<128x64xf32>
    %231 = vector.extract_strided_slice %227 {offsets = [0, 0], sizes = [128, 64], strides = [1, 1]} : vector<128x73xf32> to vector<128x64xf32>
    %232 = vector.broadcast %229 : vector<128x1xf32> to vector<128x64xf32>
    %233 = arith.mulf %231, %232 : vector<128x64xf32>
    %234 = vector.broadcast %183 : vector<1x64xf32> to vector<128x64xf32>
    %235 = arith.mulf %233, %234 : vector<128x64xf32>
    %236 = arith.addf %230, %235 : vector<128x64xf32>
    %c0_97 = arith.constant 0 : index
    %c0_98 = arith.constant 0 : index
    %237 = vector.load %arg14[%c0_97, %c0_98] : memref<128x64xf32, #tpu.memory_space<vmem>>, vector<128x64xf32>
    tpu.vector_store %arg14[%c0_97, %c0_98], %236 {strides = array<i32>} : memref<128x64xf32, #tpu.memory_space<vmem>>, vector<128x64xf32>,
    %238 = vector.extract_strided_slice %172 {offsets = [0, 70], sizes = [128, 1], strides = [1, 1]} : vector<128x73xf32> to vector<128x1xf32>
    %239 = vector.extract_strided_slice %174 {offsets = [1, 0], sizes = [1, 128], strides = [1, 1]} : vector<4x128xf32> to vector<1x128xf32>
    %240 = vector.broadcast %238 : vector<128x1xf32> to vector<128x128xf32>
    %241 = vector.broadcast %239 : vector<1x128xf32> to vector<128x128xf32>
    %242 = arith.addf %240, %241 : vector<128x128xf32>
    %cst_99 = arith.constant 2.000000e-01 : f32
    %243 = vector.broadcast %cst_99 : f32 to vector<128x128xf32>
    %244 = arith.mulf %243, %242 : vector<128x128xf32>
    %245 = arith.maximumf %242, %244 : vector<128x128xf32>
    %cst_100 = arith.constant dense<0xFF800000> : vector<128xf32>
    %246 = vector.multi_reduction <maximumf>, %245, %cst_100 [1] : vector<128x128xf32> to vector<128xf32>
    %247 = vector.shape_cast %246 : vector<128xf32> to vector<128x1xf32>
    %248 = vector.broadcast %247 : vector<128x1xf32> to vector<128x128xf32>
    %249 = arith.subf %245, %248 : vector<128x128xf32>
    %250 = math.exp %249 : vector<128x128xf32>
    %c0_101 = arith.constant 0 : index
    %c0_102 = arith.constant 0 : index
    %251 = vector.load %arg2[%c0_101, %c0_102] : memref<128x128xf32, #tpu.memory_space<vmem>>, vector<128x128xf32>
    %252 = arith.mulf %250, %251 : vector<128x128xf32>
    %cst_103 = arith.constant dense<0.000000e+00> : vector<128x73xf32>
    %253 = tpu.matmul %252, %172, %cst_103 {dimension_numbers = #tpu.dot_dimension_numbers<[1], [0], [0], [1], [0, 0, 1, 1], [], []>} : vector<128x128xf32>, vector<128x73xf32>, vector<128x73xf32> -> vector<128x73xf32>
    %254 = vector.extract_strided_slice %253 {offsets = [0, 64], sizes = [128, 1], strides = [1, 1]} : vector<128x73xf32> to vector<128x1xf32>
    %255 = tpu.reciprocal %254 {approx = true} : vector<128x1xf32> -> vector<128x1xf32>
    %c0_104 = arith.constant 0 : index
    %c0_105 = arith.constant 0 : index
    %256 = vector.load %arg14[%c0_104, %c0_105] : memref<128x64xf32, #tpu.memory_space<vmem>>, vector<128x64xf32>
    %257 = vector.extract_strided_slice %253 {offsets = [0, 0], sizes = [128, 64], strides = [1, 1]} : vector<128x73xf32> to vector<128x64xf32>
    %258 = vector.broadcast %255 : vector<128x1xf32> to vector<128x64xf32>
    %259 = arith.mulf %257, %258 : vector<128x64xf32>
    %260 = vector.broadcast %191 : vector<1x64xf32> to vector<128x64xf32>
    %261 = arith.mulf %259, %260 : vector<128x64xf32>
    %262 = arith.addf %256, %261 : vector<128x64xf32>
    %c0_106 = arith.constant 0 : index
    %c0_107 = arith.constant 0 : index
    %263 = vector.load %arg14[%c0_106, %c0_107] : memref<128x64xf32, #tpu.memory_space<vmem>>, vector<128x64xf32>
    tpu.vector_store %arg14[%c0_106, %c0_107], %262 {strides = array<i32>} : memref<128x64xf32, #tpu.memory_space<vmem>>, vector<128x64xf32>,
    %264 = vector.extract_strided_slice %172 {offsets = [0, 71], sizes = [128, 1], strides = [1, 1]} : vector<128x73xf32> to vector<128x1xf32>
    %265 = vector.extract_strided_slice %174 {offsets = [2, 0], sizes = [1, 128], strides = [1, 1]} : vector<4x128xf32> to vector<1x128xf32>
    %266 = vector.broadcast %264 : vector<128x1xf32> to vector<128x128xf32>
    %267 = vector.broadcast %265 : vector<1x128xf32> to vector<128x128xf32>
    %268 = arith.addf %266, %267 : vector<128x128xf32>
    %cst_108 = arith.constant 2.000000e-01 : f32
    %269 = vector.broadcast %cst_108 : f32 to vector<128x128xf32>
    %270 = arith.mulf %269, %268 : vector<128x128xf32>
    %271 = arith.maximumf %268, %270 : vector<128x128xf32>
    %cst_109 = arith.constant dense<0xFF800000> : vector<128xf32>
    %272 = vector.multi_reduction <maximumf>, %271, %cst_109 [1] : vector<128x128xf32> to vector<128xf32>
    %273 = vector.shape_cast %272 : vector<128xf32> to vector<128x1xf32>
    %274 = vector.broadcast %273 : vector<128x1xf32> to vector<128x128xf32>
    %275 = arith.subf %271, %274 : vector<128x128xf32>
    %276 = math.exp %275 : vector<128x128xf32>
    %c0_110 = arith.constant 0 : index
    %c0_111 = arith.constant 0 : index
    %277 = vector.load %arg2[%c0_110, %c0_111] : memref<128x128xf32, #tpu.memory_space<vmem>>, vector<128x128xf32>
    %278 = arith.mulf %276, %277 : vector<128x128xf32>
    %cst_112 = arith.constant dense<0.000000e+00> : vector<128x73xf32>
    %279 = tpu.matmul %278, %172, %cst_112 {dimension_numbers = #tpu.dot_dimension_numbers<[1], [0], [0], [1], [0, 0, 1, 1], [], []>} : vector<128x128xf32>, vector<128x73xf32>, vector<128x73xf32> -> vector<128x73xf32>
    %280 = vector.extract_strided_slice %279 {offsets = [0, 64], sizes = [128, 1], strides = [1, 1]} : vector<128x73xf32> to vector<128x1xf32>
    %281 = tpu.reciprocal %280 {approx = true} : vector<128x1xf32> -> vector<128x1xf32>
    %c0_113 = arith.constant 0 : index
    %c0_114 = arith.constant 0 : index
    %282 = vector.load %arg14[%c0_113, %c0_114] : memref<128x64xf32, #tpu.memory_space<vmem>>, vector<128x64xf32>
    %283 = vector.extract_strided_slice %279 {offsets = [0, 0], sizes = [128, 64], strides = [1, 1]} : vector<128x73xf32> to vector<128x64xf32>
    %284 = vector.broadcast %281 : vector<128x1xf32> to vector<128x64xf32>
    %285 = arith.mulf %283, %284 : vector<128x64xf32>
    %286 = vector.broadcast %199 : vector<1x64xf32> to vector<128x64xf32>
    %287 = arith.mulf %285, %286 : vector<128x64xf32>
    %288 = arith.addf %282, %287 : vector<128x64xf32>
    %c0_115 = arith.constant 0 : index
    %c0_116 = arith.constant 0 : index
    %289 = vector.load %arg14[%c0_115, %c0_116] : memref<128x64xf32, #tpu.memory_space<vmem>>, vector<128x64xf32>
    tpu.vector_store %arg14[%c0_115, %c0_116], %288 {strides = array<i32>} : memref<128x64xf32, #tpu.memory_space<vmem>>, vector<128x64xf32>,
    %290 = vector.extract_strided_slice %172 {offsets = [0, 72], sizes = [128, 1], strides = [1, 1]} : vector<128x73xf32> to vector<128x1xf32>
    %291 = vector.extract_strided_slice %174 {offsets = [3, 0], sizes = [1, 128], strides = [1, 1]} : vector<4x128xf32> to vector<1x128xf32>
    %292 = vector.broadcast %290 : vector<128x1xf32> to vector<128x128xf32>
    %293 = vector.broadcast %291 : vector<1x128xf32> to vector<128x128xf32>
    %294 = arith.addf %292, %293 : vector<128x128xf32>
    %cst_117 = arith.constant 2.000000e-01 : f32
    %295 = vector.broadcast %cst_117 : f32 to vector<128x128xf32>
    %296 = arith.mulf %295, %294 : vector<128x128xf32>
    %297 = arith.maximumf %294, %296 : vector<128x128xf32>
    %cst_118 = arith.constant dense<0xFF800000> : vector<128xf32>
    %298 = vector.multi_reduction <maximumf>, %297, %cst_118 [1] : vector<128x128xf32> to vector<128xf32>
    %299 = vector.shape_cast %298 : vector<128xf32> to vector<128x1xf32>
    %300 = vector.broadcast %299 : vector<128x1xf32> to vector<128x128xf32>
    %301 = arith.subf %297, %300 : vector<128x128xf32>
    %302 = math.exp %301 : vector<128x128xf32>
    %c0_119 = arith.constant 0 : index
    %c0_120 = arith.constant 0 : index
    %303 = vector.load %arg2[%c0_119, %c0_120] : memref<128x128xf32, #tpu.memory_space<vmem>>, vector<128x128xf32>
    %304 = arith.mulf %302, %303 : vector<128x128xf32>
    %cst_121 = arith.constant dense<0.000000e+00> : vector<128x73xf32>
    %305 = tpu.matmul %304, %172, %cst_121 {dimension_numbers = #tpu.dot_dimension_numbers<[1], [0], [0], [1], [0, 0, 1, 1], [], []>} : vector<128x128xf32>, vector<128x73xf32>, vector<128x73xf32> -> vector<128x73xf32>
    %306 = vector.extract_strided_slice %305 {offsets = [0, 64], sizes = [128, 1], strides = [1, 1]} : vector<128x73xf32> to vector<128x1xf32>
    %307 = tpu.reciprocal %306 {approx = true} : vector<128x1xf32> -> vector<128x1xf32>
    %c0_122 = arith.constant 0 : index
    %c0_123 = arith.constant 0 : index
    %308 = vector.load %arg14[%c0_122, %c0_123] : memref<128x64xf32, #tpu.memory_space<vmem>>, vector<128x64xf32>
    %309 = vector.extract_strided_slice %305 {offsets = [0, 0], sizes = [128, 64], strides = [1, 1]} : vector<128x73xf32> to vector<128x64xf32>
    %310 = vector.broadcast %307 : vector<128x1xf32> to vector<128x64xf32>
    %311 = arith.mulf %309, %310 : vector<128x64xf32>
    %312 = vector.broadcast %207 : vector<1x64xf32> to vector<128x64xf32>
    %313 = arith.mulf %311, %312 : vector<128x64xf32>
    %314 = arith.addf %308, %313 : vector<128x64xf32>
    %c0_124 = arith.constant 0 : index
    %c0_125 = arith.constant 0 : index
    %315 = vector.load %arg14[%c0_124, %c0_125] : memref<128x64xf32, #tpu.memory_space<vmem>>, vector<128x64xf32>
    tpu.vector_store %arg14[%c0_124, %c0_125], %314 {strides = array<i32>} : memref<128x64xf32, #tpu.memory_space<vmem>>, vector<128x64xf32>,
    %c0_126 = arith.constant 0 : index
    %c0_127 = arith.constant 0 : index
    %316 = vector.load %arg14[%c0_126, %c0_127] : memref<128x64xf32, #tpu.memory_space<vmem>>, vector<128x64xf32>
    %cst_128 = arith.constant 0.000000e+00 : f32
    %317 = vector.broadcast %cst_128 : f32 to vector<128x64xf32>
    %318 = arith.cmpf ogt, %316, %317 : vector<128x64xf32>
    %319 = math.exp %316 : vector<128x64xf32>
    %cst_129 = arith.constant 1.000000e+00 : f32
    %320 = vector.broadcast %cst_129 : f32 to vector<128x64xf32>
    %321 = arith.subf %319, %320 : vector<128x64xf32>
    %322 = arith.select %318, %316, %321 : vector<128x64xi1>, vector<128x64xf32>
    %c0_130 = arith.constant 0 : index
    %c0_131 = arith.constant 0 : index
    %323 = vector.load %arg9[%c0_130, %c0_131] : memref<64x48xf32, #tpu.memory_space<vmem>>, vector<64x48xf32>
    %cst_132 = arith.constant dense<0.000000e+00> : vector<128x48xf32>
    %324 = tpu.matmul %322, %323, %cst_132 {dimension_numbers = #tpu.dot_dimension_numbers<[1], [0], [0], [1], [0, 0, 1, 1], [], []>} : vector<128x64xf32>, vector<64x48xf32>, vector<128x48xf32> -> vector<128x48xf32>
    %325 = tpu.iota {dimensions = array<i32: 1>} : vector<1x61xi32>
    %c0_133 = arith.constant 0 : index
    %c0_134 = arith.constant 0 : index
    %326 = vector.load %arg8[%c0_133, %c0_134] : memref<64x61xf32, #tpu.memory_space<vmem>>, vector<64x61xf32>
    %cst_135 = arith.constant dense<0.000000e+00> : vector<128x61xf32>
    %327 = tpu.matmul %322, %326, %cst_135 {dimension_numbers = #tpu.dot_dimension_numbers<[1], [0], [0], [1], [0, 0, 1, 1], [], []>} : vector<128x64xf32>, vector<64x61xf32>, vector<128x61xf32> -> vector<128x61xf32>
    %c48_i32_136 = arith.constant 48 : i32
    %328 = vector.broadcast %c48_i32_136 : i32 to vector<1x61xi32>
    %329 = arith.cmpi eq, %325, %328 : vector<1x61xi32>
    %cst_137 = arith.constant 1.000000e+00 : f32
    %cst_138 = arith.constant 0.000000e+00 : f32
    %330 = vector.broadcast %cst_137 : f32 to vector<1x61xf32>
    %331 = vector.broadcast %cst_138 : f32 to vector<1x61xf32>
    %332 = arith.select %329, %330, %331 : vector<1x61xi1>, vector<1x61xf32>
    %333 = vector.broadcast %332 : vector<1x61xf32> to vector<128x61xf32>
    %334 = arith.addf %327, %333 : vector<128x61xf32>
    %335 = vector.extract_strided_slice %334 {offsets = [0, 49], sizes = [128, 6], strides = [1, 1]} : vector<128x61xf32> to vector<128x6xf32>
    %336 = tpu.transpose %335, [1, 0] : vector<128x6xf32> -> vector<6x128xf32>
    %337 = tpu.iota {dimensions = array<i32: 1>} : vector<1x48xi32>
    %c0_i32_139 = arith.constant 0 : i32
    %338 = vector.broadcast %c0_i32_139 : i32 to vector<1x48xi32>
    %339 = arith.cmpi sge, %337, %338 : vector<1x48xi32>
    %c8_i32 = arith.constant 8 : i32
    %340 = vector.broadcast %c8_i32 : i32 to vector<1x48xi32>
    %341 = arith.cmpi slt, %337, %340 : vector<1x48xi32>
    %342 = arith.andi %339, %341 : vector<1x48xi1>
    %cst_140 = arith.constant 1.000000e+00 : f32
    %cst_141 = arith.constant 0.000000e+00 : f32
    %343 = vector.broadcast %cst_140 : f32 to vector<1x48xf32>
    %344 = vector.broadcast %cst_141 : f32 to vector<1x48xf32>
    %345 = arith.select %342, %343, %344 : vector<1x48xi1>, vector<1x48xf32>
    %c8_i32_142 = arith.constant 8 : i32
    %346 = vector.broadcast %c8_i32_142 : i32 to vector<1x48xi32>
    %347 = arith.cmpi sge, %337, %346 : vector<1x48xi32>
    %c16_i32_143 = arith.constant 16 : i32
    %348 = vector.broadcast %c16_i32_143 : i32 to vector<1x48xi32>
    %349 = arith.cmpi slt, %337, %348 : vector<1x48xi32>
    %350 = arith.andi %347, %349 : vector<1x48xi1>
    %cst_144 = arith.constant 1.000000e+00 : f32
    %cst_145 = arith.constant 0.000000e+00 : f32
    %351 = vector.broadcast %cst_144 : f32 to vector<1x48xf32>
    %352 = vector.broadcast %cst_145 : f32 to vector<1x48xf32>
    %353 = arith.select %350, %351, %352 : vector<1x48xi1>, vector<1x48xf32>
    %c16_i32_146 = arith.constant 16 : i32
    %354 = vector.broadcast %c16_i32_146 : i32 to vector<1x48xi32>
    %355 = arith.cmpi sge, %337, %354 : vector<1x48xi32>
    %c24_i32 = arith.constant 24 : i32
    %356 = vector.broadcast %c24_i32 : i32 to vector<1x48xi32>
    %357 = arith.cmpi slt, %337, %356 : vector<1x48xi32>
    %358 = arith.andi %355, %357 : vector<1x48xi1>
    %cst_147 = arith.constant 1.000000e+00 : f32
    %cst_148 = arith.constant 0.000000e+00 : f32
    %359 = vector.broadcast %cst_147 : f32 to vector<1x48xf32>
    %360 = vector.broadcast %cst_148 : f32 to vector<1x48xf32>
    %361 = arith.select %358, %359, %360 : vector<1x48xi1>, vector<1x48xf32>
    %c24_i32_149 = arith.constant 24 : i32
    %362 = vector.broadcast %c24_i32_149 : i32 to vector<1x48xi32>
    %363 = arith.cmpi sge, %337, %362 : vector<1x48xi32>
    %c32_i32_150 = arith.constant 32 : i32
    %364 = vector.broadcast %c32_i32_150 : i32 to vector<1x48xi32>
    %365 = arith.cmpi slt, %337, %364 : vector<1x48xi32>
    %366 = arith.andi %363, %365 : vector<1x48xi1>
    %cst_151 = arith.constant 1.000000e+00 : f32
    %cst_152 = arith.constant 0.000000e+00 : f32
    %367 = vector.broadcast %cst_151 : f32 to vector<1x48xf32>
    %368 = vector.broadcast %cst_152 : f32 to vector<1x48xf32>
    %369 = arith.select %366, %367, %368 : vector<1x48xi1>, vector<1x48xf32>
    %c32_i32_153 = arith.constant 32 : i32
    %370 = vector.broadcast %c32_i32_153 : i32 to vector<1x48xi32>
    %371 = arith.cmpi sge, %337, %370 : vector<1x48xi32>
    %c40_i32 = arith.constant 40 : i32
    %372 = vector.broadcast %c40_i32 : i32 to vector<1x48xi32>
    %373 = arith.cmpi slt, %337, %372 : vector<1x48xi32>
    %374 = arith.andi %371, %373 : vector<1x48xi1>
    %cst_154 = arith.constant 1.000000e+00 : f32
    %cst_155 = arith.constant 0.000000e+00 : f32
    %375 = vector.broadcast %cst_154 : f32 to vector<1x48xf32>
    %376 = vector.broadcast %cst_155 : f32 to vector<1x48xf32>
    %377 = arith.select %374, %375, %376 : vector<1x48xi1>, vector<1x48xf32>
    %c40_i32_156 = arith.constant 40 : i32
    %378 = vector.broadcast %c40_i32_156 : i32 to vector<1x48xi32>
    %379 = arith.cmpi sge, %337, %378 : vector<1x48xi32>
    %c48_i32_157 = arith.constant 48 : i32
    %380 = vector.broadcast %c48_i32_157 : i32 to vector<1x48xi32>
    %381 = arith.cmpi slt, %337, %380 : vector<1x48xi32>
    %382 = arith.andi %379, %381 : vector<1x48xi1>
    %cst_158 = arith.constant 1.000000e+00 : f32
    %cst_159 = arith.constant 0.000000e+00 : f32
    %383 = vector.broadcast %cst_158 : f32 to vector<1x48xf32>
    %384 = vector.broadcast %cst_159 : f32 to vector<1x48xf32>
    %385 = arith.select %382, %383, %384 : vector<1x48xi1>, vector<1x48xf32>
    %c0_160 = arith.constant 0 : index
    %c0_161 = arith.constant 0 : index
    %386 = vector.load %arg10[%c0_160, %c0_161] : memref<1x48xf32, #tpu.memory_space<vmem>>, vector<1x48xf32>
    %387 = vector.broadcast %386 : vector<1x48xf32> to vector<128x48xf32>
    %388 = arith.addf %324, %387 : vector<128x48xf32>
    %c0_162 = arith.constant 0 : index
    %c0_163 = arith.constant 0 : index
    %389 = vector.load %arg15[%c0_162, %c0_163] : memref<128x48xf32, #tpu.memory_space<vmem>>, vector<128x48xf32>
    tpu.vector_store %arg15[%c0_162, %c0_163], %388 {strides = array<i32>} : memref<128x48xf32, #tpu.memory_space<vmem>>, vector<128x48xf32>,
    %390 = vector.extract_strided_slice %334 {offsets = [0, 55], sizes = [128, 1], strides = [1, 1]} : vector<128x61xf32> to vector<128x1xf32>
    %391 = vector.extract_strided_slice %336 {offsets = [0, 0], sizes = [1, 128], strides = [1, 1]} : vector<6x128xf32> to vector<1x128xf32>
    %392 = vector.broadcast %390 : vector<128x1xf32> to vector<128x128xf32>
    %393 = vector.broadcast %391 : vector<1x128xf32> to vector<128x128xf32>
    %394 = arith.addf %392, %393 : vector<128x128xf32>
    %cst_164 = arith.constant 2.000000e-01 : f32
    %395 = vector.broadcast %cst_164 : f32 to vector<128x128xf32>
    %396 = arith.mulf %395, %394 : vector<128x128xf32>
    %397 = arith.maximumf %394, %396 : vector<128x128xf32>
    %cst_165 = arith.constant dense<0xFF800000> : vector<128xf32>
    %398 = vector.multi_reduction <maximumf>, %397, %cst_165 [1] : vector<128x128xf32> to vector<128xf32>
    %399 = vector.shape_cast %398 : vector<128xf32> to vector<128x1xf32>
    %400 = vector.broadcast %399 : vector<128x1xf32> to vector<128x128xf32>
    %401 = arith.subf %397, %400 : vector<128x128xf32>
    %402 = math.exp %401 : vector<128x128xf32>
    %c0_166 = arith.constant 0 : index
    %c0_167 = arith.constant 0 : index
    %403 = vector.load %arg2[%c0_166, %c0_167] : memref<128x128xf32, #tpu.memory_space<vmem>>, vector<128x128xf32>
    %404 = arith.mulf %402, %403 : vector<128x128xf32>
    %cst_168 = arith.constant dense<0.000000e+00> : vector<128x61xf32>
    %405 = tpu.matmul %404, %334, %cst_168 {dimension_numbers = #tpu.dot_dimension_numbers<[1], [0], [0], [1], [0, 0, 1, 1], [], []>} : vector<128x128xf32>, vector<128x61xf32>, vector<128x61xf32> -> vector<128x61xf32>
    %406 = vector.extract_strided_slice %405 {offsets = [0, 48], sizes = [128, 1], strides = [1, 1]} : vector<128x61xf32> to vector<128x1xf32>
    %407 = tpu.reciprocal %406 {approx = true} : vector<128x1xf32> -> vector<128x1xf32>
    %c0_169 = arith.constant 0 : index
    %c0_170 = arith.constant 0 : index
    %408 = vector.load %arg15[%c0_169, %c0_170] : memref<128x48xf32, #tpu.memory_space<vmem>>, vector<128x48xf32>
    %409 = vector.extract_strided_slice %405 {offsets = [0, 0], sizes = [128, 48], strides = [1, 1]} : vector<128x61xf32> to vector<128x48xf32>
    %410 = vector.broadcast %407 : vector<128x1xf32> to vector<128x48xf32>
    %411 = arith.mulf %409, %410 : vector<128x48xf32>
    %412 = vector.broadcast %345 : vector<1x48xf32> to vector<128x48xf32>
    %413 = arith.mulf %411, %412 : vector<128x48xf32>
    %414 = arith.addf %408, %413 : vector<128x48xf32>
    %c0_171 = arith.constant 0 : index
    %c0_172 = arith.constant 0 : index
    %415 = vector.load %arg15[%c0_171, %c0_172] : memref<128x48xf32, #tpu.memory_space<vmem>>, vector<128x48xf32>
    tpu.vector_store %arg15[%c0_171, %c0_172], %414 {strides = array<i32>} : memref<128x48xf32, #tpu.memory_space<vmem>>, vector<128x48xf32>,
    %416 = vector.extract_strided_slice %334 {offsets = [0, 56], sizes = [128, 1], strides = [1, 1]} : vector<128x61xf32> to vector<128x1xf32>
    %417 = vector.extract_strided_slice %336 {offsets = [1, 0], sizes = [1, 128], strides = [1, 1]} : vector<6x128xf32> to vector<1x128xf32>
    %418 = vector.broadcast %416 : vector<128x1xf32> to vector<128x128xf32>
    %419 = vector.broadcast %417 : vector<1x128xf32> to vector<128x128xf32>
    %420 = arith.addf %418, %419 : vector<128x128xf32>
    %cst_173 = arith.constant 2.000000e-01 : f32
    %421 = vector.broadcast %cst_173 : f32 to vector<128x128xf32>
    %422 = arith.mulf %421, %420 : vector<128x128xf32>
    %423 = arith.maximumf %420, %422 : vector<128x128xf32>
    %cst_174 = arith.constant dense<0xFF800000> : vector<128xf32>
    %424 = vector.multi_reduction <maximumf>, %423, %cst_174 [1] : vector<128x128xf32> to vector<128xf32>
    %425 = vector.shape_cast %424 : vector<128xf32> to vector<128x1xf32>
    %426 = vector.broadcast %425 : vector<128x1xf32> to vector<128x128xf32>
    %427 = arith.subf %423, %426 : vector<128x128xf32>
    %428 = math.exp %427 : vector<128x128xf32>
    %c0_175 = arith.constant 0 : index
    %c0_176 = arith.constant 0 : index
    %429 = vector.load %arg2[%c0_175, %c0_176] : memref<128x128xf32, #tpu.memory_space<vmem>>, vector<128x128xf32>
    %430 = arith.mulf %428, %429 : vector<128x128xf32>
    %cst_177 = arith.constant dense<0.000000e+00> : vector<128x61xf32>
    %431 = tpu.matmul %430, %334, %cst_177 {dimension_numbers = #tpu.dot_dimension_numbers<[1], [0], [0], [1], [0, 0, 1, 1], [], []>} : vector<128x128xf32>, vector<128x61xf32>, vector<128x61xf32> -> vector<128x61xf32>
    %432 = vector.extract_strided_slice %431 {offsets = [0, 48], sizes = [128, 1], strides = [1, 1]} : vector<128x61xf32> to vector<128x1xf32>
    %433 = tpu.reciprocal %432 {approx = true} : vector<128x1xf32> -> vector<128x1xf32>
    %c0_178 = arith.constant 0 : index
    %c0_179 = arith.constant 0 : index
    %434 = vector.load %arg15[%c0_178, %c0_179] : memref<128x48xf32, #tpu.memory_space<vmem>>, vector<128x48xf32>
    %435 = vector.extract_strided_slice %431 {offsets = [0, 0], sizes = [128, 48], strides = [1, 1]} : vector<128x61xf32> to vector<128x48xf32>
    %436 = vector.broadcast %433 : vector<128x1xf32> to vector<128x48xf32>
    %437 = arith.mulf %435, %436 : vector<128x48xf32>
    %438 = vector.broadcast %353 : vector<1x48xf32> to vector<128x48xf32>
    %439 = arith.mulf %437, %438 : vector<128x48xf32>
    %440 = arith.addf %434, %439 : vector<128x48xf32>
    %c0_180 = arith.constant 0 : index
    %c0_181 = arith.constant 0 : index
    %441 = vector.load %arg15[%c0_180, %c0_181] : memref<128x48xf32, #tpu.memory_space<vmem>>, vector<128x48xf32>
    tpu.vector_store %arg15[%c0_180, %c0_181], %440 {strides = array<i32>} : memref<128x48xf32, #tpu.memory_space<vmem>>, vector<128x48xf32>,
    %442 = vector.extract_strided_slice %334 {offsets = [0, 57], sizes = [128, 1], strides = [1, 1]} : vector<128x61xf32> to vector<128x1xf32>
    %443 = vector.extract_strided_slice %336 {offsets = [2, 0], sizes = [1, 128], strides = [1, 1]} : vector<6x128xf32> to vector<1x128xf32>
    %444 = vector.broadcast %442 : vector<128x1xf32> to vector<128x128xf32>
    %445 = vector.broadcast %443 : vector<1x128xf32> to vector<128x128xf32>
    %446 = arith.addf %444, %445 : vector<128x128xf32>
    %cst_182 = arith.constant 2.000000e-01 : f32
    %447 = vector.broadcast %cst_182 : f32 to vector<128x128xf32>
    %448 = arith.mulf %447, %446 : vector<128x128xf32>
    %449 = arith.maximumf %446, %448 : vector<128x128xf32>
    %cst_183 = arith.constant dense<0xFF800000> : vector<128xf32>
    %450 = vector.multi_reduction <maximumf>, %449, %cst_183 [1] : vector<128x128xf32> to vector<128xf32>
    %451 = vector.shape_cast %450 : vector<128xf32> to vector<128x1xf32>
    %452 = vector.broadcast %451 : vector<128x1xf32> to vector<128x128xf32>
    %453 = arith.subf %449, %452 : vector<128x128xf32>
    %454 = math.exp %453 : vector<128x128xf32>
    %c0_184 = arith.constant 0 : index
    %c0_185 = arith.constant 0 : index
    %455 = vector.load %arg2[%c0_184, %c0_185] : memref<128x128xf32, #tpu.memory_space<vmem>>, vector<128x128xf32>
    %456 = arith.mulf %454, %455 : vector<128x128xf32>
    %cst_186 = arith.constant dense<0.000000e+00> : vector<128x61xf32>
    %457 = tpu.matmul %456, %334, %cst_186 {dimension_numbers = #tpu.dot_dimension_numbers<[1], [0], [0], [1], [0, 0, 1, 1], [], []>} : vector<128x128xf32>, vector<128x61xf32>, vector<128x61xf32> -> vector<128x61xf32>
    %458 = vector.extract_strided_slice %457 {offsets = [0, 48], sizes = [128, 1], strides = [1, 1]} : vector<128x61xf32> to vector<128x1xf32>
    %459 = tpu.reciprocal %458 {approx = true} : vector<128x1xf32> -> vector<128x1xf32>
    %c0_187 = arith.constant 0 : index
    %c0_188 = arith.constant 0 : index
    %460 = vector.load %arg15[%c0_187, %c0_188] : memref<128x48xf32, #tpu.memory_space<vmem>>, vector<128x48xf32>
    %461 = vector.extract_strided_slice %457 {offsets = [0, 0], sizes = [128, 48], strides = [1, 1]} : vector<128x61xf32> to vector<128x48xf32>
    %462 = vector.broadcast %459 : vector<128x1xf32> to vector<128x48xf32>
    %463 = arith.mulf %461, %462 : vector<128x48xf32>
    %464 = vector.broadcast %361 : vector<1x48xf32> to vector<128x48xf32>
    %465 = arith.mulf %463, %464 : vector<128x48xf32>
    %466 = arith.addf %460, %465 : vector<128x48xf32>
    %c0_189 = arith.constant 0 : index
    %c0_190 = arith.constant 0 : index
    %467 = vector.load %arg15[%c0_189, %c0_190] : memref<128x48xf32, #tpu.memory_space<vmem>>, vector<128x48xf32>
    tpu.vector_store %arg15[%c0_189, %c0_190], %466 {strides = array<i32>} : memref<128x48xf32, #tpu.memory_space<vmem>>, vector<128x48xf32>,
    %468 = vector.extract_strided_slice %334 {offsets = [0, 58], sizes = [128, 1], strides = [1, 1]} : vector<128x61xf32> to vector<128x1xf32>
    %469 = vector.extract_strided_slice %336 {offsets = [3, 0], sizes = [1, 128], strides = [1, 1]} : vector<6x128xf32> to vector<1x128xf32>
    %470 = vector.broadcast %468 : vector<128x1xf32> to vector<128x128xf32>
    %471 = vector.broadcast %469 : vector<1x128xf32> to vector<128x128xf32>
    %472 = arith.addf %470, %471 : vector<128x128xf32>
    %cst_191 = arith.constant 2.000000e-01 : f32
    %473 = vector.broadcast %cst_191 : f32 to vector<128x128xf32>
    %474 = arith.mulf %473, %472 : vector<128x128xf32>
    %475 = arith.maximumf %472, %474 : vector<128x128xf32>
    %cst_192 = arith.constant dense<0xFF800000> : vector<128xf32>
    %476 = vector.multi_reduction <maximumf>, %475, %cst_192 [1] : vector<128x128xf32> to vector<128xf32>
    %477 = vector.shape_cast %476 : vector<128xf32> to vector<128x1xf32>
    %478 = vector.broadcast %477 : vector<128x1xf32> to vector<128x128xf32>
    %479 = arith.subf %475, %478 : vector<128x128xf32>
    %480 = math.exp %479 : vector<128x128xf32>
    %c0_193 = arith.constant 0 : index
    %c0_194 = arith.constant 0 : index
    %481 = vector.load %arg2[%c0_193, %c0_194] : memref<128x128xf32, #tpu.memory_space<vmem>>, vector<128x128xf32>
    %482 = arith.mulf %480, %481 : vector<128x128xf32>
    %cst_195 = arith.constant dense<0.000000e+00> : vector<128x61xf32>
    %483 = tpu.matmul %482, %334, %cst_195 {dimension_numbers = #tpu.dot_dimension_numbers<[1], [0], [0], [1], [0, 0, 1, 1], [], []>} : vector<128x128xf32>, vector<128x61xf32>, vector<128x61xf32> -> vector<128x61xf32>
    %484 = vector.extract_strided_slice %483 {offsets = [0, 48], sizes = [128, 1], strides = [1, 1]} : vector<128x61xf32> to vector<128x1xf32>
    %485 = tpu.reciprocal %484 {approx = true} : vector<128x1xf32> -> vector<128x1xf32>
    %c0_196 = arith.constant 0 : index
    %c0_197 = arith.constant 0 : index
    %486 = vector.load %arg15[%c0_196, %c0_197] : memref<128x48xf32, #tpu.memory_space<vmem>>, vector<128x48xf32>
    %487 = vector.extract_strided_slice %483 {offsets = [0, 0], sizes = [128, 48], strides = [1, 1]} : vector<128x61xf32> to vector<128x48xf32>
    %488 = vector.broadcast %485 : vector<128x1xf32> to vector<128x48xf32>
    %489 = arith.mulf %487, %488 : vector<128x48xf32>
    %490 = vector.broadcast %369 : vector<1x48xf32> to vector<128x48xf32>
    %491 = arith.mulf %489, %490 : vector<128x48xf32>
    %492 = arith.addf %486, %491 : vector<128x48xf32>
    %c0_198 = arith.constant 0 : index
    %c0_199 = arith.constant 0 : index
    %493 = vector.load %arg15[%c0_198, %c0_199] : memref<128x48xf32, #tpu.memory_space<vmem>>, vector<128x48xf32>
    tpu.vector_store %arg15[%c0_198, %c0_199], %492 {strides = array<i32>} : memref<128x48xf32, #tpu.memory_space<vmem>>, vector<128x48xf32>,
    %494 = vector.extract_strided_slice %334 {offsets = [0, 59], sizes = [128, 1], strides = [1, 1]} : vector<128x61xf32> to vector<128x1xf32>
    %495 = vector.extract_strided_slice %336 {offsets = [4, 0], sizes = [1, 128], strides = [1, 1]} : vector<6x128xf32> to vector<1x128xf32>
    %496 = vector.broadcast %494 : vector<128x1xf32> to vector<128x128xf32>
    %497 = vector.broadcast %495 : vector<1x128xf32> to vector<128x128xf32>
    %498 = arith.addf %496, %497 : vector<128x128xf32>
    %cst_200 = arith.constant 2.000000e-01 : f32
    %499 = vector.broadcast %cst_200 : f32 to vector<128x128xf32>
    %500 = arith.mulf %499, %498 : vector<128x128xf32>
    %501 = arith.maximumf %498, %500 : vector<128x128xf32>
    %cst_201 = arith.constant dense<0xFF800000> : vector<128xf32>
    %502 = vector.multi_reduction <maximumf>, %501, %cst_201 [1] : vector<128x128xf32> to vector<128xf32>
    %503 = vector.shape_cast %502 : vector<128xf32> to vector<128x1xf32>
    %504 = vector.broadcast %503 : vector<128x1xf32> to vector<128x128xf32>
    %505 = arith.subf %501, %504 : vector<128x128xf32>
    %506 = math.exp %505 : vector<128x128xf32>
    %c0_202 = arith.constant 0 : index
    %c0_203 = arith.constant 0 : index
    %507 = vector.load %arg2[%c0_202, %c0_203] : memref<128x128xf32, #tpu.memory_space<vmem>>, vector<128x128xf32>
    %508 = arith.mulf %506, %507 : vector<128x128xf32>
    %cst_204 = arith.constant dense<0.000000e+00> : vector<128x61xf32>
    %509 = tpu.matmul %508, %334, %cst_204 {dimension_numbers = #tpu.dot_dimension_numbers<[1], [0], [0], [1], [0, 0, 1, 1], [], []>} : vector<128x128xf32>, vector<128x61xf32>, vector<128x61xf32> -> vector<128x61xf32>
    %510 = vector.extract_strided_slice %509 {offsets = [0, 48], sizes = [128, 1], strides = [1, 1]} : vector<128x61xf32> to vector<128x1xf32>
    %511 = tpu.reciprocal %510 {approx = true} : vector<128x1xf32> -> vector<128x1xf32>
    %c0_205 = arith.constant 0 : index
    %c0_206 = arith.constant 0 : index
    %512 = vector.load %arg15[%c0_205, %c0_206] : memref<128x48xf32, #tpu.memory_space<vmem>>, vector<128x48xf32>
    %513 = vector.extract_strided_slice %509 {offsets = [0, 0], sizes = [128, 48], strides = [1, 1]} : vector<128x61xf32> to vector<128x48xf32>
    %514 = vector.broadcast %511 : vector<128x1xf32> to vector<128x48xf32>
    %515 = arith.mulf %513, %514 : vector<128x48xf32>
    %516 = vector.broadcast %377 : vector<1x48xf32> to vector<128x48xf32>
    %517 = arith.mulf %515, %516 : vector<128x48xf32>
    %518 = arith.addf %512, %517 : vector<128x48xf32>
    %c0_207 = arith.constant 0 : index
    %c0_208 = arith.constant 0 : index
    %519 = vector.load %arg15[%c0_207, %c0_208] : memref<128x48xf32, #tpu.memory_space<vmem>>, vector<128x48xf32>
    tpu.vector_store %arg15[%c0_207, %c0_208], %518 {strides = array<i32>} : memref<128x48xf32, #tpu.memory_space<vmem>>, vector<128x48xf32>,
    %520 = vector.extract_strided_slice %334 {offsets = [0, 60], sizes = [128, 1], strides = [1, 1]} : vector<128x61xf32> to vector<128x1xf32>
    %521 = vector.extract_strided_slice %336 {offsets = [5, 0], sizes = [1, 128], strides = [1, 1]} : vector<6x128xf32> to vector<1x128xf32>
    %522 = vector.broadcast %520 : vector<128x1xf32> to vector<128x128xf32>
    %523 = vector.broadcast %521 : vector<1x128xf32> to vector<128x128xf32>
    %524 = arith.addf %522, %523 : vector<128x128xf32>
    %cst_209 = arith.constant 2.000000e-01 : f32
    %525 = vector.broadcast %cst_209 : f32 to vector<128x128xf32>
    %526 = arith.mulf %525, %524 : vector<128x128xf32>
    %527 = arith.maximumf %524, %526 : vector<128x128xf32>
    %cst_210 = arith.constant dense<0xFF800000> : vector<128xf32>
    %528 = vector.multi_reduction <maximumf>, %527, %cst_210 [1] : vector<128x128xf32> to vector<128xf32>
    %529 = vector.shape_cast %528 : vector<128xf32> to vector<128x1xf32>
    %530 = vector.broadcast %529 : vector<128x1xf32> to vector<128x128xf32>
    %531 = arith.subf %527, %530 : vector<128x128xf32>
    %532 = math.exp %531 : vector<128x128xf32>
    %c0_211 = arith.constant 0 : index
    %c0_212 = arith.constant 0 : index
    %533 = vector.load %arg2[%c0_211, %c0_212] : memref<128x128xf32, #tpu.memory_space<vmem>>, vector<128x128xf32>
    %534 = arith.mulf %532, %533 : vector<128x128xf32>
    %cst_213 = arith.constant dense<0.000000e+00> : vector<128x61xf32>
    %535 = tpu.matmul %534, %334, %cst_213 {dimension_numbers = #tpu.dot_dimension_numbers<[1], [0], [0], [1], [0, 0, 1, 1], [], []>} : vector<128x128xf32>, vector<128x61xf32>, vector<128x61xf32> -> vector<128x61xf32>
    %536 = vector.extract_strided_slice %535 {offsets = [0, 48], sizes = [128, 1], strides = [1, 1]} : vector<128x61xf32> to vector<128x1xf32>
    %537 = tpu.reciprocal %536 {approx = true} : vector<128x1xf32> -> vector<128x1xf32>
    %c0_214 = arith.constant 0 : index
    %c0_215 = arith.constant 0 : index
    %538 = vector.load %arg15[%c0_214, %c0_215] : memref<128x48xf32, #tpu.memory_space<vmem>>, vector<128x48xf32>
    %539 = vector.extract_strided_slice %535 {offsets = [0, 0], sizes = [128, 48], strides = [1, 1]} : vector<128x61xf32> to vector<128x48xf32>
    %540 = vector.broadcast %537 : vector<128x1xf32> to vector<128x48xf32>
    %541 = arith.mulf %539, %540 : vector<128x48xf32>
    %542 = vector.broadcast %385 : vector<1x48xf32> to vector<128x48xf32>
    %543 = arith.mulf %541, %542 : vector<128x48xf32>
    %544 = arith.addf %538, %543 : vector<128x48xf32>
    %c0_216 = arith.constant 0 : index
    %c0_217 = arith.constant 0 : index
    %545 = vector.load %arg15[%c0_216, %c0_217] : memref<128x48xf32, #tpu.memory_space<vmem>>, vector<128x48xf32>
    tpu.vector_store %arg15[%c0_216, %c0_217], %544 {strides = array<i32>} : memref<128x48xf32, #tpu.memory_space<vmem>>, vector<128x48xf32>,
    %c0_218 = arith.constant 0 : index
    %c0_219 = arith.constant 0 : index
    %546 = vector.load %arg15[%c0_218, %c0_219] : memref<128x48xf32, #tpu.memory_space<vmem>>, vector<128x48xf32>
    %c0_220 = arith.constant 0 : index
    %c0_221 = arith.constant 0 : index
    %547 = vector.load %arg11[%c0_220, %c0_221] : memref<48x8xf32, #tpu.memory_space<vmem>>, vector<48x8xf32>
    %cst_222 = arith.constant dense<0.000000e+00> : vector<128x8xf32>
    %548 = tpu.matmul %546, %547, %cst_222 {dimension_numbers = #tpu.dot_dimension_numbers<[1], [0], [0], [1], [0, 0, 1, 1], [], []>} : vector<128x48xf32>, vector<48x8xf32>, vector<128x8xf32> -> vector<128x8xf32>
    %c0_223 = arith.constant 0 : index
    %c0_224 = arith.constant 0 : index
    %549 = vector.load %arg12[%c0_223, %c0_224] : memref<128x8xf32, #tpu.memory_space<vmem>>, vector<128x8xf32>
    tpu.vector_store %arg12[%c0_223, %c0_224], %548 {strides = array<i32>} : memref<128x8xf32, #tpu.memory_space<vmem>>, vector<128x8xf32>,
    return
  }
  func.func @transform_0(%arg0: i32) -> (i32, i32) {
    %c0_i32 = arith.constant 0 : i32
    %c0_i32_0 = arith.constant 0 : i32
    %c0_i32_1 = arith.constant 0 : i32
    return %c0_i32, %c0_i32_0 : i32, i32
  }
  func.func @transform_1(%arg0: i32) -> (i32, i32) {
    %c0_i32 = arith.constant 0 : i32
    %c0_i32_0 = arith.constant 0 : i32
    %c0_i32_1 = arith.constant 0 : i32
    return %c0_i32, %c0_i32_0 : i32, i32
  }
  func.func @transform_2(%arg0: i32) -> (i32, i32) {
    %c0_i32 = arith.constant 0 : i32
    %c0_i32_0 = arith.constant 0 : i32
    %c0_i32_1 = arith.constant 0 : i32
    return %c0_i32, %c0_i32_0 : i32, i32
  }
  func.func @transform_3(%arg0: i32) -> (i32, i32) {
    %c0_i32 = arith.constant 0 : i32
    %c0_i32_0 = arith.constant 0 : i32
    %c0_i32_1 = arith.constant 0 : i32
    return %c0_i32, %c0_i32_0 : i32, i32
  }
  func.func @transform_4(%arg0: i32) -> (i32, i32) {
    %c0_i32 = arith.constant 0 : i32
    %c0_i32_0 = arith.constant 0 : i32
    %c0_i32_1 = arith.constant 0 : i32
    return %c0_i32, %c0_i32_0 : i32, i32
  }
  func.func @transform_5(%arg0: i32) -> (i32, i32) {
    %c0_i32 = arith.constant 0 : i32
    %c0_i32_0 = arith.constant 0 : i32
    %c0_i32_1 = arith.constant 0 : i32
    return %c0_i32, %c0_i32_0 : i32, i32
  }
  func.func @transform_6(%arg0: i32) -> (i32, i32) {
    %c0_i32 = arith.constant 0 : i32
    %c0_i32_0 = arith.constant 0 : i32
    %c0_i32_1 = arith.constant 0 : i32
    return %c0_i32, %c0_i32_0 : i32, i32
  }
  func.func @transform_7(%arg0: i32) -> (i32, i32) {
    %c0_i32 = arith.constant 0 : i32
    %c0_i32_0 = arith.constant 0 : i32
    %c0_i32_1 = arith.constant 0 : i32
    return %c0_i32, %c0_i32_0 : i32, i32
  }
  func.func @transform_8(%arg0: i32) -> (i32, i32) {
    %c0_i32 = arith.constant 0 : i32
    %c0_i32_0 = arith.constant 0 : i32
    %c0_i32_1 = arith.constant 0 : i32
    return %c0_i32, %c0_i32_0 : i32, i32
  }
  func.func @transform_9(%arg0: i32) -> (i32, i32) {
    %c0_i32 = arith.constant 0 : i32
    %c0_i32_0 = arith.constant 0 : i32
    %c0_i32_1 = arith.constant 0 : i32
    return %c0_i32, %c0_i32_0 : i32, i32
  }
  func.func @transform_10(%arg0: i32) -> (i32, i32) {
    %c0_i32 = arith.constant 0 : i32
    %c0_i32_0 = arith.constant 0 : i32
    %c0_i32_1 = arith.constant 0 : i32
    return %c0_i32, %c0_i32_0 : i32, i32
  }
  func.func @transform_11(%arg0: i32) -> (i32, i32) {
    %c0_i32 = arith.constant 0 : i32
    %c0_i32_0 = arith.constant 0 : i32
    %c0_i32_1 = arith.constant 0 : i32
    return %c0_i32, %c0_i32_0 : i32, i32
  }
}

</mosaic_0001>

<bundles_post_ra>
// kernel: gat_model_forward.1
= control target key start
LH: loop header
LB: loop body
LE: loop exit
PB: predicated region body
PF: predicated region fallthrough
CT: control target
= control target key end

     0   :  { %16 = vsyncpa [#allocation6], 0  ;;  %s9155_s20 = smov [#allocation5]   ;;  %s9156_s22 = smov 128   ;;  %s14507_s0 = inlined_call_operand.vmem [shape: f32[128,16], index: 0, kind: input, shape index: {}]   ;;  %s14508_s1 = inlined_call_operand.vmem [shape: f32[128,128], index: 1, kind: input, shape index: {}]   ;;  %s14509_s2 = inlined_call_operand.vmem [shape: f32[16,73], index: 2, kind: input, shape index: {}]   ;;  %s14510_s3 = inlined_call_operand.vmem [shape: f32[16,64], index: 3, kind: input, shape index: {}]   ;;  %s14511_s4 = inlined_call_operand.vmem [shape: f32[1,64], index: 4, kind: input, shape index: {}]   ;;  %s14512_s5 = inlined_call_operand.vmem [shape: f32[64,73], index: 5, kind: input, shape index: {}]   ;;  %s14513_s6 = inlined_call_operand.vmem [shape: f32[1,64], index: 6, kind: input, shape index: {}]   ;;  %s14514_s7 = inlined_call_operand.hbm [shape: f32[64,61], index: 7, kind: input, shape index: {}]   ;;  %s14515_s8 = inlined_call_operand.vmem [shape: f32[64,48], index: 8, kind: input, shape index: {}]   ;;  %s14516_s9 = inlined_call_operand.vmem [shape: f32[1,48], index: 9, kind: input, shape index: {}]   ;;  %s14517_s10 = inlined_call_operand.vmem [shape: f32[48,8], index: 10, kind: input, shape index: {}]   ;;  %s14518_s11 = inlined_call_operand.vmem [shape: f32[128,8], index: 11, kind: output, shape index: {}]  }
   0x1   :  { %s35_s19 = sshll.u32 %s14514_s7, 4  ;;  %s37_s21 = sshll.u32 %s9155_s20, 4  ;;  %s36_s19 = int_to_ptr.hbm [resolvable:$true] %s35_s19  ;;  %s38_s21 = int_to_ptr.vmem [resolvable:$true] %s37_s21 }
   0x2   :  { %s9157_s23 = smov 8  }
   0x3   :  { %43 = dma.hbm_to_vmem [thread:$0]  %s36_s19, 1024, %s38_s21, [#allocation6], %s9156_s22, %s9156_s22, %s9157_s23  }
   0x4   :  { %9153 = dma.done.wait [#allocation6], 1024  }
   0x5   :  { %9154 = vsyncadd [#allocation6], 4294966272  ;;  %v75_v0 = vld [vmem:[%s14509_s2 + $0x8] sm:$0xff]  ;;  %v74_v1 = vld [vmem:[%s14509_s2] sm:$0xff]  ;;  %vm78_vm0 = vcmask 130048   ;;  %v14523_v15 = vmov 71   ;;  %v72_v20 = vlaneseq }
   0x6   :  { %141 = vmatpush.msra.mxu0 %v75_v0  ;;  %v9245_v2 = vld [vmem:[%s14507_s0] sm:$0xff]  ;;  %v9252_v3 = vld [vmem:[%s14507_s0 + $0x8] sm:$0xff]  ;;  %v9259_v4 = vld [vmem:[%s14507_s0 + $0x10] sm:$0xff]  ;;  %8017 = vset.pattern.permute.xlu1 %v14523_v15  ;;  %v14521_v16 = vmov 69   ;;  %v14519_v18 = vmov 70   ;;  %v14525_v23 = vmov 0.0  }
   0x7   :  { %v9266_v5 = vld [vmem:[%s14507_s0 + $0x18] sm:$0xff]  ;;  %v9273_v6 = vld [vmem:[%s14507_s0 + $0x20] sm:$0xff]  ;;  %v9280_v7 = vld [vmem:[%s14507_s0 + $0x28] sm:$0xff]  ;;  %8015 = vset.pattern.permute.xlu2 %v14521_v16  ;;  %8016 = vset.pattern.permute.xlu0 %v14519_v18  ;;  %v9350_v21 = vand.u32 127, %v72_v20  ;;  %s9162_s18 = smov 63   ;;  %vm373_vm2 = vcmask 523264  }
   0x8   :  { %142 = vmatpush.msra.mxu0 %v74_v1  ;;  %v9287_v8 = vld [vmem:[%s14507_s0 + $0x30] sm:$0xff]  ;;  %v9294_v9 = vld [vmem:[%s14507_s0 + $0x38] sm:$0xff]  ;;  %v9301_v10 = vld [vmem:[%s14507_s0 + $0x40] sm:$0xff] }
   0x9   :  { %7847 = vmatmul.msk.f32.vlgmr.msra.gmra.mxu0 %vm78_vm0, %v9245_v2  ;;  %v9308_v11 = vld [vmem:[%s14507_s0 + $0x48] sm:$0xff]  ;;  %v9315_v12 = vld [vmem:[%s14507_s0 + $0x50] sm:$0xff]  ;;  %v9322_v13 = vld [vmem:[%s14507_s0 + $0x58] sm:$0xff]  ;;  %14642 = vst [vmem:[#allocation8_spill] sm:$0xff] %v9350_v21  ;;  %vm76_vm1 = vcmp.eq.s32.totalorder %v9350_v21, 64 }
   0xa   :  { %v9329_v14 = vld [vmem:[%s14507_s0 + $0x60] sm:$0xff]  ;;  %v9338_v17 = vld [vmem:[%s14507_s0 + $0x68] sm:$0xff]  ;;  %v9346_v19 = vld [vmem:[%s14507_s0 + $0x70] sm:$0xff]  ;;  %v9361_v24 = vsel %vm76_vm1, 1.0, %v14525_v23 }
   0xb   :  { %v9355_v22 = vld [vmem:[%s14507_s0 + $0x78] sm:$0xff]  ;;  %14643 = vst [vmem:[#allocation9_spill] sm:$0xff] %v9361_v24  ;;  %v71_v46 = vld [vmem:[%s14510_s3 + $0x8] sm:$0xff]  ;;  %v70_v48 = vld [vmem:[%s14510_s3] sm:$0xff] }
   0xc   :  { %322 = vmatpush.msra.mxu1 %v71_v46 }
   0xe   :  { %323 = vmatpush.msra.mxu1 %v70_v48 }
   0xf   :  { %7863 = vmatmul.msk.f32.vlgmr.msra.gmra.mxu1 %vm78_vm0, %v9245_v2 }
  0x11   :  { %7848 = vmatmul.msk.f32.gmra.mxu0 %vm78_vm0, %v9252_v3 }
  0x17   :  { %7864 = vmatmul.msk.f32.gmra.mxu1 %vm78_vm0, %v9252_v3 }
  0x19   :  { %7849 = vmatmul.msk.f32.gmra.mxu0 %vm78_vm0, %v9259_v4 }
  0x1f   :  { %7865 = vmatmul.msk.f32.gmra.mxu1 %vm78_vm0, %v9259_v4 }
  0x21   :  { %7850 = vmatmul.msk.f32.gmra.mxu0 %vm78_vm0, %v9266_v5 }
  0x27   :  { %7866 = vmatmul.msk.f32.gmra.mxu1 %vm78_vm0, %v9266_v5 }
  0x29   :  { %7851 = vmatmul.msk.f32.gmra.mxu0 %vm78_vm0, %v9273_v6 }
  0x2f   :  { %7867 = vmatmul.msk.f32.gmra.mxu1 %vm78_vm0, %v9273_v6 }
  0x31   :  { %7852 = vmatmul.msk.f32.gmra.mxu0 %vm78_vm0, %v9280_v7 }
  0x37   :  { %7868 = vmatmul.msk.f32.gmra.mxu1 %vm78_vm0, %v9280_v7 }
  0x39   :  { %7853 = vmatmul.msk.f32.gmra.mxu0 %vm78_vm0, %v9287_v8 }
  0x3f   :  { %7869 = vmatmul.msk.f32.gmra.mxu1 %vm78_vm0, %v9287_v8 }
  0x41   :  { %7854 = vmatmul.msk.f32.gmra.mxu0 %vm78_vm0, %v9294_v9 }
  0x47   :  { %7870 = vmatmul.msk.f32.gmra.mxu1 %vm78_vm0, %v9294_v9 }
  0x49   :  { %7855 = vmatmul.msk.f32.gmra.mxu0 %vm78_vm0, %v9301_v10 }
  0x4f   :  { %7871 = vmatmul.msk.f32.gmra.mxu1 %vm78_vm0, %v9301_v10 }
  0x51   :  { %7856 = vmatmul.msk.f32.gmra.mxu0 %vm78_vm0, %v9308_v11 }
  0x57   :  { %7872 = vmatmul.msk.f32.gmra.mxu1 %vm78_vm0, %v9308_v11 }
  0x59   :  { %7857 = vmatmul.msk.f32.gmra.mxu0 %vm78_vm0, %v9315_v12 }
  0x5f   :  { %7873 = vmatmul.msk.f32.gmra.mxu1 %vm78_vm0, %v9315_v12 }
  0x61   :  { %7858 = vmatmul.msk.f32.gmra.mxu0 %vm78_vm0, %v9322_v13 }
  0x67   :  { %7874 = vmatmul.msk.f32.gmra.mxu1 %vm78_vm0, %v9322_v13 }
  0x69   :  { %7859 = vmatmul.msk.f32.gmra.mxu0 %vm78_vm0, %v9329_v14 }
  0x6f   :  { %7875 = vmatmul.msk.f32.gmra.mxu1 %vm78_vm0, %v9329_v14 }
  0x71   :  { %7860 = vmatmul.msk.f32.gmra.mxu0 %vm78_vm0, %v9338_v17 }
  0x77   :  { %7876 = vmatmul.msk.f32.gmra.mxu1 %vm78_vm0, %v9338_v17 }
  0x79   :  { %7861 = vmatmul.msk.f32.gmra.mxu0 %vm78_vm0, %v9346_v19 }
  0x7f   :  { %7877 = vmatmul.msk.f32.gmra.mxu1 %vm78_vm0, %v9346_v19 }
  0x81   :  { %7862 = vmatmul.msk.f32.gmra.mxu0 %vm78_vm0, %v9355_v22 }
  0x86   :  { %v144_v25 = vpop.f32.mrf.mxu0 }
  0x87   :  { %v9364_v26 = vadd.f32 %v144_v25, %v9361_v24  ;;  %7878 = vmatmul.msk.f32.gmra.mxu1 %vm78_vm0, %v9355_v22 }
  0x89   :  { %1323 = vperm.xlu1 %8017, %v9364_v26   ;;  %391 = vperm.xlu2 %8015, %v9364_v26  }
  0x8a   :  { %208 = vrot.lane.b32.xlu0 %v9364_v26, %s9162_s18 }
  0x8e   :  { %v147_v27 = vpop.f32.mrf.mxu0 }
  0x8f   :  { %v9371_v28 = vadd.f32 %v147_v27, %v9361_v24 }
  0x91   :  { %8019 = vset.pattern.permute.xlu2 %v14519_v18  ;;  %8022 = vset.pattern.permute.xlu1 %v14519_v18 }
  0x92   :  { %857 = vperm.xlu0 %8016, %v9364_v26   ;;  %861 = vperm.xlu2 %8019, %v9371_v28  }
  0x96   :  { %v150_v29 = vpop.f32.mrf.mxu0 }
  0x97   :  { %v9378_v30 = vadd.f32 %v150_v29, %v9361_v24 }
  0x99   :  { %14644 = vst [vmem:[#allocation10_spill] sm:$0xff] %v9378_v30  ;;  %212 = vrot.lane.b32.xlu1 %v9378_v30, %s9162_s18 }
  0x9a   :  { %210 = vrot.lane.b32.xlu0 %v9371_v28, %s9162_s18  ;;  %8020 = vset.pattern.permute.xlu2 %v14523_v15 }
  0x9b   :  { %1327 = vperm.xlu2 %8020, %v9371_v28   ;;  %8018 = vset.pattern.permute.xlu0 %v14521_v16 }
  0x9e   :  { %v153_v31 = vpop.f32.mrf.mxu0 }
  0x9f   :  { %v9392_v32 = vadd.f32 %v153_v31, %v9361_v24 }
  0xa1   :  { %865 = vperm.xlu1 %8022, %v9378_v30  }
  0xa2   :  { %395 = vperm.xlu0 %8018, %v9371_v28  }
  0xa3   :  { %8021 = vset.pattern.permute.xlu2 %v14521_v16 }
  0xa4   :  { %399 = vperm.xlu2 %8021, %v9378_v30  }
  0xa6   :  { %v156_v33 = vpop.f32.mrf.mxu0 }
  0xa7   :  { %v9401_v35 = vadd.f32 %v156_v33, %v9361_v24 }
  0xa9   :  { %214 = vrot.lane.b32.xlu1 %v9392_v32, %s9162_s18 }
  0xaa   :  { %8023 = vset.pattern.permute.xlu0 %v14523_v15  ;;  %8025 = vset.pattern.permute.xlu1 %v14523_v15 }
  0xab   :  { %1331 = vperm.xlu0 %8023, %v9378_v30  }
  0xac   :  { %403 = vperm.xlu2 %8021, %v9392_v32  }
  0xae   :  { %v159_v34 = vpop.f32.mrf.mxu0 }
  0xaf   :  { %v9409_v36 = vadd.f32 %v159_v34, %v9361_v24 }
  0xb1   :  { %1335 = vperm.xlu1 %8025, %v9392_v32   ;;  %14645 = vst [vmem:[#allocation11_spill] sm:$0xff] %v9409_v36 }
  0xb3   :  { %8026 = vset.pattern.permute.xlu0 %v14521_v16 }
  0xb4   :  { %407 = vperm.xlu0 %8026, %v9401_v35   ;;  %8024 = vset.pattern.permute.xlu2 %v14519_v18 }
  0xb5   :  { %869 = vperm.xlu2 %8024, %v9392_v32  }
  0xb6   :  { %v162_v37 = vpop.f32.mrf.mxu0 }
  0xb7   :  { %v9419_v39 = vadd.f32 %v162_v37, %v9361_v24 }
  0xb9   :  { %8030 = vset.pattern.permute.xlu1 %v14519_v18 }
  0xba   :  { %877 = vperm.xlu1 %8030, %v9409_v36  }
  0xbc   :  { %8027 = vset.pattern.permute.xlu0 %v14519_v18 }
  0xbd   :  { %873 = vperm.xlu0 %8027, %v9401_v35   ;;  %216 = vrot.lane.b32.xlu2 %v9401_v35, %s9162_s18 }
  0xbe   :  { %v165_v38 = vpop.f32.mrf.mxu0  ;;  %8028 = vset.pattern.permute.xlu2 %v14523_v15 }
  0xbf   :  { %v9428_v41 = vadd.f32 %v165_v38, %v9361_v24 }
  0xc1   :  { %14646 = vst [vmem:[#allocation12_spill] sm:$0xff] %v9428_v41 }
  0xc2   :  { %8031 = vset.pattern.permute.xlu1 %v14523_v15 }
  0xc3   :  { %1343 = vperm.xlu1 %8031, %v9409_v36  }
  0xc5   :  { %220 = vrot.lane.b32.xlu0 %v9419_v39, %s9162_s18  ;;  %1339 = vperm.xlu2 %8028, %v9401_v35  }
  0xc6   :  { %v168_v40 = vpop.f32.mrf.mxu0  ;;  %8032 = vset.pattern.permute.xlu0 %v14521_v16 }
  0xc7   :  { %v9438_v43 = vadd.f32 %v168_v40, %v9361_v24 }
  0xc9   :  { %14647 = vst [vmem:[#allocation13_spill] sm:$0xff] %v9438_v43 }
  0xcb   :  { %222 = vrot.lane.b32.xlu1 %v9428_v41, %s9162_s18 }
  0xcc   :  { %8039 = vset.pattern.permute.xlu1 %v14519_v18 }
  0xcd   :  { %415 = vperm.xlu0 %8032, %v9419_v39   ;;  %218 = vrot.lane.b32.xlu2 %v9409_v36, %s9162_s18 }
  0xce   :  { %v171_v42 = vpop.f32.mrf.mxu0  ;;  %8029 = vset.pattern.permute.xlu2 %v14521_v16 }
  0xcf   :  { %v9479_v53 = vadd.f32 %v171_v42, %v9361_v24 }
  0xd3   :  { %889 = vperm.xlu1 %8039, %v9438_v43  }
  0xd5   :  { %8036 = vset.pattern.permute.xlu0 %v14519_v18  ;;  %411 = vperm.xlu2 %8029, %v9409_v36  }
  0xd6   :  { %885 = vperm.xlu0 %8036, %v9428_v41   ;;  %v174_v44 = vpop.f32.mrf.mxu0 }
  0xd7   :  { %v9454_v47 = vadd.f32 %v174_v44, %v9361_v24 }
  0xd9   :  { %14648 = vst [vmem:[#allocation14_spill] sm:$0xff] %v9454_v47 }
  0xdb   :  { %8040 = vset.pattern.permute.xlu1 %v14523_v15 }
  0xdc   :  { %1355 = vperm.xlu1 %8040, %v9438_v43  }
  0xdd   :  { %8033 = vset.pattern.permute.xlu2 %v14519_v18 }
  0xde   :  { %8037 = vset.pattern.permute.xlu0 %v14523_v15  ;;  %v177_v45 = vpop.f32.mrf.mxu0  ;;  %881 = vperm.xlu2 %8033, %v9419_v39  }
  0xdf   :  { %1351 = vperm.xlu0 %8037, %v9428_v41   ;;  %v9470_v51 = vadd.f32 %v177_v45, %v9361_v24 }
  0xe1   :  { %14649 = vst [vmem:[#allocation15_spill] sm:$0xff] %v9470_v51 }
  0xe3   :  { %v9461_v49 = vpop.permute.xlu2 %391 }
  0xe4   :  { %228 = vrot.lane.b32.xlu1 %v9454_v47, %s9162_s18 }
  0xe5   :  { %8046 = vset.pattern.permute.xlu1 %v14519_v18 }
  0xe6   :  { %v180_v50 = vpop.f32.mrf.mxu0  ;;  %8034 = vset.pattern.permute.xlu2 %v14523_v15 }
  0xe7   :  { %8038 = vset.pattern.permute.xlu0 %v14521_v16  ;;  %1347 = vperm.xlu2 %8034, %v9419_v39   ;;  %v9527_v0 = vadd.f32 %v180_v50, %v9361_v24 }
  0xe8   :  { %423 = vperm.xlu0 %8038, %v9438_v43  }
  0xe9   :  { %14653 = vst [vmem:[#allocation19_spill] sm:$0xff] %v9527_v0 }
  0xec   :  { %901 = vperm.xlu1 %8046, %v9470_v51   ;;  %v9476_v52 = vpop.permute.xlu2 %861 }
  0xee   :  { %v183_v54 = vpop.f32.mrf.mxu0 }
  0xef   :  { %8035 = vset.pattern.permute.xlu2 %v14521_v16  ;;  %v9495_v57 = vadd.f32 %v183_v54, %v9361_v24 }
  0xf0   :  { %226 = vrot.lane.b32.xlu0 %v9479_v53, %s9162_s18  ;;  %419 = vperm.xlu2 %8035, %v9428_v41  }
  0xf1   :  { %14650 = vst [vmem:[#allocation16_spill] sm:$0xff] %v9495_v57 }
  0xf4   :  { %8047 = vset.pattern.permute.xlu1 %v14523_v15 }
  0xf5   :  { %1367 = vperm.xlu1 %8047, %v9470_v51   ;;  %v9489_v55 = vpop.permute.xlu2 %1327 }
  0xf6   :  { %v186_v56 = vpop.f32.mrf.mxu0 }
  0xf7   :  { %v9507_v61 = vadd.f32 %v186_v56, %v9361_v24 }
  0xf8   :  { %431 = vperm.xlu0 %8038, %v9454_v47   ;;  %224 = vrot.lane.b32.xlu2 %v9438_v43, %s9162_s18 }
  0xf9   :  { %14651 = vst [vmem:[#allocation17_spill] sm:$0xff] %v9507_v61 }
  0xfb   :  { %v9621_v31 = vpop.permute.xlu1 %1323 }
  0xfc   :  { %v9499_v58 = vpop.permute.xlu0 %208 }
  0xfd   :  { %234 = vrot.lane.b32.xlu1 %v9495_v57, %s9162_s18 }
  0xfe   :  { %v189_v59 = vpop.f32.mrf.mxu0  ;;  %v9503_v60 = vpop.permute.xlu2 %399  ;;  %8055 = vset.pattern.permute.xlu1 %v14519_v18 }
  0xff   :  { %v9510_v62 = vadd.f32 %v189_v59, %v9361_v24 }
 0x100   :  { %8043 = vset.pattern.permute.xlu0 %v14519_v18  ;;  %427 = vperm.xlu2 %8035, %v9479_v53  }
 0x101   :  { %14652 = vst [vmem:[#allocation18_spill] sm:$0xff] %v9510_v62  ;;  %897 = vperm.xlu0 %8043, %v9454_v47   ;;  %615 = vmatpush.msra.mxu2 %v9510_v62 }
 0x102   :  { %1081 = vmatpush.msra.mxu3 %v9510_v62  ;;  %1547 = vmatpush.msrb.mxu0 %v9510_v62 }
 0x103   :  { %2013 = vmatpush.msrb.mxu1 %v9510_v62  ;;  %616 = vmatpush.msra.mxu2 %v9507_v61 }
 0x104   :  { %1082 = vmatpush.msra.mxu3 %v9507_v61  ;;  %1548 = vmatpush.msrb.mxu0 %v9507_v61  ;;  %v9522_v63 = vpop.permute.xlu0 %857 }
 0x105   :  { %2014 = vmatpush.msrb.mxu1 %v9507_v61  ;;  %617 = vmatpush.msra.mxu2 %v9495_v57 }
 0x106   :  { %1083 = vmatpush.msra.mxu3 %v9495_v57  ;;  %1549 = vmatpush.msrb.mxu0 %v9495_v57  ;;  %v9531_v1 = vpop.permute.xlu2 %403 }
 0x107   :  { %2015 = vmatpush.msrb.mxu1 %v9495_v57  ;;  %913 = vperm.xlu1 %8055, %v9507_v61  }
 0x108   :  { %618 = vmatpush.msra.mxu2 %v9527_v0  ;;  %1084 = vmatpush.msra.mxu3 %v9527_v0 }
 0x109   :  { %1550 = vmatpush.msrb.mxu0 %v9527_v0  ;;  %2016 = vmatpush.msrb.mxu1 %v9527_v0 }
 0x10a   :  { %8041 = vset.pattern.permute.xlu2 %v14519_v18  ;;  %8044 = vset.pattern.permute.xlu0 %v14523_v15 }
 0x10b   :  { %619 = vmatpush.msra.mxu2 %v9470_v51  ;;  %1085 = vmatpush.msra.mxu3 %v9470_v51  ;;  %v213_v34 = vpop.permute.xlu1 %212 }
 0x10c   :  { %1551 = vmatpush.msrb.mxu0 %v9470_v51  ;;  %2017 = vmatpush.msrb.mxu1 %v9470_v51  ;;  %v9545_v2 = vpop.permute.xlu0 %210 }
 0x10d   :  { %893 = vperm.xlu2 %8041, %v9479_v53   ;;  %1363 = vperm.xlu0 %8044, %v9454_v47  }
 0x10e   :  { %620 = vmatpush.msra.mxu2 %v9454_v47  ;;  %1086 = vmatpush.msra.mxu3 %v9454_v47 }
 0x10f   :  { %1552 = vmatpush.msrb.mxu0 %v9454_v47  ;;  %2018 = vmatpush.msrb.mxu1 %v9454_v47  ;;  %v9553_v3 = vpop.permute.xlu2 %869 }
 0x110   :  { %621 = vmatpush.msra.mxu2 %v9479_v53  ;;  %1087 = vmatpush.msra.mxu3 %v9479_v53 }
 0x111   :  { %1553 = vmatpush.msrb.mxu0 %v9479_v53  ;;  %2019 = vmatpush.msrb.mxu1 %v9479_v53 }
 0x112   :  { %8056 = vset.pattern.permute.xlu1 %v14523_v15  ;;  %622 = vmatpush.msra.mxu2 %v9438_v43 }
 0x113   :  { %1379 = vperm.xlu1 %8056, %v9507_v61   ;;  %1088 = vmatpush.msra.mxu3 %v9438_v43  ;;  %v9645_v40 = vpop.permute.xlu1 %865 }
 0x114   :  { %1554 = vmatpush.msrb.mxu0 %v9438_v43  ;;  %2020 = vmatpush.msrb.mxu1 %v9438_v43  ;;  %v9565_v4 = vpop.permute.xlu0 %395 }
 0x115   :  { %623 = vmatpush.msra.mxu2 %v9428_v41  ;;  %1089 = vmatpush.msra.mxu3 %v9428_v41 }
 0x116   :  { %1555 = vmatpush.msrb.mxu0 %v9428_v41  ;;  %2021 = vmatpush.msrb.mxu1 %v9428_v41 }
 0x117   :  { %8042 = vset.pattern.permute.xlu2 %v14523_v15  ;;  %232 = vrot.lane.b32.xlu0 %v9527_v0, %s9162_s18  ;;  %v9574_v5 = vpop.permute.xlu2 %216 }
 0x118   :  { %1359 = vperm.xlu2 %8042, %v9479_v53   ;;  %624 = vmatpush.msra.mxu2 %v9419_v39 }
 0x119   :  { %1090 = vmatpush.msra.mxu3 %v9419_v39  ;;  %1556 = vmatpush.msrb.mxu0 %v9419_v39 }
 0x11a   :  { %2022 = vmatpush.msrb.mxu1 %v9419_v39  ;;  %625 = vmatpush.msra.mxu2 %v9409_v36 }
 0x11b   :  { %1091 = vmatpush.msra.mxu3 %v9409_v36  ;;  %1557 = vmatpush.msrb.mxu0 %v9409_v36  ;;  %v215_v44 = vpop.permute.xlu1 %214 }
 0x11c   :  { %2023 = vmatpush.msrb.mxu1 %v9409_v36  ;;  %626 = vmatpush.msra.mxu2 %v9401_v35 }
 0x11d   :  { %1092 = vmatpush.msra.mxu3 %v9401_v35  ;;  %1558 = vmatpush.msrb.mxu0 %v9401_v35  ;;  %v9588_v20 = vpop.permute.xlu0 %1331 }
 0x11e   :  { %2024 = vmatpush.msrb.mxu1 %v9401_v35  ;;  %8048 = vset.pattern.permute.xlu0 %v14521_v16 }
 0x11f   :  { %627 = vmatpush.msra.mxu2 %v9392_v32  ;;  %1093 = vmatpush.msra.mxu3 %v9392_v32  ;;  %v9599_v25 = vpop.permute.xlu2 %1339 }
 0x120   :  { %1559 = vmatpush.msrb.mxu0 %v9392_v32  ;;  %2025 = vmatpush.msrb.mxu1 %v9392_v32 }
 0x121   :  { %439 = vperm.xlu0 %8048, %v9527_v0   ;;  %230 = vrot.lane.b32.xlu2 %v9470_v51, %s9162_s18 }
 0x122   :  { %628 = vmatpush.msra.mxu2 %v9378_v30  ;;  %1094 = vmatpush.msra.mxu3 %v9378_v30 }
 0x123   :  { %1560 = vmatpush.msrb.mxu0 %v9378_v30  ;;  %2026 = vmatpush.msrb.mxu1 %v9378_v30  ;;  %v9668_v46 = vpop.permute.xlu1 %1335 }
 0x124   :  { %629 = vmatpush.msra.mxu2 %v9371_v28  ;;  %1095 = vmatpush.msra.mxu3 %v9371_v28 }
 0x125   :  { %1561 = vmatpush.msrb.mxu0 %v9371_v28  ;;  %2027 = vmatpush.msrb.mxu1 %v9371_v28 }
 0x126   :  { %630 = vmatpush.msra.mxu2 %v9364_v26  ;;  %1096 = vmatpush.msra.mxu3 %v9364_v26  ;;  %v9611_v27 = vpop.permute.xlu0 %407 }
 0x127   :  { %1562 = vmatpush.msrb.mxu0 %v9364_v26  ;;  %2028 = vmatpush.msrb.mxu1 %v9364_v26  ;;  %v219_v29 = vpop.permute.xlu2 %218 }
 0x128   :  { %8045 = vset.pattern.permute.xlu2 %v14521_v16 }
 0x129   :  { %8052 = vset.pattern.permute.xlu0 %v14519_v18  ;;  %435 = vperm.xlu2 %8045, %v9470_v51  }
 0x12a   :  { %909 = vperm.xlu0 %8052, %v9495_v57  }
 0x12c   :  { %v9676_v11 = vpop.permute.xlu1 %877 }
 0x12f   :  { %v9623_v33 = vpop.permute.xlu0 %873  ;;  %v9631_v6 = vpop.permute.xlu2 %411 }
 0x131   :  { %8049 = vset.pattern.permute.xlu2 %v14519_v18 }
 0x132   :  { %8053 = vset.pattern.permute.xlu0 %v14523_v15  ;;  %905 = vperm.xlu2 %8049, %v9527_v0  }
 0x133   :  { %1375 = vperm.xlu0 %8053, %v9495_v57  }
 0x135   :  { %v9687_v12 = vpop.permute.xlu1 %1343 }
 0x137   :  { %v221_v37 = vpop.permute.xlu0 %220 }
 0x138   :  { %v9639_v7 = vpop.permute.xlu2 %881 }
 0x13a   :  { %8050 = vset.pattern.permute.xlu2 %v14523_v15 }
 0x13b   :  { %8054 = vset.pattern.permute.xlu0 %v14521_v16  ;;  %1371 = vperm.xlu2 %8050, %v9527_v0  }
 0x13c   :  { %447 = vperm.xlu0 %8054, %v9507_v61  }
 0x13f   :  { %v9641_v38 = vpop.permute.xlu0 %415 }
 0x141   :  { %v9656_v42 = vpop.permute.xlu2 %1347 }
 0x143   :  { %8051 = vset.pattern.permute.xlu2 %v14521_v16 }
 0x144   :  { %443 = vperm.xlu2 %8051, %v9495_v57   ;;  %238 = vrot.lane.b32.xlu0 %v9510_v62, %s9162_s18 }
 0x148   :  { %256 = vxpose.xlu1.b32.start [1/16] (narrow) %v9499_v58, 8  ;;  %v9652_v8 = vpop.permute.xlu0 %885  ;;  %v223_v58 = vpop.permute.xlu1 %222 }
 0x14a   :  { %v9665_v45 = vpop.permute.xlu2 %419 }
 0x14c   :  { %236 = vrot.lane.b32.xlu2 %v9507_v61, %s9162_s18 }
 0x150   :  { %257 = vxpose.xlu1.b32.cont [2/16] (narrow) %v9545_v2, 8  ;;  %v9701_v14 = vpop.permute.xlu1 %889 }
 0x151   :  { %v9663_v9 = vpop.permute.xlu0 %1351 }
 0x152   :  { %v225_v48 = vpop.permute.xlu2 %224 }
 0x154   :  { %451 = vperm.xlu2 %8051, %v9510_v62  }
 0x158   :  { %258 = vxpose.xlu1.b32.cont [3/16] (narrow) %v213_v34, 8 }
 0x15a   :  { %v9672_v10 = vpop.permute.xlu0 %423  ;;  %v9682_v54 = vpop.permute.xlu2 %427 }
 0x15c   :  { %8057 = vset.pattern.permute.xlu2 %v14519_v18 }
 0x15d   :  { %917 = vperm.xlu2 %8057, %v9510_v62  }
 0x160   :  { %259 = vxpose.xlu1.b32.cont [4/16] (narrow) %v215_v44, 8 }
 0x162   :  { %v227_v50 = vpop.permute.xlu0 %226 }
 0x165   :  { %8058 = vset.pattern.permute.xlu2 %v14523_v15 }
 0x166   :  { %1383 = vperm.xlu2 %8058, %v9510_v62  }
 0x167   :  { %v9693_v13 = vpop.permute.xlu2 %893 }
 0x168   :  { %260 = vxpose.xlu1.b32.cont [5/16] (narrow) %v9574_v5, 8 }
 0x16a   :  { %v9689_v56 = vpop.permute.xlu0 %431 }
 0x170   :  { %261 = vxpose.xlu1.b32.cont [6/16] (narrow) %v219_v29, 8  ;;  %v9707_v29 = vpop.permute.xlu1 %1355 }
 0x172   :  { %v9699_v2 = vpop.permute.xlu2 %1359 }
 0x173   :  { %v9697_v59 = vpop.permute.xlu0 %897 }
 0x178   :  { %262 = vxpose.xlu1.b32.cont [7/16] (narrow) %v221_v37, 8  ;;  %v229_v19 = vpop.permute.xlu1 %228 }
 0x17b   :  { %v231_v17 = vpop.permute.xlu2 %230 }
 0x17f   :  { %v9705_v5 = vpop.permute.xlu0 %1363 }
 0x180   :  { %263 = vxpose.xlu1.b32.cont [8/16] (narrow) %v223_v58, 8  ;;  %v9715_v58 = vpop.permute.xlu1 %901 }
 0x183   :  { %v9709_v37 = vpop.permute.xlu2 %435 }
 0x188   :  { %264 = vxpose.xlu1.b32.cont [9/16] (narrow) %v225_v48, 8  ;;  %v9721_v15 = vpop.permute.xlu1 %1367 }
 0x189   :  { %v233_v34 = vpop.permute.xlu0 %232 }
 0x18c   :  { %v9713_v18 = vpop.permute.xlu2 %905 }
 0x190   :  { %265 = vxpose.xlu1.b32.cont [10/16] (narrow) %v227_v50, 8  ;;  %v235_v50 = vpop.permute.xlu1 %234 }
 0x193   :  { %v9711_v44 = vpop.permute.xlu0 %439 }
 0x195   :  { %v9719_v16 = vpop.permute.xlu2 %1371 }
 0x198   :  { %266 = vxpose.xlu1.b32.cont [11/16] (narrow) %v229_v19, 8  ;;  %v9727_v61 = vpop.permute.xlu1 %913 }
 0x19c   :  { %v9717_v22 = vpop.permute.xlu0 %909 }
 0x19e   :  { %v444_v23 = vpop.permute.xlu2 %443 }
 0x1a0   :  { %267 = vxpose.xlu1.b32.cont [12/16] (narrow) %v231_v17, 8  ;;  %v9729_v17 = vpop.permute.xlu1 %1379 }
 0x1a5   :  { %v9723_v48 = vpop.permute.xlu0 %1375 }
 0x1a6   :  { %v237_v19 = vpop.permute.xlu2 %236 }
 0x1a8   :  { %268 = vxpose.xlu1.b32.cont [13/16] (narrow) %v233_v34, 8 }
 0x1ae   :  { %v9725_v24 = vpop.permute.xlu0 %447 }
 0x1b0   :  { %269 = vxpose.xlu1.b32.cont [14/16] (narrow) %v235_v50, 8 }
 0x1b6   :  { %v239_v21 = vpop.permute.xlu0 %238 }
 0x1b8   :  { %270 = vxpose.xlu1.b32.cont [15/16] (narrow) %v237_v19, 8 }
 0x1c0   :  { %271 = vxpose.xlu1.b32.end [16/16] (narrow) %v239_v21, 8 }
 0x1ec   :  { %v9731_v57 = vpop.trf.xlu1 }
 0x1ed   :  { %v9734_v51 = vperm.slane %v9731_v57, 0 }
 0x1ef   :  { %v456_v34 = vadd.f32 %v9734_v51, %v9565_v4  ;;  %v455_v50 = vadd.f32 %v9734_v51, %v9461_v49  ;;  %v457_v41 = vadd.f32 %v9734_v51, %v9503_v60  ;;  %v458_v62 = vadd.f32 %v9734_v51, %v9531_v1 }
 0x1f1   :  { %v472_v47 = vmul.f32 0.2, %v456_v34  ;;  %v471_v43 = vmul.f32 0.2, %v455_v50  ;;  %v473_v4 = vmul.f32 0.2, %v457_v41 }
 0x1f2   :  { %v474_v36 = vmul.f32 0.2, %v458_v62 }
 0x1f3   :  { %v9740_v19 = vmax.f32 %v456_v34, %v472_v47  ;;  %v9742_v21 = vmax.f32 %v455_v50, %v471_v43  ;;  %v9750_v30 = vmax.f32 %v457_v41, %v473_v4  ;;  %v459_v43 = vadd.f32 %v9734_v51, %v9611_v27 }
 0x1f4   :  { %v9752_v49 = vmax.f32 %v458_v62, %v474_v36  ;;  %v460_v47 = vadd.f32 %v9734_v51, %v9631_v6  ;;  %v461_v36 = vadd.f32 %v9734_v51, %v9641_v38  ;;  %v462_v41 = vadd.f32 %v9734_v51, %v9665_v45 }
 0x1f5   :  { %505 = vmax.xlane.f32.xlu2 %v9740_v19  ;;  %503 = vmax.xlane.f32.xlu0 %v9742_v21  ;;  %v475_v60 = vmul.f32 0.2, %v459_v43 }
 0x1f6   :  { %v476_v1 = vmul.f32 0.2, %v460_v47  ;;  %v477_v62 = vmul.f32 0.2, %v461_v36  ;;  %v478_v27 = vmul.f32 0.2, %v462_v41 }
 0x1f7   :  { %v9760_v34 = vmax.f32 %v459_v43, %v475_v60  ;;  %v463_v43 = vadd.f32 %v9734_v51, %v9672_v10  ;;  %v9781_v60 = vperm.slane %v9731_v57, 1  ;;  %v466_v10 = vadd.f32 %v9734_v51, %v9709_v37 }
 0x1f8   :  { %v9762_v50 = vmax.f32 %v460_v47, %v476_v1  ;;  %v9770_v6 = vmax.f32 %v461_v36, %v477_v62  ;;  %v9772_v4 = vmax.f32 %v462_v41, %v478_v27  ;;  %v464_v47 = vadd.f32 %v9734_v51, %v9682_v54 }
 0x1f9   :  { %v479_v38 = vmul.f32 0.2, %v463_v43  ;;  %v465_v41 = vadd.f32 %v9734_v51, %v9689_v56  ;;  %v922_v54 = vadd.f32 %v9781_v60, %v9476_v52  ;;  %v482_v27 = vmul.f32 0.2, %v466_v10 }
 0x1fa   :  { %v480_v45 = vmul.f32 0.2, %v464_v47  ;;  %v467_v56 = vadd.f32 %v9734_v51, %v9711_v44  ;;  %v925_v52 = vadd.f32 %v9781_v60, %v9623_v33  ;;  %v928_v33 = vadd.f32 %v9781_v60, %v9652_v8 }
 0x1fb   :  { %v9783_v1 = vmax.f32 %v463_v43, %v479_v38  ;;  %v481_v62 = vmul.f32 0.2, %v465_v41  ;;  %v938_v0 = vmul.f32 0.2, %v922_v54  ;;  %v468_v38 = vadd.f32 %v9734_v51, %v444_v23 }
 0x1fc   :  { %v9785_v36 = vmax.f32 %v464_v47, %v480_v45  ;;  %v9797_v47 = vmax.f32 %v466_v10, %v482_v27  ;;  %v483_v45 = vmul.f32 0.2, %v467_v56  ;;  %v941_v10 = vmul.f32 0.2, %v925_v52 }
 0x1fd   :  { %507 = vmax.xlane.f32.xlu2 %v9750_v30  ;;  %509 = vmax.xlane.f32.xlu0 %v9752_v49  ;;  %v9795_v43 = vmax.f32 %v465_v41, %v481_v62  ;;  %v9804_v37 = vmax.f32 %v922_v54, %v938_v0  ;;  %v452_v41 = vpop.permute.xlu2 %451  ;;  %v469_v23 = vadd.f32 %v9734_v51, %v9725_v24 }
 0x1fe   :  { %14654 = vst [vmem:[#allocation20_spill] sm:$0xff] %v9785_v36  ;;  %v9809_v62 = vmax.f32 %v467_v56, %v483_v45  ;;  %v470_v27 = vadd.f32 %v9734_v51, %v452_v41  ;;  %v9818_v0 = vmax.f32 %v925_v52, %v941_v10  ;;  %v923_v24 = vadd.f32 %v9781_v60, %v9645_v40 }
 0x1ff   :  { %14655 = vst [vmem:[#allocation21_spill] sm:$0xff] %v9797_v47  ;;  %v485_v54 = vmul.f32 0.2, %v469_v23  ;;  %v921_v51 = vadd.f32 %v9781_v60, %v9522_v63  ;;  %v931_v52 = vadd.f32 %v9781_v60, %v9697_v59  ;;  %v926_v63 = vadd.f32 %v9781_v60, %v9676_v11 }
 0x200   :  { %v939_v45 = vmul.f32 0.2, %v923_v24 }
 0x201   :  { %v9823_v56 = vmax.f32 %v469_v23, %v485_v54  ;;  %v937_v41 = vmul.f32 0.2, %v921_v51  ;;  %v924_v23 = vadd.f32 %v9781_v60, %v9553_v3 }
 0x202   :  { %v9838_v10 = vmax.f32 %v923_v24, %v939_v45 }
 0x203   :  { %v9840_v40 = vmax.f32 %v921_v51, %v937_v41  ;;  %v940_v54 = vmul.f32 0.2, %v924_v23  ;;  %v929_v51 = vadd.f32 %v9781_v60, %v9701_v14 }
 0x205   :  { %511 = vmax.xlane.f32.xlu2 %v9760_v34  ;;  %513 = vmax.xlane.f32.xlu0 %v9762_v50  ;;  %v9858_v3 = vmax.f32 %v924_v23, %v940_v54  ;;  %v945_v41 = vmul.f32 0.2, %v929_v51 }
 0x207   :  { %v9871_v23 = vmax.f32 %v929_v51, %v945_v41  ;;  %v933_v41 = vadd.f32 %v9781_v60, %v9713_v18 }
 0x20d   :  { %515 = vmax.xlane.f32.xlu2 %v9770_v6  ;;  %517 = vmax.xlane.f32.xlu0 %v9772_v4 }
 0x215   :  { %519 = vmax.xlane.f32.xlu2 %v9783_v1  ;;  %521 = vmax.xlane.f32.xlu0 %v9785_v36  ;;  %v484_v36 = vmul.f32 0.2, %v468_v38 }
 0x217   :  { %v9811_v44 = vmax.f32 %v468_v38, %v484_v36  ;;  %v944_v36 = vmul.f32 0.2, %v928_v33 }
 0x219   :  { %v9833_v8 = vmax.f32 %v928_v33, %v944_v36  ;;  %v942_v33 = vmul.f32 0.2, %v926_v63  ;;  %v9854_v36 = vperm.slane %v9731_v57, 2 }
 0x21b   :  { %v9856_v24 = vmax.f32 %v926_v63, %v942_v33  ;;  %v1388_v45 = vadd.f32 %v9854_v36, %v9489_v55  ;;  %v930_v33 = vadd.f32 %v9781_v60, %v9693_v13  ;;  %v935_v13 = vadd.f32 %v9781_v60, %v9727_v61 }
 0x21c   :  { %v1389_v18 = vadd.f32 %v9854_v36, %v9588_v20  ;;  %v1391_v20 = vadd.f32 %v9854_v36, %v9599_v25 }
 0x21d   :  { %523 = vmax.xlane.f32.xlu2 %v9795_v43  ;;  %525 = vmax.xlane.f32.xlu0 %v9797_v47  ;;  %v486_v47 = vmul.f32 0.2, %v470_v27  ;;  %v1404_v63 = vmul.f32 0.2, %v1388_v45 }
 0x21f   :  { %v9825_v38 = vmax.f32 %v470_v27, %v486_v47  ;;  %v947_v47 = vmul.f32 0.2, %v931_v52  ;;  %v934_v27 = vadd.f32 %v9781_v60, %v9717_v22  ;;  %v9881_v55 = vmax.f32 %v1388_v45, %v1404_v63 }
 0x220   :  { %971 = vmax.xlane.f32.xlu1 %v9804_v37  ;;  %v1395_v45 = vadd.f32 %v9854_v36, %v9707_v29  ;;  %v949_v63 = vmul.f32 0.2, %v933_v41 }
 0x221   :  { %v9848_v59 = vmax.f32 %v931_v52, %v947_v47  ;;  %v950_v11 = vmul.f32 0.2, %v934_v27  ;;  %v927_v52 = vadd.f32 %v9781_v60, %v9639_v7  ;;  %v932_v7 = vadd.f32 %v9781_v60, %v9715_v58 }
 0x222   :  { %v9903_v61 = vmax.f32 %v933_v41, %v949_v63  ;;  %v1407_v63 = vmul.f32 0.2, %v1391_v20 }
 0x223   :  { %v9866_v22 = vmax.f32 %v934_v27, %v950_v11  ;;  %v943_v47 = vmul.f32 0.2, %v927_v52  ;;  %v1392_v27 = vadd.f32 %v9854_v36, %v9687_v12  ;;  %v948_v54 = vmul.f32 0.2, %v932_v7 }
 0x224   :  { %v946_v11 = vmul.f32 0.2, %v930_v33 }
 0x225   :  { %527 = vmax.xlane.f32.xlu2 %v9809_v62  ;;  %529 = vmax.xlane.f32.xlu0 %v9811_v44  ;;  %14656 = vst [vmem:[#allocation22_spill] sm:$0xff] %v9866_v22  ;;  %v9873_v14 = vmax.f32 %v927_v52, %v943_v47  ;;  %v1408_v51 = vmul.f32 0.2, %v1392_v27  ;;  %v9886_v52 = vmax.f32 %v932_v7, %v948_v54  ;;  %v951_v47 = vmul.f32 0.2, %v935_v13  ;;  %v918_v7 = vpop.permute.xlu2 %917 }
 0x226   :  { %v9888_v58 = vmax.f32 %v930_v33, %v946_v11  ;;  %v1411_v33 = vmul.f32 0.2, %v1395_v45  ;;  %v936_v11 = vadd.f32 %v9781_v60, %v918_v7  ;;  %v1387_v60 = vadd.f32 %v9854_v36, %v9621_v31 }
 0x227   :  { %v9896_v12 = vmax.f32 %v1392_v27, %v1408_v51  ;;  %v9901_v54 = vmax.f32 %v935_v13, %v951_v47  ;;  %v1398_v27 = vadd.f32 %v9854_v36, %v9721_v15  ;;  %v1405_v51 = vmul.f32 0.2, %v1389_v18 }
 0x228   :  { %977 = vmax.xlane.f32.xlu1 %v9818_v0  ;;  %v9910_v29 = vmax.f32 %v1395_v45, %v1411_v33  ;;  %v1401_v45 = vadd.f32 %v9854_v36, %v9729_v17  ;;  %v1403_v7 = vmul.f32 0.2, %v1387_v60  ;;  %v9935_v31 = vmax.f32 %v1391_v20, %v1407_v63 }
 0x229   :  { %v1414_v13 = vmul.f32 0.2, %v1398_v27  ;;  %v9915_v41 = vmax.f32 %v1389_v18, %v1405_v51  ;;  %v1394_v17 = vadd.f32 %v9854_v36, %v9663_v9  ;;  %v1397_v9 = vadd.f32 %v9854_v36, %v9705_v5 }
 0x22a   :  { %v1417_v25 = vmul.f32 0.2, %v1401_v45  ;;  %v9937_v18 = vmax.f32 %v1387_v60, %v1403_v7 }
 0x22b   :  { %v9925_v15 = vmax.f32 %v1398_v27, %v1414_v13  ;;  %v1410_v51 = vmul.f32 0.2, %v1394_v17 }
 0x22c   :  { %v9945_v27 = vmax.f32 %v1401_v45, %v1417_v25  ;;  %v1393_v45 = vadd.f32 %v9854_v36, %v9656_v42 }
 0x22d   :  { %531 = vmax.xlane.f32.xlu2 %v9823_v56  ;;  %533 = vmax.xlane.f32.xlu0 %v9825_v38  ;;  %14657 = vst [vmem:[#allocation23_spill] sm:$0xff] %v9925_v15  ;;  %v9929_v33 = vpop.permute.xlu2 %1383 }
 0x22e   :  { %14658 = vst [vmem:[#allocation24_spill] sm:$0xff] %v9945_v27 }
 0x230   :  { %983 = vmax.xlane.f32.xlu1 %v9833_v8 }
 0x235   :  { %973 = vmax.xlane.f32.xlu2 %v9838_v10  ;;  %969 = vmax.xlane.f32.xlu0 %v9840_v40 }
 0x238   :  { %989 = vmax.xlane.f32.xlu1 %v9848_v59 }
 0x23d   :  { %979 = vmax.xlane.f32.xlu2 %v9856_v24  ;;  %975 = vmax.xlane.f32.xlu0 %v9858_v3 }
 0x240   :  { %995 = vmax.xlane.f32.xlu1 %v9866_v22  ;;  %v952_v22 = vmul.f32 0.2, %v936_v11 }
 0x242   :  { %v9917_v47 = vmax.f32 %v936_v11, %v952_v22  ;;  %v14544_v22 = vmov 72   ;;  %v1390_v11 = vadd.f32 %v9854_v36, %v9668_v46 }
 0x243   :  { %8059 = vset.pattern.permute.xlu2 %v14544_v22  ;;  %8060 = vset.pattern.permute.xlu1 %v14544_v22 }
 0x244   :  { %8061 = vset.pattern.permute.xlu0 %v14544_v22  ;;  %v1406_v13 = vmul.f32 0.2, %v1390_v11  ;;  %v9951_v22 = vmax.f32 %v1394_v17, %v1410_v51  ;;  %v9963_v17 = vld [vmem:[%s14508_s1] sm:$0xff]  ;;  %v1396_v51 = vadd.f32 %v9854_v36, %v9699_v2  ;;  %v9980_v2 = vld [vmem:[%s14508_s1 + $0x8] sm:$0xff] }
 0x245   :  { %985 = vmax.xlane.f32.xlu2 %v9871_v23  ;;  %981 = vmax.xlane.f32.xlu0 %v9873_v14 }
 0x246   :  { %v9953_v46 = vmax.f32 %v1390_v11, %v1406_v13 }
 0x248   :  { %1437 = vmax.xlane.f32.xlu1 %v9881_v55 }
 0x24d   :  { %991 = vmax.xlane.f32.xlu2 %v9886_v52  ;;  %987 = vmax.xlane.f32.xlu0 %v9888_v58 }
 0x250   :  { %1445 = vmax.xlane.f32.xlu1 %v9896_v12 }
 0x255   :  { %997 = vmax.xlane.f32.xlu2 %v9901_v54  ;;  %993 = vmax.xlane.f32.xlu0 %v9903_v61 }
 0x258   :  { %1451 = vmax.xlane.f32.xlu1 %v9910_v29 }
 0x25d   :  { %1439 = vmax.xlane.f32.xlu2 %v9915_v41  ;;  %999 = vmax.xlane.f32.xlu0 %v9917_v47 }
 0x260   :  { %1457 = vmax.xlane.f32.xlu1 %v9925_v15 }
 0x265   :  { %1443 = vmax.xlane.f32.xlu2 %v9935_v31  ;;  %1435 = vmax.xlane.f32.xlu0 %v9937_v18 }
 0x268   :  { %1463 = vmax.xlane.f32.xlu1 %v9945_v27  ;;  %v506_v20 = vpop.xlane.xlu2 %505  ;;  %v504_v63 = vpop.xlane.xlu0 %503  ;;  %v1413_v27 = vmul.f32 0.2, %v1397_v9 }
 0x269   :  { %v535_v60 = vsub.f32 %v9742_v21, %v504_v63  ;;  %v536_v25 = vsub.f32 %v9740_v19, %v506_v20  ;;  %v1409_v21 = vmul.f32 0.2, %v1393_v45  ;;  %v1400_v19 = vadd.f32 %v9854_v36, %v9723_v48 }
 0x26a   :  { %v9965_v11 = vmax.f32 %v1397_v9, %v1413_v27  ;;  %v1412_v9 = vmul.f32 0.2, %v1396_v51 }
 0x26b   :  { %v551_v7 = vmul.f32 1.442695, %v535_v60  ;;  %v553_v63 = vmul.f32 1.442695, %v536_v25  ;;  %v9967_v42 = vmax.f32 %v1393_v45, %v1409_v21  ;;  %v1416_v27 = vmul.f32 0.2, %v1400_v19 }
 0x26c   :  { %14659 = vst [vmem:[#allocation25_spill] sm:$0xff] %v9965_v11 }
 0x26d   :  { %1449 = vmax.xlane.f32.xlu2 %v9951_v22  ;;  %1441 = vmax.xlane.f32.xlu0 %v9953_v46  ;;  %8166 = vpow2.f32 %v551_v7  ;;  %v9982_v21 = vmax.f32 %v1400_v19, %v1416_v27 }
 0x26e   :  { %8168 = vpow2.f32 %v553_v63 }
 0x26f   :  { %14660 = vst [vmem:[#allocation26_spill] sm:$0xff] %v9982_v21 }
 0x270   :  { %v508_v15 = vpop.xlane.xlu2 %507  ;;  %v510_v5 = vpop.xlane.xlu0 %509 }
 0x271   :  { %v537_v20 = vsub.f32 %v9750_v30, %v508_v15  ;;  %v9984_v30 = vmax.f32 %v1396_v51, %v1412_v9  ;;  %v1399_v15 = vadd.f32 %v9854_v36, %v9719_v16  ;;  %v538_v63 = vsub.f32 %v9752_v49, %v510_v5  ;;  %v9996_v16 = vld [vmem:[%s14508_s1 + $0x10] sm:$0xff] }
 0x272   :  { %v1402_v5 = vadd.f32 %v9854_v36, %v9929_v33 }
 0x273   :  { %v8167_v13 = vpop.eup %8166  ;;  %v555_v7 = vmul.f32 1.442695, %v537_v20  ;;  %14661 = vst [vmem:[#allocation27_spill] sm:$0xff] %v9984_v30  ;;  %v1415_v20 = vmul.f32 0.2, %v1399_v15 }
 0x274   :  { %v599_v60 = vmul.f32 %v8167_v13, %v9963_v17  ;;  %v8169_v48 = vpop.eup %8168 }
 0x275   :  { %1455 = vmax.xlane.f32.xlu2 %v9965_v11  ;;  %1447 = vmax.xlane.f32.xlu0 %v9967_v42  ;;  %8170 = vpow2.f32 %v555_v7  ;;  %v600_v13 = vmul.f32 %v8169_v48, %v9980_v2  ;;  %v9998_v49 = vmax.f32 %v1399_v15, %v1415_v20  ;;  %v10009_v15 = vld [vmem:[%s14508_s1 + $0x18] sm:$0xff] }
 0x276   :  { %631 = vmatmul.f32.vlgmr.msra.gmra.mxu2 %v599_v60  ;;  %v557_v60 = vmul.f32 1.442695, %v538_v63 }
 0x277   :  { %14662 = vst [vmem:[#allocation28_spill] sm:$0xff] %v9998_v49 }
 0x278   :  { %v512_v45 = vpop.xlane.xlu2 %511  ;;  %v514_v25 = vpop.xlane.xlu0 %513  ;;  %8172 = vpow2.f32 %v557_v60 }
 0x279   :  { %v539_v27 = vsub.f32 %v9760_v34, %v512_v45  ;;  %v540_v34 = vsub.f32 %v9762_v50, %v514_v25 }
 0x27b   :  { %v8171_v51 = vpop.eup %8170  ;;  %v559_v7 = vmul.f32 1.442695, %v539_v27  ;;  %v561_v45 = vmul.f32 1.442695, %v540_v34 }
 0x27c   :  { %v601_v9 = vmul.f32 %v8171_v51, %v9996_v16  ;;  %v10024_v51 = vld [vmem:[%s14508_s1 + $0x20] sm:$0xff] }
 0x27d   :  { %1461 = vmax.xlane.f32.xlu2 %v9982_v21  ;;  %1453 = vmax.xlane.f32.xlu0 %v9984_v30  ;;  %8174 = vpow2.f32 %v559_v7  ;;  %v10037_v7 = vld [vmem:[%s14508_s1 + $0x28] sm:$0xff] }
 0x27e   :  { %634 = vmatmul.f32.gmra.mxu2 %v600_v13  ;;  %v8173_v13 = vpop.eup %8172  ;;  %8176 = vpow2.f32 %v561_v45  ;;  %v14665_v45 = vld [vmem:[#allocation10_spill] sm:$0xff] }
 0x27f   :  { %v602_v33 = vmul.f32 %v8173_v13, %v10009_v15 }
 0x280   :  { %v516_v11 = vpop.xlane.xlu2 %515  ;;  %v518_v19 = vpop.xlane.xlu0 %517 }
 0x281   :  { %1793 = vperm.xlu1 %8060, %v9371_v28   ;;  %v1418_v28 = vmul.f32 0.2, %v1402_v5  ;;  %v541_v50 = vsub.f32 %v9770_v6, %v516_v11 }
 0x283   :  { %v10011_v36 = vmax.f32 %v1402_v5, %v1418_v28  ;;  %v8175_v60 = vpop.eup %8174  ;;  %v563_v27 = vmul.f32 1.442695, %v541_v50  ;;  %v10053_v50 = vld [vmem:[%s14508_s1 + $0x30] sm:$0xff] }
 0x284   :  { %v603_v25 = vmul.f32 %v8175_v60, %v10024_v51 }
 0x285   :  { %1459 = vmax.xlane.f32.xlu0 %v9998_v49  ;;  %14663 = vst [vmem:[#allocation29_spill] sm:$0xff] %v10011_v36  ;;  %8178 = vpow2.f32 %v563_v27  ;;  %v14671_v49 = vld [vmem:[#allocation14_spill] sm:$0xff] }
 0x286   :  { %637 = vmatmul.f32.gmra.mxu2 %v601_v9 }
 0x288   :  { %v520_v48 = vpop.xlane.xlu2 %519  ;;  %v522_v63 = vpop.xlane.xlu0 %521 }
 0x289   :  { %1805 = vperm.xlu1 %8060, %v9401_v35  }
 0x28d   :  { %1465 = vmax.xlane.f32.xlu0 %v10011_v36 }
 0x28e   :  { %640 = vmatmul.f32.gmra.mxu2 %v602_v33  ;;  %v14664_v33 = vld [vmem:[#allocation19_spill] sm:$0xff] }
 0x290   :  { %v10016_v20 = vpop.xlane.xlu2 %523  ;;  %v10018_v35 = vpop.xlane.xlu0 %525 }
 0x291   :  { %1813 = vperm.xlu1 %8060, %v9419_v39   ;;  %v8177_v39 = vpop.eup %8176 }
 0x292   :  { %v604_v6 = vmul.f32 %v8177_v39, %v10037_v7  ;;  %v8179_v60 = vpop.eup %8178 }
 0x293   :  { %v972_v5 = vpop.xlane.xlu1 %971 }
 0x295   :  { %1789 = vperm.xlu2 %8059, %v9364_v26   ;;  %v542_v26 = vsub.f32 %v9772_v4, %v518_v19  ;;  %v14666_v19 = vld [vmem:[#allocation11_spill] sm:$0xff] }
 0x296   :  { %643 = vmatmul.f32.gmra.mxu2 %v603_v25  ;;  %v605_v25 = vmul.f32 %v8179_v60, %v10053_v50  ;;  %v1002_v60 = vsub.f32 %v9804_v37, %v972_v5  ;;  %v10080_v37 = vld [vmem:[%s14508_s1 + $0x40] sm:$0xff] }
 0x297   :  { %v565_v11 = vmul.f32 1.442695, %v542_v26 }
 0x298   :  { %v10029_v9 = vpop.xlane.xlu2 %527  ;;  %v10031_v28 = vpop.xlane.xlu0 %529 }
 0x299   :  { %1825 = vperm.xlu1 %8060, %v9479_v53   ;;  %8180 = vpow2.f32 %v565_v11 }
 0x29b   :  { %v10039_v13 = vpop.xlane.xlu1 %977 }
 0x29d   :  { %1801 = vperm.xlu2 %8059, %v9392_v32   ;;  %v543_v32 = vsub.f32 %v9783_v1, %v520_v48  ;;  %v10066_v1 = vld [vmem:[%s14508_s1 + $0x38] sm:$0xff]  ;;  %v14669_v48 = vld [vmem:[#allocation20_spill] sm:$0xff] }
 0x29e   :  { %646 = vmatmul.f32.gmra.mxu2 %v604_v6  ;;  %v544_v11 = vsub.f32 %v14669_v48, %v522_v63 }
 0x29f   :  { %v567_v27 = vmul.f32 1.442695, %v543_v32  ;;  %v8181_v36 = vpop.eup %8180  ;;  %v14670_v32 = vld [vmem:[#allocation13_spill] sm:$0xff] }
 0x2a0   :  { %v10044_v34 = vpop.xlane.xlu2 %531  ;;  %v10046_v53 = vpop.xlane.xlu0 %533 }
 0x2a1   :  { %1837 = vperm.xlu1 %8060, %v14664_v33   ;;  %1797 = vperm.xlu0 %8061, %v14665_v45   ;;  %v14667_v33 = vld [vmem:[#allocation18_spill] sm:$0xff]  ;;  %v14668_v45 = vld [vmem:[#allocation12_spill] sm:$0xff]  ;;  %8182 = vpow2.f32 %v567_v27 }
 0x2a3   :  { %v10056_v4 = vpop.xlane.xlu1 %983 }
 0x2a5   :  { %1809 = vperm.xlu2 %8059, %v14666_v19  }
 0x2a6   :  { %649 = vmatmul.f32.gmra.mxu2 %v605_v25  ;;  %v569_v25 = vmul.f32 1.442695, %v544_v11 }
 0x2a7   :  { %v8183_v63 = vpop.eup %8182 }
 0x2a8   :  { %v974_v39 = vpop.xlane.xlu2 %973  ;;  %v970_v26 = vpop.xlane.xlu0 %969  ;;  %v607_v48 = vmul.f32 %v8183_v63, %v10080_v37 }
 0x2a9   :  { %v1001_v6 = vsub.f32 %v9840_v40, %v970_v26  ;;  %1849 = vperm.xlu1 %8060, %v14667_v33   ;;  %1817 = vperm.xlu0 %8061, %v14668_v45   ;;  %v606_v40 = vmul.f32 %v8181_v36, %v10066_v1  ;;  %v1019_v33 = vmul.f32 1.442695, %v1002_v60  ;;  %v545_v36 = vsub.f32 %v9795_v43, %v10016_v20  ;;  %v14673_v20 = vld [vmem:[#allocation16_spill] sm:$0xff] }
 0x2aa   :  { %v1003_v27 = vsub.f32 %v9838_v10, %v974_v39  ;;  %v10098_v39 = vld [vmem:[%s14508_s1 + $0x48] sm:$0xff] }
 0x2ab   :  { %v1017_v19 = vmul.f32 1.442695, %v1001_v6  ;;  %v10072_v26 = vpop.xlane.xlu1 %989  ;;  %v14672_v6 = vld [vmem:[#allocation15_spill] sm:$0xff]  ;;  %v571_v11 = vmul.f32 1.442695, %v545_v36  ;;  %v14675_v36 = vld [vmem:[#allocation17_spill] sm:$0xff] }
 0x2ad   :  { %1821 = vperm.xlu2 %8059, %v14670_v32   ;;  %8184 = vpow2.f32 %v1017_v19  ;;  %v1021_v19 = vmul.f32 1.442695, %v1003_v27 }
 0x2ae   :  { %652 = vmatmul.f32.gmra.mxu2 %v606_v40  ;;  %8186 = vpow2.f32 %v569_v25  ;;  %v14674_v25 = vld [vmem:[#allocation21_spill] sm:$0xff] }
 0x2af   :  { %8188 = vpow2.f32 %v1019_v33  ;;  %v546_v33 = vsub.f32 %v14674_v25, %v10018_v35 }
 0x2b0   :  { %v10074_v45 = vpop.xlane.xlu2 %979  ;;  %v976_v21 = vpop.xlane.xlu0 %975  ;;  %8190 = vpow2.f32 %v571_v11 }
 0x2b1   :  { %1829 = vperm.xlu0 %8061, %v14671_v49   ;;  %8192 = vpow2.f32 %v1021_v19  ;;  %v1004_v63 = vsub.f32 %v9858_v3, %v976_v21  ;;  %v10113_v3 = vld [vmem:[%s14508_s1 + $0x50] sm:$0xff]  ;;  %v547_v21 = vsub.f32 %v9809_v62, %v10029_v9  ;;  %v1005_v19 = vsub.f32 %v9818_v0, %v10039_v13  ;;  %v10128_v62 = vld [vmem:[%s14508_s1 + $0x58] sm:$0xff] }
 0x2b2   :  { %v548_v0 = vsub.f32 %v9811_v44, %v10031_v28  ;;  %v10143_v44 = vld [vmem:[%s14508_s1 + $0x60] sm:$0xff] }
 0x2b3   :  { %v8185_v5 = vpop.eup %8184  ;;  %v10092_v43 = vpop.xlane.xlu1 %995  ;;  %v575_v25 = vmul.f32 1.442695, %v547_v21 }
 0x2b4   :  { %v1065_v49 = vmul.f32 %v8185_v5, %v9963_v17  ;;  %v8187_v40 = vpop.eup %8186 }
 0x2b5   :  { %1833 = vperm.xlu2 %8059, %v14672_v6   ;;  %v8189_v10 = vpop.eup %8188  ;;  %v608_v5 = vmul.f32 %v8187_v40, %v10098_v39  ;;  %v573_v6 = vmul.f32 1.442695, %v546_v33  ;;  %v1025_v33 = vmul.f32 1.442695, %v1005_v19 }
 0x2b6   :  { %655 = vmatmul.f32.gmra.mxu2 %v607_v48  ;;  %1097 = vmatmul.f32.vlgmr.msra.gmra.mxu3 %v1065_v49  ;;  %v1066_v27 = vmul.f32 %v8189_v10, %v9980_v2  ;;  %v1023_v48 = vmul.f32 1.442695, %v1004_v63  ;;  %v8191_v11 = vpop.eup %8190 }
 0x2b7   :  { %v8193_v30 = vpop.eup %8192  ;;  %8194 = vpow2.f32 %v573_v6  ;;  %v609_v40 = vmul.f32 %v8191_v11, %v10113_v3 }
 0x2b8   :  { %v10088_v60 = vpop.xlane.xlu2 %985  ;;  %v10090_v32 = vpop.xlane.xlu0 %981  ;;  %8196 = vpow2.f32 %v1023_v48  ;;  %v1067_v10 = vmul.f32 %v8193_v30, %v9996_v16  ;;  %v1006_v30 = vsub.f32 %v9856_v24, %v10074_v45  ;;  %v577_v48 = vmul.f32 1.442695, %v548_v0 }
 0x2b9   :  { %1841 = vperm.xlu0 %8061, %v14673_v20   ;;  %8198 = vpow2.f32 %v575_v25  ;;  %v549_v24 = vsub.f32 %v9823_v56, %v10044_v34  ;;  %v1007_v28 = vsub.f32 %v9873_v14, %v10090_v32  ;;  %v10159_v14 = vld [vmem:[%s14508_s1 + $0x68] sm:$0xff]  ;;  %v550_v32 = vsub.f32 %v9825_v38, %v10046_v53 }
 0x2ba   :  { %8200 = vpow2.f32 %v1025_v33  ;;  %v1027_v11 = vmul.f32 1.442695, %v1006_v30 }
 0x2bb   :  { %v1438_v35 = vpop.xlane.xlu1 %1437  ;;  %8202 = vpow2.f32 %v577_v48  ;;  %v579_v33 = vmul.f32 1.442695, %v549_v24  ;;  %v1008_v48 = vsub.f32 %v9833_v8, %v10056_v4  ;;  %v10175_v8 = vld [vmem:[%s14508_s1 + $0x70] sm:$0xff] }
 0x2bc   :  { %8204 = vpow2.f32 %v1027_v11  ;;  %v1468_v11 = vsub.f32 %v9881_v55, %v1438_v35 }
 0x2bd   :  { %1845 = vperm.xlu2 %8059, %v14675_v36   ;;  %8206 = vpow2.f32 %v579_v33  ;;  %v1031_v24 = vmul.f32 1.442695, %v1008_v48 }
 0x2be   :  { %658 = vmatmul.f32.gmra.mxu2 %v608_v5  ;;  %1100 = vmatmul.f32.gmra.mxu3 %v1066_v27  ;;  %v8195_v5 = vpop.eup %8194  ;;  %v1485_v38 = vmul.f32 1.442695, %v1468_v11 }
 0x2bf   :  { %v8197_v27 = vpop.eup %8196  ;;  %v610_v13 = vmul.f32 %v8195_v5, %v10128_v62 }
 0x2c0   :  { %v10106_v49 = vpop.xlane.xlu2 %991  ;;  %v10108_v20 = vpop.xlane.xlu0 %987  ;;  %v1068_v6 = vmul.f32 %v8197_v27, %v10009_v15  ;;  %v1029_v27 = vmul.f32 1.442695, %v1007_v28 }
 0x2c2   :  { %8208 = vpow2.f32 %v1029_v27 }
 0x2c3   :  { %v10134_v9 = vpop.xlane.xlu1 %1445 }
 0x2c6   :  { %661 = vmatmul.f32.gmra.mxu2 %v609_v40  ;;  %1103 = vmatmul.f32.gmra.mxu3 %v1067_v10  ;;  %v8199_v40 = vpop.eup %8198 }
 0x2c7   :  { %v8201_v10 = vpop.eup %8200  ;;  %v611_v45 = vmul.f32 %v8199_v40, %v10143_v44 }
 0x2c8   :  { %v10121_v63 = vpop.xlane.xlu2 %997  ;;  %v10123_v36 = vpop.xlane.xlu0 %993  ;;  %v1069_v25 = vmul.f32 %v8201_v10, %v10024_v51  ;;  %v581_v10 = vmul.f32 1.442695, %v550_v32 }
 0x2cb   :  { %v10151_v5 = vpop.xlane.xlu1 %1451 }
 0x2ce   :  { %664 = vmatmul.f32.gmra.mxu2 %v610_v13  ;;  %1106 = vmatmul.f32.gmra.mxu3 %v1068_v6  ;;  %v8203_v13 = vpop.eup %8202 }
 0x2cf   :  { %v8205_v34 = vpop.eup %8204  ;;  %v612_v40 = vmul.f32 %v8203_v13, %v10159_v14 }
 0x2d0   :  { %v1440_v21 = vpop.xlane.xlu2 %1439  ;;  %v10138_v19 = vpop.xlane.xlu0 %999 }
 0x2d1   :  { %v1469_v27 = vsub.f32 %v9915_v41, %v1440_v21 }
 0x2d3   :  { %v10170_v53 = vpop.xlane.xlu1 %1457 }
 0x2d6   :  { %667 = vmatmul.f32.gmra.mxu2 %v611_v45  ;;  %1109 = vmatmul.f32.gmra.mxu3 %v1069_v25  ;;  %v8207_v45 = vpop.eup %8206  ;;  %v1009_v25 = vsub.f32 %v9871_v23, %v10088_v60  ;;  %v10188_v23 = vld [vmem:[%s14508_s1 + $0x78] sm:$0xff] }
 0x2d7   :  { %v8209_v55 = vpop.eup %8208  ;;  %v613_v33 = vmul.f32 %v8207_v45, %v10175_v8 }
 0x2d8   :  { %v10153_v0 = vpop.xlane.xlu2 %1443  ;;  %v1436_v30 = vpop.xlane.xlu0 %1435 }
 0x2d9   :  { %v1467_v56 = vsub.f32 %v9937_v18, %v1436_v30  ;;  %v1070_v18 = vmul.f32 %v8205_v34, %v10037_v7  ;;  %v1071_v30 = vmul.f32 %v8209_v55, %v10053_v50 }
 0x2db   :  { %v1483_v6 = vmul.f32 1.442695, %v1467_v56  ;;  %v1033_v56 = vmul.f32 1.442695, %v1009_v25  ;;  %v10190_v41 = vpop.xlane.xlu1 %1463 }
 0x2dd   :  { %8210 = vpow2.f32 %v1483_v6  ;;  %v1487_v6 = vmul.f32 1.442695, %v1469_v27 }
 0x2de   :  { %670 = vmatmul.f32.gmra.mxu2 %v612_v40  ;;  %1112 = vmatmul.f32.gmra.mxu3 %v1070_v18  ;;  %8212 = vpow2.f32 %v581_v10 }
 0x2df   :  { %8214 = vpow2.f32 %v1031_v24 }
 0x2e0   :  { %v10168_v28 = vpop.xlane.xlu2 %1449  ;;  %v1442_v4 = vpop.xlane.xlu0 %1441  ;;  %8216 = vpow2.f32 %v1485_v38 }
 0x2e1   :  { %8218 = vpow2.f32 %v1033_v56  ;;  %v1470_v21 = vsub.f32 %v9953_v46, %v1442_v4 }
 0x2e2   :  { %8220 = vpow2.f32 %v1487_v6 }
 0x2e3   :  { %v8211_v35 = vpop.eup %8210  ;;  %v1489_v38 = vmul.f32 1.442695, %v1470_v21 }
 0x2e4   :  { %v1531_v13 = vmul.f32 %v8211_v35, %v9963_v17  ;;  %v8213_v32 = vpop.eup %8212  ;;  %v1010_v17 = vsub.f32 %v9888_v58, %v10108_v20  ;;  %v10203_v58 = vperm.slane %v9731_v57, 3  ;;  %v1011_v20 = vsub.f32 %v9848_v59, %v10072_v26 }
 0x2e5   :  { %v8215_v48 = vpop.eup %8214  ;;  %v614_v40 = vmul.f32 %v8213_v32, %v10188_v23 }
 0x2e6   :  { %673 = vmatmul.f32.gmra.mxu2 %v613_v33  ;;  %1115 = vmatmul.f32.gmra.mxu3 %v1071_v30  ;;  %v8217_v60 = vpop.eup %8216  ;;  %v1072_v18 = vmul.f32 %v8215_v48, %v10066_v1  ;;  %v1035_v24 = vmul.f32 1.442695, %v1010_v17  ;;  %v1037_v30 = vmul.f32 1.442695, %v1011_v20  ;;  %v1013_v20 = vsub.f32 %v9903_v61, %v10123_v36  ;;  %v14676_v36 = vld [vmem:[#allocation22_spill] sm:$0xff] }
 0x2e7   :  { %1563 = vmatmul.f32.vlgmr.msrb.gmra.mxu0 %v1531_v13  ;;  %v1532_v10 = vmul.f32 %v8217_v60, %v9980_v2  ;;  %v8219_v55 = vpop.eup %8218  ;;  %v1471_v2 = vsub.f32 %v9935_v31, %v10153_v0  ;;  %v1012_v0 = vsub.f32 %v9886_v52, %v10106_v49  ;;  %v1472_v60 = vsub.f32 %v9896_v12, %v10134_v9 }
 0x2e8   :  { %v10183_v34 = vpop.xlane.xlu2 %1455  ;;  %v10195_v11 = vpop.xlane.xlu0 %1447  ;;  %8222 = vpow2.f32 %v1035_v24  ;;  %v1073_v25 = vmul.f32 %v8219_v55, %v10080_v37 }
 0x2e9   :  { %v8221_v46 = vpop.eup %8220  ;;  %8224 = vpow2.f32 %v1489_v38  ;;  %v1491_v26 = vmul.f32 1.442695, %v1471_v2  ;;  %v1493_v38 = vmul.f32 1.442695, %v1472_v60 }
 0x2ea   :  { %v1533_v27 = vmul.f32 %v8221_v46, %v9996_v16  ;;  %8226 = vpow2.f32 %v1037_v30 }
 0x2eb   :  { %8228 = vpow2.f32 %v1491_v26  ;;  %v1014_v26 = vsub.f32 %v14676_v36, %v10092_v43 }
 0x2ee   :  { %676 = vmatmul.f32.gmra.mxu2 %v614_v40  ;;  %1118 = vmatmul.f32.gmra.mxu3 %v1072_v18  ;;  %v8223_v32 = vpop.eup %8222 }
 0x2ef   :  { %1566 = vmatmul.f32.gmra.mxu0 %v1532_v10  ;;  %v8225_v31 = vpop.eup %8224  ;;  %v1074_v17 = vmul.f32 %v8223_v32, %v10098_v39  ;;  %v1039_v10 = vmul.f32 1.442695, %v1012_v0 }
 0x2f0   :  { %v10200_v45 = vpop.xlane.xlu2 %1461  ;;  %v10212_v57 = vpop.xlane.xlu0 %1453  ;;  %v1534_v18 = vmul.f32 %v8225_v31, %v10009_v15 }
 0x2f1   :  { %v8227_v24 = vpop.eup %8226  ;;  %8230 = vpow2.f32 %v1039_v10  ;;  %v1475_v10 = vsub.f32 %v9910_v29, %v10151_v5 }
 0x2f2   :  { %v8229_v9 = vpop.eup %8228  ;;  %8232 = vpow2.f32 %v1493_v38 }
 0x2f3   :  { %v1794_v4 = vpop.permute.xlu1 %1793  ;;  %v1499_v5 = vmul.f32 1.442695, %v1475_v10 }
 0x2f4   :  { %v1854_v35 = vadd.f32 %v10203_v58, %v1794_v4  ;;  %v1075_v4 = vmul.f32 %v8227_v24, %v10113_v3 }
 0x2f6   :  { %v1870_v33 = vmul.f32 0.2, %v1854_v35  ;;  %1121 = vmatmul.f32.gmra.mxu3 %v1073_v25 }
 0x2f7   :  { %1569 = vmatmul.f32.gmra.mxu0 %v1533_v27  ;;  %v1041_v27 = vmul.f32 1.442695, %v1013_v20  ;;  %v8231_v30 = vpop.eup %8230 }
 0x2f8   :  { %v10214_v13 = vmax.f32 %v1854_v35, %v1870_v33  ;;  %v1790_v59 = vpop.permute.xlu2 %1789  ;;  %v10230_v55 = vpop.xlane.xlu0 %1459  ;;  %v1473_v35 = vsub.f32 %v9967_v42, %v10195_v11  ;;  %v1535_v33 = vmul.f32 %v8229_v9, %v10024_v51  ;;  %v1076_v11 = vmul.f32 %v8231_v30, %v10128_v62 }
 0x2f9   :  { %v1853_v56 = vadd.f32 %v10203_v58, %v1790_v59  ;;  %8234 = vpow2.f32 %v1041_v27  ;;  %v1474_v51 = vsub.f32 %v9951_v22, %v10168_v28  ;;  %v1015_v22 = vsub.f32 %v9901_v54, %v10121_v63 }
 0x2fa   :  { %1903 = vmax.xlane.f32.xlu2 %v10214_v13  ;;  %v1495_v59 = vmul.f32 1.442695, %v1473_v35 }
 0x2fb   :  { %v1806_v16 = vpop.permute.xlu1 %1805  ;;  %v1869_v6 = vmul.f32 0.2, %v1853_v56  ;;  %v1497_v43 = vmul.f32 1.442695, %v1474_v51 }
 0x2fc   :  { %v1857_v48 = vadd.f32 %v10203_v58, %v1806_v16  ;;  %8236 = vpow2.f32 %v1495_v59  ;;  %v1043_v16 = vmul.f32 1.442695, %v1014_v26  ;;  %v14677_v59 = vld [vmem:[#allocation27_spill] sm:$0xff] }
 0x2fd   :  { %v10224_v21 = vmax.f32 %v1853_v56, %v1869_v6  ;;  %v8233_v56 = vpop.eup %8232 }
 0x2fe   :  { %v1873_v40 = vmul.f32 0.2, %v1857_v48  ;;  %1124 = vmatmul.f32.gmra.mxu3 %v1074_v17  ;;  %v1536_v6 = vmul.f32 %v8233_v56, %v10037_v7  ;;  %8238 = vpow2.f32 %v1043_v16  ;;  %v14553_v56 = vmov 64  }
 0x2ff   :  { %1901 = vmax.xlane.f32.xlu0 %v10224_v21  ;;  %1572 = vmatmul.f32.gmra.mxu0 %v1534_v18  ;;  %v8235_v17 = vpop.eup %8234  ;;  %8240 = vpow2.f32 %v1497_v43 }
 0x300   :  { %v10228_v52 = vmax.f32 %v1857_v48, %v1873_v40  ;;  %v1802_v49 = vpop.permute.xlu2 %1801  ;;  %v10246_v32 = vpop.xlane.xlu0 %1465  ;;  %v1077_v38 = vmul.f32 %v8235_v17, %v10143_v44  ;;  %8064 = vset.pattern.permute.xlu0 %v14553_v56  ;;  %8063 = vset.pattern.permute.xlu1 %v14553_v56 }
 0x301   :  { %v1856_v12 = vadd.f32 %v10203_v58, %v1802_v49  ;;  %8062 = vset.pattern.permute.xlu2 %v14553_v56 }
 0x302   :  { %1909 = vmax.xlane.f32.xlu2 %v10228_v52  ;;  %v8237_v40 = vpop.eup %8236 }
 0x303   :  { %v1814_v46 = vpop.permute.xlu1 %1813  ;;  %v1872_v15 = vmul.f32 0.2, %v1856_v12 }
 0x304   :  { %v1859_v2 = vadd.f32 %v10203_v58, %v1814_v46  ;;  %v1045_v46 = vmul.f32 1.442695, %v1015_v22  ;;  %v8239_v54 = vpop.eup %8238 }
 0x305   :  { %v10240_v25 = vmax.f32 %v1856_v12, %v1872_v15  ;;  %v1537_v12 = vmul.f32 %v8237_v40, %v10053_v50  ;;  %v14678_v40 = vld [vmem:[#allocation25_spill] sm:$0xff] }
 0x306   :  { %1127 = vmatmul.f32.gmra.mxu3 %v1075_v4  ;;  %v1875_v61 = vmul.f32 0.2, %v1859_v2  ;;  %v8241_v4 = vpop.eup %8240  ;;  %8242 = vpow2.f32 %v1045_v46  ;;  %v1477_v22 = vsub.f32 %v14678_v40, %v10183_v34 }
 0x307   :  { %1907 = vmax.xlane.f32.xlu0 %v10240_v25  ;;  %1575 = vmatmul.f32.gmra.mxu0 %v1535_v33  ;;  %v1016_v33 = vsub.f32 %v9917_v47, %v10138_v19  ;;  %8244 = vpow2.f32 %v1499_v5 }
 0x308   :  { %v10252_v0 = vmax.f32 %v1859_v2, %v1875_v61  ;;  %v1810_v48 = vpop.permute.xlu2 %1809  ;;  %v1078_v2 = vmul.f32 %v8239_v54, %v10159_v14  ;;  %v1476_v61 = vsub.f32 %v14677_v59, %v10212_v57  ;;  %v1503_v34 = vmul.f32 1.442695, %v1477_v22 }
 0x309   :  { %v1858_v63 = vadd.f32 %v10203_v58, %v1810_v48  ;;  %v1047_v47 = vmul.f32 1.442695, %v1016_v33 }
 0x30a   :  { %v1501_v16 = vmul.f32 1.442695, %v1476_v61 }
 0x30b   :  { %v1826_v42 = vpop.permute.xlu1 %1825  ;;  %v1874_v30 = vmul.f32 0.2, %v1858_v63  ;;  %8246 = vpow2.f32 %v1047_v47 }
 0x30c   :  { %v1862_v31 = vadd.f32 %v10203_v58, %v1826_v42  ;;  %8248 = vpow2.f32 %v1501_v16  ;;  %v14681_v16 = vld [vmem:[#allocation26_spill] sm:$0xff] }
 0x30d   :  { %v10288_v51 = vmax.f32 %v1858_v63, %v1874_v30  ;;  %8250 = vpow2.f32 %v1503_v34 }
 0x30e   :  { %1130 = vmatmul.f32.gmra.mxu3 %v1076_v11  ;;  %v1878_v60 = vmul.f32 0.2, %v1862_v31  ;;  %v1538_v11 = vmul.f32 %v8241_v4, %v10066_v1 }
 0x30f   :  { %1913 = vmax.xlane.f32.xlu0 %v10252_v0  ;;  %1578 = vmatmul.f32.gmra.mxu0 %v1536_v6 }
 0x310   :  { %v10261_v49 = vmax.f32 %v1862_v31, %v1878_v60  ;;  %v1822_v15 = vpop.permute.xlu2 %1821  ;;  %v8243_v31 = vpop.eup %8242 }
 0x311   :  { %v1861_v19 = vadd.f32 %v10203_v58, %v1822_v15  ;;  %v8245_v1 = vpop.eup %8244  ;;  %v14679_v15 = vld [vmem:[#allocation23_spill] sm:$0xff] }
 0x312   :  { %v8247_v46 = vpop.eup %8246 }
 0x313   :  { %v1838_v28 = vpop.permute.xlu1 %1837  ;;  %v1798_v18 = vpop.permute.xlu0 %1797  ;;  %v1877_v17 = vmul.f32 0.2, %v1861_v19 }
 0x314   :  { %v1855_v7 = vadd.f32 %v10203_v58, %v1798_v18  ;;  %v1865_v24 = vadd.f32 %v10203_v58, %v1838_v28  ;;  %v1079_v18 = vmul.f32 %v8243_v31, %v10175_v8  ;;  %v8249_v54 = vpop.eup %8248 }
 0x316   :  { %v1871_v9 = vmul.f32 0.2, %v1855_v7  ;;  %1133 = vmatmul.f32.gmra.mxu3 %v1077_v38  ;;  %v1881_v20 = vmul.f32 0.2, %v1865_v24 }
 0x317   :  { %1919 = vmax.xlane.f32.xlu0 %v10261_v49  ;;  %1581 = vmatmul.f32.gmra.mxu0 %v1537_v12 }
 0x318   :  { %v10268_v29 = vmax.f32 %v1855_v7, %v1871_v9  ;;  %v10277_v36 = vmax.f32 %v1865_v24, %v1881_v20  ;;  %v1834_v48 = vpop.permute.xlu2 %1833  ;;  %v1539_v7 = vmul.f32 %v8245_v1, %v10080_v37  ;;  %v10299_v24 = vpop.f32.mrf.mxu2  ;;  %v10305_v9 = vmax.f32 %v1861_v19, %v1877_v17 }
 0x319   :  { %v1864_v38 = vadd.f32 %v10203_v58, %v1834_v48  ;;  %v1478_v20 = vsub.f32 %v14679_v15, %v10170_v53  ;;  %v8251_v53 = vpop.eup %8250 }
 0x31a   :  { %1905 = vmax.xlane.f32.xlu1 %v10268_v29 }
 0x31b   :  { %v1850_v35 = vpop.permute.xlu1 %1849  ;;  %v1818_v50 = vpop.permute.xlu0 %1817  ;;  %v1880_v5 = vmul.f32 0.2, %v1864_v38  ;;  %v1505_v59 = vmul.f32 1.442695, %v1478_v20 }
 0x31c   :  { %v1860_v27 = vadd.f32 %v10203_v58, %v1818_v50  ;;  %v1868_v26 = vadd.f32 %v10203_v58, %v1850_v35  ;;  %v1080_v35 = vmul.f32 %v8247_v46, %v10188_v23 }
 0x31d   :  { %v10317_v30 = vmax.f32 %v1864_v38, %v1880_v5  ;;  %v325_v5 = vpop.f32.mrf.mxu1 }
 0x31e   :  { %v1876_v42 = vmul.f32 0.2, %v1860_v27  ;;  %1136 = vmatmul.f32.gmra.mxu3 %v1078_v2  ;;  %v1884_v6 = vmul.f32 0.2, %v1868_v26  ;;  %v1540_v2 = vmul.f32 %v8249_v54, %v10098_v39  ;;  %v14680_v39 = vld [vmem:[#allocation28_spill] sm:$0xff] }
 0x31f   :  { %1925 = vmax.xlane.f32.xlu0 %v10277_v36  ;;  %1584 = vmatmul.f32.gmra.mxu0 %v1538_v11 }
 0x320   :  { %v10286_v57 = vmax.f32 %v1860_v27, %v1876_v42  ;;  %v10295_v28 = vmax.f32 %v1868_v26, %v1884_v6  ;;  %v1846_v4 = vpop.permute.xlu2 %1845  ;;  %v10319_v61 = vpop.f32.mrf.mxu2  ;;  %v1541_v42 = vmul.f32 %v8251_v53, %v10113_v3  ;;  %v1480_v6 = vsub.f32 %v14681_v16, %v10200_v45 }
 0x321   :  { %v1867_v33 = vadd.f32 %v10203_v58, %v1846_v4  ;;  %8252 = vrcp.f32 %v10319_v61 }
 0x322   :  { %1911 = vmax.xlane.f32.xlu1 %v10288_v51  ;;  %1915 = vmax.xlane.f32.xlu2 %v10286_v57  ;;  %8254 = vpow2.f32 %v1505_v59 }
 0x323   :  { %v1830_v43 = vpop.permute.xlu0 %1829  ;;  %v1883_v26 = vmul.f32 0.2, %v1867_v33 }
 0x324   :  { %v1863_v60 = vadd.f32 %v10203_v58, %v1830_v43  ;;  %v14682_v43 = vld [vmem:[#allocation24_spill] sm:$0xff] }
 0x325   :  { %v10327_v11 = vmax.f32 %v1867_v33, %v1883_v26 }
 0x326   :  { %v1879_v10 = vmul.f32 0.2, %v1863_v60  ;;  %1139 = vmatmul.f32.gmra.mxu3 %v1079_v18 }
 0x327   :  { %1931 = vmax.xlane.f32.xlu0 %v10295_v28  ;;  %1587 = vmatmul.f32.gmra.mxu0 %v1539_v7  ;;  %v8253_v19 = vpop.eup %8252 }
 0x328   :  { %v10303_v12 = vmax.f32 %v1863_v60, %v1879_v10  ;;  %v8255_v31 = vpop.eup %8254  ;;  %v1481_v60 = vsub.f32 %v14682_v43, %v10190_v41  ;;  %v10343_v10 = vpop.f32.mrf.mxu2 }
 0x329   :  { %v1542_v1 = vmul.f32 %v8255_v31, %v10128_v62  ;;  %v14683_v62 = vld [vmem:[#allocation29_spill] sm:$0xff] }
 0x32a   :  { %1917 = vmax.xlane.f32.xlu1 %v10305_v9  ;;  %1921 = vmax.xlane.f32.xlu2 %v10303_v12  ;;  %v1511_v40 = vmul.f32 1.442695, %v1481_v60  ;;  %v1482_v45 = vsub.f32 %v14683_v62, %v10246_v32 }
 0x32b   :  { %v1842_v37 = vpop.permute.xlu0 %1841 }
 0x32c   :  { %v1866_v63 = vadd.f32 %v10203_v58, %v1842_v37  ;;  %v1479_v58 = vsub.f32 %v14680_v39, %v10230_v55  ;;  %v1509_v55 = vmul.f32 1.442695, %v1480_v6  ;;  %v1513_v41 = vmul.f32 1.442695, %v1482_v45 }
 0x32e   :  { %v1882_v50 = vmul.f32 0.2, %v1866_v63  ;;  %1142 = vmatmul.f32.gmra.mxu3 %v1080_v35  ;;  %v1507_v47 = vmul.f32 1.442695, %v1479_v58 }
 0x32f   :  { %1590 = vmatmul.f32.gmra.mxu0 %v1540_v2 }
 0x330   :  { %v10315_v27 = vmax.f32 %v1866_v63, %v1882_v50  ;;  %8256 = vpow2.f32 %v1507_v47  ;;  %v10349_v54 = vpop.f32.mrf.mxu2 }
 0x331   :  { %8258 = vpow2.f32 %v1509_v55 }
 0x332   :  { %1923 = vmax.xlane.f32.xlu1 %v10317_v30  ;;  %1927 = vmax.xlane.f32.xlu2 %v10315_v27 }
 0x336   :  { %v8257_v3 = vpop.eup %8256 }
 0x337   :  { %1593 = vmatmul.f32.gmra.mxu0 %v1541_v42  ;;  %v1543_v17 = vmul.f32 %v8257_v3, %v10143_v44  ;;  %v8259_v18 = vpop.eup %8258 }
 0x338   :  { %v1544_v7 = vmul.f32 %v8259_v18, %v10159_v14  ;;  %v10357_v14 = vld [vmem:[%s14511_s4] ss:$0 sm:$0xff]  ;;  %v10359_v15 = vpop.f32.mrf.mxu2 }
 0x339   :  { %v10333_v48 = vpop.f32.mrf.mxu3 }
 0x33a   :  { %1929 = vmax.xlane.f32.xlu1 %v10327_v11  ;;  %8260 = vrcp.f32 %v10333_v48 }
 0x33b   :  { %719 = vperm.xlu0 %8064, %v8253_v19   ;;  %8262 = vpow2.f32 %v1511_v40 }
 0x33c   :  { %8264 = vpow2.f32 %v1513_v41 }
 0x33f   :  { %1596 = vmatmul.f32.gmra.mxu0 %v1542_v1 }
 0x340   :  { %v8261_v38 = vpop.eup %8260  ;;  %v10370_v2 = vpop.f32.mrf.mxu2 }
 0x341   :  { %v10338_v22 = vpop.f32.mrf.mxu3  ;;  %v8263_v34 = vpop.eup %8262 }
 0x342   :  { %v1545_v46 = vmul.f32 %v8263_v34, %v10175_v8  ;;  %v8265_v37 = vpop.eup %8264  ;;  %v326_v8 = vadd.f32 %v10357_v14, %v325_v5 }
 0x343   :  { %v1546_v32 = vmul.f32 %v8265_v37, %v10188_v23  ;;  %v328_v23 = vpop.f32.mrf.mxu1  ;;  %v1982_v37 = vld [vmem:[%s14508_s1 + $0x8] sm:$0xff] }
 0x344   :  { %374 = vst.msk [vmem:[#allocation2] sm:$0xff] %vm373_vm2, %v326_v8  ;;  %v329_v35 = vadd.f32 %v10357_v14, %v328_v23 }
 0x346   :  { %375 = vst.msk [vmem:[#allocation2 + $0x8] sm:$0xff] %vm373_vm2, %v329_v35 }
 0x347   :  { %1599 = vmatmul.f32.gmra.mxu0 %v1543_v17 }
 0x348   :  { %v10383_v31 = vpop.f32.mrf.mxu2 }
 0x349   :  { %v10346_v44 = vpop.f32.mrf.mxu3 }
 0x34b   :  { %v331_v59 = vpop.f32.mrf.mxu1 }
 0x34c   :  { %v332_v53 = vadd.f32 %v10357_v14, %v331_v59 }
 0x34e   :  { %376 = vst.msk [vmem:[#allocation2 + $0x10] sm:$0xff] %vm373_vm2, %v332_v53 }
 0x34f   :  { %1602 = vmatmul.f32.gmra.mxu0 %v1544_v7 }
 0x350   :  { %v10398_v45 = vpop.f32.mrf.mxu2 }
 0x351   :  { %v10351_v63 = vpop.f32.mrf.mxu3 }
 0x353   :  { %1180 = vperm.xlu1 %8063, %v8261_v38   ;;  %v334_v1 = vpop.f32.mrf.mxu1 }
 0x354   :  { %v335_v55 = vadd.f32 %v10357_v14, %v334_v1 }
 0x356   :  { %377 = vst.msk [vmem:[#allocation2 + $0x18] sm:$0xff] %vm373_vm2, %v335_v55 }
 0x357   :  { %1605 = vmatmul.f32.gmra.mxu0 %v1545_v46 }
 0x358   :  { %v10414_v59 = vpop.f32.mrf.mxu2 }
 0x359   :  { %v10366_v4 = vpop.f32.mrf.mxu3 }
 0x35b   :  { %v337_v7 = vpop.f32.mrf.mxu1 }
 0x35c   :  { %v338_v41 = vadd.f32 %v10357_v14, %v337_v7 }
 0x35e   :  { %378 = vst.msk [vmem:[#allocation2 + $0x20] sm:$0xff] %vm373_vm2, %v338_v41 }
 0x35f   :  { %1608 = vmatmul.f32.gmra.mxu0 %v1546_v32 }
 0x361   :  { %v10376_v26 = vpop.f32.mrf.mxu3 }
 0x363   :  { %v340_v35 = vpop.f32.mrf.mxu1 }
 0x364   :  { %v10363_v20 = vpop.f32.mrf.mxu0 }
 0x365   :  { %8266 = vrcp.f32 %v10363_v20 }
 0x369   :  { %v10390_v60 = vpop.f32.mrf.mxu3 }
 0x36b   :  { %v8267_v50 = vpop.eup %8266  ;;  %v343_v55 = vpop.f32.mrf.mxu1 }
 0x36c   :  { %1646 = vperm.xlu2 %8062, %v8267_v50   ;;  %v10372_v33 = vpop.f32.mrf.mxu0  ;;  %v341_v50 = vadd.f32 %v10357_v14, %v340_v35 }
 0x36d   :  { %8268 = vrcp.f32 %v10372_v33  ;;  %v1904_v39 = vpop.xlane.xlu2 %1903 }
 0x36e   :  { %8270 = vrcp.f32 %v10343_v10  ;;  %v1934_v16 = vsub.f32 %v10214_v13, %v1904_v39  ;;  %v1981_v13 = vld [vmem:[%s14508_s1] sm:$0xff]  ;;  %379 = vst.msk [vmem:[#allocation2 + $0x28] sm:$0xff] %vm373_vm2, %v341_v50 }
 0x370   :  { %v1951_v3 = vmul.f32 1.442695, %v1934_v16 }
 0x371   :  { %v10408_v5 = vpop.f32.mrf.mxu3 }
 0x372   :  { %v1902_v58 = vpop.xlane.xlu0 %1901 }
 0x373   :  { %v8269_v42 = vpop.eup %8268  ;;  %v1933_v47 = vsub.f32 %v10224_v21, %v1902_v58  ;;  %v346_v41 = vpop.f32.mrf.mxu1 }
 0x374   :  { %v10381_v19 = vpop.f32.mrf.mxu0  ;;  %1651 = vperm.xlu1 %8063, %v8269_v42   ;;  %v8271_v43 = vpop.eup %8270 }
 0x375   :  { %v1949_v6 = vmul.f32 1.442695, %v1933_v47  ;;  %8272 = vrcp.f32 %v10381_v19 }
 0x377   :  { %8274 = vpow2.f32 %v1949_v6 }
 0x378   :  { %8276 = vrcp.f32 %v10346_v44 }
 0x379   :  { %8278 = vrcp.f32 %v10351_v63  ;;  %v10422_v16 = vpop.f32.mrf.mxu3 }
 0x37a   :  { %8280 = vpow2.f32 %v1951_v3  ;;  %v1908_v18 = vpop.xlane.xlu0 %1907  ;;  %v344_v3 = vadd.f32 %v10357_v14, %v343_v55 }
 0x37b   :  { %v8273_v21 = vpop.eup %8272  ;;  %8282 = vrcp.f32 %v10383_v31  ;;  %v1936_v6 = vsub.f32 %v10240_v25, %v1908_v18  ;;  %v1983_v25 = vld [vmem:[%s14508_s1 + $0x10] sm:$0xff] }
 0x37c   :  { %v10396_v17 = vpop.f32.mrf.mxu0  ;;  %1656 = vperm.xlu0 %8064, %v8273_v21   ;;  %724 = vperm.xlu1 %8063, %v8271_v43   ;;  %380 = vst.msk [vmem:[#allocation2 + $0x30] sm:$0xff] %vm373_vm2, %v344_v3 }
 0x37d   :  { %v8275_v40 = vpop.eup %8274 }
 0x37e   :  { %v1997_v62 = vmul.f32 %v8275_v40, %v1981_v13  ;;  %v8277_v38 = vpop.eup %8276  ;;  %v1955_v40 = vmul.f32 1.442695, %v1936_v6 }
 0x37f   :  { %v8279_v34 = vpop.eup %8278 }
 0x380   :  { %2029 = vmatmul.f32.vlgmr.msrb.gmra.mxu1 %v1997_v62  ;;  %v8281_v46 = vpop.eup %8280  ;;  %v1910_v62 = vpop.xlane.xlu2 %1909 }
 0x381   :  { %v1998_v8 = vmul.f32 %v8281_v46, %v1982_v37  ;;  %v8283_v53 = vpop.eup %8282  ;;  %v1937_v18 = vsub.f32 %v10228_v52, %v1910_v62  ;;  %v10437_v46 = vpop.f32.mrf.mxu3  ;;  %v1984_v52 = vld [vmem:[%s14508_s1 + $0x18] sm:$0xff] }
 0x382   :  { %v10411_v23 = vpop.xlane.xlu0 %1913  ;;  %14684 = vst [vmem:[#allocation19_spill] sm:$0xff] %v10437_v46 }
 0x384   :  { %v10406_v32 = vpop.f32.mrf.mxu0  ;;  %1190 = vperm.xlu0 %8064, %v8277_v38   ;;  %1195 = vperm.xlu1 %8063, %v8279_v34   ;;  %v347_v34 = vadd.f32 %v10357_v14, %v346_v41 }
 0x385   :  { %8284 = vrcp.f32 %v10406_v32 }
 0x386   :  { %8286 = vrcp.f32 %v10414_v59  ;;  %381 = vst.msk [vmem:[#allocation2 + $0x38] sm:$0xff] %vm373_vm2, %v347_v34  ;;  %v14685_v34 = vld [vmem:[#allocation8_spill] sm:$0xff] }
 0x387   :  { %8288 = vrcp.f32 %v10376_v26  ;;  %vm289_vm3 = vcmp.lt.s32.totalorder %v14685_v34, 16  ;;  %vm292_vm4 = vcmp.ge.s32.totalorder %v14685_v34, 16  ;;  %vm293_vm5 = vcmp.lt.s32.totalorder %v14685_v34, 32 }
 0x388   :  { %2032 = vmatmul.f32.gmra.mxu1 %v1998_v8  ;;  %v1957_v8 = vmul.f32 1.442695, %v1937_v18  ;;  %v10463_v18 = vpop.f32.mrf.mxu2  ;;  %vm294_vm6 = vmand %vm292_vm4, %vm293_vm5  ;;  %vm296_vm7 = vcmp.ge.s32.totalorder %v14685_v34, 32  ;;  %vm297_vm8 = vcmp.lt.s32.totalorder %v14685_v34, 48  ;;  %vm300_vm10 = vcmp.ge.s32.totalorder %v14685_v34, 48 }
 0x389   :  { %v10451_v3 = vpop.f32.mrf.mxu3  ;;  %vm298_vm9 = vmand %vm296_vm7, %vm297_vm8  ;;  %vm301_vm11 = vcmp.lt.s32.totalorder %v14685_v34, 64 }
 0x38a   :  { %v10426_v43 = vpop.xlane.xlu0 %1919  ;;  %vm302_vm12 = vmand %vm300_vm10, %vm301_vm11 }
 0x38b   :  { %v8285_v39 = vpop.eup %8284 }
 0x38c   :  { %v10418_v58 = vpop.f32.mrf.mxu0  ;;  %1666 = vperm.xlu1 %8063, %v8285_v39   ;;  %744 = vperm.xlu0 %8064, %v8283_v53   ;;  %v8287_v21 = vpop.eup %8286 }
 0x38d   :  { %v1906_v42 = vpop.xlane.xlu1 %1905  ;;  %v8289_v13 = vpop.eup %8288 }
 0x38e   :  { %v1935_v47 = vsub.f32 %v10268_v29, %v1906_v42 }
 0x390   :  { %v1953_v1 = vmul.f32 1.442695, %v1935_v47  ;;  %v349_v47 = vpop.f32.mrf.mxu1 }
 0x392   :  { %8290 = vpow2.f32 %v1953_v1  ;;  %v10440_v35 = vpop.xlane.xlu0 %1925  ;;  %v350_v1 = vadd.f32 %v10357_v14, %v349_v47 }
 0x394   :  { %v10429_v7 = vpop.f32.mrf.mxu0  ;;  %1205 = vperm.xlu1 %8063, %v8289_v13   ;;  %754 = vperm.xlu0 %8064, %v8287_v21   ;;  %382 = vst.msk [vmem:[#allocation2 + $0x40] sm:$0xff] %vm373_vm2, %v350_v1 }
 0x395   :  { %8292 = vrcp.f32 %v10429_v7  ;;  %v1912_v50 = vpop.xlane.xlu1 %1911 }
 0x396   :  { %8294 = vpow2.f32 %v1955_v40  ;;  %v1938_v42 = vsub.f32 %v10288_v51, %v1912_v50  ;;  %v1985_v51 = vld [vmem:[%s14508_s1 + $0x20] sm:$0xff]  ;;  %v1916_v50 = vpop.xlane.xlu2 %1915 }
 0x397   :  { %8296 = vrcp.f32 %v10408_v5 }
 0x398   :  { %v8291_v29 = vpop.eup %8290  ;;  %8298 = vpow2.f32 %v1957_v8  ;;  %v1959_v21 = vmul.f32 1.442695, %v1938_v42 }
 0x399   :  { %v1999_v38 = vmul.f32 %v8291_v29, %v1983_v25  ;;  %v1939_v25 = vsub.f32 %v10252_v0, %v10411_v23  ;;  %v352_v29 = vpop.f32.mrf.mxu1  ;;  %v10471_v23 = vpop.f32.mrf.mxu3 }
 0x39a   :  { %v10455_v62 = vpop.xlane.xlu0 %1931 }
 0x39b   :  { %2035 = vmatmul.f32.gmra.mxu1 %v1999_v38  ;;  %v8293_v37 = vpop.eup %8292  ;;  %v353_v38 = vadd.f32 %v10357_v14, %v352_v29  ;;  %v1961_v8 = vmul.f32 1.442695, %v1939_v25  ;;  %v697_v29 = vld [vmem:[#allocation2 + $0x8] sm:$0xff] }
 0x39c   :  { %v10442_v53 = vpop.f32.mrf.mxu0  ;;  %1676 = vperm.xlu1 %8063, %v8293_v37   ;;  %v8295_v39 = vpop.eup %8294 }
 0x39d   :  { %v2000_v6 = vmul.f32 %v8295_v39, %v1984_v52  ;;  %v8297_v55 = vpop.eup %8296  ;;  %383 = vst.msk [vmem:[#allocation2 + $0x48] sm:$0xff] %vm373_vm2, %v353_v38  ;;  %v14687_v52 = vmov 0.0   ;;  %v10486_v38 = vpop.f32.mrf.mxu2 }
 0x39e   :  { %v8299_v40 = vpop.eup %8298  ;;  %v10477_v42 = vsel %vm289_vm3, 1.0, %v14687_v52 }
 0x39f   :  { %v2001_v41 = vmul.f32 %v8299_v40, %v1985_v51  ;;  %14688 = vst [vmem:[#allocation11_spill] sm:$0xff] %v10477_v42 }
 0x3a3   :  { %2038 = vmatmul.f32.gmra.mxu1 %v2000_v6  ;;  %v1986_v6 = vld [vmem:[%s14508_s1 + $0x28] sm:$0xff] }
 0x3a4   :  { %v10453_v13 = vpop.f32.mrf.mxu0  ;;  %1215 = vperm.xlu1 %8063, %v8297_v55   ;;  %v1940_v55 = vsub.f32 %v10286_v57, %v1916_v50  ;;  %v1987_v50 = vld [vmem:[%s14508_s1 + $0x30] sm:$0xff] }
 0x3a5   :  { %8300 = vrcp.f32 %v10453_v13 }
 0x3a6   :  { %8302 = vpow2.f32 %v1959_v21  ;;  %v355_v21 = vpop.f32.mrf.mxu1 }
 0x3a7   :  { %8304 = vrcp.f32 %v10451_v3  ;;  %v356_v25 = vadd.f32 %v10357_v14, %v355_v21 }
 0x3a9   :  { %384 = vst.msk [vmem:[#allocation2 + $0x50] sm:$0xff] %vm373_vm2, %v356_v25  ;;  %v1942_v25 = vsub.f32 %v10261_v49, %v10426_v43  ;;  %v1989_v43 = vld [vmem:[%s14508_s1 + $0x40] sm:$0xff] }
 0x3ab   :  { %2041 = vmatmul.f32.gmra.mxu1 %v2001_v41  ;;  %v8301_v37 = vpop.eup %8300 }
 0x3ac   :  { %v10469_v39 = vpop.f32.mrf.mxu0  ;;  %1686 = vperm.xlu1 %8063, %v8301_v37   ;;  %v8303_v0 = vpop.eup %8302 }
 0x3ad   :  { %14686 = vst [vmem:[#allocation10_spill] sm:$0xff] %v10469_v39  ;;  %8306 = vrcp.f32 %v10469_v39  ;;  %v720_v47 = vpop.permute.xlu0 %719  ;;  %v2002_v51 = vmul.f32 %v8303_v0, %v1986_v6  ;;  %v8305_v41 = vpop.eup %8304  ;;  %v1963_v39 = vmul.f32 1.442695, %v1940_v55 }
 0x3ae   :  { %v793_v1 = vmul.f32 %v720_v47, %v10319_v61  ;;  %8308 = vpow2.f32 %v1961_v8  ;;  %v1918_v61 = vpop.xlane.xlu1 %1917  ;;  %v10496_v0 = vpop.f32.mrf.mxu3 }
 0x3af   :  { %8310 = vrcp.f32 %v10437_v46  ;;  %v1941_v47 = vsub.f32 %v10305_v9, %v1918_v61  ;;  %v358_v6 = vpop.f32.mrf.mxu1  ;;  %v1988_v9 = vld [vmem:[%s14508_s1 + $0x38] sm:$0xff] }
 0x3b0   :  { %v809_v40 = vmul.f32 %v793_v1, %v10477_v42  ;;  %8312 = vpow2.f32 %v1963_v39  ;;  %v359_v55 = vadd.f32 %v10357_v14, %v358_v6  ;;  %v1922_v6 = vpop.xlane.xlu2 %1921 }
 0x3b1   :  { %v1965_v21 = vmul.f32 1.442695, %v1941_v47  ;;  %8314 = vrcp.f32 %v10486_v38  ;;  %v1967_v47 = vmul.f32 1.442695, %v1942_v25 }
 0x3b2   :  { %v825_v37 = vadd.f32 %v809_v40, %v697_v29  ;;  %385 = vst.msk [vmem:[#allocation2 + $0x58] sm:$0xff] %vm373_vm2, %v359_v55  ;;  %v10502_v40 = vpop.f32.mrf.mxu2 }
 0x3b3   :  { %2044 = vmatmul.f32.gmra.mxu1 %v2002_v51  ;;  %v8307_v56 = vpop.eup %8306 }
 0x3b4   :  { %841 = vst.msk [vmem:[#allocation2 + $0x8] sm:$0xff] %vm373_vm2, %v825_v37  ;;  %v10490_v57 = vpop.f32.mrf.mxu0  ;;  %1230 = vperm.xlu1 %8063, %v8305_v41   ;;  %1691 = vperm.xlu0 %8064, %v8307_v56   ;;  %v8309_v8 = vpop.eup %8308 }
 0x3b5   :  { %v2003_v1 = vmul.f32 %v8309_v8, %v1987_v50  ;;  %v8311_v56 = vpop.eup %8310 }
 0x3b6   :  { %v8313_v39 = vpop.eup %8312  ;;  %v10513_v61 = vpop.f32.mrf.mxu3 }
 0x3b7   :  { %v361_v29 = vpop.f32.mrf.mxu1  ;;  %v2004_v41 = vmul.f32 %v8313_v39, %v1988_v9  ;;  %14690 = vst [vmem:[#allocation12_spill] sm:$0xff] %v10513_v61  ;;  %v8315_v8 = vpop.eup %8314 }
 0x3b8   :  { %v362_v37 = vadd.f32 %v10357_v14, %v361_v29 }
 0x3ba   :  { %386 = vst.msk [vmem:[#allocation2 + $0x60] sm:$0xff] %vm373_vm2, %v362_v37  ;;  %v10523_v55 = vpop.f32.mrf.mxu2  ;;  %v1924_v37 = vpop.xlane.xlu1 %1923 }
 0x3bb   :  { %2047 = vmatmul.f32.gmra.mxu1 %v2003_v1 }
 0x3bc   :  { %v10504_v51 = vpop.f32.mrf.mxu0  ;;  %1225 = vperm.xlu0 %8064, %v8311_v56   ;;  %v1943_v56 = vsub.f32 %v10303_v12, %v1922_v6  ;;  %v1990_v12 = vld [vmem:[%s14508_s1 + $0x48] sm:$0xff] }
 0x3bd   :  { %14689 = vst [vmem:[#allocation18_spill] sm:$0xff] %v10504_v51  ;;  %8316 = vrcp.f32 %v10504_v51 }
 0x3be   :  { %8318 = vpow2.f32 %v1965_v21 }
 0x3bf   :  { %8320 = vrcp.f32 %v10513_v61  ;;  %v364_v21 = vpop.f32.mrf.mxu1  ;;  %v706_v61 = vld [vmem:[#allocation2 + $0x50] sm:$0xff] }
 0x3c0   :  { %v365_v9 = vadd.f32 %v10357_v14, %v364_v21 }
 0x3c2   :  { %387 = vst.msk [vmem:[#allocation2 + $0x68] sm:$0xff] %vm373_vm2, %v365_v9 }
 0x3c3   :  { %2050 = vmatmul.f32.gmra.mxu1 %v2004_v41  ;;  %v8317_v50 = vpop.eup %8316  ;;  %v1969_v41 = vmul.f32 1.442695, %v1943_v56 }
 0x3c4   :  { %v10517_v1 = vpop.f32.mrf.mxu0  ;;  %1701 = vperm.xlu1 %8063, %v8317_v50   ;;  %764 = vperm.xlu0 %8064, %v8315_v8   ;;  %v8319_v49 = vpop.eup %8318 }
 0x3c5   :  { %8322 = vrcp.f32 %v10517_v1  ;;  %v2005_v39 = vmul.f32 %v8319_v49, %v1989_v43  ;;  %v8321_v25 = vpop.eup %8320  ;;  %v10535_v49 = vpop.f32.mrf.mxu2 }
 0x3c6   :  { %8324 = vpow2.f32 %v1967_v47  ;;  %v1944_v47 = vsub.f32 %v10317_v30, %v1924_v37  ;;  %v1991_v30 = vld [vmem:[%s14508_s1 + $0x50] sm:$0xff] }
 0x3c7   :  { %8326 = vrcp.f32 %v10523_v55  ;;  %v367_v6 = vpop.f32.mrf.mxu1 }
 0x3c8   :  { %8328 = vpow2.f32 %v1969_v41  ;;  %v368_v56 = vadd.f32 %v10357_v14, %v367_v6  ;;  %v1945_v41 = vsub.f32 %v10277_v36, %v10440_v35  ;;  %v1992_v36 = vld [vmem:[%s14508_s1 + $0x58] sm:$0xff] }
 0x3c9   :  { %8330 = vrcp.f32 %v10496_v0 }
 0x3ca   :  { %388 = vst.msk [vmem:[#allocation2 + $0x70] sm:$0xff] %vm373_vm2, %v368_v56  ;;  %v1973_v56 = vmul.f32 1.442695, %v1945_v41 }
 0x3cb   :  { %2053 = vmatmul.f32.gmra.mxu1 %v2005_v39  ;;  %v8323_v29 = vpop.eup %8322  ;;  %v1971_v39 = vmul.f32 1.442695, %v1944_v47 }
 0x3cc   :  { %v10528_v8 = vpop.f32.mrf.mxu0  ;;  %1245 = vperm.xlu1 %8063, %v8321_v25   ;;  %1706 = vperm.xlu0 %8064, %v8323_v29   ;;  %v8325_v50 = vpop.eup %8324 }
 0x3cd   :  { %v2006_v43 = vmul.f32 %v8325_v50, %v1990_v12  ;;  %v8327_v21 = vpop.eup %8326  ;;  %v1930_v29 = vpop.xlane.xlu1 %1929 }
 0x3ce   :  { %v8329_v25 = vpop.eup %8328  ;;  %v10549_v6 = vpop.f32.mrf.mxu2 }
 0x3cf   :  { %v370_v37 = vpop.f32.mrf.mxu1  ;;  %v2007_v50 = vmul.f32 %v8329_v25, %v1991_v30  ;;  %v8331_v47 = vpop.eup %8330 }
 0x3d0   :  { %v371_v12 = vadd.f32 %v10357_v14, %v370_v37 }
 0x3d2   :  { %389 = vst.msk [vmem:[#allocation2 + $0x78] sm:$0xff] %vm373_vm2, %v371_v12  ;;  %v1993_v12 = vld [vmem:[%s14508_s1 + $0x60] sm:$0xff] }
 0x3d3   :  { %2056 = vmatmul.f32.gmra.mxu1 %v2006_v43 }
 0x3d4   :  { %v10540_v9 = vpop.f32.mrf.mxu0  ;;  %774 = vperm.xlu0 %8064, %v8327_v21   ;;  %v1928_v21 = vpop.xlane.xlu2 %1927 }
 0x3d5   :  { %14691 = vst [vmem:[#allocation20_spill] sm:$0xff] %v10540_v9  ;;  %8332 = vrcp.f32 %v10540_v9  ;;  %v10556_v35 = vpop.permute.xlu1 %1180  ;;  %v1946_v14 = vsub.f32 %v10315_v27, %v1928_v21  ;;  %v1947_v27 = vsub.f32 %v10327_v11, %v1930_v29 }
 0x3d6   :  { %8334 = vpow2.f32 %v1971_v39  ;;  %v10559_v39 = vpop.f32.mrf.mxu3 }
 0x3d7   :  { %8336 = vrcp.f32 %v10549_v6  ;;  %v1975_v37 = vmul.f32 1.442695, %v1946_v14  ;;  %v1977_v21 = vmul.f32 1.442695, %v1947_v27  ;;  %v1994_v14 = vld [vmem:[%s14508_s1 + $0x68] sm:$0xff] }
 0x3d8   :  { %8338 = vpow2.f32 %v1973_v56 }
 0x3db   :  { %2059 = vmatmul.f32.gmra.mxu1 %v2007_v50  ;;  %v8333_v43 = vpop.eup %8332 }
 0x3dc   :  { %1716 = vperm.xlu1 %8063, %v8333_v43   ;;  %1240 = vperm.xlu0 %8064, %v8331_v47   ;;  %v8335_v9 = vpop.eup %8334  ;;  %v10561_v30 = vpop.f32.mrf.mxu0 }
 0x3dd   :  { %v2008_v25 = vmul.f32 %v8335_v9, %v1992_v36  ;;  %14692 = vst [vmem:[#allocation13_spill] sm:$0xff] %v10561_v30  ;;  %v8337_v41 = vpop.eup %8336  ;;  %8340 = vrcp.f32 %v10561_v30 }
 0x3de   :  { %v8339_v50 = vpop.eup %8338  ;;  %8342 = vpow2.f32 %v1975_v37  ;;  %v10570_v9 = vpop.f32.mrf.mxu3  ;;  %v1948_v37 = vsub.f32 %v10295_v28, %v10455_v62  ;;  %v1995_v28 = vld [vmem:[%s14508_s1 + $0x70] sm:$0xff] }
 0x3df   :  { %v2009_v43 = vmul.f32 %v8339_v50, %v1993_v12  ;;  %14693 = vst [vmem:[#allocation14_spill] sm:$0xff] %v10570_v9  ;;  %8344 = vrcp.f32 %v10570_v9  ;;  %v698_v12 = vld [vmem:[#allocation2 + $0x10] sm:$0xff] }
 0x3e0   :  { %8346 = vpow2.f32 %v1977_v21 }
 0x3e3   :  { %2062 = vmatmul.f32.gmra.mxu1 %v2008_v25  ;;  %v8341_v56 = vpop.eup %8340 }
 0x3e4   :  { %784 = vperm.xlu0 %8064, %v8337_v41   ;;  %v8343_v36 = vpop.eup %8342 }
 0x3e5   :  { %v2010_v29 = vmul.f32 %v8343_v36, %v1994_v14  ;;  %v8345_v27 = vpop.eup %8344  ;;  %v10592_v36 = vsel %vm294_vm6, 1.0, %v14687_v52 }
 0x3e6   :  { %v10567_v47 = vpop.permute.xlu1 %1651  ;;  %v8347_v30 = vpop.eup %8346  ;;  %14694 = vst [vmem:[#allocation15_spill] sm:$0xff] %v10592_v36 }
 0x3e7   :  { %v2011_v21 = vmul.f32 %v8347_v30, %v1995_v28  ;;  %v702_v28 = vld [vmem:[#allocation2 + $0x30] sm:$0xff] }
 0x3eb   :  { %2065 = vmatmul.f32.gmra.mxu1 %v2009_v43  ;;  %v1979_v43 = vmul.f32 1.442695, %v1948_v37 }
 0x3ec   :  { %1721 = vperm.xlu0 %8064, %v8341_v56  }
 0x3ed   :  { %8348 = vpow2.f32 %v1979_v43 }
 0x3ee   :  { %v1657_v25 = vpop.permute.xlu0 %1656  ;;  %v725_v41 = vpop.permute.xlu1 %724 }
 0x3ef   :  { %v794_v11 = vmul.f32 %v725_v41, %v10343_v10  ;;  %v1726_v43 = vmul.f32 %v1657_v25, %v10381_v19 }
 0x3f1   :  { %v810_v50 = vmul.f32 %v794_v11, %v10477_v42 }
 0x3f3   :  { %2068 = vmatmul.f32.gmra.mxu1 %v2010_v29  ;;  %v826_v56 = vadd.f32 %v810_v50, %v698_v12  ;;  %v8349_v37 = vpop.eup %8348  ;;  %v1996_v50 = vld [vmem:[%s14508_s1 + $0x78] sm:$0xff] }
 0x3f4   :  { %1255 = vperm.xlu0 %8064, %v8345_v27   ;;  %v2012_v27 = vmul.f32 %v8349_v37, %v1996_v50 }
 0x3f5   :  { %842 = vst.msk [vmem:[#allocation2 + $0x10] sm:$0xff] %vm373_vm2, %v826_v56 }
 0x3f6   :  { %v1191_v10 = vpop.permute.xlu0 %1190  ;;  %v10605_v12 = vpop.permute.xlu1 %1195 }
 0x3f7   :  { %v1260_v62 = vmul.f32 %v1191_v10, %v10346_v44 }
 0x3f9   :  { %v1276_v14 = vmul.f32 %v1260_v62, %v10592_v36 }
 0x3fb   :  { %2071 = vmatmul.f32.gmra.mxu1 %v2011_v21  ;;  %v10614_v21 = vsel %vm298_vm9, 1.0, %v14687_v52 }
 0x3fc   :  { %v1164_v41 = vld [vmem:[#allocation2 + $0x10] sm:$0xff]  ;;  %14695 = vst [vmem:[#allocation16_spill] sm:$0xff] %v10614_v21 }
 0x3fd   :  { %v1292_v11 = vadd.f32 %v1276_v14, %v1164_v41  ;;  %v10595_v29 = vpop.f32.mrf.mxu1 }
 0x3fe   :  { %8350 = vrcp.f32 %v10595_v29  ;;  %v745_v44 = vpop.permute.xlu0 %744  ;;  %v10625_v50 = vpop.permute.xlu1 %1666 }
 0x3ff   :  { %1308 = vst.msk [vmem:[#allocation2 + $0x10] sm:$0xff] %vm373_vm2, %v1292_v11  ;;  %v798_v30 = vmul.f32 %v745_v44, %v10383_v31  ;;  %8352 = vrcp.f32 %v10299_v24  ;;  %v1742_v31 = vmul.f32 %v1726_v43, %v10614_v21  ;;  %v704_v44 = vld [vmem:[#allocation2 + $0x40] sm:$0xff] }
 0x401   :  { %v814_v56 = vmul.f32 %v798_v30, %v10477_v42 }
 0x403   :  { %2074 = vmatmul.f32.gmra.mxu1 %v2012_v27  ;;  %v830_v10 = vadd.f32 %v814_v56, %v702_v28 }
 0x404   :  { %v8351_v62 = vpop.eup %8350 }
 0x405   :  { %846 = vst.msk [vmem:[#allocation2 + $0x30] sm:$0xff] %vm373_vm2, %v830_v10  ;;  %v10619_v14 = vpop.f32.mrf.mxu1  ;;  %2112 = vperm.xlu2 %8062, %v8351_v62   ;;  %v8353_v30 = vpop.eup %8352 }
 0x406   :  { %8354 = vrcp.f32 %v10619_v14  ;;  %v755_v19 = vpop.permute.xlu0 %754  ;;  %v1630_v25 = vld [vmem:[#allocation2 + $0x10] sm:$0xff]  ;;  %v10629_v28 = vpop.permute.xlu1 %1205 }
 0x407   :  { %v800_v41 = vmul.f32 %v755_v19, %v10414_v59  ;;  %v1758_v37 = vadd.f32 %v1742_v31, %v1630_v25  ;;  %8356 = vrcp.f32 %v10338_v22 }
 0x408   :  { %8358 = vrcp.f32 %v10396_v17 }
 0x409   :  { %v816_v11 = vmul.f32 %v800_v41, %v10477_v42  ;;  %1774 = vst.msk [vmem:[#allocation2 + $0x10] sm:$0xff] %vm373_vm2, %v1758_v37 }
 0x40b   :  { %v832_v27 = vadd.f32 %v816_v11, %v704_v44 }
 0x40c   :  { %v8355_v43 = vpop.eup %8354 }
 0x40d   :  { %848 = vst.msk [vmem:[#allocation2 + $0x40] sm:$0xff] %vm373_vm2, %v832_v27  ;;  %714 = vperm.xlu2 %8062, %v8353_v30   ;;  %2117 = vperm.xlu1 %8063, %v8355_v43   ;;  %v8357_v56 = vpop.eup %8356 }
 0x40e   :  { %v8359_v10 = vpop.eup %8358  ;;  %v10636_v31 = vpop.permute.xlu1 %1676 }
 0x415   :  { %1185 = vperm.xlu2 %8062, %v8357_v56  }
 0x416   :  { %v10645_v11 = vpop.permute.xlu1 %1215 }
 0x418   :  { %v10632_v59 = vpop.f32.mrf.mxu1 }
 0x419   :  { %8360 = vrcp.f32 %v10632_v59 }
 0x41a   :  { %8362 = vrcp.f32 %v10349_v54 }
 0x41b   :  { %8364 = vrcp.f32 %v10359_v15 }
 0x41d   :  { %1661 = vperm.xlu2 %8062, %v8359_v10  }
 0x41e   :  { %v10653_v56 = vpop.permute.xlu1 %1686 }
 0x41f   :  { %v8361_v62 = vpop.eup %8360  ;;  %14698 = vst [vmem:[#allocation22_spill] sm:$0xff] %v10653_v56 }
 0x420   :  { %v10638_v19 = vpop.f32.mrf.mxu1  ;;  %2122 = vperm.xlu0 %8064, %v8361_v62   ;;  %v8363_v25 = vpop.eup %8362 }
 0x421   :  { %v8365_v44 = vpop.eup %8364 }
 0x425   :  { %729 = vperm.xlu2 %8062, %v8363_v25  }
 0x426   :  { %v10641_v41 = vpop.permute.xlu0 %1691 }
 0x427   :  { %14696 = vst [vmem:[#allocation21_spill] sm:$0xff] %v10641_v41 }
 0x428   :  { %v10643_v37 = vpop.f32.mrf.mxu1 }
 0x429   :  { %8366 = vrcp.f32 %v10643_v37 }
 0x42a   :  { %8368 = vrcp.f32 %v10366_v4 }
 0x42b   :  { %8370 = vrcp.f32 %v10418_v58 }
 0x42d   :  { %734 = vperm.xlu2 %8062, %v8365_v44  }
 0x42e   :  { %v10649_v27 = vpop.permute.xlu0 %1225 }
 0x42f   :  { %v8367_v30 = vpop.eup %8366  ;;  %14697 = vst [vmem:[#allocation17_spill] sm:$0xff] %v10649_v27  ;;  %v1231_v27 = vpop.permute.xlu1 %1230 }
 0x430   :  { %v10651_v43 = vpop.f32.mrf.mxu1  ;;  %2132 = vperm.xlu1 %8063, %v8367_v30   ;;  %v8369_v10 = vpop.eup %8368  ;;  %v1268_v46 = vmul.f32 %v1231_v27, %v10451_v3  ;;  %v708_v27 = vld [vmem:[#allocation2 + $0x60] sm:$0xff] }
 0x431   :  { %v8371_v41 = vpop.eup %8370 }
 0x435   :  { %1200 = vperm.xlu2 %8062, %v8369_v10  }
 0x436   :  { %v765_v62 = vpop.permute.xlu0 %764 }
 0x437   :  { %v802_v25 = vmul.f32 %v765_v62, %v10486_v38  ;;  %v1284_v62 = vmul.f32 %v1268_v46, %v10592_v36 }
 0x438   :  { %v10657_v9 = vpop.f32.mrf.mxu1 }
 0x439   :  { %8372 = vrcp.f32 %v10657_v9  ;;  %v818_v44 = vmul.f32 %v802_v25, %v10477_v42 }
 0x43a   :  { %8374 = vrcp.f32 %v10370_v2 }
 0x43b   :  { %v834_v51 = vadd.f32 %v818_v44, %v706_v61  ;;  %8376 = vrcp.f32 %v10390_v60 }
 0x43d   :  { %850 = vst.msk [vmem:[#allocation2 + $0x50] sm:$0xff] %vm373_vm2, %v834_v51  ;;  %1671 = vperm.xlu2 %8062, %v8371_v41  }
 0x43e   :  { %v1707_v10 = vpop.permute.xlu0 %1706 }
 0x43f   :  { %v8373_v30 = vpop.eup %8372 }
 0x440   :  { %v10664_v38 = vpop.f32.mrf.mxu1  ;;  %2142 = vperm.xlu1 %8063, %v8373_v30   ;;  %v8375_v56 = vpop.eup %8374 }
 0x441   :  { %v8377_v46 = vpop.eup %8376 }
 0x444   :  { %v1172_v25 = vld [vmem:[#allocation2 + $0x50] sm:$0xff] }
 0x445   :  { %739 = vperm.xlu2 %8062, %v8375_v56   ;;  %v1300_v61 = vadd.f32 %v1284_v62, %v1172_v25 }
 0x446   :  { %v775_v44 = vpop.permute.xlu0 %774 }
 0x447   :  { %v804_v51 = vmul.f32 %v775_v44, %v10523_v55  ;;  %1316 = vst.msk [vmem:[#allocation2 + $0x50] sm:$0xff] %vm373_vm2, %v1300_v61 }
 0x448   :  { %v10669_v41 = vpop.f32.mrf.mxu1 }
 0x449   :  { %14699 = vst [vmem:[#allocation27_spill] sm:$0xff] %v10669_v41  ;;  %8378 = vrcp.f32 %v10669_v41  ;;  %v820_v3 = vmul.f32 %v804_v51, %v10477_v42 }
 0x44a   :  { %8380 = vrcp.f32 %v10442_v53 }
 0x44b   :  { %v836_v30 = vadd.f32 %v820_v3, %v708_v27 }
 0x44d   :  { %852 = vst.msk [vmem:[#allocation2 + $0x60] sm:$0xff] %vm373_vm2, %v836_v30  ;;  %1210 = vperm.xlu2 %8062, %v8377_v46   ;;  %v10682_v46 = vpop.permute.xlu2 %1646 }
 0x44e   :  { %v1241_v62 = vpop.permute.xlu0 %1240 }
 0x44f   :  { %v8379_v56 = vpop.eup %8378  ;;  %v1270_v55 = vmul.f32 %v1241_v62, %v10496_v0 }
 0x450   :  { %v10677_v25 = vpop.f32.mrf.mxu1  ;;  %2152 = vperm.xlu0 %8064, %v8379_v56   ;;  %v8381_v44 = vpop.eup %8380  ;;  %v1736_v56 = vmul.f32 %v1707_v10, %v10517_v1 }
 0x451   :  { %14700 = vst [vmem:[#allocation25_spill] sm:$0xff] %v10677_v25  ;;  %8382 = vrcp.f32 %v10677_v25  ;;  %v1286_v61 = vmul.f32 %v1270_v55, %v10592_v36  ;;  %v710_v25 = vld [vmem:[#allocation2 + $0x70] sm:$0xff]  ;;  %v10699_v10 = vpop.permute.xlu1 %1701 }
 0x452   :  { %8384 = vrcp.f32 %v10398_v45 }
 0x453   :  { %8386 = vrcp.f32 %v10422_v16 }
 0x454   :  { %v1174_v51 = vld [vmem:[#allocation2 + $0x60] sm:$0xff] }
 0x455   :  { %v1302_v3 = vadd.f32 %v1286_v61, %v1174_v51  ;;  %1681 = vperm.xlu2 %8062, %v8381_v44   ;;  %v1752_v51 = vmul.f32 %v1736_v56, %v10614_v21 }
 0x456   :  { %v785_v30 = vpop.permute.xlu0 %784 }
 0x457   :  { %v8383_v27 = vpop.eup %8382  ;;  %1318 = vst.msk [vmem:[#allocation2 + $0x60] sm:$0xff] %vm373_vm2, %v1302_v3  ;;  %v806_v0 = vmul.f32 %v785_v30, %v10549_v6 }
 0x458   :  { %v10686_v62 = vpop.f32.mrf.mxu1  ;;  %2157 = vperm.xlu1 %8063, %v8383_v27   ;;  %v8385_v44 = vpop.eup %8384 }
 0x459   :  { %v822_v55 = vmul.f32 %v806_v0, %v10477_v42  ;;  %v8387_v1 = vpop.eup %8386 }
 0x45b   :  { %v838_v61 = vadd.f32 %v822_v55, %v710_v25 }
 0x45d   :  { %854 = vst.msk [vmem:[#allocation2 + $0x70] sm:$0xff] %vm373_vm2, %v838_v61  ;;  %749 = vperm.xlu2 %8062, %v8385_v44   ;;  %v696_v61 = vld [vmem:[#allocation2] sm:$0xff] }
 0x45e   :  { %v1640_v3 = vld [vmem:[#allocation2 + $0x60] sm:$0xff] }
 0x45f   :  { %v10693_v41 = vpop.permute.xlu2 %2112  ;;  %v1768_v27 = vadd.f32 %v1752_v51, %v1640_v3  ;;  %v2357_v3 = vld [vmem:[%s14512_s5 + $0x38] sm:$0xff] }
 0x460   :  { %v10695_v6 = vpop.f32.mrf.mxu1  ;;  %2414 = vmatpush.msrb.mxu2 %v2357_v3 }
 0x461   :  { %14701 = vst [vmem:[#allocation23_spill] sm:$0xff] %v10695_v6  ;;  %8388 = vrcp.f32 %v10695_v6 }
 0x462   :  { %1784 = vst.msk [vmem:[#allocation2 + $0x60] sm:$0xff] %vm373_vm2, %v1768_v27  ;;  %8390 = vrcp.f32 %v10463_v18  ;;  %v10712_v27 = vpop.permute.xlu1 %1245 }
 0x463   :  { %14702 = vst [vmem:[#allocation28_spill] sm:$0xff] %v10712_v27 }
 0x465   :  { %1220 = vperm.xlu2 %8062, %v8387_v1  }
 0x467   :  { %v8389_v25 = vpop.eup %8388  ;;  %v715_v30 = vpop.permute.xlu2 %714 }
 0x468   :  { %2167 = vperm.xlu0 %8064, %v8389_v25   ;;  %v792_v0 = vmul.f32 %v715_v30, %v10299_v24  ;;  %v10703_v56 = vpop.f32.mrf.mxu1  ;;  %v8391_v44 = vpop.eup %8390  ;;  %v1258_v25 = vmul.f32 %v10556_v35, %v10333_v48 }
 0x469   :  { %8392 = vrcp.f32 %v10703_v56 }
 0x46a   :  { %v808_v55 = vmul.f32 %v792_v0, %v10477_v42  ;;  %8394 = vrcp.f32 %v10490_v57  ;;  %v1274_v3 = vmul.f32 %v1258_v25, %v10592_v36  ;;  %v2355_v25 = vld [vmem:[%s14512_s5 + $0x28] sm:$0xff] }
 0x46b   :  { %8396 = vrcp.f32 %v10502_v40 }
 0x46c   :  { %v824_v51 = vadd.f32 %v808_v55, %v696_v61  ;;  %v2356_v55 = vld [vmem:[%s14512_s5 + $0x30] sm:$0xff] }
 0x46d   :  { %759 = vperm.xlu2 %8062, %v8391_v44   ;;  %2415 = vmatpush.msrb.mxu2 %v2356_v55  ;;  %v1163_v44 = vld [vmem:[#allocation2 + $0x8] sm:$0xff] }
 0x46e   :  { %840 = vst.msk [vmem:[#allocation2] sm:$0xff] %vm373_vm2, %v824_v51 }
 0x46f   :  { %v8393_v24 = vpop.eup %8392  ;;  %v1186_v1 = vpop.permute.xlu2 %1185  ;;  %2416 = vmatpush.msrb.mxu2 %v2355_v25  ;;  %v2351_v25 = vld [vmem:[%s14512_s5 + $0x8] sm:$0xff] }
 0x470   :  { %v1259_v30 = vmul.f32 %v1186_v1, %v10338_v22  ;;  %v10717_v0 = vpop.f32.mrf.mxu1  ;;  %2172 = vperm.xlu1 %8063, %v8393_v24   ;;  %v8395_v51 = vpop.eup %8394  ;;  %v1725_v24 = vmul.f32 %v10567_v47, %v10372_v33  ;;  %v2353_v33 = vld [vmem:[%s14512_s5 + $0x18] sm:$0xff] }
 0x471   :  { %v10726_v22 = vpop.permute.xlu1 %1716  ;;  %v8397_v47 = vpop.eup %8396 }
 0x472   :  { %v1275_v61 = vmul.f32 %v1259_v30, %v10592_v36  ;;  %v1741_v30 = vmul.f32 %v1725_v24, %v10614_v21 }
 0x474   :  { %v1291_v27 = vadd.f32 %v1275_v61, %v1163_v44  ;;  %v2352_v61 = vld [vmem:[%s14512_s5 + $0x10] sm:$0xff] }
 0x475   :  { %v1162_v6 = vld [vmem:[#allocation2] sm:$0xff]  ;;  %1696 = vperm.xlu2 %8062, %v8395_v51  }
 0x476   :  { %v1290_v48 = vadd.f32 %v1274_v3, %v1162_v6  ;;  %1307 = vst.msk [vmem:[#allocation2 + $0x8] sm:$0xff] %vm373_vm2, %v1291_v27  ;;  %v2354_v6 = vld [vmem:[%s14512_s5 + $0x20] sm:$0xff]  ;;  %v1724_v27 = vmul.f32 %v10682_v46, %v10363_v20  ;;  %v10753_v20 = vpop.permute.xlu0 %1721 }
 0x477   :  { %v10728_v35 = vpop.permute.xlu2 %1661  ;;  %2417 = vmatpush.msrb.mxu2 %v2354_v6 }
 0x478   :  { %1306 = vst.msk [vmem:[#allocation2] sm:$0xff] %vm373_vm2, %v1290_v48  ;;  %v10733_v1 = vpop.f32.mrf.mxu1  ;;  %v1740_v44 = vmul.f32 %v1724_v27, %v10614_v21 }
 0x479   :  { %8398 = vrcp.f32 %v10733_v1  ;;  %2418 = vmatpush.msrb.mxu2 %v2353_v33  ;;  %v2350_v33 = vld [vmem:[%s14512_s5] sm:$0xff] }
 0x47a   :  { %8400 = vrcp.f32 %v10471_v23 }
 0x47b   :  { %2419 = vmatpush.msrb.mxu2 %v2352_v61 }
 0x47d   :  { %769 = vperm.xlu2 %8062, %v8397_v47   ;;  %v1629_v55 = vld [vmem:[#allocation2 + $0x8] sm:$0xff]  ;;  %2420 = vmatpush.msrb.mxu2 %v2351_v25 }
 0x47e   :  { %v1757_v46 = vadd.f32 %v1741_v30, %v1629_v55 }
 0x47f   :  { %v8399_v51 = vpop.eup %8398  ;;  %v1628_v3 = vld [vmem:[#allocation2] sm:$0xff]  ;;  %v2118_v48 = vpop.permute.xlu1 %2117  ;;  %2421 = vmatpush.msrb.mxu2 %v2350_v33 }
 0x480   :  { %v730_v24 = vpop.permute.xlu2 %729  ;;  %v1756_v6 = vadd.f32 %v1740_v44, %v1628_v3  ;;  %1773 = vst.msk [vmem:[#allocation2 + $0x8] sm:$0xff] %vm373_vm2, %v1757_v46  ;;  %v10762_v47 = vpop.f32.mrf.mxu1  ;;  %2182 = vperm.xlu0 %8064, %v8399_v51   ;;  %v2191_v30 = vmul.f32 %v2118_v48, %v10619_v14  ;;  %v699_v44 = vld [vmem:[#allocation2 + $0x18] sm:$0xff]  ;;  %v2190_v46 = vmul.f32 %v10693_v41, %v10595_v29  ;;  %v10774_v51 = vsel %vm302_vm12, 1.0, %v14687_v52 }
 0x481   :  { %v795_v27 = vmul.f32 %v730_v24, %v10349_v54  ;;  %8402 = vrcp.f32 %v10762_v47  ;;  %v8401_v54 = vpop.eup %8400  ;;  %14703 = vst [vmem:[#allocation26_spill] sm:$0xff] %v10774_v51  ;;  %v1261_v48 = vmul.f32 %v10605_v12, %v10351_v63  ;;  %v10784_v33 = vpop.permute.xlu0 %1255 }
 0x482   :  { %1772 = vst.msk [vmem:[#allocation2] sm:$0xff] %vm373_vm2, %v1756_v6  ;;  %8404 = vrcp.f32 %v10528_v8  ;;  %v2207_v3 = vmul.f32 %v2191_v30, %v10774_v51  ;;  %v2206_v29 = vmul.f32 %v2190_v46, %v10774_v51 }
 0x483   :  { %v811_v55 = vmul.f32 %v795_v27, %v10477_v42  ;;  %v14704_v27 = vmov 71   ;;  %v1277_v12 = vmul.f32 %v1261_v48, %v10592_v36  ;;  %8406 = vrcp.f32 %v10535_v49 }
 0x484   :  { %v1727_v48 = vmul.f32 %v10728_v35, %v10396_v17 }
 0x485   :  { %v827_v61 = vadd.f32 %v811_v55, %v699_v44  ;;  %1235 = vperm.xlu2 %8062, %v8401_v54   ;;  %v700_v54 = vld [vmem:[#allocation2 + $0x20] sm:$0xff] }
 0x487   :  { %843 = vst.msk [vmem:[#allocation2 + $0x18] sm:$0xff] %vm373_vm2, %v827_v61  ;;  %v8403_v14 = vpop.eup %8402  ;;  %v2095_v24 = vld [vmem:[#allocation2 + $0x8] sm:$0xff] }
 0x488   :  { %v735_v25 = vpop.permute.xlu2 %734  ;;  %v2223_v41 = vadd.f32 %v2207_v3, %v2095_v24  ;;  %2187 = vperm.xlu1 %8063, %v8403_v14   ;;  %8070 = vset.pattern.permute.xlu0 %v14704_v27  ;;  %v8405_v63 = vpop.eup %8404  ;;  %v14705_v24 = vmov 69  }
 0x489   :  { %v796_v6 = vmul.f32 %v735_v25, %v10359_v15  ;;  %v2094_v55 = vld [vmem:[#allocation2] sm:$0xff] }
 0x48a   :  { %v2222_v30 = vadd.f32 %v2206_v29, %v2094_v55  ;;  %2239 = vst.msk [vmem:[#allocation2 + $0x8] sm:$0xff] %vm373_vm2, %v2223_v41 }
 0x48b   :  { %v812_v44 = vmul.f32 %v796_v6, %v10477_v42 }
 0x48c   :  { %2238 = vst.msk [vmem:[#allocation2] sm:$0xff] %vm373_vm2, %v2222_v30  ;;  %v8407_v30 = vpop.eup %8406 }
 0x48d   :  { %v828_v46 = vadd.f32 %v812_v44, %v700_v54  ;;  %1711 = vperm.xlu2 %8062, %v8405_v63  }
 0x48e   :  { %v1165_v61 = vld [vmem:[#allocation2 + $0x18] sm:$0xff] }
 0x48f   :  { %v1293_v15 = vadd.f32 %v1277_v12, %v1165_v61  ;;  %844 = vst.msk [vmem:[#allocation2 + $0x20] sm:$0xff] %vm373_vm2, %v828_v46  ;;  %v2096_v12 = vld [vmem:[#allocation2 + $0x10] sm:$0xff]  ;;  %v1743_v46 = vmul.f32 %v1727_v48, %v10614_v21 }
 0x490   :  { %v1201_v3 = vpop.permute.xlu2 %1200  ;;  %8065 = vset.pattern.permute.xlu1 %v14705_v24 }
 0x491   :  { %1309 = vst.msk [vmem:[#allocation2 + $0x18] sm:$0xff] %vm373_vm2, %v1293_v15  ;;  %v1262_v14 = vmul.f32 %v1201_v3, %v10366_v4  ;;  %v2255_v29 = vld [vmem:[#allocation2 + $0x8] sm:$0xff] }
 0x492   :  { %v2123_v25 = vpop.permute.xlu0 %2122  ;;  %v2288_v6 = vmul.f32 1.442695, %v2255_v29  ;;  %vm2271_vm13 = vcmp.gt.f32.partialorder %v2255_v29, 0.0 }
 0x493   :  { %v2192_v41 = vmul.f32 %v2123_v25, %v10632_v59  ;;  %v2254_v55 = vld [vmem:[#allocation2] sm:$0xff]  ;;  %v1278_v44 = vmul.f32 %v1262_v14, %v10592_v36  ;;  %v1728_v14 = vmul.f32 %v10625_v50, %v10406_v32 }
 0x494   :  { %v2286_v63 = vmul.f32 1.442695, %v2254_v55  ;;  %8408 = vpow2.f32 %v2288_v6  ;;  %v10811_v25 = vld [vmem:[%s14513_s6] ss:$0 sm:$0xff]  ;;  %vm2270_vm14 = vcmp.gt.f32.partialorder %v2254_v55, 0.0 }
 0x495   :  { %v2208_v54 = vmul.f32 %v2192_v41, %v10774_v51  ;;  %8410 = vrcp.f32 %v10559_v39  ;;  %779 = vperm.xlu2 %8062, %v8407_v30   ;;  %v10814_v41 = vpop.f32.mrf.mxu2  ;;  %v1744_v32 = vmul.f32 %v1728_v14, %v10614_v21  ;;  %v701_v14 = vld [vmem:[#allocation2 + $0x28] sm:$0xff] }
 0x496   :  { %v1166_v4 = vld [vmem:[#allocation2 + $0x20] sm:$0xff]  ;;  %8412 = vpow2.f32 %v2286_v63 }
 0x497   :  { %v1294_v61 = vadd.f32 %v1278_v44, %v1166_v4  ;;  %v2224_v17 = vadd.f32 %v2208_v54, %v2096_v12  ;;  %8414 = vrcp.f32 %v10814_v41 }
 0x498   :  { %v10802_v59 = vpop.permute.xlu2 %1671  ;;  %v1631_v35 = vld [vmem:[#allocation2 + $0x18] sm:$0xff] }
 0x499   :  { %1310 = vst.msk [vmem:[#allocation2 + $0x20] sm:$0xff] %vm373_vm2, %v1294_v61  ;;  %v1759_v15 = vadd.f32 %v1743_v46, %v1631_v35 }
 0x49a   :  { %2240 = vst.msk [vmem:[#allocation2 + $0x10] sm:$0xff] %vm373_vm2, %v2224_v17  ;;  %v8409_v3 = vpop.eup %8408 }
 0x49b   :  { %1775 = vst.msk [vmem:[#allocation2 + $0x18] sm:$0xff] %vm373_vm2, %v1759_v15  ;;  %v8411_v48 = vpop.eup %8410  ;;  %v7880_v6 = vadd.f32 -1.0, %v8409_v3 }
 0x49c   :  { %v8413_v30 = vpop.eup %8412 }
 0x49d   :  { %1250 = vperm.xlu2 %8062, %v8411_v48   ;;  %v7879_v44 = vadd.f32 -1.0, %v8413_v30  ;;  %v2335_v54 = vsel %vm2271_vm13, %v2255_v29, %v7880_v6  ;;  %v1263_v30 = vmul.f32 %v10629_v28, %v10376_v26 }
 0x49e   :  { %v2572_v50 = vadd.f32 %v10811_v25, %v2335_v54 }
 0x49f   :  { %v2334_v4 = vsel %vm2270_vm14, %v2254_v55, %v7879_v44  ;;  %v8415_v55 = vpop.eup %8414 }
 0x4a0   :  { %v740_v63 = vpop.permute.xlu2 %739  ;;  %v1632_v12 = vld [vmem:[#allocation2 + $0x20] sm:$0xff]  ;;  %7895 = vmatmul.msk.f32.vlgmr.msrb.gmra.mxu2 %vm373_vm2, %v2334_v4  ;;  %v2571_v61 = vadd.f32 %v10811_v25, %v2334_v4  ;;  %2588 = vst.msk [vmem:[#allocation3 + $0x8] sm:$0xff] %vm373_vm2, %v2572_v50 }
 0x4a1   :  { %v797_v46 = vmul.f32 %v740_v63, %v10370_v2  ;;  %v1760_v17 = vadd.f32 %v1744_v32, %v1632_v12  ;;  %v2256_v29 = vld [vmem:[#allocation2 + $0x10] sm:$0xff] }
 0x4a2   :  { %v2290_v35 = vmul.f32 1.442695, %v2256_v29  ;;  %2587 = vst.msk [vmem:[#allocation3] sm:$0xff] %vm373_vm2, %v2571_v61  ;;  %v2133_v3 = vpop.permute.xlu1 %2132  ;;  %vm2272_vm15 = vcmp.gt.f32.partialorder %v2256_v29, 0.0 }
 0x4a3   :  { %v813_v15 = vmul.f32 %v797_v46, %v10477_v42  ;;  %1776 = vst.msk [vmem:[#allocation2 + $0x20] sm:$0xff] %vm373_vm2, %v1760_v17  ;;  %v2194_v48 = vmul.f32 %v2133_v3, %v10643_v37  ;;  %v1168_v46 = vld [vmem:[#allocation2 + $0x30] sm:$0xff]  ;;  %v1279_v17 = vmul.f32 %v1263_v30, %v10592_v36  ;;  %v1730_v3 = vmul.f32 %v10636_v31, %v10429_v7 }
 0x4a4   :  { %8416 = vpow2.f32 %v2290_v35 }
 0x4a5   :  { %v829_v2 = vadd.f32 %v813_v15, %v701_v14  ;;  %789 = vperm.xlu2 %8062, %v8415_v55   ;;  %8418 = vrcp.f32 %v10638_v19  ;;  %v2210_v50 = vmul.f32 %v2194_v48, %v10774_v51  ;;  %v1746_v55 = vmul.f32 %v1730_v3, %v10614_v21 }
 0x4a6   :  { %8420 = vrcp.f32 %v10651_v43 }
 0x4a7   :  { %845 = vst.msk [vmem:[#allocation2 + $0x28] sm:$0xff] %vm373_vm2, %v829_v2  ;;  %8422 = vrcp.f32 %v10664_v38 }
 0x4a8   :  { %v1211_v6 = vpop.permute.xlu2 %1210  ;;  %7896 = vmatmul.msk.f32.gmra.mxu2 %vm373_vm2, %v2335_v54 }
 0x4a9   :  { %v1264_v44 = vmul.f32 %v1211_v6, %v10390_v60 }
 0x4aa   :  { %v8417_v32 = vpop.eup %8416  ;;  %v2098_v63 = vld [vmem:[#allocation2 + $0x20] sm:$0xff] }
 0x4ab   :  { %v1280_v4 = vmul.f32 %v1264_v44, %v10592_v36  ;;  %v7881_v37 = vadd.f32 -1.0, %v8417_v32  ;;  %v2226_v12 = vadd.f32 %v2210_v50, %v2098_v63  ;;  %v8419_v61 = vpop.eup %8418 }
 0x4ac   :  { %v8421_v14 = vpop.eup %8420 }
 0x4ad   :  { %v1296_v35 = vadd.f32 %v1280_v4, %v1168_v46  ;;  %v2336_v15 = vsel %vm2272_vm15, %v2256_v29, %v7881_v37  ;;  %2242 = vst.msk [vmem:[#allocation2 + $0x20] sm:$0xff] %vm373_vm2, %v2226_v12  ;;  %2127 = vperm.xlu2 %8062, %v8419_v61   ;;  %v1729_v29 = vmul.f32 %v10802_v59, %v10418_v58  ;;  %v703_v4 = vld [vmem:[#allocation2 + $0x38] sm:$0xff]  ;;  %v8423_v37 = vpop.eup %8422 }
 0x4ae   :  { %v1167_v26 = vld [vmem:[#allocation2 + $0x28] sm:$0xff]  ;;  %v2573_v60 = vadd.f32 %v10811_v25, %v2336_v15 }
 0x4af   :  { %v1295_v28 = vadd.f32 %v1279_v17, %v1167_v26  ;;  %1312 = vst.msk [vmem:[#allocation2 + $0x30] sm:$0xff] %vm373_vm2, %v1296_v35  ;;  %v1745_v30 = vmul.f32 %v1729_v29, %v10614_v21  ;;  %v1170_v29 = vld [vmem:[#allocation2 + $0x40] sm:$0xff] }
 0x4b0   :  { %v1682_v54 = vpop.permute.xlu2 %1681  ;;  %2589 = vst.msk [vmem:[#allocation3 + $0x10] sm:$0xff] %vm373_vm2, %v2573_v60  ;;  %7897 = vmatmul.msk.f32.gmra.mxu2 %vm373_vm2, %v2336_v15 }
 0x4b1   :  { %1311 = vst.msk [vmem:[#allocation2 + $0x28] sm:$0xff] %vm373_vm2, %v1295_v28 }
 0x4b2   :  { %v2143_v7 = vpop.permute.xlu1 %2142 }
 0x4b3   :  { %v2196_v50 = vmul.f32 %v2143_v7, %v10657_v9  ;;  %v1265_v9 = vmul.f32 %v10645_v11, %v10408_v5  ;;  %v1731_v7 = vmul.f32 %v1682_v54, %v10442_v53  ;;  %v14707_v53 = vld [vmem:[#allocation19_spill] sm:$0xff]  ;;  %v14708_v54 = vld [vmem:[#allocation17_spill] sm:$0xff] }
 0x4b4   :  { %v2258_v2 = vld [vmem:[#allocation2 + $0x20] sm:$0xff] }
 0x4b5   :  { %2137 = vperm.xlu2 %8062, %v8421_v14   ;;  %v2294_v6 = vmul.f32 1.442695, %v2258_v2  ;;  %v2212_v61 = vmul.f32 %v2196_v50, %v10774_v51  ;;  %vm2274_vm0 = vcmp.gt.f32.partialorder %v2258_v2, 0.0 }
 0x4b6   :  { %v1634_v48 = vld [vmem:[#allocation2 + $0x30] sm:$0xff] }
 0x4b7   :  { %v1762_v44 = vadd.f32 %v1746_v55, %v1634_v48  ;;  %8424 = vpow2.f32 %v2294_v6  ;;  %v1281_v55 = vmul.f32 %v1265_v9, %v10592_v36  ;;  %v14709_v9 = vld [vmem:[#allocation27_spill] sm:$0xff] }
 0x4b8   :  { %v750_v31 = vpop.permute.xlu2 %749  ;;  %v1633_v32 = vld [vmem:[#allocation2 + $0x28] sm:$0xff]  ;;  %8426 = vrcp.f32 %v10686_v62 }
 0x4b9   :  { %1778 = vst.msk [vmem:[#allocation2 + $0x30] sm:$0xff] %vm373_vm2, %v1762_v44  ;;  %v799_v58 = vmul.f32 %v750_v31, %v10398_v45  ;;  %v1761_v59 = vadd.f32 %v1745_v30, %v1633_v32  ;;  %8428 = vrcp.f32 %v10717_v0 }
 0x4bb   :  { %v815_v63 = vmul.f32 %v799_v58, %v10477_v42  ;;  %1777 = vst.msk [vmem:[#allocation2 + $0x28] sm:$0xff] %vm373_vm2, %v1761_v59  ;;  %v705_v58 = vld [vmem:[#allocation2 + $0x48] sm:$0xff] }
 0x4bd   :  { %v831_v12 = vadd.f32 %v815_v63, %v703_v4  ;;  %v8425_v46 = vpop.eup %8424  ;;  %2147 = vperm.xlu2 %8062, %v8423_v37  }
 0x4be   :  { %v7883_v17 = vadd.f32 -1.0, %v8425_v46  ;;  %v8427_v14 = vpop.eup %8426 }
 0x4bf   :  { %847 = vst.msk [vmem:[#allocation2 + $0x38] sm:$0xff] %vm373_vm2, %v831_v12  ;;  %v8429_v59 = vpop.eup %8428 }
 0x4c0   :  { %v2100_v45 = vld [vmem:[#allocation2 + $0x30] sm:$0xff]  ;;  %v1221_v35 = vpop.permute.xlu2 %1220  ;;  %v10861_v60 = vsel %vm2274_vm0, %v2258_v2, %v7883_v17 }
 0x4c1   :  { %v2228_v15 = vadd.f32 %v2212_v61, %v2100_v45  ;;  %v1266_v26 = vmul.f32 %v1221_v35, %v10422_v16  ;;  %v2575_v28 = vadd.f32 %v10811_v25, %v10861_v60  ;;  %v14706_v2 = vld [vmem:[#allocation22_spill] sm:$0xff]  ;;  %v1267_v61 = vmul.f32 %v14708_v54, %v14707_v53 }
 0x4c2   :  { %v1732_v6 = vmul.f32 %v14706_v2, %v10453_v13  ;;  %v1747_v13 = vmul.f32 %v1731_v7, %v10614_v21 }
 0x4c3   :  { %2244 = vst.msk [vmem:[#allocation2 + $0x30] sm:$0xff] %vm373_vm2, %v2228_v15  ;;  %v1282_v3 = vmul.f32 %v1266_v26, %v10592_v36 }
 0x4c4   :  { %2591 = vst.msk [vmem:[#allocation3 + $0x20] sm:$0xff] %vm373_vm2, %v2575_v28  ;;  %v1748_v50 = vmul.f32 %v1732_v6, %v10614_v21  ;;  %v1638_v28 = vld [vmem:[#allocation2 + $0x50] sm:$0xff] }
 0x4c5   :  { %v1298_v48 = vadd.f32 %v1282_v3, %v1170_v29  ;;  %2162 = vperm.xlu2 %8062, %v8427_v14   ;;  %v1283_v29 = vmul.f32 %v1267_v61, %v10592_v36  ;;  %v14713_v61 = vld [vmem:[#allocation25_spill] sm:$0xff] }
 0x4c6   :  { %v1169_v5 = vld [vmem:[#allocation2 + $0x38] sm:$0xff] }
 0x4c7   :  { %v1297_v16 = vadd.f32 %v1281_v55, %v1169_v5  ;;  %1314 = vst.msk [vmem:[#allocation2 + $0x40] sm:$0xff] %vm373_vm2, %v1298_v48  ;;  %v14710_v48 = vmov 70  }
 0x4c8   :  { %v760_v11 = vpop.permute.xlu2 %759 }
 0x4c9   :  { %1313 = vst.msk [vmem:[#allocation2 + $0x38] sm:$0xff] %vm373_vm2, %v1297_v16  ;;  %v801_v30 = vmul.f32 %v760_v11, %v10463_v18  ;;  %v2153_v18 = vpop.permute.xlu0 %2152 }
 0x4ca   :  { %v2260_v44 = vld [vmem:[#allocation2 + $0x30] sm:$0xff]  ;;  %v2198_v15 = vmul.f32 %v2153_v18, %v14709_v9 }
 0x4cb   :  { %v817_v31 = vmul.f32 %v801_v30, %v10477_v42  ;;  %v2298_v32 = vmul.f32 1.442695, %v2260_v44  ;;  %vm2276_vm1 = vcmp.gt.f32.partialorder %v2260_v44, 0.0 }
 0x4cd   :  { %v833_v63 = vadd.f32 %v817_v31, %v705_v58  ;;  %8430 = vpow2.f32 %v2298_v32  ;;  %2177 = vperm.xlu2 %8062, %v8429_v59   ;;  %v14711_v31 = vld [vmem:[#allocation10_spill] sm:$0xff]  ;;  %v2158_v58 = vpop.permute.xlu1 %2157 }
 0x4ce   :  { %v1636_v4 = vld [vmem:[#allocation2 + $0x40] sm:$0xff] }
 0x4cf   :  { %v1764_v37 = vadd.f32 %v1748_v50, %v1636_v4  ;;  %849 = vst.msk [vmem:[#allocation2 + $0x48] sm:$0xff] %vm373_vm2, %v833_v63  ;;  %v707_v50 = vld [vmem:[#allocation2 + $0x58] sm:$0xff] }
 0x4d0   :  { %v1697_v12 = vpop.permute.xlu2 %1696  ;;  %v1635_v46 = vld [vmem:[#allocation2 + $0x38] sm:$0xff] }
 0x4d1   :  { %1780 = vst.msk [vmem:[#allocation2 + $0x40] sm:$0xff] %vm373_vm2, %v1764_v37  ;;  %v1734_v17 = vmul.f32 %v1697_v12, %v10490_v57  ;;  %v1763_v45 = vadd.f32 %v1747_v13, %v1635_v46  ;;  %v2214_v57 = vmul.f32 %v2198_v15, %v10774_v51 }
 0x4d3   :  { %v8431_v35 = vpop.eup %8430  ;;  %v1750_v26 = vmul.f32 %v1734_v17, %v10614_v21  ;;  %1779 = vst.msk [vmem:[#allocation2 + $0x38] sm:$0xff] %vm373_vm2, %v1763_v45  ;;  %v2199_v17 = vmul.f32 %v2158_v58, %v14713_v61 }
 0x4d4   :  { %v7885_v3 = vadd.f32 -1.0, %v8431_v35 }
 0x4d5   :  { %v1766_v14 = vadd.f32 %v1750_v26, %v1638_v28  ;;  %8066 = vset.pattern.permute.xlu2 %v14710_v48  ;;  %v2106_v26 = vld [vmem:[#allocation2 + $0x60] sm:$0xff] }
 0x4d6   :  { %v1171_v55 = vld [vmem:[#allocation2 + $0x48] sm:$0xff]  ;;  %v10889_v5 = vsel %vm2276_vm1, %v2260_v44, %v7885_v3 }
 0x4d7   :  { %v1299_v16 = vadd.f32 %v1283_v29, %v1171_v55  ;;  %1782 = vst.msk [vmem:[#allocation2 + $0x50] sm:$0xff] %vm373_vm2, %v1766_v14  ;;  %v2577_v11 = vadd.f32 %v10811_v25, %v10889_v5  ;;  %v14712_v44 = vld [vmem:[#allocation21_spill] sm:$0xff]  ;;  %v14714_v14 = vld [vmem:[#allocation18_spill] sm:$0xff] }
 0x4d8   :  { %v2102_v2 = vld [vmem:[#allocation2 + $0x40] sm:$0xff]  ;;  %v770_v6 = vpop.permute.xlu2 %769  ;;  %v1733_v32 = vmul.f32 %v14712_v44, %v14711_v31  ;;  %v1735_v55 = vmul.f32 %v10699_v10, %v14714_v14 }
 0x4d9   :  { %v2230_v30 = vadd.f32 %v2214_v57, %v2102_v2  ;;  %1315 = vst.msk [vmem:[#allocation2 + $0x48] sm:$0xff] %vm373_vm2, %v1299_v16  ;;  %v803_v7 = vmul.f32 %v770_v6, %v10502_v40 }
 0x4da   :  { %2593 = vst.msk [vmem:[#allocation3 + $0x30] sm:$0xff] %vm373_vm2, %v2577_v11  ;;  %v1749_v4 = vmul.f32 %v1733_v32, %v10614_v21  ;;  %v1751_v2 = vmul.f32 %v1735_v55, %v10614_v21  ;;  %v2168_v32 = vpop.permute.xlu0 %2167 }
 0x4db   :  { %2246 = vst.msk [vmem:[#allocation2 + $0x40] sm:$0xff] %vm373_vm2, %v2230_v30  ;;  %v819_v59 = vmul.f32 %v803_v7, %v10477_v42 }
 0x4dd   :  { %v835_v63 = vadd.f32 %v819_v59, %v707_v50  ;;  %v709_v50 = vld [vmem:[#allocation2 + $0x68] sm:$0xff] }
 0x4df   :  { %851 = vst.msk [vmem:[#allocation2 + $0x58] sm:$0xff] %vm373_vm2, %v835_v63 }
 0x4e0   :  { %v1637_v13 = vld [vmem:[#allocation2 + $0x48] sm:$0xff]  ;;  %v1236_v37 = vpop.permute.xlu2 %1235 }
 0x4e1   :  { %v1765_v18 = vadd.f32 %v1749_v4, %v1637_v13  ;;  %v1269_v40 = vmul.f32 %v1236_v37, %v10471_v23  ;;  %v2215_v23 = vmul.f32 %v2199_v17, %v10774_v51  ;;  %v14715_v4 = vld [vmem:[#allocation23_spill] sm:$0xff] }
 0x4e2   :  { %v2262_v12 = vld [vmem:[#allocation2 + $0x40] sm:$0xff]  ;;  %v2173_v46 = vpop.permute.xlu1 %2172  ;;  %v2201_v13 = vmul.f32 %v2168_v32, %v14715_v4 }
 0x4e3   :  { %1781 = vst.msk [vmem:[#allocation2 + $0x48] sm:$0xff] %vm373_vm2, %v1765_v18  ;;  %v2302_v53 = vmul.f32 1.442695, %v2262_v12  ;;  %v2202_v54 = vmul.f32 %v2173_v46, %v10703_v56  ;;  %v1285_v45 = vmul.f32 %v1269_v40, %v10592_v36  ;;  %vm2278_vm6 = vcmp.gt.f32.partialorder %v2262_v12, 0.0  ;;  %v14716_v40 = vld [vmem:[#allocation12_spill] sm:$0xff] }
 0x4e5   :  { %8432 = vpow2.f32 %v2302_v53  ;;  %v2218_v9 = vmul.f32 %v2202_v54, %v10774_v51  ;;  %v2217_v53 = vmul.f32 %v2201_v13, %v10774_v51 }
 0x4e6   :  { %v1173_v35 = vld [vmem:[#allocation2 + $0x58] sm:$0xff] }
 0x4e7   :  { %v1301_v15 = vadd.f32 %v1285_v45, %v1173_v35  ;;  %v2234_v28 = vadd.f32 %v2218_v9, %v2106_v26 }
 0x4e8   :  { %v1712_v3 = vpop.permute.xlu2 %1711 }
 0x4e9   :  { %1317 = vst.msk [vmem:[#allocation2 + $0x58] sm:$0xff] %vm373_vm2, %v1301_v15  ;;  %v1176_v15 = vld [vmem:[#allocation2 + $0x70] sm:$0xff] }
 0x4ea   :  { %v2103_v29 = vld [vmem:[#allocation2 + $0x48] sm:$0xff]  ;;  %2250 = vst.msk [vmem:[#allocation2 + $0x60] sm:$0xff] %vm373_vm2, %v2234_v28 }
 0x4eb   :  { %v8433_v56 = vpop.eup %8432  ;;  %v2231_v57 = vadd.f32 %v2215_v23, %v2103_v29 }
 0x4ec   :  { %v7887_v16 = vadd.f32 -1.0, %v8433_v56 }
 0x4ed   :  { %2247 = vst.msk [vmem:[#allocation2 + $0x48] sm:$0xff] %vm373_vm2, %v2231_v57 }
 0x4ee   :  { %v10916_v11 = vsel %vm2278_vm6, %v2262_v12, %v7887_v16  ;;  %v14717_v12 = vld [vmem:[#allocation28_spill] sm:$0xff] }
 0x4ef   :  { %v2579_v6 = vadd.f32 %v10811_v25, %v10916_v11  ;;  %v1271_v46 = vmul.f32 %v14717_v12, %v14716_v40 }
 0x4f0   :  { %v1639_v30 = vld [vmem:[#allocation2 + $0x58] sm:$0xff]  ;;  %v780_v7 = vpop.permute.xlu2 %779 }
 0x4f1   :  { %v1767_v31 = vadd.f32 %v1751_v2, %v1639_v30  ;;  %v805_v44 = vmul.f32 %v780_v7, %v10535_v49  ;;  %2595 = vst.msk [vmem:[#allocation3 + $0x40] sm:$0xff] %vm373_vm2, %v2579_v6  ;;  %v2266_v10 = vld [vmem:[#allocation2 + $0x60] sm:$0xff]  ;;  %v1287_v28 = vmul.f32 %v1271_v46, %v10592_v36  ;;  %v2097_v46 = vld [vmem:[#allocation2 + $0x18] sm:$0xff] }
 0x4f2   :  { %v2310_v58 = vmul.f32 1.442695, %v2266_v10  ;;  %vm2282_vm9 = vcmp.gt.f32.partialorder %v2266_v10, 0.0  ;;  %v14718_v2 = vld [vmem:[#allocation20_spill] sm:$0xff] }
 0x4f3   :  { %1783 = vst.msk [vmem:[#allocation2 + $0x58] sm:$0xff] %vm373_vm2, %v1767_v31  ;;  %v821_v59 = vmul.f32 %v805_v44, %v10477_v42  ;;  %v1738_v6 = vmul.f32 %v10726_v22, %v14718_v2  ;;  %v1737_v31 = vmul.f32 %v1712_v3, %v10528_v8  ;;  %v14719_v3 = vld [vmem:[#allocation14_spill] sm:$0xff] }
 0x4f4   :  { %v2263_v63 = vld [vmem:[#allocation2 + $0x48] sm:$0xff]  ;;  %8434 = vpow2.f32 %v2310_v58 }
 0x4f5   :  { %v837_v37 = vadd.f32 %v821_v59, %v709_v50  ;;  %v2304_v18 = vmul.f32 1.442695, %v2263_v63  ;;  %vm2279_vm10 = vcmp.gt.f32.partialorder %v2263_v63, 0.0  ;;  %v1754_v58 = vmul.f32 %v1738_v6, %v10614_v21 }
 0x4f7   :  { %853 = vst.msk [vmem:[#allocation2 + $0x68] sm:$0xff] %vm373_vm2, %v837_v37  ;;  %8436 = vpow2.f32 %v2304_v18  ;;  %v1273_v37 = vmul.f32 %v10784_v33, %v14719_v3 }
 0x4f8   :  { %v1251_v49 = vpop.permute.xlu2 %1250 }
 0x4f9   :  { %v1272_v54 = vmul.f32 %v1251_v49, %v10559_v39 }
 0x4fa   :  { %v8435_v61 = vpop.eup %8434  ;;  %v2105_v17 = vld [vmem:[#allocation2 + $0x58] sm:$0xff] }
 0x4fb   :  { %v2233_v45 = vadd.f32 %v2217_v53, %v2105_v17  ;;  %v1288_v35 = vmul.f32 %v1272_v54, %v10592_v36  ;;  %v7891_v9 = vadd.f32 -1.0, %v8435_v61  ;;  %v1289_v54 = vmul.f32 %v1273_v37, %v10592_v36 }
 0x4fd   :  { %v8437_v26 = vpop.eup %8436  ;;  %2249 = vst.msk [vmem:[#allocation2 + $0x58] sm:$0xff] %vm373_vm2, %v2233_v45  ;;  %v1304_v23 = vadd.f32 %v1288_v35, %v1176_v15  ;;  %v10934_v29 = vsel %vm2282_vm9, %v2266_v10, %v7891_v9  ;;  %v711_v10 = vld [vmem:[#allocation2 + $0x78] sm:$0xff] }
 0x4fe   :  { %v1175_v56 = vld [vmem:[#allocation2 + $0x68] sm:$0xff]  ;;  %v7888_v14 = vadd.f32 -1.0, %v8437_v26  ;;  %v2583_v39 = vadd.f32 %v10811_v25, %v10934_v29 }
 0x4ff   :  { %v1303_v55 = vadd.f32 %v1287_v28, %v1175_v56  ;;  %1320 = vst.msk [vmem:[#allocation2 + $0x70] sm:$0xff] %vm373_vm2, %v1304_v23  ;;  %v14720_v23 = vld [vmem:[#allocation13_spill] sm:$0xff] }
 0x500   :  { %v790_v57 = vpop.permute.xlu2 %789  ;;  %v10939_v16 = vsel %vm2279_vm10, %v2263_v63, %v7888_v14  ;;  %2599 = vst.msk [vmem:[#allocation3 + $0x60] sm:$0xff] %vm373_vm2, %v2583_v39  ;;  %v1753_v63 = vmul.f32 %v1737_v31, %v10614_v21  ;;  %v1739_v56 = vmul.f32 %v10753_v20, %v14720_v23  ;;  %v2099_v39 = vld [vmem:[#allocation2 + $0x28] sm:$0xff]  ;;  %v2188_v20 = vpop.permute.xlu1 %2187 }
 0x501   :  { %1319 = vst.msk [vmem:[#allocation2 + $0x68] sm:$0xff] %vm373_vm2, %v1303_v55  ;;  %v807_v30 = vmul.f32 %v790_v57, %v10814_v41  ;;  %v2580_v7 = vadd.f32 %v10811_v25, %v10939_v16  ;;  %v2183_v41 = vpop.permute.xlu0 %2182 }
 0x502   :  { %v2204_v40 = vmul.f32 %v2183_v41, %v10733_v1  ;;  %v1755_v2 = vmul.f32 %v1739_v56, %v10614_v21 }
 0x503   :  { %v823_v44 = vmul.f32 %v807_v30, %v10477_v42  ;;  %2596 = vst.msk [vmem:[#allocation3 + $0x48] sm:$0xff] %vm373_vm2, %v2580_v7 }
 0x504   :  { %v2265_v32 = vld [vmem:[#allocation2 + $0x58] sm:$0xff]  ;;  %v2220_v33 = vmul.f32 %v2204_v40, %v10774_v51 }
 0x505   :  { %v839_v59 = vadd.f32 %v823_v44, %v711_v10  ;;  %v2308_v50 = vmul.f32 1.442695, %v2265_v32  ;;  %vm2281_vm11 = vcmp.gt.f32.partialorder %v2265_v32, 0.0 }
 0x506   :  { %v1642_v22 = vld [vmem:[#allocation2 + $0x70] sm:$0xff] }
 0x507   :  { %v1770_v4 = vadd.f32 %v1754_v58, %v1642_v22  ;;  %855 = vst.msk [vmem:[#allocation2 + $0x78] sm:$0xff] %vm373_vm2, %v839_v59  ;;  %8438 = vpow2.f32 %v2308_v50  ;;  %v2101_v58 = vld [vmem:[#allocation2 + $0x38] sm:$0xff]  ;;  %v2205_v59 = vmul.f32 %v2188_v20, %v10762_v47 }
 0x508   :  { %v2128_v13 = vpop.permute.xlu2 %2127  ;;  %v1641_v8 = vld [vmem:[#allocation2 + $0x68] sm:$0xff] }
 0x509   :  { %1786 = vst.msk [vmem:[#allocation2 + $0x70] sm:$0xff] %vm373_vm2, %v1770_v4  ;;  %v2193_v18 = vmul.f32 %v2128_v13, %v10638_v19  ;;  %v1769_v49 = vadd.f32 %v1753_v63, %v1641_v8  ;;  %v2221_v13 = vmul.f32 %v2205_v59, %v10774_v51 }
 0x50b   :  { %v2209_v12 = vmul.f32 %v2193_v18, %v10774_v51  ;;  %1785 = vst.msk [vmem:[#allocation2 + $0x68] sm:$0xff] %vm373_vm2, %v1769_v49 }
 0x50d   :  { %v8439_v53 = vpop.eup %8438  ;;  %v2225_v61 = vadd.f32 %v2209_v12, %v2097_v46  ;;  %v2104_v12 = vld [vmem:[#allocation2 + $0x50] sm:$0xff] }
 0x50e   :  { %v1177_v17 = vld [vmem:[#allocation2 + $0x78] sm:$0xff]  ;;  %v7890_v45 = vadd.f32 -1.0, %v8439_v53 }
 0x50f   :  { %v1305_v35 = vadd.f32 %v1289_v54, %v1177_v17  ;;  %2241 = vst.msk [vmem:[#allocation2 + $0x18] sm:$0xff] %vm373_vm2, %v2225_v61  ;;  %v14721_v61 = vld [vmem:[#allocation9_spill] sm:$0xff] }
 0x510   :  { %v2108_v19 = vld [vmem:[#allocation2 + $0x70] sm:$0xff]  ;;  %v2138_v9 = vpop.permute.xlu2 %2137  ;;  %v10964_v1 = vsel %vm2281_vm11, %v2265_v32, %v7890_v45 }
 0x511   :  { %v2236_v15 = vadd.f32 %v2220_v33, %v2108_v19  ;;  %1321 = vst.msk [vmem:[#allocation2 + $0x78] sm:$0xff] %vm373_vm2, %v1305_v35  ;;  %v2195_v26 = vmul.f32 %v2138_v9, %v10651_v43  ;;  %v2582_v28 = vadd.f32 %v10811_v25, %v10964_v1 }
 0x513   :  { %2252 = vst.msk [vmem:[#allocation2 + $0x70] sm:$0xff] %vm373_vm2, %v2236_v15  ;;  %v2211_v14 = vmul.f32 %v2195_v26, %v10774_v51 }
 0x514   :  { %2598 = vst.msk [vmem:[#allocation3 + $0x58] sm:$0xff] %vm373_vm2, %v2582_v28 }
 0x515   :  { %v2227_v55 = vadd.f32 %v2211_v14, %v2099_v39  ;;  %v2107_v14 = vld [vmem:[#allocation2 + $0x68] sm:$0xff] }
 0x516   :  { %v2257_v57 = vld [vmem:[#allocation2 + $0x18] sm:$0xff] }
 0x517   :  { %2243 = vst.msk [vmem:[#allocation2 + $0x28] sm:$0xff] %vm373_vm2, %v2227_v55  ;;  %v2292_v43 = vmul.f32 1.442695, %v2257_v57  ;;  %vm2273_vm12 = vcmp.gt.f32.partialorder %v2257_v57, 0.0 }
 0x518   :  { %v1643_v6 = vld [vmem:[#allocation2 + $0x78] sm:$0xff]  ;;  %v2148_v30 = vpop.permute.xlu2 %2147 }
 0x519   :  { %v1771_v7 = vadd.f32 %v1755_v2, %v1643_v6  ;;  %v2197_v31 = vmul.f32 %v2148_v30, %v10664_v38  ;;  %8440 = vpow2.f32 %v2292_v43 }
 0x51a   :  { %v2268_v44 = vld [vmem:[#allocation2 + $0x70] sm:$0xff] }
 0x51b   :  { %1787 = vst.msk [vmem:[#allocation2 + $0x78] sm:$0xff] %vm373_vm2, %v1771_v7  ;;  %v2213_v10 = vmul.f32 %v2197_v31, %v10774_v51  ;;  %v2314_v32 = vmul.f32 1.442695, %v2268_v44  ;;  %vm2284_vm13 = vcmp.gt.f32.partialorder %v2268_v44, 0.0 }
 0x51d   :  { %v2229_v50 = vadd.f32 %v2213_v10, %v2101_v58  ;;  %8442 = vpow2.f32 %v2314_v32 }
 0x51e   :  { %v2259_v22 = vld [vmem:[#allocation2 + $0x28] sm:$0xff] }
 0x51f   :  { %v8441_v63 = vpop.eup %8440  ;;  %2245 = vst.msk [vmem:[#allocation2 + $0x38] sm:$0xff] %vm373_vm2, %v2229_v50  ;;  %v2296_v4 = vmul.f32 1.442695, %v2259_v22  ;;  %vm2275_vm14 = vcmp.gt.f32.partialorder %v2259_v22, 0.0 }
 0x520   :  { %v2163_v41 = vpop.permute.xlu2 %2162  ;;  %v7882_v38 = vadd.f32 -1.0, %v8441_v63 }
 0x521   :  { %v2200_v8 = vmul.f32 %v2163_v41, %v10686_v62  ;;  %8444 = vpow2.f32 %v2296_v4 }
 0x522   :  { %v2109_v3 = vld [vmem:[#allocation2 + $0x78] sm:$0xff]  ;;  %v2337_v37 = vsel %vm2273_vm12, %v2257_v57, %v7882_v38  ;;  %vm4877_vm12 = vcmask 392192  }
 0x523   :  { %v8443_v18 = vpop.eup %8442  ;;  %v2237_v49 = vadd.f32 %v2221_v13, %v2109_v3  ;;  %v2216_v47 = vmul.f32 %v2200_v8, %v10774_v51  ;;  %7898 = vmatmul.msk.f32.gmra.mxu2 %vm373_vm2, %v2337_v37  ;;  %v2574_v40 = vadd.f32 %v10811_v25, %v2337_v37  ;;  %v2423_v46 = vpop.f32.mrf.mxu2 }
 0x524   :  { %v7893_v53 = vadd.f32 -1.0, %v8443_v18  ;;  %v10989_v62 = vadd.f32 %v2423_v46, %v14721_v61 }
 0x525   :  { %2253 = vst.msk [vmem:[#allocation2 + $0x78] sm:$0xff] %vm373_vm2, %v2237_v49  ;;  %v2232_v54 = vadd.f32 %v2216_v47, %v2104_v12 }
 0x526   :  { %2590 = vst.msk [vmem:[#allocation3 + $0x18] sm:$0xff] %vm373_vm2, %v2574_v40  ;;  %v2261_v17 = vld [vmem:[#allocation2 + $0x38] sm:$0xff]  ;;  %v10992_v45 = vsel %vm2284_vm13, %v2268_v44, %v7893_v53  ;;  %2604 = vperm.xlu1 %8065, %v10989_v62   ;;  %2487 = vrot.lane.b32.xlu2 %v10989_v62, %s9162_s18 }
 0x527   :  { %v8445_v33 = vpop.eup %8444  ;;  %2248 = vst.msk [vmem:[#allocation2 + $0x50] sm:$0xff] %vm373_vm2, %v2232_v54  ;;  %v2300_v35 = vmul.f32 1.442695, %v2261_v17  ;;  %v2585_v19 = vadd.f32 %v10811_v25, %v10992_v45  ;;  %vm2277_vm15 = vcmp.gt.f32.partialorder %v2261_v17, 0.0 }
 0x528   :  { %v2178_v9 = vpop.permute.xlu2 %2177  ;;  %v7884_v15 = vadd.f32 -1.0, %v8445_v33 }
 0x529   :  { %v2203_v26 = vmul.f32 %v2178_v9, %v10717_v0  ;;  %8446 = vpow2.f32 %v2300_v35  ;;  %2601 = vst.msk [vmem:[#allocation3 + $0x70] sm:$0xff] %vm373_vm2, %v2585_v19 }
 0x52a   :  { %v2339_v28 = vsel %vm2275_vm14, %v2259_v22, %v7884_v15 }
 0x52b   :  { %v2219_v23 = vmul.f32 %v2203_v26, %v10774_v51  ;;  %7899 = vmatmul.msk.f32.gmra.mxu2 %vm373_vm2, %v10861_v60  ;;  %v2576_v56 = vadd.f32 %v10811_v25, %v2339_v28  ;;  %v2426_v39 = vpop.f32.mrf.mxu2 }
 0x52c   :  { %v2269_v55 = vld [vmem:[#allocation2 + $0x78] sm:$0xff]  ;;  %v11007_v2 = vadd.f32 %v2426_v39, %v14721_v61 }
 0x52d   :  { %v2235_v57 = vadd.f32 %v2219_v23, %v2107_v14  ;;  %2592 = vst.msk [vmem:[#allocation3 + $0x28] sm:$0xff] %vm373_vm2, %v2576_v56  ;;  %v2316_v0 = vmul.f32 1.442695, %v2269_v55  ;;  %vm2285_vm0 = vcmp.gt.f32.partialorder %v2269_v55, 0.0 }
 0x52e   :  { %v2264_v43 = vld [vmem:[#allocation2 + $0x50] sm:$0xff]  ;;  %2489 = vrot.lane.b32.xlu0 %v11007_v2, %s9162_s18  ;;  %8069 = vset.pattern.permute.xlu1 %v14710_v48 }
 0x52f   :  { %v8447_v6 = vpop.eup %8446  ;;  %2251 = vst.msk [vmem:[#allocation2 + $0x68] sm:$0xff] %vm373_vm2, %v2235_v57  ;;  %v2306_v60 = vmul.f32 1.442695, %v2264_v43  ;;  %8448 = vpow2.f32 %v2316_v0  ;;  %3070 = vperm.xlu2 %8066, %v10989_v62   ;;  %3074 = vperm.xlu1 %8069, %v11007_v2   ;;  %vm2280_vm1 = vcmp.gt.f32.partialorder %v2264_v43, 0.0 }
 0x530   :  { %v7886_v30 = vadd.f32 -1.0, %v8447_v6 }
 0x531   :  { %8450 = vpow2.f32 %v2306_v60 }
 0x532   :  { %v2341_v7 = vsel %vm2277_vm15, %v2261_v17, %v7886_v30 }
 0x533   :  { %7900 = vmatmul.msk.f32.gmra.mxu2 %vm373_vm2, %v2339_v28  ;;  %v2578_v31 = vadd.f32 %v10811_v25, %v2341_v7  ;;  %v2429_v20 = vpop.f32.mrf.mxu2 }
 0x534   :  { %v11019_v10 = vadd.f32 %v2429_v20, %v14721_v61 }
 0x535   :  { %v8449_v44 = vpop.eup %8448  ;;  %2594 = vst.msk [vmem:[#allocation3 + $0x38] sm:$0xff] %vm373_vm2, %v2578_v31 }
 0x536   :  { %14722 = vst [vmem:[#allocation24_spill] sm:$0xff] %v11019_v10  ;;  %v2267_v32 = vld [vmem:[#allocation2 + $0x68] sm:$0xff]  ;;  %v7894_v58 = vadd.f32 -1.0, %v8449_v44  ;;  %3540 = vperm.xlu0 %8070, %v11007_v2  }
 0x537   :  { %v8451_v59 = vpop.eup %8450  ;;  %v2312_v50 = vmul.f32 1.442695, %v2267_v32  ;;  %8067 = vset.pattern.permute.xlu2 %v14704_v27  ;;  %2491 = vrot.lane.b32.xlu1 %v11019_v10, %s9162_s18  ;;  %vm2283_vm6 = vcmp.gt.f32.partialorder %v2267_v32, 0.0 }
 0x538   :  { %v7889_v22 = vadd.f32 -1.0, %v8451_v59  ;;  %v2349_v63 = vsel %vm2285_vm0, %v2269_v55, %v7894_v58  ;;  %3536 = vperm.xlu2 %8067, %v10989_v62   ;;  %8071 = vset.pattern.permute.xlu1 %v14705_v24 }
 0x539   :  { %8452 = vpow2.f32 %v2312_v50  ;;  %v2586_v4 = vadd.f32 %v10811_v25, %v2349_v63 }
 0x53a   :  { %v2344_v41 = vsel %vm2280_vm1, %v2264_v43, %v7889_v22 }
 0x53b   :  { %7901 = vmatmul.msk.f32.gmra.mxu2 %vm373_vm2, %v10889_v5  ;;  %v2581_v38 = vadd.f32 %v10811_v25, %v2344_v41  ;;  %2602 = vst.msk [vmem:[#allocation3 + $0x78] sm:$0xff] %vm373_vm2, %v2586_v4 }
 0x53d   :  { %2597 = vst.msk [vmem:[#allocation3 + $0x50] sm:$0xff] %vm373_vm2, %v2581_v38 }
 0x53e   :  { %8086 = vset.pattern.permute.xlu0 %v14710_v48 }
 0x53f   :  { %v8453_v13 = vpop.eup %8452  ;;  %2612 = vperm.xlu1 %8071, %v11019_v10  }
 0x540   :  { %v7892_v8 = vadd.f32 -1.0, %v8453_v13  ;;  %8068 = vset.pattern.permute.xlu2 %v14705_v24 }
 0x541   :  { %2608 = vperm.xlu2 %8068, %v11007_v2  }
 0x542   :  { %v2347_v3 = vsel %vm2283_vm6, %v2267_v32, %v7892_v8 }
 0x543   :  { %7902 = vmatmul.msk.f32.gmra.mxu2 %vm373_vm2, %v2341_v7  ;;  %v2584_v5 = vadd.f32 %v10811_v25, %v2347_v3 }
 0x545   :  { %2600 = vst.msk [vmem:[#allocation3 + $0x68] sm:$0xff] %vm373_vm2, %v2584_v5 }
 0x547   :  { %8073 = vset.pattern.permute.xlu1 %v14704_v27 }
 0x548   :  { %3544 = vperm.xlu1 %8073, %v11019_v10  }
 0x549   :  { %8072 = vset.pattern.permute.xlu2 %v14710_v48 }
 0x54a   :  { %3078 = vperm.xlu2 %8072, %v11019_v10  }
 0x54b   :  { %7903 = vmatmul.msk.f32.gmra.mxu2 %vm373_vm2, %v10916_v11 }
 0x550   :  { %8075 = vset.pattern.permute.xlu1 %v14710_v48 }
 0x552   :  { %8074 = vset.pattern.permute.xlu2 %v14705_v24 }
 0x553   :  { %7904 = vmatmul.msk.f32.gmra.mxu2 %vm373_vm2, %v10939_v16 }
 0x55b   :  { %7905 = vmatmul.msk.f32.gmra.mxu2 %vm373_vm2, %v2344_v41 }
 0x563   :  { %7906 = vmatmul.msk.f32.gmra.mxu2 %vm373_vm2, %v10964_v1 }
 0x56b   :  { %7907 = vmatmul.msk.f32.gmra.mxu2 %vm373_vm2, %v10934_v29 }
 0x573   :  { %7908 = vmatmul.msk.f32.gmra.mxu2 %vm373_vm2, %v2347_v3 }
 0x57b   :  { %7909 = vmatmul.msk.f32.gmra.mxu2 %vm373_vm2, %v10992_v45 }
 0x580   :  { %v11098_v46 = vpop.permute.xlu2 %2487 }
 0x583   :  { %7910 = vmatmul.msk.f32.gmra.mxu2 %vm373_vm2, %v2349_v63 }
 0x589   :  { %v11109_v17 = vpop.permute.xlu2 %3070 }
 0x592   :  { %v11121_v19 = vpop.permute.xlu2 %3536 }
 0x598   :  { %v11123_v9 = vpop.permute.xlu1 %2604 }
 0x59b   :  { %v11129_v26 = vpop.permute.xlu2 %2608 }
 0x5a0   :  { %v2490_v22 = vpop.permute.xlu0 %2489 }
 0x5a1   :  { %v11131_v28 = vpop.permute.xlu1 %3074 }
 0x5a4   :  { %v11145_v39 = vpop.permute.xlu2 %3078 }
 0x5a6   :  { %v2432_v25 = vpop.f32.mrf.mxu2 }
 0x5a7   :  { %v11061_v11 = vadd.f32 %v2432_v25, %v14721_v61 }
 0x5a8   :  { %v11275_v13 = vpop.permute.xlu0 %3540 }
 0x5a9   :  { %14723 = vst [vmem:[#allocation29_spill] sm:$0xff] %v11061_v11  ;;  %3082 = vperm.xlu1 %8075, %v11061_v11   ;;  %2493 = vrot.lane.b32.xlu2 %v11061_v11, %s9162_s18  ;;  %v11148_v57 = vpop.permute.xlu1 %2491 }
 0x5ae   :  { %v2435_v16 = vpop.f32.mrf.mxu2 }
 0x5af   :  { %v11067_v1 = vadd.f32 %v2435_v16, %v14721_v61 }
 0x5b1   :  { %14724 = vst [vmem:[#allocation22_spill] sm:$0xff] %v11067_v1  ;;  %2495 = vrot.lane.b32.xlu0 %v11067_v1, %s9162_s18  ;;  %8077 = vset.pattern.permute.xlu1 %v14705_v24  ;;  %v11165_v30 = vpop.permute.xlu1 %2612 }
 0x5b2   :  { %2616 = vperm.xlu2 %8074, %v11061_v11   ;;  %2620 = vperm.xlu1 %8077, %v11067_v1  }
 0x5b6   :  { %v2438_v29 = vpop.f32.mrf.mxu2 }
 0x5b7   :  { %v11079_v18 = vadd.f32 %v2438_v29, %v14721_v61 }
 0x5b9   :  { %14725 = vst [vmem:[#allocation19_spill] sm:$0xff] %v11079_v18 }
 0x5ba   :  { %8076 = vset.pattern.permute.xlu2 %v14704_v27  ;;  %8079 = vset.pattern.permute.xlu1 %v14704_v27 }
 0x5bb   :  { %3548 = vperm.xlu2 %8076, %v11061_v11   ;;  %3552 = vperm.xlu1 %8079, %v11067_v1  }
 0x5be   :  { %v2441_v37 = vpop.f32.mrf.mxu2 }
 0x5bf   :  { %v11096_v12 = vadd.f32 %v2441_v37, %v14721_v61 }
 0x5c3   :  { %8078 = vset.pattern.permute.xlu2 %v14710_v48  ;;  %2497 = vrot.lane.b32.xlu1 %v11079_v18, %s9162_s18 }
 0x5c4   :  { %3086 = vperm.xlu2 %8078, %v11067_v1   ;;  %8081 = vset.pattern.permute.xlu1 %v14710_v48 }
 0x5c6   :  { %v2444_v49 = vpop.f32.mrf.mxu2 }
 0x5c7   :  { %v11087_v47 = vadd.f32 %v2444_v49, %v14721_v61 }
 0x5c9   :  { %14726 = vst [vmem:[#allocation17_spill] sm:$0xff] %v11087_v47  ;;  %2501 = vrot.lane.b32.xlu0 %v11087_v47, %s9162_s18 }
 0x5cb   :  { %3090 = vperm.xlu1 %8081, %v11079_v18  }
 0x5cc   :  { %8080 = vset.pattern.permute.xlu2 %v14705_v24 }
 0x5cd   :  { %2624 = vperm.xlu2 %8080, %v11079_v18  }
 0x5ce   :  { %v2447_v40 = vpop.f32.mrf.mxu2 }
 0x5cf   :  { %v11105_v54 = vadd.f32 %v2447_v40, %v14721_v61 }
 0x5d1   :  { %3098 = vperm.xlu0 %8086, %v11087_v47   ;;  %14727 = vst [vmem:[#allocation27_spill] sm:$0xff] %v11105_v54 }
 0x5d3   :  { %8083 = vset.pattern.permute.xlu1 %v14705_v24 }
 0x5d4   :  { %2628 = vperm.xlu1 %8083, %v11096_v12  }
 0x5d5   :  { %8082 = vset.pattern.permute.xlu2 %v14704_v27 }
 0x5d6   :  { %3556 = vperm.xlu2 %8082, %v11079_v18   ;;  %v2450_v53 = vpop.f32.mrf.mxu2 }
 0x5d7   :  { %v11134_v23 = vadd.f32 %v2450_v53, %v14721_v61 }
 0x5dc   :  { %2503 = vrot.lane.b32.xlu1 %v11105_v54, %s9162_s18 }
 0x5de   :  { %2499 = vrot.lane.b32.xlu2 %v11096_v12, %s9162_s18  ;;  %v2453_v45 = vpop.f32.mrf.mxu2 }
 0x5df   :  { %v11114_v33 = vadd.f32 %v2453_v45, %v14721_v61  ;;  %8084 = vset.pattern.permute.xlu2 %v14710_v48 }
 0x5e1   :  { %14728 = vst [vmem:[#allocation10_spill] sm:$0xff] %v11114_v33  ;;  %2507 = vrot.lane.b32.xlu0 %v11114_v33, %s9162_s18 }
 0x5e4   :  { %2636 = vperm.xlu1 %8083, %v11105_v54  }
 0x5e6   :  { %3094 = vperm.xlu2 %8084, %v11096_v12   ;;  %v2456_v35 = vpop.f32.mrf.mxu2 }
 0x5e7   :  { %v11155_v43 = vadd.f32 %v2456_v35, %v14721_v61 }
 0x5e9   :  { %14730 = vst [vmem:[#allocation25_spill] sm:$0xff] %v11155_v43 }
 0x5ec   :  { %8087 = vset.pattern.permute.xlu1 %v14710_v48 }
 0x5ed   :  { %3102 = vperm.xlu1 %8087, %v11105_v54  }
 0x5ee   :  { %8085 = vset.pattern.permute.xlu2 %v14705_v24  ;;  %v2459_v15 = vpop.f32.mrf.mxu2 }
 0x5ef   :  { %2632 = vperm.xlu2 %8085, %v11087_v47   ;;  %v11181_v20 = vadd.f32 %v2459_v15, %v14721_v61 }
 0x5f5   :  { %8089 = vset.pattern.permute.xlu1 %v14705_v24 }
 0x5f6   :  { %2644 = vperm.xlu1 %8089, %v11114_v33   ;;  %v2462_v56 = vpop.f32.mrf.mxu2 }
 0x5f7   :  { %2505 = vrot.lane.b32.xlu2 %v11134_v23, %s9162_s18  ;;  %v11141_v14 = vadd.f32 %v2462_v56, %v14721_v61 }
 0x5f9   :  { %14729 = vst [vmem:[#allocation21_spill] sm:$0xff] %v11141_v14  ;;  %2513 = vrot.lane.b32.xlu0 %v11141_v14, %s9162_s18 }
 0x5fe   :  { %8090 = vset.pattern.permute.xlu1 %v14710_v48  ;;  %v2465_v55 = vpop.f32.mrf.mxu2 }
 0x5ff   :  { %2640 = vperm.xlu2 %8085, %v11134_v23   ;;  %3110 = vperm.xlu1 %8090, %v11114_v33   ;;  %v11168_v7 = vadd.f32 %v2465_v55, %v14721_v61 }
 0x601   :  { %14731 = vst [vmem:[#allocation18_spill] sm:$0xff] %v11168_v7 }
 0x603   :  { %v11152_v0 = vpop.permute.xlu2 %2493 }
 0x606   :  { %v2468_v6 = vpop.f32.mrf.mxu2 }
 0x607   :  { %8088 = vset.pattern.permute.xlu2 %v14710_v48  ;;  %v11159_v60 = vadd.f32 %v2468_v6, %v14721_v61  ;;  %2509 = vrot.lane.b32.xlu1 %v11155_v43, %s9162_s18  ;;  %v11195_v61 = vpop.permute.xlu1 %3544 }
 0x608   :  { %3106 = vperm.xlu2 %8088, %v11134_v23   ;;  %8093 = vset.pattern.permute.xlu1 %v14705_v24 }
 0x609   :  { %2828 = vmatpush.msrb.mxu3 %v11159_v60  ;;  %3294 = vmatpush.msra.mxu0 %v11159_v60 }
 0x60a   :  { %3760 = vmatpush.msra.mxu1 %v11159_v60  ;;  %4226 = vmatpush.msra.mxu2 %v11159_v60 }
 0x60b   :  { %2829 = vmatpush.msrb.mxu3 %v11168_v7  ;;  %3295 = vmatpush.msra.mxu0 %v11168_v7 }
 0x60c   :  { %3761 = vmatpush.msra.mxu1 %v11168_v7  ;;  %4227 = vmatpush.msra.mxu2 %v11168_v7  ;;  %v11178_v31 = vpop.permute.xlu2 %2616 }
 0x60d   :  { %2830 = vmatpush.msrb.mxu3 %v11141_v14  ;;  %3296 = vmatpush.msra.mxu0 %v11141_v14 }
 0x60e   :  { %3762 = vmatpush.msra.mxu1 %v11141_v14  ;;  %4228 = vmatpush.msra.mxu2 %v11141_v14 }
 0x60f   :  { %2652 = vperm.xlu1 %8093, %v11181_v20   ;;  %2831 = vmatpush.msrb.mxu3 %v11181_v20 }
 0x610   :  { %8091 = vset.pattern.permute.xlu2 %v14705_v24  ;;  %3297 = vmatpush.msra.mxu0 %v11181_v20 }
 0x611   :  { %3763 = vmatpush.msra.mxu1 %v11181_v20  ;;  %4229 = vmatpush.msra.mxu2 %v11181_v20 }
 0x612   :  { %2648 = vperm.xlu2 %8091, %v11155_v43   ;;  %2832 = vmatpush.msrb.mxu3 %v11155_v43 }
 0x613   :  { %3298 = vmatpush.msra.mxu0 %v11155_v43  ;;  %3764 = vmatpush.msra.mxu1 %v11155_v43 }
 0x614   :  { %4230 = vmatpush.msra.mxu2 %v11155_v43  ;;  %2833 = vmatpush.msrb.mxu3 %v11114_v33 }
 0x615   :  { %3299 = vmatpush.msra.mxu0 %v11114_v33  ;;  %3765 = vmatpush.msra.mxu1 %v11114_v33  ;;  %v11203_v44 = vpop.permute.xlu2 %3548 }
 0x616   :  { %4231 = vmatpush.msra.mxu2 %v11114_v33  ;;  %2834 = vmatpush.msrb.mxu3 %v11134_v23 }
 0x617   :  { %3300 = vmatpush.msra.mxu0 %v11134_v23  ;;  %3766 = vmatpush.msra.mxu1 %v11134_v23 }
 0x618   :  { %4232 = vmatpush.msra.mxu2 %v11134_v23  ;;  %8094 = vset.pattern.permute.xlu1 %v14710_v48 }
 0x619   :  { %2835 = vmatpush.msrb.mxu3 %v11105_v54  ;;  %3301 = vmatpush.msra.mxu0 %v11105_v54 }
 0x61a   :  { %3767 = vmatpush.msra.mxu1 %v11105_v54  ;;  %4233 = vmatpush.msra.mxu2 %v11105_v54 }
 0x61b   :  { %8092 = vset.pattern.permute.xlu2 %v14710_v48  ;;  %3118 = vperm.xlu1 %8094, %v11181_v20   ;;  %v11217_v32 = vpop.permute.xlu1 %3082 }
 0x61c   :  { %3114 = vperm.xlu2 %8092, %v11155_v43   ;;  %2836 = vmatpush.msrb.mxu3 %v11087_v47 }
 0x61d   :  { %3302 = vmatpush.msra.mxu0 %v11087_v47  ;;  %3768 = vmatpush.msra.mxu1 %v11087_v47 }
 0x61e   :  { %4234 = vmatpush.msra.mxu2 %v11087_v47  ;;  %2837 = vmatpush.msrb.mxu3 %v11096_v12  ;;  %v11225_v58 = vpop.permute.xlu2 %3086 }
 0x61f   :  { %3303 = vmatpush.msra.mxu0 %v11096_v12  ;;  %3769 = vmatpush.msra.mxu1 %v11096_v12 }
 0x620   :  { %4235 = vmatpush.msra.mxu2 %v11096_v12  ;;  %2535 = vxpose.xlu0.b32.start [1/16] (narrow) %v11098_v46, 8 }
 0x621   :  { %2838 = vmatpush.msrb.mxu3 %v11079_v18  ;;  %3304 = vmatpush.msra.mxu0 %v11079_v18 }
 0x622   :  { %3770 = vmatpush.msra.mxu1 %v11079_v18  ;;  %4236 = vmatpush.msra.mxu2 %v11079_v18 }
 0x623   :  { %2839 = vmatpush.msrb.mxu3 %v11067_v1  ;;  %3305 = vmatpush.msra.mxu0 %v11067_v1  ;;  %v2496_v5 = vpop.permute.xlu0 %2495 }
 0x624   :  { %3771 = vmatpush.msra.mxu1 %v11067_v1  ;;  %4237 = vmatpush.msra.mxu2 %v11067_v1  ;;  %v11239_v59 = vpop.permute.xlu1 %2620  ;;  %v11537_v1 = vld [vmem:[%s14508_s1 + $0x28] sm:$0xff] }
 0x625   :  { %2515 = vrot.lane.b32.xlu1 %v11168_v7, %s9162_s18  ;;  %2511 = vrot.lane.b32.xlu2 %v11181_v20, %s9162_s18 }
 0x626   :  { %2840 = vmatpush.msrb.mxu3 %v11061_v11  ;;  %3306 = vmatpush.msra.mxu0 %v11061_v11 }
 0x627   :  { %3772 = vmatpush.msra.mxu1 %v11061_v11  ;;  %4238 = vmatpush.msra.mxu2 %v11061_v11  ;;  %v11249_v50 = vpop.permute.xlu2 %2624 }
 0x628   :  { %2841 = vmatpush.msrb.mxu3 %v11019_v10  ;;  %3307 = vmatpush.msra.mxu0 %v11019_v10 }
 0x629   :  { %3773 = vmatpush.msra.mxu1 %v11019_v10  ;;  %4239 = vmatpush.msra.mxu2 %v11019_v10 }
 0x62a   :  { %2536 = vxpose.xlu0.b32.cont [2/16] (narrow) %v2490_v22, 8  ;;  %2842 = vmatpush.msrb.mxu3 %v11007_v2 }
 0x62b   :  { %3308 = vmatpush.msra.mxu0 %v11007_v2  ;;  %3774 = vmatpush.msra.mxu1 %v11007_v2 }
 0x62c   :  { %4240 = vmatpush.msra.mxu2 %v11007_v2  ;;  %8097 = vset.pattern.permute.xlu1 %v14705_v24 }
 0x62d   :  { %2843 = vmatpush.msrb.mxu3 %v10989_v62  ;;  %3309 = vmatpush.msra.mxu0 %v10989_v62  ;;  %v11262_v63 = vpop.permute.xlu1 %3552 }
 0x62e   :  { %3775 = vmatpush.msra.mxu1 %v10989_v62  ;;  %4241 = vmatpush.msra.mxu2 %v10989_v62 }
 0x62f   :  { %8095 = vset.pattern.permute.xlu2 %v14705_v24  ;;  %2660 = vperm.xlu1 %8097, %v11168_v7  }
 0x630   :  { %2656 = vperm.xlu2 %8095, %v11141_v14   ;;  %v11269_v4 = vpop.permute.xlu2 %3556 }
 0x632   :  { %2537 = vxpose.xlu0.b32.cont [3/16] (narrow) %v11148_v57, 8 }
 0x635   :  { %v2498_v41 = vpop.permute.xlu1 %2497 }
 0x637   :  { %8098 = vset.pattern.permute.xlu1 %v14710_v48 }
 0x638   :  { %3126 = vperm.xlu1 %8098, %v11168_v7   ;;  %8096 = vset.pattern.permute.xlu2 %v14710_v48  ;;  %v2500_v38 = vpop.permute.xlu2 %2499 }
 0x639   :  { %3122 = vperm.xlu2 %8096, %v11141_v14  }
 0x63a   :  { %2538 = vxpose.xlu0.b32.cont [4/16] (narrow) %v11152_v0, 8 }
 0x63b   :  { %v2502_v40 = vpop.permute.xlu0 %2501 }
 0x63d   :  { %v11279_v8 = vpop.permute.xlu1 %3090 }
 0x640   :  { %v11281_v3 = vpop.permute.xlu2 %3094  ;;  %8102 = vset.pattern.permute.xlu1 %v14704_v27 }
 0x641   :  { %2517 = vrot.lane.b32.xlu2 %v11159_v60, %s9162_s18 }
 0x642   :  { %2539 = vxpose.xlu0.b32.cont [5/16] (narrow) %v2496_v5, 8  ;;  %8099 = vset.pattern.permute.xlu2 %v14705_v24 }
 0x643   :  { %v11301_v35 = vpop.permute.xlu0 %3098 }
 0x646   :  { %v11287_v25 = vpop.permute.xlu1 %2628 }
 0x649   :  { %2664 = vperm.xlu2 %8099, %v11159_v60   ;;  %v2633_v16 = vpop.permute.xlu2 %2632 }
 0x64a   :  { %2540 = vxpose.xlu0.b32.cont [6/16] (narrow) %v2498_v41, 8 }
 0x64e   :  { %v2504_v29 = vpop.permute.xlu1 %2503 }
 0x651   :  { %8100 = vset.pattern.permute.xlu2 %v14710_v48  ;;  %v2506_v37 = vpop.permute.xlu2 %2505 }
 0x652   :  { %3130 = vperm.xlu2 %8100, %v11159_v60   ;;  %2541 = vxpose.xlu0.b32.cont [7/16] (narrow) %v2500_v38, 8 }
 0x653   :  { %v2508_v15 = vpop.permute.xlu0 %2507 }
 0x656   :  { %v11292_v49 = vpop.permute.xlu1 %2636 }
 0x659   :  { %v2641_v46 = vpop.permute.xlu2 %2640 }
 0x65a   :  { %2542 = vxpose.xlu0.b32.cont [8/16] (narrow) %v2502_v40, 8  ;;  %8103 = vset.pattern.permute.xlu2 %v14704_v27 }
 0x65f   :  { %v11295_v24 = vpop.permute.xlu1 %3102 }
 0x662   :  { %2543 = vxpose.xlu0.b32.cont [9/16] (narrow) %v2504_v29, 8  ;;  %v11297_v53 = vpop.permute.xlu2 %3106 }
 0x668   :  { %v11299_v45 = vpop.permute.xlu1 %2644 }
 0x66a   :  { %2544 = vxpose.xlu0.b32.cont [10/16] (narrow) %v2506_v37, 8 }
 0x66b   :  { %v2514_v22 = vpop.permute.xlu0 %2513 }
 0x66c   :  { %v2649_v48 = vpop.permute.xlu2 %2648 }
 0x671   :  { %v11303_v56 = vpop.permute.xlu1 %3110 }
 0x672   :  { %2545 = vxpose.xlu0.b32.cont [11/16] (narrow) %v2508_v15, 8 }
 0x676   :  { %v11305_v55 = vpop.permute.xlu2 %3114 }
 0x679   :  { %v2510_v57 = vpop.permute.xlu1 %2509 }
 0x67a   :  { %2546 = vxpose.xlu0.b32.cont [12/16] (narrow) %v2510_v57, 8 }
 0x67f   :  { %v2512_v0 = vpop.permute.xlu2 %2511 }
 0x681   :  { %v2653_v6 = vpop.permute.xlu1 %2652 }
 0x682   :  { %2547 = vxpose.xlu0.b32.cont [13/16] (narrow) %v2512_v0, 8 }
 0x68a   :  { %2548 = vxpose.xlu0.b32.cont [14/16] (narrow) %v2514_v22, 8  ;;  %v2657_v41 = vpop.permute.xlu2 %2656 }
 0x68d   :  { %v11307_v38 = vpop.permute.xlu1 %3118 }
 0x693   :  { %v11309_v5 = vpop.permute.xlu2 %3122 }
 0x697   :  { %v2516_v29 = vpop.permute.xlu1 %2515 }
 0x698   :  { %2549 = vxpose.xlu0.b32.cont [15/16] (narrow) %v2516_v29, 8 }
 0x69b   :  { %v2518_v37 = vpop.permute.xlu2 %2517 }
 0x6a0   :  { %2550 = vxpose.xlu0.b32.end [16/16] (narrow) %v2518_v37, 8 }
 0x6cc   :  { %v11311_v40 = vpop.trf.xlu0 }
 0x6cd   :  { %14732 = vst [vmem:[#allocation23_spill] sm:$0xff] %v11311_v40  ;;  %v11314_v15 = vperm.slane %v11311_v40, 0 }
 0x6cf   :  { %v2669_v57 = vadd.f32 %v11314_v15, %v11129_v26  ;;  %v2668_v0 = vadd.f32 %v11314_v15, %v11123_v9  ;;  %v2671_v29 = vadd.f32 %v11314_v15, %v11178_v31  ;;  %v2670_v37 = vadd.f32 %v11314_v15, %v11165_v30 }
 0x6d1   :  { %v2685_v22 = vmul.f32 0.2, %v2669_v57  ;;  %v2684_v52 = vmul.f32 0.2, %v2668_v0  ;;  %v2687_v26 = vmul.f32 0.2, %v2671_v29 }
 0x6d2   :  { %v2686_v21 = vmul.f32 0.2, %v2670_v37 }
 0x6d3   :  { %v11320_v34 = vmax.f32 %v2669_v57, %v2685_v22  ;;  %v11322_v51 = vmax.f32 %v2668_v0, %v2684_v52  ;;  %v11330_v36 = vmax.f32 %v2671_v29, %v2687_v26  ;;  %v2673_v52 = vadd.f32 %v11314_v15, %v11249_v50 }
 0x6d4   :  { %v11332_v9 = vmax.f32 %v2670_v37, %v2686_v21  ;;  %v2672_v57 = vadd.f32 %v11314_v15, %v11239_v59  ;;  %v2675_v29 = vadd.f32 %v11314_v15, %v2633_v16  ;;  %v2674_v21 = vadd.f32 %v11314_v15, %v11287_v25 }
 0x6d5   :  { %2718 = vmax.xlane.f32.xlu2 %v11320_v34  ;;  %2716 = vmax.xlane.f32.xlu1 %v11322_v51  ;;  %v2689_v30 = vmul.f32 0.2, %v2673_v52 }
 0x6d6   :  { %v2688_v31 = vmul.f32 0.2, %v2672_v57  ;;  %v2691_v59 = vmul.f32 0.2, %v2675_v29  ;;  %v2690_v50 = vmul.f32 0.2, %v2674_v21 }
 0x6d7   :  { %v11340_v0 = vmax.f32 %v2673_v52, %v2689_v30  ;;  %v2677_v52 = vadd.f32 %v11314_v15, %v2641_v46 }
 0x6d8   :  { %v11342_v22 = vmax.f32 %v2672_v57, %v2688_v31  ;;  %v11349_v37 = vmax.f32 %v2675_v29, %v2691_v59  ;;  %v11351_v26 = vmax.f32 %v2674_v21, %v2690_v50  ;;  %v2676_v57 = vadd.f32 %v11314_v15, %v11292_v49 }
 0x6d9   :  { %v2693_v25 = vmul.f32 0.2, %v2677_v52  ;;  %v2679_v29 = vadd.f32 %v11314_v15, %v2649_v48  ;;  %v2678_v21 = vadd.f32 %v11314_v15, %v11299_v45  ;;  %v11376_v45 = vperm.slane %v11311_v40, 1 }
 0x6da   :  { %v2692_v16 = vmul.f32 0.2, %v2676_v57 }
 0x6db   :  { %v11358_v30 = vmax.f32 %v2677_v52, %v2693_v25  ;;  %v2695_v49 = vmul.f32 0.2, %v2679_v29  ;;  %v2694_v46 = vmul.f32 0.2, %v2678_v21  ;;  %v2681_v52 = vadd.f32 %v11314_v15, %v2657_v41 }
 0x6dc   :  { %v11360_v31 = vmax.f32 %v2676_v57, %v2692_v16  ;;  %v2680_v57 = vadd.f32 %v11314_v15, %v2653_v6  ;;  %v2665_v16 = vpop.permute.xlu2 %2664  ;;  %v2661_v6 = vpop.permute.xlu1 %2660 }
 0x6dd   :  { %2722 = vmax.xlane.f32.xlu2 %v11330_v36  ;;  %2720 = vmax.xlane.f32.xlu1 %v11332_v9  ;;  %v11367_v59 = vmax.f32 %v2679_v29, %v2695_v49  ;;  %v11369_v50 = vmax.f32 %v2678_v21, %v2694_v46  ;;  %v2697_v48 = vmul.f32 0.2, %v2681_v52  ;;  %v3135_v21 = vadd.f32 %v11376_v45, %v11131_v28 }
 0x6de   :  { %v2696_v25 = vmul.f32 0.2, %v2680_v57  ;;  %v2683_v41 = vadd.f32 %v11314_v15, %v2665_v16  ;;  %v2682_v18 = vadd.f32 %v11314_v15, %v2661_v6 }
 0x6df   :  { %v11378_v42 = vmax.f32 %v2681_v52, %v2697_v48  ;;  %v3151_v49 = vmul.f32 0.2, %v3135_v21  ;;  %v3138_v52 = vadd.f32 %v11376_v45, %v11225_v58  ;;  %v3141_v58 = vadd.f32 %v11376_v45, %v11301_v35 }
 0x6e0   :  { %v11380_v29 = vmax.f32 %v2680_v57, %v2696_v25  ;;  %v2699_v46 = vmul.f32 0.2, %v2683_v41  ;;  %v2698_v28 = vmul.f32 0.2, %v2682_v18  ;;  %v3134_v25 = vadd.f32 %v11376_v45, %v11109_v17 }
 0x6e1   :  { %v11391_v57 = vmax.f32 %v3135_v21, %v3151_v49  ;;  %v3154_v15 = vmul.f32 0.2, %v3138_v52  ;;  %v3137_v49 = vadd.f32 %v11376_v45, %v11217_v32  ;;  %v3144_v35 = vadd.f32 %v11376_v45, %v11303_v56 }
 0x6e2   :  { %v11393_v48 = vmax.f32 %v2683_v41, %v2699_v46  ;;  %v11399_v16 = vmax.f32 %v2682_v18, %v2698_v28  ;;  %v3150_v6 = vmul.f32 0.2, %v3134_v25  ;;  %v3139_v28 = vadd.f32 %v11376_v45, %v11279_v8 }
 0x6e3   :  { %v11406_v21 = vmax.f32 %v3138_v52, %v3154_v15  ;;  %v3153_v46 = vmul.f32 0.2, %v3137_v49  ;;  %v3140_v15 = vadd.f32 %v11376_v45, %v11281_v3  ;;  %v3142_v8 = vadd.f32 %v11376_v45, %v11295_v24 }
 0x6e4   :  { %v11408_v41 = vmax.f32 %v3134_v25, %v3150_v6  ;;  %v3155_v32 = vmul.f32 0.2, %v3139_v28  ;;  %v3147_v3 = vadd.f32 %v11376_v45, %v11309_v5 }
 0x6e5   :  { %2726 = vmax.xlane.f32.xlu2 %v11340_v0  ;;  %2724 = vmax.xlane.f32.xlu1 %v11342_v22  ;;  %v11423_v25 = vmax.f32 %v3137_v49, %v3153_v46  ;;  %v3158_v56 = vmul.f32 0.2, %v3142_v8 }
 0x6e6   :  { %v11431_v6 = vmax.f32 %v3139_v28, %v3155_v32  ;;  %v3163_v46 = vmul.f32 0.2, %v3147_v3 }
 0x6e7   :  { %v11444_v24 = vmax.f32 %v3142_v8, %v3158_v56  ;;  %v3127_v8 = vpop.permute.xlu1 %3126 }
 0x6e8   :  { %v11449_v32 = vmax.f32 %v3147_v3, %v3163_v46 }
 0x6ed   :  { %2730 = vmax.xlane.f32.xlu2 %v11349_v37  ;;  %2728 = vmax.xlane.f32.xlu1 %v11351_v26 }
 0x6f5   :  { %2734 = vmax.xlane.f32.xlu2 %v11358_v30  ;;  %2732 = vmax.xlane.f32.xlu1 %v11360_v31 }
 0x6fd   :  { %2738 = vmax.xlane.f32.xlu2 %v11367_v59  ;;  %2736 = vmax.xlane.f32.xlu1 %v11369_v50 }
 0x705   :  { %2742 = vmax.xlane.f32.xlu2 %v11378_v42  ;;  %2740 = vmax.xlane.f32.xlu1 %v11380_v29 }
 0x707   :  { %8101 = vset.pattern.permute.xlu0 %v14704_v27  ;;  %v3136_v27 = vadd.f32 %v11376_v45, %v11145_v39  ;;  %v3157_v39 = vmul.f32 0.2, %v3141_v58 }
 0x709   :  { %v3152_v17 = vmul.f32 0.2, %v3136_v27  ;;  %v11421_v52 = vmax.f32 %v3141_v58, %v3157_v39  ;;  %v3143_v39 = vadd.f32 %v11376_v45, %v11297_v53  ;;  %v3146_v53 = vadd.f32 %v11376_v45, %v11307_v38  ;;  %v11467_v38 = vpop.permute.xlu2 %3130 }
 0x70b   :  { %v11414_v18 = vmax.f32 %v3136_v27, %v3152_v17  ;;  %v3160_v27 = vmul.f32 0.2, %v3144_v35  ;;  %v3156_v17 = vmul.f32 0.2, %v3140_v15  ;;  %v3159_v28 = vmul.f32 0.2, %v3143_v39 }
 0x70d   :  { %3184 = vmax.xlane.f32.xlu2 %v11391_v57  ;;  %2746 = vmax.xlane.f32.xlu1 %v11393_v48  ;;  %v11434_v58 = vmax.f32 %v3144_v35, %v3160_v27  ;;  %v11436_v49 = vmax.f32 %v3140_v15, %v3156_v17  ;;  %v3145_v35 = vadd.f32 %v11376_v45, %v11305_v55  ;;  %v3162_v17 = vmul.f32 0.2, %v3146_v53 }
 0x70e   :  { %v11451_v15 = vmax.f32 %v3143_v39, %v3159_v28  ;;  %v3148_v55 = vadd.f32 %v11376_v45, %v3127_v8 }
 0x70f   :  { %v3161_v5 = vmul.f32 0.2, %v3145_v35  ;;  %v11461_v56 = vmax.f32 %v3146_v53, %v3162_v17 }
 0x710   :  { %v3164_v3 = vmul.f32 0.2, %v3148_v55 }
 0x711   :  { %2744 = vmax.xlane.f32.xlu0 %v11399_v16  ;;  %v11457_v27 = vmax.f32 %v3145_v35, %v3161_v5 }
 0x712   :  { %v11464_v39 = vmax.f32 %v3148_v55, %v3164_v3  ;;  %v11478_v3 = vld [vmem:[%s14508_s1] sm:$0xff] }
 0x715   :  { %3190 = vmax.xlane.f32.xlu2 %v11406_v21  ;;  %3182 = vmax.xlane.f32.xlu1 %v11408_v41 }
 0x719   :  { %3186 = vmax.xlane.f32.xlu0 %v11414_v18 }
 0x71d   :  { %3196 = vmax.xlane.f32.xlu2 %v11421_v52  ;;  %3188 = vmax.xlane.f32.xlu1 %v11423_v25 }
 0x721   :  { %3192 = vmax.xlane.f32.xlu0 %v11431_v6 }
 0x725   :  { %3202 = vmax.xlane.f32.xlu2 %v11434_v58  ;;  %3194 = vmax.xlane.f32.xlu1 %v11436_v49 }
 0x729   :  { %3198 = vmax.xlane.f32.xlu0 %v11444_v24 }
 0x72d   :  { %3208 = vmax.xlane.f32.xlu2 %v11449_v32  ;;  %3200 = vmax.xlane.f32.xlu1 %v11451_v15 }
 0x731   :  { %3204 = vmax.xlane.f32.xlu0 %v11457_v27 }
 0x735   :  { %3206 = vmax.xlane.f32.xlu1 %v11461_v56 }
 0x739   :  { %3210 = vmax.xlane.f32.xlu0 %v11464_v39 }
 0x745   :  { %3568 = vperm.xlu2 %8103, %v11105_v54  }
 0x748   :  { %v2717_v46 = vpop.xlane.xlu1 %2716  ;;  %v2719_v28 = vpop.xlane.xlu2 %2718 }
 0x749   :  { %v2748_v35 = vsub.f32 %v11322_v51, %v2717_v46  ;;  %v2749_v8 = vsub.f32 %v11320_v34, %v2719_v28 }
 0x74b   :  { %v2764_v5 = vmul.f32 1.442695, %v2748_v35  ;;  %v2766_v53 = vmul.f32 1.442695, %v2749_v8  ;;  %v11488_v8 = vld [vmem:[%s14508_s1 + $0x8] sm:$0xff] }
 0x74d   :  { %8454 = vpow2.f32 %v2764_v5  ;;  %3560 = vperm.xlu0 %8101, %v11096_v12   ;;  %3580 = vperm.xlu2 %8103, %v11155_v43   ;;  %v11498_v43 = vld [vmem:[%s14508_s1 + $0x10] sm:$0xff] }
 0x74e   :  { %3564 = vperm.xlu1 %8102, %v11087_v47   ;;  %8456 = vpow2.f32 %v2766_v53  ;;  %v14733_v53 = vmov 72  }
 0x750   :  { %v2721_v17 = vpop.xlane.xlu1 %2720  ;;  %v2723_v55 = vpop.xlane.xlu2 %2722 }
 0x751   :  { %v2750_v51 = vsub.f32 %v11332_v9, %v2721_v17  ;;  %v2751_v9 = vsub.f32 %v11330_v36, %v2723_v55 }
 0x753   :  { %v8455_v54 = vpop.eup %8454  ;;  %v2768_v46 = vmul.f32 1.442695, %v2750_v51  ;;  %v2770_v17 = vmul.f32 1.442695, %v2751_v9 }
 0x754   :  { %v2812_v34 = vmul.f32 %v8455_v54, %v11478_v3  ;;  %v8457_v5 = vpop.eup %8456 }
 0x755   :  { %3572 = vperm.xlu0 %8101, %v11134_v23   ;;  %3592 = vperm.xlu2 %8103, %v11168_v7   ;;  %8458 = vpow2.f32 %v2768_v46  ;;  %v2813_v54 = vmul.f32 %v8457_v5, %v11488_v8 }
 0x756   :  { %2844 = vmatmul.f32.vlgmr.msrb.gmra.mxu3 %v2812_v34  ;;  %3576 = vperm.xlu1 %8102, %v11114_v33   ;;  %8460 = vpow2.f32 %v2770_v17  ;;  %v11515_v17 = vperm.slane %v11311_v40, 2 }
 0x758   :  { %v2725_v28 = vpop.xlane.xlu1 %2724  ;;  %v2727_v35 = vpop.xlane.xlu2 %2726 }
 0x759   :  { %v2752_v36 = vsub.f32 %v11342_v22, %v2725_v28  ;;  %v2753_v22 = vsub.f32 %v11340_v0, %v2727_v35 }
 0x75b   :  { %v8459_v7 = vpop.eup %8458  ;;  %v2772_v46 = vmul.f32 1.442695, %v2752_v36  ;;  %v2774_v28 = vmul.f32 1.442695, %v2753_v22 }
 0x75c   :  { %v2814_v55 = vmul.f32 %v8459_v7, %v11498_v43 }
 0x75d   :  { %3584 = vperm.xlu0 %8101, %v11181_v20   ;;  %8106 = vset.pattern.permute.xlu2 %v14733_v53  ;;  %8462 = vpow2.f32 %v2772_v46  ;;  %v11524_v46 = vld [vmem:[%s14508_s1 + $0x20] sm:$0xff] }
 0x75e   :  { %3588 = vperm.xlu1 %8102, %v11141_v14   ;;  %2847 = vmatmul.f32.gmra.mxu3 %v2813_v54  ;;  %v8461_v54 = vpop.eup %8460  ;;  %v11509_v14 = vld [vmem:[%s14508_s1 + $0x18] sm:$0xff]  ;;  %8464 = vpow2.f32 %v2774_v28  ;;  %v3149_v28 = vadd.f32 %v11376_v45, %v11467_v38  ;;  %v3602_v38 = vadd.f32 %v11515_v17, %v11195_v61 }
 0x75f   :  { %v2815_v7 = vmul.f32 %v8461_v54, %v11509_v14  ;;  %v11575_v61 = vld [vmem:[%s14508_s1 + $0x38] sm:$0xff] }
 0x760   :  { %v2729_v51 = vpop.xlane.xlu1 %2728  ;;  %v2731_v34 = vpop.xlane.xlu2 %2730 }
 0x761   :  { %v2754_v0 = vsub.f32 %v11351_v26, %v2729_v51  ;;  %v2755_v26 = vsub.f32 %v11349_v37, %v2731_v34  ;;  %v3603_v51 = vadd.f32 %v11515_v17, %v11203_v44 }
 0x763   :  { %v8463_v33 = vpop.eup %8462  ;;  %v2776_v54 = vmul.f32 1.442695, %v2754_v0  ;;  %v2778_v0 = vmul.f32 1.442695, %v2755_v26  ;;  %v3600_v26 = vadd.f32 %v11515_v17, %v11121_v19 }
 0x764   :  { %v2816_v35 = vmul.f32 %v8463_v33, %v11524_v46  ;;  %v8465_v47 = vpop.eup %8464 }
 0x765   :  { %3596 = vperm.xlu0 %8101, %v11159_v60   ;;  %8466 = vpow2.f32 %v2776_v54  ;;  %v3619_v54 = vmul.f32 0.2, %v3603_v51 }
 0x766   :  { %2850 = vmatmul.f32.gmra.mxu3 %v2814_v55  ;;  %8104 = vset.pattern.permute.xlu1 %v14733_v53  ;;  %8468 = vpow2.f32 %v2778_v0 }
 0x767   :  { %v11556_v37 = vmax.f32 %v3603_v51, %v3619_v54  ;;  %v3618_v51 = vmul.f32 0.2, %v3602_v38  ;;  %v3616_v54 = vmul.f32 0.2, %v3600_v26 }
 0x768   :  { %v2733_v5 = vpop.xlane.xlu1 %2732  ;;  %v11504_v9 = vpop.xlane.xlu2 %2734 }
 0x769   :  { %v2756_v44 = vsub.f32 %v11360_v31, %v2733_v5  ;;  %14734 = vst [vmem:[#allocation12_spill] sm:$0xff] %v11556_v37 }
 0x76b   :  { %v8467_v10 = vpop.eup %8466 }
 0x76d   :  { %8105 = vset.pattern.permute.xlu0 %v14733_v53  ;;  %v3601_v53 = vadd.f32 %v11515_v17, %v11275_v13  ;;  %v2817_v13 = vmul.f32 %v8465_v47, %v11537_v1  ;;  %v3165_v47 = vmul.f32 0.2, %v3149_v28 }
 0x76e   :  { %2853 = vmatmul.f32.gmra.mxu3 %v2815_v7 }
 0x76f   :  { %v3617_v40 = vmul.f32 0.2, %v3601_v53 }
 0x770   :  { %v11517_v36 = vpop.xlane.xlu1 %2736  ;;  %v11519_v55 = vpop.xlane.xlu2 %2738 }
 0x771   :  { %v11540_v33 = vmax.f32 %v3601_v53, %v3617_v40  ;;  %v11553_v40 = vld [vmem:[%s14508_s1 + $0x30] sm:$0xff]  ;;  %v11564_v53 = vmax.f32 %v3149_v28, %v3165_v47  ;;  %v2757_v28 = vsub.f32 %v11358_v30, %v11504_v9  ;;  %v3604_v30 = vadd.f32 %v11515_v17, %v11262_v63 }
 0x772   :  { %v2818_v34 = vmul.f32 %v8467_v10, %v11553_v40  ;;  %v8469_v10 = vpop.eup %8468 }
 0x773   :  { %v3620_v63 = vmul.f32 0.2, %v3604_v30 }
 0x776   :  { %2856 = vmatmul.f32.gmra.mxu3 %v2816_v35 }
 0x778   :  { %v11530_v22 = vpop.xlane.xlu1 %2740  ;;  %v11532_v7 = vpop.xlane.xlu2 %2742 }
 0x77e   :  { %3650 = vmax.xlane.f32.xlu2 %v11540_v33  ;;  %2859 = vmatmul.f32.gmra.mxu3 %v2817_v13  ;;  %v2780_v13 = vmul.f32 1.442695, %v2756_v44  ;;  %v2819_v44 = vmul.f32 %v8469_v10, %v11575_v61 }
 0x780   :  { %v11548_v35 = vpop.xlane.xlu1 %2746  ;;  %v3185_v11 = vpop.xlane.xlu2 %3184  ;;  %8470 = vpow2.f32 %v2780_v13 }
 0x781   :  { %v3215_v19 = vsub.f32 %v11391_v57, %v3185_v11 }
 0x783   :  { %v3232_v9 = vmul.f32 1.442695, %v3215_v19 }
 0x784   :  { %v11559_v45 = vpop.xlane.xlu0 %2744 }
 0x786   :  { %3654 = vmax.xlane.f32.xlu2 %v11556_v37  ;;  %2862 = vmatmul.f32.gmra.mxu3 %v2818_v34  ;;  %v11581_v34 = vmax.f32 %v3602_v38, %v3618_v51  ;;  %v11585_v37 = vmax.f32 %v3600_v26, %v3616_v54  ;;  %v8471_v57 = vpop.eup %8470  ;;  %v2758_v26 = vsub.f32 %v11369_v50, %v11517_v36 }
 0x788   :  { %v3183_v0 = vpop.xlane.xlu1 %3182  ;;  %3212 = vmax.xlane.f32.xlu1 %v11564_v53  ;;  %v11569_v31 = vpop.xlane.xlu2 %3190  ;;  %v2784_v19 = vmul.f32 1.442695, %v2758_v26 }
 0x789   :  { %v3214_v5 = vsub.f32 %v11408_v41, %v3183_v0  ;;  %v3605_v41 = vadd.f32 %v11515_v17, %v11269_v4  ;;  %v2782_v0 = vmul.f32 1.442695, %v2757_v28  ;;  %v11596_v4 = vld [vmem:[%s14508_s1 + $0x40] sm:$0xff] }
 0x78a   :  { %v2820_v28 = vmul.f32 %v8471_v57, %v11596_v4 }
 0x78b   :  { %v3230_v47 = vmul.f32 1.442695, %v3214_v5  ;;  %v3621_v38 = vmul.f32 0.2, %v3605_v41 }
 0x78c   :  { %v3187_v13 = vpop.xlane.xlu0 %3186 }
 0x78d   :  { %8472 = vpow2.f32 %v3230_v47  ;;  %v3216_v5 = vsub.f32 %v11414_v18, %v3187_v13  ;;  %v11603_v54 = vmax.f32 %v3605_v41, %v3621_v38  ;;  %v11605_v47 = vmax.f32 %v3604_v30, %v3620_v63  ;;  %v11614_v41 = vld [vmem:[%s14508_s1 + $0x48] sm:$0xff] }
 0x78e   :  { %2865 = vmatmul.f32.gmra.mxu3 %v2819_v44  ;;  %8474 = vpow2.f32 %v2782_v0  ;;  %v2759_v30 = vsub.f32 %v11367_v59, %v11519_v55  ;;  %v2760_v59 = vsub.f32 %v11380_v29, %v11530_v22  ;;  %v2761_v22 = vsub.f32 %v11378_v42, %v11532_v7 }
 0x78f   :  { %3652 = vmax.xlane.f32.xlu0 %v11581_v34  ;;  %8476 = vpow2.f32 %v3232_v9  ;;  %v3234_v44 = vmul.f32 1.442695, %v3216_v5 }
 0x790   :  { %3648 = vmax.xlane.f32.xlu1 %v11585_v37  ;;  %v11591_v11 = vpop.xlane.xlu2 %3196  ;;  %v3189_v36 = vpop.xlane.xlu1 %3188  ;;  %8478 = vpow2.f32 %v2784_v19  ;;  %v2786_v26 = vmul.f32 1.442695, %v2759_v30 }
 0x791   :  { %8480 = vpow2.f32 %v3234_v44  ;;  %v3217_v13 = vsub.f32 %v11423_v25, %v3189_v36  ;;  %v3218_v25 = vsub.f32 %v11406_v21, %v11569_v31  ;;  %v2788_v36 = vmul.f32 1.442695, %v2760_v59  ;;  %v11640_v21 = vld [vmem:[%s14508_s1 + $0x58] sm:$0xff] }
 0x792   :  { %8482 = vpow2.f32 %v2786_v26  ;;  %v2790_v59 = vmul.f32 1.442695, %v2761_v22 }
 0x793   :  { %v8473_v10 = vpop.eup %8472  ;;  %v3236_v63 = vmul.f32 1.442695, %v3217_v13 }
 0x794   :  { %v3278_v51 = vmul.f32 %v8473_v10, %v11478_v3  ;;  %v8475_v50 = vpop.eup %8474  ;;  %v3193_v9 = vpop.xlane.xlu0 %3192 }
 0x795   :  { %v8477_v18 = vpop.eup %8476  ;;  %v2821_v57 = vmul.f32 %v8475_v50, %v11614_v41  ;;  %8484 = vpow2.f32 %v3236_v63  ;;  %v3219_v31 = vsub.f32 %v11431_v6, %v3193_v9 }
 0x796   :  { %2868 = vmatmul.f32.gmra.mxu3 %v2820_v28  ;;  %3310 = vmatmul.f32.vlgmr.msra.gmra.mxu0 %v3278_v51  ;;  %v3279_v38 = vmul.f32 %v8477_v18, %v11488_v8  ;;  %v8479_v10 = vpop.eup %8478  ;;  %v11626_v28 = vld [vmem:[%s14508_s1 + $0x50] sm:$0xff]  ;;  %v3238_v18 = vmul.f32 1.442695, %v3218_v25  ;;  %8486 = vpow2.f32 %v2788_v36  ;;  %v2762_v36 = vsub.f32 %v11399_v16, %v11559_v45 }
 0x797   :  { %3658 = vmax.xlane.f32.xlu0 %v11603_v54  ;;  %v8481_v51 = vpop.eup %8480  ;;  %v2822_v44 = vmul.f32 %v8479_v10, %v11626_v28 }
 0x798   :  { %3656 = vmax.xlane.f32.xlu1 %v11605_v47  ;;  %v11609_v0 = vpop.xlane.xlu2 %3202  ;;  %v3195_v19 = vpop.xlane.xlu1 %3194  ;;  %v3280_v50 = vmul.f32 %v8481_v51, %v11498_v43  ;;  %8488 = vpow2.f32 %v3238_v18  ;;  %v2792_v22 = vmul.f32 1.442695, %v2762_v36 }
 0x799   :  { %v8483_v30 = vpop.eup %8482  ;;  %8490 = vpow2.f32 %v2790_v59  ;;  %v2763_v59 = vsub.f32 %v11393_v48, %v11548_v35 }
 0x79a   :  { %v2823_v26 = vmul.f32 %v8483_v30, %v11640_v21  ;;  %v3220_v30 = vsub.f32 %v11436_v49, %v3195_v19  ;;  %v11676_v19 = vld [vmem:[%s14508_s1 + $0x68] sm:$0xff] }
 0x79b   :  { %v2794_v36 = vmul.f32 1.442695, %v2763_v59 }
 0x79c   :  { %v11632_v55 = vpop.xlane.xlu0 %3198 }
 0x79e   :  { %2871 = vmatmul.f32.gmra.mxu3 %v2821_v57  ;;  %3313 = vmatmul.f32.gmra.mxu0 %v3279_v38  ;;  %v8485_v57 = vpop.eup %8484 }
 0x79f   :  { %v3281_v63 = vmul.f32 %v8485_v57, %v11509_v14  ;;  %v8487_v42 = vpop.eup %8486 }
 0x7a0   :  { %v11621_v5 = vpop.xlane.xlu2 %3208  ;;  %v11651_v25 = vpop.xlane.xlu1 %3200 }
 0x7a1   :  { %v8489_v6 = vpop.eup %8488 }
 0x7a2   :  { %v3282_v57 = vmul.f32 %v8489_v6, %v11524_v46 }
 0x7a4   :  { %v11647_v10 = vpop.xlane.xlu0 %3204 }
 0x7a6   :  { %2874 = vmatmul.f32.gmra.mxu3 %v2822_v44  ;;  %3316 = vmatmul.f32.gmra.mxu0 %v3280_v50  ;;  %v3240_v44 = vmul.f32 1.442695, %v3219_v31  ;;  %v11658_v50 = vld [vmem:[%s14508_s1 + $0x60] sm:$0xff] }
 0x7a8   :  { %v3569_v13 = vpop.permute.xlu2 %3568  ;;  %8492 = vpow2.f32 %v3240_v44  ;;  %v11670_v16 = vpop.xlane.xlu1 %3206 }
 0x7a9   :  { %v3608_v29 = vadd.f32 %v11515_v17, %v3569_v13  ;;  %v2824_v13 = vmul.f32 %v8487_v42, %v11658_v50  ;;  %8494 = vpow2.f32 %v2792_v22  ;;  %v3221_v42 = vsub.f32 %v11421_v52, %v11591_v11  ;;  %v11692_v11 = vld [vmem:[%s14508_s1 + $0x70] sm:$0xff] }
 0x7ab   :  { %v3624_v38 = vmul.f32 0.2, %v3608_v29 }
 0x7ac   :  { %v11667_v31 = vpop.xlane.xlu0 %3210 }
 0x7ad   :  { %v11649_v51 = vmax.f32 %v3608_v29, %v3624_v38  ;;  %v8491_v38 = vpop.eup %8490 }
 0x7ae   :  { %2877 = vmatmul.f32.gmra.mxu3 %v2823_v26  ;;  %3319 = vmatmul.f32.gmra.mxu0 %v3281_v63  ;;  %v3242_v26 = vmul.f32 1.442695, %v3220_v30  ;;  %v8493_v63 = vpop.eup %8492  ;;  %v3244_v30 = vmul.f32 1.442695, %v3221_v42 }
 0x7af   :  { %3664 = vmax.xlane.f32.xlu0 %v11649_v51  ;;  %v3283_v6 = vmul.f32 %v8493_v63, %v11537_v1 }
 0x7b0   :  { %v3581_v7 = vpop.permute.xlu2 %3580  ;;  %8496 = vpow2.f32 %v3242_v26  ;;  %v3222_v26 = vsub.f32 %v11444_v24, %v11632_v55 }
 0x7b1   :  { %v3611_v9 = vadd.f32 %v11515_v17, %v3581_v7  ;;  %v2825_v7 = vmul.f32 %v8491_v38, %v11676_v19  ;;  %8498 = vpow2.f32 %v2794_v36  ;;  %v11709_v36 = vld [vmem:[%s14508_s1 + $0x78] sm:$0xff] }
 0x7b2   :  { %8500 = vpow2.f32 %v3244_v30  ;;  %v3246_v42 = vmul.f32 1.442695, %v3222_v26 }
 0x7b3   :  { %v3627_v18 = vmul.f32 0.2, %v3611_v9 }
 0x7b4   :  { %8502 = vpow2.f32 %v3246_v42 }
 0x7b5   :  { %v11665_v29 = vmax.f32 %v3611_v9, %v3627_v18 }
 0x7b6   :  { %2880 = vmatmul.f32.gmra.mxu3 %v2824_v13  ;;  %3322 = vmatmul.f32.gmra.mxu0 %v3282_v57  ;;  %v8495_v13 = vpop.eup %8494 }
 0x7b7   :  { %3670 = vmax.xlane.f32.xlu0 %v11665_v29  ;;  %v8497_v57 = vpop.eup %8496  ;;  %v2826_v63 = vmul.f32 %v8495_v13, %v11692_v11 }
 0x7b8   :  { %v3593_v45 = vpop.permute.xlu2 %3592  ;;  %v3284_v59 = vmul.f32 %v8497_v57, %v11553_v40  ;;  %v8499_v24 = vpop.eup %8498 }
 0x7b9   :  { %v3614_v49 = vadd.f32 %v11515_v17, %v3593_v45 }
 0x7bb   :  { %v3630_v44 = vmul.f32 0.2, %v3614_v49 }
 0x7bd   :  { %v11684_v9 = vmax.f32 %v3614_v49, %v3630_v44 }
 0x7be   :  { %2883 = vmatmul.f32.gmra.mxu3 %v2825_v7  ;;  %3325 = vmatmul.f32.gmra.mxu0 %v3283_v6 }
 0x7bf   :  { %v3561_v18 = vpop.permute.xlu0 %3560  ;;  %3676 = vmax.xlane.f32.xlu0 %v11684_v9 }
 0x7c0   :  { %v3606_v48 = vadd.f32 %v11515_v17, %v3561_v18  ;;  %v3565_v35 = vpop.permute.xlu1 %3564  ;;  %v8501_v18 = vpop.eup %8500 }
 0x7c1   :  { %v3607_v52 = vadd.f32 %v11515_v17, %v3565_v35  ;;  %v3223_v35 = vsub.f32 %v11451_v15, %v11651_v25  ;;  %v8503_v25 = vpop.eup %8502 }
 0x7c2   :  { %v3622_v22 = vmul.f32 0.2, %v3606_v48 }
 0x7c3   :  { %v3623_v38 = vmul.f32 0.2, %v3607_v52  ;;  %v3248_v26 = vmul.f32 1.442695, %v3223_v35 }
 0x7c4   :  { %v11696_v45 = vmax.f32 %v3606_v48, %v3622_v22  ;;  %v3285_v22 = vmul.f32 %v8501_v18, %v11575_v61 }
 0x7c5   :  { %v11699_v49 = vmax.f32 %v3607_v52, %v3623_v38  ;;  %v2827_v52 = vmul.f32 %v8499_v24, %v11709_v36  ;;  %8504 = vpow2.f32 %v3248_v26 }
 0x7c6   :  { %3660 = vmax.xlane.f32.xlu2 %v11696_v45  ;;  %2886 = vmatmul.f32.gmra.mxu3 %v2826_v63 }
 0x7c7   :  { %3328 = vmatmul.f32.gmra.mxu0 %v3284_v59  ;;  %v3573_v44 = vpop.permute.xlu0 %3572  ;;  %3662 = vmax.xlane.f32.xlu1 %v11699_v49 }
 0x7c8   :  { %v3609_v7 = vadd.f32 %v11515_v17, %v3573_v44  ;;  %v3577_v6 = vpop.permute.xlu1 %3576 }
 0x7c9   :  { %v3610_v55 = vadd.f32 %v11515_v17, %v3577_v6 }
 0x7ca   :  { %v3625_v30 = vmul.f32 0.2, %v3609_v7 }
 0x7cb   :  { %v3626_v48 = vmul.f32 0.2, %v3610_v55 }
 0x7cc   :  { %v11713_v13 = vmax.f32 %v3609_v7, %v3625_v30  ;;  %v3224_v7 = vsub.f32 %v11434_v58, %v11609_v0  ;;  %v3225_v58 = vsub.f32 %v11457_v27, %v11647_v10  ;;  %v3227_v10 = vsub.f32 %v11449_v32, %v11621_v5  ;;  %v14736_v5 = vld [vmem:[#allocation29_spill] sm:$0xff] }
 0x7cd   :  { %v11716_v57 = vmax.f32 %v3610_v55, %v3626_v48  ;;  %v3286_v55 = vmul.f32 %v8503_v25, %v11596_v4 }
 0x7ce   :  { %3666 = vmax.xlane.f32.xlu2 %v11713_v13  ;;  %2889 = vmatmul.f32.gmra.mxu3 %v2827_v52  ;;  %v3250_v30 = vmul.f32 1.442695, %v3224_v7 }
 0x7cf   :  { %3331 = vmatmul.f32.gmra.mxu0 %v3285_v22  ;;  %v3585_v38 = vpop.permute.xlu0 %3584  ;;  %3668 = vmax.xlane.f32.xlu1 %v11716_v57  ;;  %v3252_v22 = vmul.f32 1.442695, %v3225_v58  ;;  %v14741_v58 = vld [vmem:[#allocation27_spill] sm:$0xff] }
 0x7d0   :  { %v3612_v63 = vadd.f32 %v11515_v17, %v3585_v38  ;;  %v3589_v59 = vpop.permute.xlu1 %3588  ;;  %8506 = vpow2.f32 %v3250_v30 }
 0x7d1   :  { %v3613_v15 = vadd.f32 %v11515_v17, %v3589_v59  ;;  %8508 = vpow2.f32 %v3252_v22  ;;  %v3256_v59 = vmul.f32 1.442695, %v3227_v10 }
 0x7d2   :  { %v3628_v44 = vmul.f32 0.2, %v3612_v63 }
 0x7d3   :  { %v3629_v42 = vmul.f32 0.2, %v3613_v15  ;;  %4006 = vperm.xlu0 %8105, %v11007_v2   ;;  %v8505_v2 = vpop.eup %8504 }
 0x7d4   :  { %v11726_v6 = vmax.f32 %v3612_v63, %v3628_v44  ;;  %v3287_v52 = vmul.f32 %v8505_v2, %v11614_v41  ;;  %v14737_v44 = vmov 64  }
 0x7d5   :  { %v11728_v24 = vmax.f32 %v3613_v15, %v3629_v42  ;;  %v14738_v42 = vld [vmem:[#allocation22_spill] sm:$0xff] }
 0x7d6   :  { %3672 = vmax.xlane.f32.xlu2 %v11726_v6  ;;  %v8507_v38 = vpop.eup %8506 }
 0x7d7   :  { %3334 = vmatmul.f32.gmra.mxu0 %v3286_v55  ;;  %v3597_v18 = vpop.permute.xlu0 %3596  ;;  %3674 = vmax.xlane.f32.xlu1 %v11728_v24  ;;  %v8509_v27 = vpop.eup %8508 }
 0x7d8   :  { %v3615_v48 = vadd.f32 %v11515_v17, %v3597_v18  ;;  %v3226_v17 = vsub.f32 %v11461_v56, %v11670_v16  ;;  %v3289_v63 = vmul.f32 %v8509_v27, %v11640_v21  ;;  %v3228_v56 = vsub.f32 %v11464_v39, %v11667_v31  ;;  %v14739_v31 = vld [vmem:[#allocation19_spill] sm:$0xff]  ;;  %v14743_v27 = vld [vmem:[#allocation25_spill] sm:$0xff] }
 0x7da   :  { %v3631_v35 = vmul.f32 0.2, %v3615_v48  ;;  %v3254_v26 = vmul.f32 1.442695, %v3226_v17  ;;  %v3258_v32 = vmul.f32 1.442695, %v3228_v56 }
 0x7db   :  { %4026 = vperm.xlu0 %8105, %v11096_v12   ;;  %v3288_v12 = vmul.f32 %v8507_v38, %v11626_v28 }
 0x7dc   :  { %v11737_v0 = vmax.f32 %v3615_v48, %v3631_v35  ;;  %8510 = vpow2.f32 %v3254_v26  ;;  %v14742_v26 = vld [vmem:[#allocation10_spill] sm:$0xff] }
 0x7dd   :  { %8512 = vpow2.f32 %v3256_v59 }
 0x7de   :  { %3678 = vmax.xlane.f32.xlu2 %v11737_v0  ;;  %8514 = vpow2.f32 %v3258_v32  ;;  %v14746_v32 = vld [vmem:[#allocation18_spill] sm:$0xff] }
 0x7df   :  { %3337 = vmatmul.f32.gmra.mxu0 %v3287_v52 }
 0x7e3   :  { %4038 = vperm.xlu0 %8105, %v11134_v23   ;;  %v8511_v23 = vpop.eup %8510 }
 0x7e4   :  { %v3290_v16 = vmul.f32 %v8511_v23, %v11658_v50  ;;  %v8513_v15 = vpop.eup %8512  ;;  %v14744_v23 = vld [vmem:[#allocation12_spill] sm:$0xff] }
 0x7e5   :  { %v8515_v7 = vpop.eup %8514 }
 0x7e6   :  { %v3292_v48 = vmul.f32 %v8515_v7, %v11692_v11 }
 0x7e7   :  { %3340 = vmatmul.f32.gmra.mxu0 %v3288_v12 }
 0x7eb   :  { %4050 = vperm.xlu0 %8105, %v11181_v20   ;;  %v14735_v20 = vld [vmem:[#allocation24_spill] sm:$0xff] }
 0x7ef   :  { %3343 = vmatmul.f32.gmra.mxu0 %v3289_v63 }
 0x7f0   :  { %4002 = vperm.xlu1 %8104, %v10989_v62  }
 0x7f1   :  { %v3651_v55 = vpop.xlane.xlu2 %3650 }
 0x7f2   :  { %v3681_v2 = vsub.f32 %v11540_v33, %v3651_v55 }
 0x7f3   :  { %4062 = vperm.xlu0 %8105, %v11159_v60   ;;  %v3291_v60 = vmul.f32 %v8513_v15, %v11676_v19 }
 0x7f4   :  { %v3698_v22 = vmul.f32 1.442695, %v3681_v2 }
 0x7f6   :  { %4010 = vperm.xlu2 %8106, %v14735_v20  }
 0x7f7   :  { %3346 = vmatmul.f32.gmra.mxu0 %v3290_v16  ;;  %v14745_v16 = vld [vmem:[#allocation21_spill] sm:$0xff] }
 0x7f8   :  { %4014 = vperm.xlu1 %8104, %v14736_v5  }
 0x7f9   :  { %v3655_v63 = vpop.xlane.xlu2 %3654 }
 0x7fa   :  { %v3683_v56 = vsub.f32 %v14744_v23, %v3655_v63 }
 0x7fb   :  { %v3213_v25 = vpop.xlane.xlu1 %3212  ;;  %8109 = vset.pattern.permute.xlu0 %v14737_v44 }
 0x7fc   :  { %v3229_v62 = vsub.f32 %v11564_v53, %v3213_v25  ;;  %v14740_v53 = vld [vmem:[#allocation17_spill] sm:$0xff] }
 0x7fe   :  { %4018 = vperm.xlu2 %8106, %v14738_v42   ;;  %v3260_v39 = vmul.f32 1.442695, %v3229_v62 }
 0x7ff   :  { %3349 = vmatmul.f32.gmra.mxu0 %v3291_v60 }
 0x800   :  { %4022 = vperm.xlu1 %8104, %v14739_v31   ;;  %8516 = vpow2.f32 %v3260_v39 }
 0x802   :  { %v3653_v38 = vpop.xlane.xlu0 %3652 }
 0x803   :  { %v3649_v18 = vpop.xlane.xlu1 %3648 }
 0x804   :  { %v3680_v30 = vsub.f32 %v11585_v37, %v3649_v18  ;;  %v3682_v37 = vsub.f32 %v11581_v34, %v3653_v38  ;;  %v3702_v34 = vmul.f32 1.442695, %v3683_v56 }
 0x806   :  { %v3696_v35 = vmul.f32 1.442695, %v3680_v30  ;;  %4030 = vperm.xlu2 %8106, %v14740_v53   ;;  %v8517_v52 = vpop.eup %8516  ;;  %v3700_v10 = vmul.f32 1.442695, %v3682_v37 }
 0x807   :  { %3352 = vmatmul.f32.gmra.mxu0 %v3292_v48  ;;  %v3293_v17 = vmul.f32 %v8517_v52, %v11709_v36 }
 0x808   :  { %8518 = vpow2.f32 %v3696_v35  ;;  %4034 = vperm.xlu1 %8104, %v14741_v58  }
 0x809   :  { %8520 = vpow2.f32 %v3698_v22 }
 0x80a   :  { %8522 = vpow2.f32 %v3700_v10  ;;  %v3659_v62 = vpop.xlane.xlu0 %3658 }
 0x80b   :  { %v3657_v5 = vpop.xlane.xlu1 %3656  ;;  %8524 = vpow2.f32 %v3702_v34 }
 0x80c   :  { %v3684_v15 = vsub.f32 %v11605_v47, %v3657_v5 }
 0x80e   :  { %v8519_v12 = vpop.eup %8518  ;;  %4042 = vperm.xlu2 %8106, %v14742_v26   ;;  %v3704_v60 = vmul.f32 1.442695, %v3684_v15 }
 0x80f   :  { %v3744_v33 = vmul.f32 %v8519_v12, %v11478_v3  ;;  %3355 = vmatmul.f32.gmra.mxu0 %v3293_v17  ;;  %v8521_v59 = vpop.eup %8520 }
 0x810   :  { %4046 = vperm.xlu1 %8104, %v14743_v27   ;;  %v3745_v20 = vmul.f32 %v8521_v59, %v11488_v8  ;;  %v8523_v3 = vpop.eup %8522  ;;  %v3685_v8 = vsub.f32 %v11603_v54, %v3659_v62  ;;  %8526 = vpow2.f32 %v3704_v60 }
 0x811   :  { %3776 = vmatmul.f32.vlgmr.msra.gmra.mxu1 %v3744_v33  ;;  %v3746_v25 = vmul.f32 %v8523_v3, %v11498_v43  ;;  %v8525_v42 = vpop.eup %8524 }
 0x812   :  { %v3747_v39 = vmul.f32 %v8525_v42, %v11509_v14  ;;  %v3706_v7 = vmul.f32 1.442695, %v3685_v8 }
 0x813   :  { %v11795_v27 = vpop.f32.mrf.mxu0 }
 0x814   :  { %8528 = vpow2.f32 %v3706_v7 }
 0x816   :  { %4054 = vperm.xlu2 %8106, %v14745_v16   ;;  %v8527_v55 = vpop.eup %8526 }
 0x817   :  { %v3748_v47 = vmul.f32 %v8527_v55, %v11524_v46  ;;  %v14747_v46 = vld [vmem:[#allocation23_spill] sm:$0xff] }
 0x818   :  { %4058 = vperm.xlu1 %8104, %v14746_v32   ;;  %v11788_v22 = vperm.slane %v14747_v46, 3 }
 0x819   :  { %3779 = vmatmul.f32.gmra.mxu1 %v3745_v20 }
 0x81a   :  { %v8529_v18 = vpop.eup %8528 }
 0x81b   :  { %v11804_v32 = vpop.f32.mrf.mxu0 }
 0x81e   :  { %8107 = vset.pattern.permute.xlu2 %v14737_v44 }
 0x820   :  { %8108 = vset.pattern.permute.xlu1 %v14737_v44  ;;  %v3749_v44 = vmul.f32 %v8529_v18, %v11537_v1 }
 0x821   :  { %3782 = vmatmul.f32.gmra.mxu1 %v3746_v25 }
 0x822   :  { %v3665_v31 = vpop.xlane.xlu0 %3664 }
 0x823   :  { %v3688_v38 = vsub.f32 %v11649_v51, %v3665_v31  ;;  %v11812_v42 = vpop.f32.mrf.mxu0 }
 0x825   :  { %v3712_v12 = vmul.f32 1.442695, %v3688_v38 }
 0x829   :  { %3785 = vmatmul.f32.gmra.mxu1 %v3747_v39 }
 0x82a   :  { %v3671_v43 = vpop.xlane.xlu0 %3670 }
 0x82b   :  { %v3691_v15 = vsub.f32 %v11665_v29, %v3671_v43 }
 0x82d   :  { %v3718_v8 = vmul.f32 1.442695, %v3691_v15 }
 0x831   :  { %3788 = vmatmul.f32.gmra.mxu1 %v3748_v47 }
 0x832   :  { %v11785_v35 = vpop.xlane.xlu0 %3676 }
 0x839   :  { %3791 = vmatmul.f32.gmra.mxu1 %v3749_v44  ;;  %v3661_v30 = vpop.xlane.xlu2 %3660 }
 0x83a   :  { %v3686_v48 = vsub.f32 %v11696_v45, %v3661_v30  ;;  %v3663_v54 = vpop.xlane.xlu1 %3662 }
 0x83b   :  { %v3687_v14 = vsub.f32 %v11699_v49, %v3663_v54 }
 0x83c   :  { %v3708_v2 = vmul.f32 1.442695, %v3686_v48 }
 0x83d   :  { %v3710_v53 = vmul.f32 1.442695, %v3687_v14 }
 0x83e   :  { %8530 = vpow2.f32 %v3708_v2 }
 0x83f   :  { %8532 = vpow2.f32 %v3710_v53 }
 0x840   :  { %8534 = vpow2.f32 %v3712_v12 }
 0x841   :  { %v3667_v58 = vpop.xlane.xlu2 %3666 }
 0x842   :  { %v3689_v10 = vsub.f32 %v11713_v13, %v3667_v58  ;;  %v3669_v63 = vpop.xlane.xlu1 %3668 }
 0x843   :  { %v3690_v56 = vsub.f32 %v11716_v57, %v3669_v63 }
 0x844   :  { %v8531_v52 = vpop.eup %8530 }
 0x845   :  { %v4007_v1 = vpop.permute.xlu0 %4006  ;;  %v3750_v17 = vmul.f32 %v8531_v52, %v11553_v40  ;;  %v8533_v26 = vpop.eup %8532  ;;  %v3714_v40 = vmul.f32 1.442695, %v3689_v10  ;;  %v3716_v13 = vmul.f32 1.442695, %v3690_v56 }
 0x846   :  { %v4067_v45 = vadd.f32 %v11788_v22, %v4007_v1  ;;  %v3751_v51 = vmul.f32 %v8533_v26, %v11575_v61  ;;  %v8535_v23 = vpop.eup %8534 }
 0x847   :  { %3794 = vmatmul.f32.gmra.mxu1 %v3750_v17  ;;  %8536 = vpow2.f32 %v3714_v40  ;;  %v3752_v20 = vmul.f32 %v8535_v23, %v11596_v4 }
 0x848   :  { %v4083_v49 = vmul.f32 0.2, %v4067_v45  ;;  %8538 = vpow2.f32 %v3716_v13  ;;  %v3694_v13 = vsub.f32 %v11684_v9, %v11785_v35 }
 0x849   :  { %v3673_v37 = vpop.xlane.xlu2 %3672  ;;  %8540 = vpow2.f32 %v3718_v8 }
 0x84a   :  { %v11793_v33 = vmax.f32 %v4067_v45, %v4083_v49  ;;  %v3675_v3 = vpop.xlane.xlu1 %3674 }
 0x84b   :  { %v3693_v17 = vsub.f32 %v11728_v24, %v3675_v3 }
 0x84c   :  { %4116 = vmax.xlane.f32.xlu1 %v11793_v33 }
 0x84d   :  { %v4027_v16 = vpop.permute.xlu0 %4026  ;;  %v8537_v5 = vpop.eup %8536  ;;  %v3722_v40 = vmul.f32 1.442695, %v3693_v17 }
 0x84e   :  { %v3753_v62 = vmul.f32 %v8537_v5, %v11614_v41  ;;  %v4072_v57 = vadd.f32 %v11788_v22, %v4027_v16  ;;  %v8539_v31 = vpop.eup %8538  ;;  %v3692_v41 = vsub.f32 %v11726_v6, %v3673_v37 }
 0x84f   :  { %3797 = vmatmul.f32.gmra.mxu1 %v3751_v51  ;;  %v3754_v44 = vmul.f32 %v8539_v31, %v11626_v28  ;;  %v8541_v58 = vpop.eup %8540  ;;  %v11829_v28 = vpop.f32.mrf.mxu0 }
 0x850   :  { %v4088_v7 = vmul.f32 0.2, %v4072_v57  ;;  %v3720_v14 = vmul.f32 1.442695, %v3692_v41  ;;  %v3755_v49 = vmul.f32 %v8541_v58, %v11640_v21 }
 0x851   :  { %v11800_v59 = vpop.xlane.xlu2 %3678 }
 0x852   :  { %v11819_v30 = vmax.f32 %v4072_v57, %v4088_v7  ;;  %8542 = vpow2.f32 %v3720_v14  ;;  %v3695_v7 = vsub.f32 %v11737_v0, %v11800_v59 }
 0x853   :  { %8544 = vpow2.f32 %v3722_v40 }
 0x855   :  { %v4039_v4 = vpop.permute.xlu0 %4038 }
 0x856   :  { %v4075_v48 = vadd.f32 %v11788_v22, %v4039_v4  ;;  %v3724_v4 = vmul.f32 1.442695, %v3694_v13 }
 0x857   :  { %3800 = vmatmul.f32.gmra.mxu1 %v3752_v20 }
 0x858   :  { %v4091_v52 = vmul.f32 0.2, %v4075_v48  ;;  %v8543_v63 = vpop.eup %8542  ;;  %8546 = vpow2.f32 %v3724_v4 }
 0x859   :  { %v4011_v34 = vpop.permute.xlu2 %4010  ;;  %v8545_v35 = vpop.eup %8544 }
 0x85a   :  { %v4068_v61 = vadd.f32 %v11788_v22, %v4011_v34  ;;  %v11835_v37 = vmax.f32 %v4075_v48, %v4091_v52  ;;  %v11849_v34 = vpop.f32.mrf.mxu0  ;;  %v3726_v48 = vmul.f32 1.442695, %v3695_v7 }
 0x85c   :  { %v4084_v25 = vmul.f32 0.2, %v4068_v61  ;;  %8548 = vpow2.f32 %v3726_v48 }
 0x85d   :  { %v4051_v53 = vpop.permute.xlu0 %4050  ;;  %8550 = vrcp.f32 %v11804_v32 }
 0x85e   :  { %v11810_v60 = vmax.f32 %v4068_v61, %v4084_v25  ;;  %v4078_v26 = vadd.f32 %v11788_v22, %v4051_v53  ;;  %v3756_v61 = vmul.f32 %v8543_v63, %v11658_v50  ;;  %v8547_v0 = vpop.eup %8546 }
 0x85f   :  { %3803 = vmatmul.f32.gmra.mxu1 %v3753_v62  ;;  %v3758_v53 = vmul.f32 %v8547_v0, %v11692_v11 }
 0x860   :  { %4118 = vmax.xlane.f32.xlu0 %v11810_v60  ;;  %v4094_v23 = vmul.f32 0.2, %v4078_v26 }
 0x861   :  { %v4019_v39 = vpop.permute.xlu2 %4018 }
 0x862   :  { %v4070_v29 = vadd.f32 %v11788_v22, %v4019_v39  ;;  %v4003_v55 = vpop.permute.xlu1 %4002  ;;  %v11852_v15 = vmax.f32 %v4078_v26, %v4094_v23  ;;  %v11867_v41 = vpop.f32.mrf.mxu0 }
 0x863   :  { %v4066_v47 = vadd.f32 %v11788_v22, %v4003_v55  ;;  %v8549_v52 = vpop.eup %8548 }
 0x864   :  { %v4086_v43 = vmul.f32 0.2, %v4070_v29  ;;  %v3759_v17 = vmul.f32 %v8549_v52, %v11709_v36 }
 0x865   :  { %v4082_v18 = vmul.f32 0.2, %v4066_v47  ;;  %v4063_v16 = vpop.permute.xlu0 %4062 }
 0x866   :  { %v11822_v54 = vmax.f32 %v4070_v29, %v4086_v43  ;;  %v4081_v25 = vadd.f32 %v11788_v22, %v4063_v16 }
 0x867   :  { %v11824_v2 = vmax.f32 %v4066_v47, %v4082_v18  ;;  %3806 = vmatmul.f32.gmra.mxu1 %v3754_v44  ;;  %v3757_v47 = vmul.f32 %v8545_v35, %v11676_v19 }
 0x868   :  { %4126 = vmax.xlane.f32.xlu0 %v11819_v30  ;;  %4122 = vmax.xlane.f32.xlu1 %v11822_v54  ;;  %v4097_v8 = vmul.f32 0.2, %v4081_v25 }
 0x869   :  { %4114 = vmax.xlane.f32.xlu2 %v11824_v2  ;;  %v4031_v6 = vpop.permute.xlu2 %4030 }
 0x86a   :  { %v4073_v46 = vadd.f32 %v11788_v22, %v4031_v6  ;;  %v4015_v38 = vpop.permute.xlu1 %4014  ;;  %v11869_v43 = vmax.f32 %v4081_v25, %v4097_v8  ;;  %v11882_v58 = vpop.f32.mrf.mxu0 }
 0x86b   :  { %v4069_v1 = vadd.f32 %v11788_v22, %v4015_v38 }
 0x86c   :  { %v4089_v45 = vmul.f32 0.2, %v4073_v46 }
 0x86d   :  { %v4085_v12 = vmul.f32 0.2, %v4069_v1 }
 0x86e   :  { %v11838_v10 = vmax.f32 %v4073_v46, %v4089_v45 }
 0x86f   :  { %v11840_v51 = vmax.f32 %v4069_v1, %v4085_v12  ;;  %3809 = vmatmul.f32.gmra.mxu1 %v3755_v49  ;;  %v8551_v49 = vpop.eup %8550 }
 0x870   :  { %4132 = vmax.xlane.f32.xlu0 %v11835_v37  ;;  %4128 = vmax.xlane.f32.xlu1 %v11838_v10 }
 0x871   :  { %4120 = vmax.xlane.f32.xlu2 %v11840_v51  ;;  %v4043_v24 = vpop.permute.xlu2 %4042 }
 0x872   :  { %v4076_v21 = vadd.f32 %v11788_v22, %v4043_v24  ;;  %v4023_v56 = vpop.permute.xlu1 %4022  ;;  %v11893_v11 = vpop.f32.mrf.mxu0 }
 0x873   :  { %v4071_v20 = vadd.f32 %v11788_v22, %v4023_v56 }
 0x874   :  { %v4092_v5 = vmul.f32 0.2, %v4076_v21 }
 0x875   :  { %v4087_v3 = vmul.f32 0.2, %v4071_v20 }
 0x876   :  { %v11855_v62 = vmax.f32 %v4076_v21, %v4092_v5  ;;  %v11905_v21 = vpop.f32.mrf.mxu3 }
 0x877   :  { %v11857_v57 = vmax.f32 %v4071_v20, %v4087_v3  ;;  %3812 = vmatmul.f32.gmra.mxu1 %v3756_v61 }
 0x878   :  { %4138 = vmax.xlane.f32.xlu0 %v11852_v15  ;;  %4134 = vmax.xlane.f32.xlu1 %v11855_v62 }
 0x879   :  { %4124 = vmax.xlane.f32.xlu2 %v11857_v57  ;;  %v4055_v9 = vpop.permute.xlu2 %4054 }
 0x87a   :  { %v4079_v50 = vadd.f32 %v11788_v22, %v4055_v9  ;;  %v4035_v39 = vpop.permute.xlu1 %4034  ;;  %v11899_v40 = vpop.f32.mrf.mxu0 }
 0x87b   :  { %v4074_v31 = vadd.f32 %v11788_v22, %v4035_v39 }
 0x87c   :  { %v4095_v29 = vmul.f32 0.2, %v4079_v50 }
 0x87d   :  { %v4090_v55 = vmul.f32 0.2, %v4074_v31 }
 0x87e   :  { %v11871_v18 = vmax.f32 %v4079_v50, %v4095_v29 }
 0x87f   :  { %v11873_v44 = vmax.f32 %v4074_v31, %v4090_v55  ;;  %3815 = vmatmul.f32.gmra.mxu1 %v3757_v47 }
 0x880   :  { %4144 = vmax.xlane.f32.xlu0 %v11869_v43  ;;  %4140 = vmax.xlane.f32.xlu1 %v11871_v18 }
 0x881   :  { %4130 = vmax.xlane.f32.xlu2 %v11873_v44 }
 0x882   :  { %v4047_v59 = vpop.permute.xlu1 %4046  ;;  %v11914_v3 = vpop.f32.mrf.mxu0 }
 0x883   :  { %v4077_v19 = vadd.f32 %v11788_v22, %v4047_v59  ;;  %14748 = vst [vmem:[#allocation28_spill] sm:$0xff] %v11914_v3 }
 0x885   :  { %v4093_v14 = vmul.f32 0.2, %v4077_v19 }
 0x887   :  { %v11880_v6 = vmax.f32 %v4077_v19, %v4093_v14  ;;  %3818 = vmatmul.f32.gmra.mxu1 %v3758_v53  ;;  %v4194_v53 = vld [vmem:[%s14508_s1] sm:$0xff] }
 0x889   :  { %4136 = vmax.xlane.f32.xlu2 %v11880_v6 }
 0x88a   :  { %v4059_v46 = vpop.permute.xlu1 %4058  ;;  %v11918_v25 = vpop.f32.mrf.mxu0 }
 0x88b   :  { %v4080_v38 = vadd.f32 %v11788_v22, %v4059_v46  ;;  %14749 = vst [vmem:[#allocation20_spill] sm:$0xff] %v11918_v25 }
 0x88d   :  { %v4096_v1 = vmul.f32 0.2, %v4080_v38 }
 0x88e   :  { %v11888_v45 = vpop.f32.mrf.mxu1 }
 0x88f   :  { %v11890_v12 = vmax.f32 %v4080_v38, %v4096_v1  ;;  %3821 = vmatmul.f32.gmra.mxu1 %v3759_v17  ;;  %8552 = vrcp.f32 %v11888_v45 }
 0x891   :  { %4142 = vmax.xlane.f32.xlu2 %v11890_v12 }
 0x892   :  { %v11922_v9 = vpop.f32.mrf.mxu0 }
 0x893   :  { %14751 = vst [vmem:[#allocation13_spill] sm:$0xff] %v11922_v9 }
 0x894   :  { %3398 = vperm.xlu0 %8109, %v8551_v49  }
 0x895   :  { %v8553_v22 = vpop.eup %8552 }
 0x896   :  { %v11896_v26 = vpop.f32.mrf.mxu1 }
 0x897   :  { %8554 = vrcp.f32 %v11896_v26 }
 0x898   :  { %8556 = vrcp.f32 %v11899_v40 }
 0x899   :  { %3859 = vperm.xlu1 %8108, %v8553_v22   ;;  %8558 = vrcp.f32 %v11795_v27  ;;  %v4195_v22 = vld [vmem:[%s14508_s1 + $0x8] sm:$0xff] }
 0x89a   :  { %8560 = vrcp.f32 %v11905_v21  ;;  %v11931_v29 = vpop.f32.mrf.mxu0 }
 0x89b   :  { %14753 = vst [vmem:[#allocation24_spill] sm:$0xff] %v11931_v29 }
 0x89d   :  { %v8555_v24 = vpop.eup %8554 }
 0x89e   :  { %v11901_v63 = vpop.f32.mrf.mxu1  ;;  %3864 = vperm.xlu0 %8109, %v8555_v24   ;;  %v8557_v23 = vpop.eup %8556 }
 0x89f   :  { %v8559_v56 = vpop.eup %8558 }
 0x8a0   :  { %v8561_v20 = vpop.eup %8560 }
 0x8a2   :  { %v11939_v46 = vpop.f32.mrf.mxu0 }
 0x8a3   :  { %14755 = vst [vmem:[#allocation22_spill] sm:$0xff] %v11939_v46 }
 0x8a6   :  { %3433 = vperm.xlu0 %8109, %v8557_v23   ;;  %v11907_v16 = vpop.f32.mrf.mxu1 }
 0x8a9   :  { %3393 = vperm.xlu2 %8107, %v8559_v56  }
 0x8aa   :  { %v11949_v56 = vpop.f32.mrf.mxu0 }
 0x8ab   :  { %14757 = vst [vmem:[#allocation17_spill] sm:$0xff] %v11949_v56 }
 0x8ae   :  { %v11910_v13 = vpop.f32.mrf.mxu1 }
 0x8b1   :  { %2927 = vperm.xlu2 %8107, %v8561_v20  }
 0x8b6   :  { %v11912_v5 = vpop.f32.mrf.mxu1 }
 0x8bf   :  { %v4117_v31 = vpop.xlane.xlu1 %4116 }
 0x8c0   :  { %v4147_v47 = vsub.f32 %v11793_v33, %v4117_v31 }
 0x8c2   :  { %v4164_v0 = vmul.f32 1.442695, %v4147_v47 }
 0x8c4   :  { %v11916_v61 = vpop.f32.mrf.mxu1 }
 0x8cc   :  { %v11920_v4 = vpop.f32.mrf.mxu1 }
 0x8cd   :  { %14750 = vst [vmem:[#allocation14_spill] sm:$0xff] %v11920_v4 }
 0x8d3   :  { %v4119_v14 = vpop.xlane.xlu0 %4118 }
 0x8d4   :  { %v11924_v35 = vpop.f32.mrf.mxu1 }
 0x8d5   :  { %8562 = vrcp.f32 %v11924_v35 }
 0x8d6   :  { %8564 = vrcp.f32 %v11922_v9 }
 0x8db   :  { %v8563_v8 = vpop.eup %8562  ;;  %v4123_v31 = vpop.xlane.xlu1 %4122 }
 0x8dc   :  { %v11927_v50 = vpop.f32.mrf.mxu1  ;;  %3899 = vperm.xlu0 %8109, %v8563_v8   ;;  %v4115_v39 = vpop.xlane.xlu2 %4114 }
 0x8dd   :  { %14752 = vst [vmem:[#allocation9_spill] sm:$0xff] %v11927_v50  ;;  %v4146_v7 = vsub.f32 %v11824_v2, %v4115_v39  ;;  %v8565_v48 = vpop.eup %8564  ;;  %v4148_v2 = vsub.f32 %v11810_v60, %v4119_v14 }
 0x8df   :  { %v4162_v55 = vmul.f32 1.442695, %v4146_v7  ;;  %v4166_v33 = vmul.f32 1.442695, %v4148_v2 }
 0x8e1   :  { %8566 = vpow2.f32 %v4162_v55  ;;  %v4196_v55 = vld [vmem:[%s14508_s1 + $0x10] sm:$0xff] }
 0x8e2   :  { %8568 = vpow2.f32 %v4164_v0 }
 0x8e4   :  { %v11934_v59 = vpop.f32.mrf.mxu1  ;;  %3448 = vperm.xlu0 %8109, %v8565_v48   ;;  %v4121_v19 = vpop.xlane.xlu2 %4120 }
 0x8e5   :  { %14754 = vst [vmem:[#allocation29_spill] sm:$0xff] %v11934_v59  ;;  %v4149_v24 = vsub.f32 %v11840_v51, %v4121_v19  ;;  %v4150_v51 = vsub.f32 %v11822_v54, %v4123_v31 }
 0x8e7   :  { %v8567_v52 = vpop.eup %8566  ;;  %v4168_v20 = vmul.f32 1.442695, %v4149_v24  ;;  %v4170_v0 = vmul.f32 1.442695, %v4150_v51  ;;  %v4199_v51 = vld [vmem:[%s14508_s1 + $0x28] sm:$0xff] }
 0x8e8   :  { %v4210_v38 = vmul.f32 %v8567_v52, %v4194_v53  ;;  %v8569_v49 = vpop.eup %8568  ;;  %v4197_v52 = vld [vmem:[%s14508_s1 + $0x18] sm:$0xff] }
 0x8e9   :  { %v4211_v23 = vmul.f32 %v8569_v49, %v4195_v22  ;;  %v4127_v22 = vpop.xlane.xlu0 %4126 }
 0x8ea   :  { %4242 = vmatmul.f32.vlgmr.msra.gmra.mxu2 %v4210_v38 }
 0x8ec   :  { %v11942_v1 = vpop.f32.mrf.mxu1  ;;  %v4125_v17 = vpop.xlane.xlu2 %4124 }
 0x8ed   :  { %14756 = vst [vmem:[#allocation19_spill] sm:$0xff] %v11942_v1  ;;  %8570 = vrcp.f32 %v11942_v1  ;;  %v4151_v2 = vsub.f32 %v11857_v57, %v4125_v17 }
 0x8ee   :  { %8572 = vpow2.f32 %v4166_v33 }
 0x8ef   :  { %8574 = vrcp.f32 %v11949_v56  ;;  %v4172_v54 = vmul.f32 1.442695, %v4151_v2 }
 0x8f0   :  { %8576 = vpow2.f32 %v4168_v20  ;;  %v4129_v20 = vpop.xlane.xlu1 %4128 }
 0x8f1   :  { %8578 = vpow2.f32 %v4170_v0 }
 0x8f2   :  { %4245 = vmatmul.f32.gmra.mxu2 %v4211_v23  ;;  %v4198_v23 = vld [vmem:[%s14508_s1 + $0x20] sm:$0xff] }
 0x8f3   :  { %v8571_v60 = vpop.eup %8570 }
 0x8f4   :  { %v11951_v8 = vpop.f32.mrf.mxu1  ;;  %3914 = vperm.xlu0 %8109, %v8571_v60   ;;  %v4131_v39 = vpop.xlane.xlu2 %4130  ;;  %v4152_v60 = vsub.f32 %v11819_v30, %v4127_v22 }
 0x8f5   :  { %14758 = vst [vmem:[#allocation27_spill] sm:$0xff] %v11951_v8  ;;  %v8573_v7 = vpop.eup %8572 }
 0x8f6   :  { %v4212_v47 = vmul.f32 %v8573_v7, %v4196_v55  ;;  %v8575_v48 = vpop.eup %8574  ;;  %v4174_v31 = vmul.f32 1.442695, %v4152_v60 }
 0x8f7   :  { %v8577_v53 = vpop.eup %8576 }
 0x8f8   :  { %v4213_v38 = vmul.f32 %v8577_v53, %v4197_v52  ;;  %v8579_v24 = vpop.eup %8578  ;;  %v4135_v0 = vpop.xlane.xlu1 %4134 }
 0x8f9   :  { %v4214_v57 = vmul.f32 %v8579_v24, %v4198_v23  ;;  %v4154_v24 = vsub.f32 %v11873_v44, %v4131_v39  ;;  %v2909_v23 = vld [vmem:[#allocation3] sm:$0xff]  ;;  %v14762_v44 = vld [vmem:[#allocation15_spill] sm:$0xff] }
 0x8fa   :  { %4248 = vmatmul.f32.gmra.mxu2 %v4212_v47  ;;  %v4153_v47 = vsub.f32 %v11838_v10, %v4129_v20 }
 0x8fc   :  { %v11958_v19 = vpop.f32.mrf.mxu1  ;;  %3463 = vperm.xlu0 %8109, %v8575_v48   ;;  %v11960_v14 = vpop.xlane.xlu2 %4136  ;;  %v4176_v30 = vmul.f32 1.442695, %v4153_v47 }
 0x8fd   :  { %14759 = vst [vmem:[#allocation10_spill] sm:$0xff] %v11958_v19 }
 0x900   :  { %v4141_v20 = vpop.xlane.xlu1 %4140 }
 0x902   :  { %4251 = vmatmul.f32.gmra.mxu2 %v4213_v38  ;;  %v4200_v38 = vld [vmem:[%s14508_s1 + $0x30] sm:$0xff] }
 0x904   :  { %v11966_v33 = vpop.f32.mrf.mxu1  ;;  %v11968_v49 = vpop.xlane.xlu2 %4142 }
 0x905   :  { %14760 = vst [vmem:[#allocation25_spill] sm:$0xff] %v11966_v33  ;;  %8580 = vrcp.f32 %v11966_v33 }
 0x906   :  { %8582 = vpow2.f32 %v4172_v54  ;;  %v14761_v54 = vld [vmem:[#allocation11_spill] sm:$0xff] }
 0x907   :  { %8584 = vpow2.f32 %v4174_v31 }
 0x908   :  { %8586 = vpow2.f32 %v4176_v30 }
 0x90a   :  { %4254 = vmatmul.f32.gmra.mxu2 %v4214_v57  ;;  %v4178_v57 = vmul.f32 1.442695, %v4154_v24 }
 0x90b   :  { %v8581_v17 = vpop.eup %8580 }
 0x90c   :  { %3929 = vperm.xlu0 %8109, %v8581_v17   ;;  %v3394_v7 = vpop.permute.xlu2 %3393  ;;  %v8583_v55 = vpop.eup %8582  ;;  %8588 = vpow2.f32 %v4178_v57 }
 0x90d   :  { %v4215_v48 = vmul.f32 %v8583_v55, %v4199_v51  ;;  %v8585_v2 = vpop.eup %8584  ;;  %v4133_v17 = vpop.xlane.xlu0 %4132  ;;  %v4201_v55 = vld [vmem:[%s14508_s1 + $0x38] sm:$0xff] }
 0x90e   :  { %v4216_v10 = vmul.f32 %v8585_v2, %v4200_v38  ;;  %v8587_v31 = vpop.eup %8586  ;;  %v4155_v51 = vsub.f32 %v11835_v37, %v4133_v17  ;;  %v4156_v37 = vsub.f32 %v11855_v62, %v4135_v0  ;;  %v4203_v17 = vld [vmem:[%s14508_s1 + $0x48] sm:$0xff] }
 0x90f   :  { %v4217_v47 = vmul.f32 %v8587_v31, %v4201_v55  ;;  %v4204_v55 = vld [vmem:[%s14508_s1 + $0x50] sm:$0xff] }
 0x912   :  { %4257 = vmatmul.f32.gmra.mxu2 %v4215_v48  ;;  %v8589_v2 = vpop.eup %8588 }
 0x914   :  { %v2928_v53 = vpop.permute.xlu2 %2927 }
 0x915   :  { %v3005_v52 = vmul.f32 %v2928_v53, %v11905_v21  ;;  %v3471_v21 = vmul.f32 %v3394_v7, %v11795_v27  ;;  %v4180_v53 = vmul.f32 1.442695, %v4155_v51  ;;  %v4202_v27 = vld [vmem:[%s14508_s1 + $0x40] sm:$0xff]  ;;  %v4139_v0 = vpop.xlane.xlu0 %4138 }
 0x916   :  { %v4218_v38 = vmul.f32 %v8589_v2, %v4202_v27  ;;  %v4158_v51 = vsub.f32 %v11852_v15, %v4139_v0  ;;  %v4206_v15 = vld [vmem:[%s14508_s1 + $0x60] sm:$0xff]  ;;  %v4160_v2 = vsub.f32 %v11890_v12, %v11968_v49  ;;  %v4208_v12 = vld [vmem:[%s14508_s1 + $0x70] sm:$0xff] }
 0x917   :  { %v3021_v22 = vmul.f32 %v3005_v52, %v14761_v54  ;;  %v3487_v39 = vmul.f32 %v3471_v21, %v14762_v44  ;;  %v3860_v52 = vpop.permute.xlu1 %3859  ;;  %8590 = vpow2.f32 %v4180_v53 }
 0x918   :  { %v3937_v7 = vmul.f32 %v3860_v52, %v11888_v45  ;;  %v4157_v45 = vsub.f32 %v11880_v6, %v11960_v14  ;;  %v4205_v6 = vld [vmem:[%s14508_s1 + $0x58] sm:$0xff]  ;;  %v4159_v14 = vsub.f32 %v11871_v18, %v4141_v20  ;;  %v4207_v18 = vld [vmem:[%s14508_s1 + $0x68] sm:$0xff] }
 0x919   :  { %v3037_v60 = vadd.f32 %v3021_v22, %v2909_v23  ;;  %v14763_v22 = vld [vmem:[#allocation16_spill] sm:$0xff]  ;;  %v4182_v23 = vmul.f32 1.442695, %v4156_v37 }
 0x91a   :  { %4260 = vmatmul.f32.gmra.mxu2 %v4216_v10  ;;  %v3953_v24 = vmul.f32 %v3937_v7, %v14763_v22  ;;  %v4184_v62 = vmul.f32 1.442695, %v4157_v45  ;;  %v4188_v53 = vmul.f32 1.442695, %v4159_v14  ;;  %v4190_v7 = vmul.f32 1.442695, %v4160_v2 }
 0x91b   :  { %3053 = vst.msk [vmem:[#allocation3] sm:$0xff] %vm373_vm2, %v3037_v60  ;;  %8592 = vpow2.f32 %v4182_v23 }
 0x91c   :  { %8594 = vpow2.f32 %v4184_v62 }
 0x91d   :  { %v8591_v57 = vpop.eup %8590  ;;  %v4145_v37 = vpop.xlane.xlu0 %4144 }
 0x91e   :  { %v4219_v21 = vmul.f32 %v8591_v57, %v4203_v17  ;;  %v4161_v20 = vsub.f32 %v11869_v43, %v4145_v37  ;;  %v12029_v43 = vpop.f32.mrf.mxu3 }
 0x920   :  { %v4192_v23 = vmul.f32 1.442695, %v4161_v20 }
 0x921   :  { %v8593_v31 = vpop.eup %8592 }
 0x922   :  { %v3375_v48 = vld [vmem:[#allocation3] sm:$0xff]  ;;  %4263 = vmatmul.f32.gmra.mxu2 %v4217_v47  ;;  %v4186_v47 = vmul.f32 1.442695, %v4158_v51 }
 0x923   :  { %v3503_v30 = vadd.f32 %v3487_v39, %v3375_v48  ;;  %v4220_v39 = vmul.f32 %v8593_v31, %v4204_v55  ;;  %v8595_v48 = vpop.eup %8594 }
 0x924   :  { %8596 = vpow2.f32 %v4186_v47 }
 0x925   :  { %3519 = vst.msk [vmem:[#allocation3] sm:$0xff] %vm373_vm2, %v3503_v30  ;;  %v4221_v30 = vmul.f32 %v8595_v48, %v4205_v6  ;;  %8598 = vpow2.f32 %v4188_v53 }
 0x926   :  { %8600 = vpow2.f32 %v4190_v7  ;;  %v12040_v31 = vpop.f32.mrf.mxu3 }
 0x927   :  { %8602 = vpow2.f32 %v4192_v23 }
 0x92a   :  { %4266 = vmatmul.f32.gmra.mxu2 %v4218_v38  ;;  %v8597_v52 = vpop.eup %8596 }
 0x92b   :  { %v4222_v27 = vmul.f32 %v8597_v52, %v4206_v15  ;;  %v8599_v38 = vpop.eup %8598 }
 0x92c   :  { %v3841_v60 = vld [vmem:[#allocation3] sm:$0xff] }
 0x92d   :  { %v3969_v10 = vadd.f32 %v3953_v24, %v3841_v60  ;;  %v4223_v24 = vmul.f32 %v8599_v38, %v4207_v18  ;;  %v8601_v60 = vpop.eup %8600 }
 0x92e   :  { %v4224_v49 = vmul.f32 %v8601_v60, %v4208_v12  ;;  %v12046_v48 = vpop.f32.mrf.mxu3 }
 0x92f   :  { %3985 = vst.msk [vmem:[#allocation3] sm:$0xff] %vm373_vm2, %v3969_v10  ;;  %v8603_v10 = vpop.eup %8602 }
 0x930   :  { %v4225_v57 = vmul.f32 %v8603_v10, %v11709_v36 }
 0x932   :  { %4269 = vmatmul.f32.gmra.mxu2 %v4219_v21 }
 0x936   :  { %v12052_v15 = vpop.f32.mrf.mxu3 }
 0x93a   :  { %4272 = vmatmul.f32.gmra.mxu2 %v4220_v39 }
 0x93e   :  { %v12062_v38 = vpop.f32.mrf.mxu3 }
 0x942   :  { %4275 = vmatmul.f32.gmra.mxu2 %v4221_v30 }
 0x946   :  { %v12068_v23 = vpop.f32.mrf.mxu3 }
 0x94a   :  { %4278 = vmatmul.f32.gmra.mxu2 %v4222_v27 }
 0x952   :  { %4281 = vmatmul.f32.gmra.mxu2 %v4223_v24 }
 0x95a   :  { %4284 = vmatmul.f32.gmra.mxu2 %v4224_v49 }
 0x962   :  { %4287 = vmatmul.f32.gmra.mxu2 %v4225_v57  ;;  %v12074_v57 = vpop.f32.mrf.mxu3 }
 0x96d   :  { %v12026_v17 = vpop.f32.mrf.mxu2 }
 0x96e   :  { %8604 = vrcp.f32 %v12026_v17 }
 0x96f   :  { %8606 = vrcp.f32 %v12029_v43 }
 0x974   :  { %v8605_v45 = vpop.eup %8604 }
 0x975   :  { %4325 = vperm.xlu1 %8108, %v8605_v45   ;;  %v12032_v21 = vpop.f32.mrf.mxu2  ;;  %v8607_v62 = vpop.eup %8606 }
 0x976   :  { %8608 = vrcp.f32 %v12032_v21 }
 0x977   :  { %8610 = vrcp.f32 %v11812_v42 }
 0x978   :  { %8612 = vrcp.f32 %v11901_v63 }
 0x97c   :  { %v8609_v0 = vpop.eup %8608 }
 0x97d   :  { %2932 = vperm.xlu1 %8108, %v8607_v62   ;;  %4330 = vperm.xlu2 %8107, %v8609_v0   ;;  %v12037_v36 = vpop.f32.mrf.mxu2  ;;  %v8611_v55 = vpop.eup %8610 }
 0x97e   :  { %8614 = vrcp.f32 %v12037_v36  ;;  %v8613_v51 = vpop.eup %8612 }
 0x97f   :  { %8616 = vrcp.f32 %v12040_v31 }
 0x980   :  { %8618 = vrcp.f32 %v11907_v16 }
 0x981   :  { %8620 = vrcp.f32 %v12046_v48 }
 0x982   :  { %8622 = vrcp.f32 %v11829_v28 }
 0x983   :  { %8624 = vrcp.f32 %v11849_v34 }
 0x984   :  { %v8615_v39 = vpop.eup %8614  ;;  %8626 = vrcp.f32 %v11910_v13 }
 0x985   :  { %3403 = vperm.xlu1 %8108, %v8611_v55   ;;  %3869 = vperm.xlu2 %8107, %v8613_v51   ;;  %v12043_v47 = vpop.f32.mrf.mxu2  ;;  %v8617_v6 = vpop.eup %8616  ;;  %8628 = vrcp.f32 %v12052_v15 }
 0x986   :  { %4335 = vperm.xlu0 %8109, %v8615_v39   ;;  %v8619_v14 = vpop.eup %8618  ;;  %8630 = vrcp.f32 %v11912_v5  ;;  %v12082_v39 = vpop.f32.mrf.mxu3 }
 0x987   :  { %v8621_v53 = vpop.eup %8620  ;;  %8632 = vrcp.f32 %v12062_v38 }
 0x988   :  { %v8623_v52 = vpop.eup %8622  ;;  %8634 = vrcp.f32 %v11867_v41 }
 0x989   :  { %v8625_v27 = vpop.eup %8624  ;;  %8636 = vrcp.f32 %v11882_v58 }
 0x98a   :  { %v8627_v7 = vpop.eup %8626  ;;  %8638 = vrcp.f32 %v11916_v61 }
 0x98b   :  { %v8629_v18 = vpop.eup %8628  ;;  %8640 = vrcp.f32 %v12068_v23 }
 0x98c   :  { %v8631_v20 = vpop.eup %8630  ;;  %8642 = vrcp.f32 %v11920_v4 }
 0x98d   :  { %3874 = vperm.xlu1 %8108, %v8619_v14   ;;  %2937 = vperm.xlu2 %8107, %v8617_v6   ;;  %v12049_v30 = vpop.f32.mrf.mxu2  ;;  %v8633_v60 = vpop.eup %8632 }
 0x98e   :  { %v8635_v12 = vpop.eup %8634  ;;  %v12087_v14 = vpop.permute.xlu0 %3398 }
 0x98f   :  { %v8637_v10 = vpop.eup %8636 }
 0x990   :  { %v8639_v45 = vpop.eup %8638 }
 0x991   :  { %v8641_v0 = vpop.eup %8640 }
 0x992   :  { %v8643_v55 = vpop.eup %8642 }
 0x995   :  { %2942 = vperm.xlu1 %8108, %v8621_v53   ;;  %3408 = vperm.xlu2 %8107, %v8623_v52   ;;  %v12055_v2 = vpop.f32.mrf.mxu2  ;;  %v4578_v53 = vld [vmem:[#allocation5 + $0x38] sm:$0xff] }
 0x996   :  { %4637 = vmatpush.msra.mxu3 %v4578_v53 }
 0x99d   :  { %3413 = vperm.xlu1 %8108, %v8625_v27   ;;  %3879 = vperm.xlu2 %8107, %v8627_v7   ;;  %v12059_v37 = vpop.f32.mrf.mxu2 }
 0x9a5   :  { %3884 = vperm.xlu1 %8108, %v8631_v20   ;;  %2947 = vperm.xlu2 %8107, %v8629_v18   ;;  %v12065_v24 = vpop.f32.mrf.mxu2  ;;  %v12093_v18 = vpop.f32.mrf.mxu3 }
 0x9a6   :  { %14765 = vst [vmem:[#allocation21_spill] sm:$0xff] %v12093_v18  ;;  %v12095_v20 = vpop.permute.xlu0 %3864 }
 0x9ad   :  { %2952 = vperm.xlu1 %8108, %v8633_v60   ;;  %3418 = vperm.xlu2 %8107, %v8635_v12   ;;  %v12071_v49 = vpop.f32.mrf.mxu2 }
 0x9b5   :  { %3423 = vperm.xlu1 %8108, %v8637_v10   ;;  %3889 = vperm.xlu2 %8107, %v8639_v45   ;;  %v12078_v62 = vpop.f32.mrf.mxu2  ;;  %v12102_v45 = vpop.f32.mrf.mxu3 }
 0x9b6   :  { %14764 = vst [vmem:[#allocation12_spill] sm:$0xff] %v12078_v62  ;;  %8644 = vrcp.f32 %v12078_v62 }
 0x9b7   :  { %8646 = vrcp.f32 %v12074_v57  ;;  %14767 = vst [vmem:[#allocation23_spill] sm:$0xff] %v12102_v45 }
 0x9b8   :  { %8648 = vrcp.f32 %v11893_v11 }
 0x9b9   :  { %8650 = vrcp.f32 %v12082_v39 }
 0x9ba   :  { %8652 = vrcp.f32 %v11914_v3 }
 0x9bb   :  { %8654 = vrcp.f32 %v12093_v18 }
 0x9bc   :  { %v8645_v51 = vpop.eup %8644  ;;  %8656 = vrcp.f32 %v11927_v50 }
 0x9bd   :  { %3894 = vperm.xlu1 %8108, %v8643_v55   ;;  %2957 = vperm.xlu2 %8107, %v8641_v0   ;;  %v12084_v6 = vpop.f32.mrf.mxu2  ;;  %v8647_v52 = vpop.eup %8646 }
 0x9be   :  { %4370 = vperm.xlu0 %8109, %v8645_v51   ;;  %v8649_v27 = vpop.eup %8648  ;;  %v12104_v55 = vpop.permute.xlu0 %3433 }
 0x9bf   :  { %v8651_v60 = vpop.eup %8650  ;;  %v12114_v33 = vpop.f32.mrf.mxu3 }
 0x9c0   :  { %v8653_v12 = vpop.eup %8652  ;;  %14768 = vst [vmem:[#allocation11_spill] sm:$0xff] %v12114_v33 }
 0x9c1   :  { %v8655_v0 = vpop.eup %8654 }
 0x9c2   :  { %v8657_v51 = vpop.eup %8656 }
 0x9c5   :  { %2962 = vperm.xlu1 %8108, %v8647_v52   ;;  %3428 = vperm.xlu2 %8107, %v8649_v27   ;;  %v12090_v7 = vpop.f32.mrf.mxu2 }
 0x9cd   :  { %3438 = vperm.xlu1 %8108, %v8653_v12   ;;  %2967 = vperm.xlu2 %8107, %v8651_v60   ;;  %v12099_v10 = vpop.f32.mrf.mxu2  ;;  %v12112_v60 = vpop.permute.xlu0 %3899 }
 0x9ce   :  { %14766 = vst [vmem:[#allocation18_spill] sm:$0xff] %v12099_v10  ;;  %8658 = vrcp.f32 %v12099_v10 }
 0x9cf   :  { %8660 = vrcp.f32 %v11918_v25 }
 0x9d0   :  { %8662 = vrcp.f32 %v11934_v59 }
 0x9d1   :  { %8664 = vrcp.f32 %v12102_v45 }
 0x9d2   :  { %8666 = vrcp.f32 %v12114_v33 }
 0x9d3   :  { %8668 = vrcp.f32 %v11931_v29  ;;  %v14771_v29 = vld [vmem:[#allocation26_spill] sm:$0xff] }
 0x9d4   :  { %v8659_v53 = vpop.eup %8658  ;;  %8670 = vrcp.f32 %v11951_v8 }
 0x9d5   :  { %2972 = vperm.xlu1 %8108, %v8655_v0   ;;  %3904 = vperm.xlu2 %8107, %v8657_v51   ;;  %v12107_v52 = vpop.f32.mrf.mxu2  ;;  %v8661_v12 = vpop.eup %8660 }
 0x9d6   :  { %4385 = vperm.xlu0 %8109, %v8659_v53   ;;  %v8663_v10 = vpop.eup %8662  ;;  %v12123_v56 = vpop.permute.xlu0 %3448 }
 0x9d7   :  { %v12110_v27 = vpop.permute.xlu2 %4330  ;;  %v8665_v51 = vpop.eup %8664  ;;  %14769 = vst [vmem:[#allocation15_spill] sm:$0xff] %v12123_v56 }
 0x9d8   :  { %v8667_v53 = vpop.eup %8666 }
 0x9d9   :  { %v8669_v59 = vpop.eup %8668 }
 0x9da   :  { %v8671_v8 = vpop.eup %8670 }
 0x9dd   :  { %3909 = vperm.xlu1 %8108, %v8663_v10   ;;  %3443 = vperm.xlu2 %8107, %v8661_v12   ;;  %v12117_v1 = vpop.f32.mrf.mxu2  ;;  %v12128_v10 = vpop.f32.mrf.mxu3 }
 0x9de   :  { %v12135_v18 = vpop.permute.xlu0 %3914 }
 0x9df   :  { %v12120_v0 = vpop.permute.xlu2 %3869 }
 0x9e5   :  { %2982 = vperm.xlu1 %8108, %v8667_v53   ;;  %2977 = vperm.xlu2 %8107, %v8665_v51   ;;  %v12126_v62 = vpop.f32.mrf.mxu2  ;;  %v4307_v53 = vld [vmem:[#allocation3] sm:$0xff]  ;;  %v2911_v51 = vld [vmem:[#allocation3 + $0x10] sm:$0xff] }
 0x9e6   :  { %14770 = vst [vmem:[#allocation16_spill] sm:$0xff] %v12126_v62  ;;  %8672 = vrcp.f32 %v12126_v62  ;;  %v4570_v62 = vld [vmem:[%s14515_s8 + $0x38] sm:$0xff] }
 0x9e7   :  { %v4326_v12 = vpop.permute.xlu1 %4325  ;;  %v2938_v9 = vpop.permute.xlu2 %2937  ;;  %8674 = vrcp.f32 %v12128_v10  ;;  %4820 = vmatpush.msrb.mxu0 %v4570_v62 }
 0x9e8   :  { %v4403_v50 = vmul.f32 %v4326_v12, %v12026_v17  ;;  %v3007_v33 = vmul.f32 %v2938_v9, %v12040_v31  ;;  %8676 = vrcp.f32 %v11958_v19  ;;  %v4577_v9 = vld [vmem:[#allocation5 + $0x30] sm:$0xff]  ;;  %v4575_v17 = vld [vmem:[#allocation5 + $0x20] sm:$0xff] }
 0x9e9   :  { %4638 = vmatpush.msra.mxu3 %v4577_v9  ;;  %v4567_v31 = vld [vmem:[%s14515_s8 + $0x20] sm:$0xff]  ;;  %v4573_v9 = vld [vmem:[#allocation5 + $0x10] sm:$0xff] }
 0x9ea   :  { %v4419_v3 = vmul.f32 %v4403_v50, %v14771_v29  ;;  %v3023_v56 = vmul.f32 %v3007_v33, %v14761_v54  ;;  %v12149_v33 = vpop.f32.mrf.mxu3 }
 0x9eb   :  { %8678 = vrcp.f32 %v12149_v33 }
 0x9ec   :  { %v8673_v4 = vpop.eup %8672  ;;  %v4435_v25 = vadd.f32 %v4419_v3, %v4307_v53  ;;  %v3039_v45 = vadd.f32 %v3023_v56, %v2911_v51  ;;  %v4569_v3 = vld [vmem:[%s14515_s8 + $0x30] sm:$0xff]  ;;  %v4574_v53 = vld [vmem:[#allocation5 + $0x18] sm:$0xff]  ;;  %8680 = vrcp.f32 %v11939_v46 }
 0x9ed   :  { %3453 = vperm.xlu1 %8108, %v8669_v59   ;;  %3919 = vperm.xlu2 %8107, %v8671_v8   ;;  %v4576_v8 = vld [vmem:[#allocation5 + $0x28] sm:$0xff]  ;;  %v8675_v62 = vpop.eup %8674  ;;  %v4566_v51 = vld [vmem:[%s14515_s8 + $0x18] sm:$0xff] }
 0x9ee   :  { %4451 = vst.msk [vmem:[#allocation3] sm:$0xff] %vm373_vm2, %v4435_v25  ;;  %4400 = vperm.xlu0 %8109, %v8673_v4   ;;  %4821 = vmatpush.msrb.mxu0 %v4569_v3  ;;  %v4568_v25 = vld [vmem:[%s14515_s8 + $0x28] sm:$0xff]  ;;  %v8677_v12 = vpop.eup %8676  ;;  %v4565_v3 = vld [vmem:[%s14515_s8 + $0x10] sm:$0xff] }
 0x9ef   :  { %3055 = vst.msk [vmem:[#allocation3 + $0x10] sm:$0xff] %vm373_vm2, %v3039_v45  ;;  %v2933_v50 = vpop.permute.xlu1 %2932  ;;  %v12147_v56 = vpop.permute.xlu2 %3408  ;;  %4639 = vmatpush.msra.mxu3 %v4576_v8  ;;  %v2910_v45 = vld [vmem:[#allocation3 + $0x8] sm:$0xff] }
 0x9f0   :  { %v3006_v59 = vmul.f32 %v2933_v50, %v12029_v43  ;;  %4822 = vmatpush.msrb.mxu0 %v4568_v25  ;;  %v12167_v50 = vpop.permute.xlu0 %3463  ;;  %v4572_v25 = vld [vmem:[#allocation5 + $0x8] sm:$0xff] }
 0x9f1   :  { %4640 = vmatpush.msra.mxu3 %v4575_v17  ;;  %v8679_v19 = vpop.eup %8678 }
 0x9f2   :  { %v3022_v4 = vmul.f32 %v3006_v59, %v14761_v54  ;;  %4823 = vmatpush.msrb.mxu0 %v4567_v31  ;;  %v3472_v31 = vmul.f32 %v12087_v14, %v11804_v32  ;;  %v8681_v32 = vpop.eup %8680 }
 0x9f3   :  { %4641 = vmatpush.msra.mxu3 %v4574_v53  ;;  %v12181_v53 = vpop.f32.mrf.mxu3 }
 0x9f4   :  { %v3038_v43 = vadd.f32 %v3022_v4, %v2910_v45  ;;  %4824 = vmatpush.msrb.mxu0 %v4566_v51  ;;  %v4564_v4 = vld [vmem:[%s14515_s8 + $0x8] sm:$0xff] }
 0x9f5   :  { %3924 = vperm.xlu1 %8108, %v8677_v12   ;;  %2987 = vperm.xlu2 %8107, %v8675_v62   ;;  %v4467_v17 = vld [vmem:[#allocation3] sm:$0xff] }
 0x9f6   :  { %3054 = vst.msk [vmem:[#allocation3 + $0x8] sm:$0xff] %vm373_vm2, %v3038_v43  ;;  %4642 = vmatpush.msra.mxu3 %v4573_v9  ;;  %4825 = vmatpush.msrb.mxu0 %v4565_v3  ;;  %v4499_v45 = vmul.f32 1.442695, %v4467_v17  ;;  %v4571_v12 = vld [vmem:[#allocation5] sm:$0xff]  ;;  %v3377_v46 = vld [vmem:[#allocation3 + $0x10] sm:$0xff]  ;;  %vm4483_vm9 = vcmp.gt.f32.partialorder %v4467_v17, 0.0 }
 0x9f7   :  { %v3404_v59 = vpop.permute.xlu1 %3403  ;;  %v12170_v8 = vpop.permute.xlu2 %3879  ;;  %v4563_v43 = vld [vmem:[%s14515_s8] sm:$0xff] }
 0x9f8   :  { %v3473_v62 = vmul.f32 %v3404_v59, %v11812_v42  ;;  %4643 = vmatpush.msra.mxu3 %v4572_v25  ;;  %4826 = vmatpush.msrb.mxu0 %v4564_v4  ;;  %8682 = vpow2.f32 %v4499_v45  ;;  %v3488_v42 = vmul.f32 %v3472_v31, %v14762_v44  ;;  %v12186_v3 = vpop.permute.xlu0 %3929  ;;  %v12196_v45 = vpop.f32.mrf.mxu0 }
 0x9f9   :  { %8684 = vrcp.f32 %v12181_v53 }
 0x9fa   :  { %v3489_v51 = vmul.f32 %v3473_v62, %v14762_v44  ;;  %4644 = vmatpush.msra.mxu3 %v4571_v12  ;;  %4827 = vmatpush.msrb.mxu0 %v4563_v43  ;;  %8686 = vrcp.f32 %v12043_v47  ;;  %v3938_v12 = vmul.f32 %v12095_v20, %v11896_v26 }
 0x9fb   :  { %8688 = vrcp.f32 %v12196_v45 }
 0x9fc   :  { %v3505_v14 = vadd.f32 %v3489_v51, %v3377_v46  ;;  %v3939_v46 = vmul.f32 %v12120_v0, %v11901_v63  ;;  %v3954_v26 = vmul.f32 %v3938_v12, %v14763_v22 }
 0x9fd   :  { %v3376_v9 = vld [vmem:[#allocation3 + $0x8] sm:$0xff]  ;;  %2992 = vperm.xlu1 %8108, %v8679_v19   ;;  %3458 = vperm.xlu2 %8107, %v8681_v32   ;;  %v12201_v32 = vpop.f32.mrf.mxu1 }
 0x9fe   :  { %v3504_v59 = vadd.f32 %v3488_v42, %v3376_v9  ;;  %3521 = vst.msk [vmem:[#allocation3 + $0x10] sm:$0xff] %vm373_vm2, %v3505_v14  ;;  %v8683_v62 = vpop.eup %8682  ;;  %v2913_v42 = vld [vmem:[#allocation3 + $0x20] sm:$0xff]  ;;  %v3955_v63 = vmul.f32 %v3939_v46, %v14763_v22  ;;  %8690 = vrcp.f32 %v12201_v32 }
 0x9ff   :  { %v12190_v25 = vpop.permute.xlu1 %3874  ;;  %v2948_v4 = vpop.permute.xlu2 %2947  ;;  %v7911_v19 = vadd.f32 -1.0, %v8683_v62  ;;  %8692 = vrcp.f32 %v12049_v30 }
 0xa00   :  { %3520 = vst.msk [vmem:[#allocation3 + $0x8] sm:$0xff] %vm373_vm2, %v3504_v59  ;;  %v3009_v31 = vmul.f32 %v2948_v4, %v12052_v15  ;;  %v8685_v51 = vpop.eup %8684  ;;  %v4336_v20 = vpop.permute.xlu0 %4335  ;;  %8694 = vrcp.f32 %v12055_v2 }
 0xa01   :  { %v4547_v14 = vsel %vm4483_vm9, %v4467_v17, %v7911_v19  ;;  %v8687_v9 = vpop.eup %8686  ;;  %v4405_v19 = vmul.f32 %v4336_v20, %v12037_v36 }
 0xa02   :  { %v3025_v43 = vmul.f32 %v3009_v31, %v14761_v54  ;;  %7927 = vmatmul.msk.f32.vlgmr.msra.gmra.mxu3 %vm373_vm2, %v4547_v14  ;;  %7943 = vmatmul.msk.f32.vlgmr.msrb.gmra.mxu0 %vm373_vm2, %v4547_v14  ;;  %v8689_v12 = vpop.eup %8688  ;;  %v4404_v14 = vmul.f32 %v12110_v27, %v12032_v21  ;;  %v3474_v21 = vmul.f32 %v12147_v56, %v11829_v28 }
 0xa04   :  { %v3041_v0 = vadd.f32 %v3025_v43, %v2913_v42  ;;  %v8691_v42 = vpop.eup %8690 }
 0xa05   :  { %v3843_v15 = vld [vmem:[#allocation3 + $0x10] sm:$0xff]  ;;  %2997 = vperm.xlu2 %8107, %v8685_v51   ;;  %4340 = vperm.xlu1 %8108, %v8687_v9   ;;  %v2912_v51 = vld [vmem:[#allocation3 + $0x18] sm:$0xff] }
 0xa06   :  { %v3971_v59 = vadd.f32 %v3955_v63, %v3843_v15  ;;  %3057 = vst.msk [vmem:[#allocation3 + $0x20] sm:$0xff] %vm373_vm2, %v3041_v0  ;;  %v4420_v15 = vmul.f32 %v4404_v14, %v14771_v29 }
 0xa07   :  { %v3842_v17 = vld [vmem:[#allocation3 + $0x8] sm:$0xff]  ;;  %v2943_v4 = vpop.permute.xlu1 %2942  ;;  %v12210_v62 = vpop.permute.xlu2 %3418 }
 0xa08   :  { %v3970_v46 = vadd.f32 %v3954_v26, %v3842_v17  ;;  %3987 = vst.msk [vmem:[#allocation3 + $0x10] sm:$0xff] %vm373_vm2, %v3971_v59  ;;  %v3008_v31 = vmul.f32 %v2943_v4, %v12046_v48  ;;  %v4421_v48 = vmul.f32 %v4405_v19, %v14771_v29  ;;  %v12229_v59 = vpop.f32.mrf.mxu3 }
 0xa09   :  { %8696 = vrcp.f32 %v12229_v59 }
 0xa0a   :  { %3986 = vst.msk [vmem:[#allocation3 + $0x8] sm:$0xff] %vm373_vm2, %v3970_v46  ;;  %v3024_v43 = vmul.f32 %v3008_v31, %v14761_v54  ;;  %v8693_v46 = vpop.eup %8692  ;;  %8698 = vrcp.f32 %v12059_v37 }
 0xa0b   :  { %v8695_v19 = vpop.eup %8694  ;;  %8700 = vrcp.f32 %v12065_v24 }
 0xa0c   :  { %v3040_v9 = vadd.f32 %v3024_v43, %v2912_v51  ;;  %v3490_v43 = vmul.f32 %v3474_v21, %v14762_v44  ;;  %8702 = vrcp.f32 %v12071_v49 }
 0xa0d   :  { %3934 = vperm.xlu2 %8107, %v8691_v42   ;;  %3468 = vperm.xlu1 %8108, %v8689_v12   ;;  %v3379_v31 = vld [vmem:[#allocation3 + $0x20] sm:$0xff]  ;;  %v3941_v42 = vmul.f32 %v12170_v8, %v11910_v13 }
 0xa0e   :  { %3056 = vst.msk [vmem:[#allocation3 + $0x18] sm:$0xff] %vm373_vm2, %v3040_v9  ;;  %v3940_v9 = vmul.f32 %v12190_v25, %v11907_v16 }
 0xa0f   :  { %v4309_v36 = vld [vmem:[#allocation3 + $0x10] sm:$0xff]  ;;  %v3414_v63 = vpop.permute.xlu1 %3413  ;;  %v12223_v0 = vpop.permute.xlu2 %3889 }
 0xa10   :  { %v4437_v27 = vadd.f32 %v4421_v48, %v4309_v36  ;;  %v3475_v26 = vmul.f32 %v3414_v63, %v11849_v34  ;;  %v8697_v36 = vpop.eup %8696  ;;  %v2915_v63 = vld [vmem:[#allocation3 + $0x30] sm:$0xff]  ;;  %v3956_v16 = vmul.f32 %v3940_v9, %v14763_v22 }
 0xa11   :  { %v4308_v20 = vld [vmem:[#allocation3 + $0x8] sm:$0xff] }
 0xa12   :  { %v4436_v17 = vadd.f32 %v4420_v15, %v4308_v20  ;;  %4453 = vst.msk [vmem:[#allocation3 + $0x10] sm:$0xff] %vm373_vm2, %v4437_v27  ;;  %v3491_v4 = vmul.f32 %v3475_v26, %v14762_v44  ;;  %v8699_v27 = vpop.eup %8698  ;;  %v3957_v26 = vmul.f32 %v3941_v42, %v14763_v22 }
 0xa14   :  { %4452 = vst.msk [vmem:[#allocation3 + $0x8] sm:$0xff] %vm373_vm2, %v4436_v17  ;;  %v3507_v12 = vadd.f32 %v3491_v4, %v3379_v31 }
 0xa15   :  { %v3378_v28 = vld [vmem:[#allocation3 + $0x18] sm:$0xff]  ;;  %4345 = vperm.xlu2 %8107, %v8693_v46   ;;  %4350 = vperm.xlu1 %8108, %v8695_v19  }
 0xa16   :  { %v3506_v34 = vadd.f32 %v3490_v43, %v3378_v28  ;;  %3523 = vst.msk [vmem:[#allocation3 + $0x20] sm:$0xff] %vm373_vm2, %v3507_v12  ;;  %v8701_v43 = vpop.eup %8700 }
 0xa17   :  { %v12238_v56 = vpop.permute.xlu1 %3884  ;;  %v2958_v51 = vpop.permute.xlu2 %2957 }
 0xa18   :  { %3522 = vst.msk [vmem:[#allocation3 + $0x18] sm:$0xff] %vm373_vm2, %v3506_v34  ;;  %v3011_v14 = vmul.f32 %v2958_v51, %v12068_v23  ;;  %v8703_v28 = vpop.eup %8702  ;;  %v2914_v34 = vld [vmem:[#allocation3 + $0x28] sm:$0xff] }
 0xa19   :  { %v12247_v21 = vld [vmem:[#allocation3 + $0x10] sm:$0xff] }
 0xa1a   :  { %v3027_v48 = vmul.f32 %v3011_v14, %v14761_v54  ;;  %v4503_v25 = vmul.f32 1.442695, %v12247_v21  ;;  %vm4485_vm11 = vcmp.gt.f32.partialorder %v12247_v21, 0.0 }
 0xa1b   :  { %v4468_v15 = vld [vmem:[#allocation3 + $0x8] sm:$0xff] }
 0xa1c   :  { %v3043_v13 = vadd.f32 %v3027_v48, %v2915_v63  ;;  %v4501_v8 = vmul.f32 1.442695, %v4468_v15  ;;  %vm4484_vm10 = vcmp.gt.f32.partialorder %v4468_v15, 0.0  ;;  %v3476_v63 = vmul.f32 %v12210_v62, %v11867_v41 }
 0xa1d   :  { %3002 = vperm.xlu1 %8108, %v8697_v36   ;;  %4355 = vperm.xlu2 %8107, %v8699_v27   ;;  %v3845_v23 = vld [vmem:[#allocation3 + $0x20] sm:$0xff] }
 0xa1e   :  { %3059 = vst.msk [vmem:[#allocation3 + $0x30] sm:$0xff] %vm373_vm2, %v3043_v13  ;;  %8704 = vpow2.f32 %v4501_v8  ;;  %v3973_v20 = vadd.f32 %v3957_v26, %v3845_v23 }
 0xa1f   :  { %v2953_v17 = vpop.permute.xlu1 %2952  ;;  %v12255_v4 = vpop.permute.xlu2 %3428  ;;  %v3844_v46 = vld [vmem:[#allocation3 + $0x18] sm:$0xff]  ;;  %8706 = vpow2.f32 %v4503_v25  ;;  %v2917_v25 = vld [vmem:[#allocation3 + $0x40] sm:$0xff] }
 0xa20   :  { %v3010_v31 = vmul.f32 %v2953_v17, %v12062_v38  ;;  %3989 = vst.msk [vmem:[#allocation3 + $0x20] sm:$0xff] %vm373_vm2, %v3973_v20  ;;  %v3972_v19 = vadd.f32 %v3956_v16, %v3844_v46  ;;  %8708 = vrcp.f32 %v12084_v6  ;;  %v3492_v17 = vmul.f32 %v3476_v63, %v14762_v44 }
 0xa21   :  { %8710 = vrcp.f32 %v12090_v7  ;;  %v3945_v63 = vmul.f32 %v12112_v60, %v11924_v35 }
 0xa22   :  { %v3026_v12 = vmul.f32 %v3010_v31, %v14761_v54  ;;  %3988 = vst.msk [vmem:[#allocation3 + $0x18] sm:$0xff] %vm373_vm2, %v3972_v19  ;;  %8712 = vrcp.f32 %v12107_v52 }
 0xa23   :  { %8714 = vrcp.f32 %v12117_v1 }
 0xa24   :  { %v8705_v51 = vpop.eup %8704  ;;  %v3042_v42 = vadd.f32 %v3026_v12, %v2914_v34  ;;  %v3479_v12 = vmul.f32 %v12104_v55, %v11899_v40 }
 0xa25   :  { %4360 = vperm.xlu1 %8108, %v8701_v43   ;;  %4365 = vperm.xlu2 %8107, %v8703_v28   ;;  %v7912_v14 = vadd.f32 -1.0, %v8705_v51  ;;  %v8707_v36 = vpop.eup %8706  ;;  %v3381_v16 = vld [vmem:[#allocation3 + $0x30] sm:$0xff]  ;;  %v3943_v43 = vmul.f32 %v12223_v0, %v11916_v61  ;;  %v3942_v28 = vmul.f32 %v12238_v56, %v11912_v5 }
 0xa26   :  { %3058 = vst.msk [vmem:[#allocation3 + $0x28] sm:$0xff] %vm373_vm2, %v3042_v42  ;;  %v8709_v23 = vpop.eup %8708 }
 0xa27   :  { %v3424_v38 = vpop.permute.xlu1 %3423  ;;  %v2968_v9 = vpop.permute.xlu2 %2967  ;;  %v4548_v48 = vsel %vm4484_vm10, %v4468_v15, %v7912_v14  ;;  %v7913_v15 = vadd.f32 -1.0, %v8707_v36  ;;  %v3959_v42 = vmul.f32 %v3943_v43, %v14763_v22  ;;  %v3958_v0 = vmul.f32 %v3942_v28, %v14763_v22  ;;  %v14774_v43 = vld [vmem:[#allocation21_spill] sm:$0xff]  ;;  %v14775_v28 = vld [vmem:[#allocation14_spill] sm:$0xff] }
 0xa28   :  { %v3477_v27 = vmul.f32 %v3424_v38, %v11882_v58  ;;  %v3013_v26 = vmul.f32 %v2968_v9, %v12082_v39  ;;  %7928 = vmatmul.msk.f32.gmra.mxu3 %vm373_vm2, %v4548_v48  ;;  %7944 = vmatmul.msk.f32.gmra.mxu0 %vm373_vm2, %v4548_v48  ;;  %v8711_v20 = vpop.eup %8710 }
 0xa29   :  { %v4549_v19 = vsel %vm4485_vm11, %v12247_v21, %v7913_v15  ;;  %v8713_v34 = vpop.eup %8712  ;;  %v3495_v21 = vmul.f32 %v3479_v12, %v14762_v44 }
 0xa2a   :  { %v3493_v13 = vmul.f32 %v3477_v27, %v14762_v44  ;;  %v3029_v8 = vmul.f32 %v3013_v26, %v14761_v54  ;;  %v8715_v51 = vpop.eup %8714  ;;  %v2916_v27 = vld [vmem:[#allocation3 + $0x38] sm:$0xff] }
 0xa2c   :  { %v3509_v41 = vadd.f32 %v3493_v13, %v3381_v16  ;;  %v3045_v62 = vadd.f32 %v3029_v8, %v2917_v25  ;;  %v3961_v13 = vmul.f32 %v3945_v63, %v14763_v22  ;;  %v14772_v16 = vld [vmem:[#allocation23_spill] sm:$0xff] }
 0xa2d   :  { %v3380_v58 = vld [vmem:[#allocation3 + $0x28] sm:$0xff]  ;;  %4375 = vperm.xlu1 %8108, %v8709_v23   ;;  %4380 = vperm.xlu2 %8107, %v8711_v20   ;;  %v3478_v23 = vmul.f32 %v12255_v4, %v11893_v11  ;;  %v14773_v11 = vld [vmem:[#allocation20_spill] sm:$0xff] }
 0xa2e   :  { %v3508_v39 = vadd.f32 %v3492_v17, %v3380_v58  ;;  %3525 = vst.msk [vmem:[#allocation3 + $0x30] sm:$0xff] %vm373_vm2, %v3509_v41  ;;  %v2919_v41 = vld [vmem:[#allocation3 + $0x50] sm:$0xff] }
 0xa2f   :  { %3061 = vst.msk [vmem:[#allocation3 + $0x40] sm:$0xff] %vm373_vm2, %v3045_v62  ;;  %v3895_v46 = vpop.permute.xlu1 %3894  ;;  %v12278_v31 = vpop.permute.xlu2 %3904  ;;  %v3494_v35 = vmul.f32 %v3478_v23, %v14762_v44 }
 0xa30   :  { %3524 = vst.msk [vmem:[#allocation3 + $0x28] sm:$0xff] %vm373_vm2, %v3508_v39  ;;  %7929 = vmatmul.msk.f32.gmra.mxu3 %vm373_vm2, %v4549_v19  ;;  %7945 = vmatmul.msk.f32.gmra.mxu0 %vm373_vm2, %v4549_v19 }
 0xa35   :  { %4390 = vperm.xlu1 %8108, %v8713_v34   ;;  %4395 = vperm.xlu2 %8107, %v8715_v51   ;;  %v3847_v61 = vld [vmem:[#allocation3 + $0x30] sm:$0xff]  ;;  %v3944_v34 = vmul.f32 %v3895_v46, %v14775_v28  ;;  %v14780_v28 = vld [vmem:[#allocation13_spill] sm:$0xff] }
 0xa36   :  { %v3383_v14 = vld [vmem:[#allocation3 + $0x40] sm:$0xff]  ;;  %v3975_v38 = vadd.f32 %v3959_v42, %v3847_v61  ;;  %v2918_v42 = vld [vmem:[#allocation3 + $0x48] sm:$0xff] }
 0xa37   :  { %v3511_v9 = vadd.f32 %v3495_v21, %v3383_v14  ;;  %v2963_v48 = vpop.permute.xlu1 %2962  ;;  %v3444_v36 = vpop.permute.xlu2 %3443  ;;  %v3846_v40 = vld [vmem:[#allocation3 + $0x28] sm:$0xff]  ;;  %v3960_v14 = vmul.f32 %v3944_v34, %v14763_v22  ;;  %v14781_v34 = vld [vmem:[#allocation15_spill] sm:$0xff] }
 0xa38   :  { %v3012_v55 = vmul.f32 %v2963_v48, %v12074_v57  ;;  %3991 = vst.msk [vmem:[#allocation3 + $0x30] sm:$0xff] %vm373_vm2, %v3975_v38  ;;  %v3974_v5 = vadd.f32 %v3958_v0, %v3846_v40  ;;  %v3481_v4 = vmul.f32 %v3444_v36, %v14773_v11  ;;  %v14776_v36 = vld [vmem:[#allocation28_spill] sm:$0xff] }
 0xa39   :  { %3527 = vst.msk [vmem:[#allocation3 + $0x40] sm:$0xff] %vm373_vm2, %v3511_v9 }
 0xa3a   :  { %v3028_v56 = vmul.f32 %v3012_v55, %v14761_v54  ;;  %3990 = vst.msk [vmem:[#allocation3 + $0x28] sm:$0xff] %vm373_vm2, %v3974_v5  ;;  %v3497_v21 = vmul.f32 %v3481_v4, %v14762_v44 }
 0xa3c   :  { %v3044_v26 = vadd.f32 %v3028_v56, %v2916_v27  ;;  %v14777_v56 = vld [vmem:[#allocation29_spill] sm:$0xff] }
 0xa3e   :  { %3060 = vst.msk [vmem:[#allocation3 + $0x38] sm:$0xff] %vm373_vm2, %v3044_v26  ;;  %v2921_v26 = vld [vmem:[#allocation3 + $0x60] sm:$0xff] }
 0xa3f   :  { %v3439_v8 = vpop.permute.xlu1 %3438  ;;  %v2978_v57 = vpop.permute.xlu2 %2977 }
 0xa40   :  { %v3015_v25 = vmul.f32 %v2978_v57, %v14772_v16  ;;  %v3849_v15 = vld [vmem:[#allocation3 + $0x40] sm:$0xff]  ;;  %v3480_v55 = vmul.f32 %v3439_v8, %v14776_v36 }
 0xa41   :  { %v3977_v20 = vadd.f32 %v3961_v13, %v3849_v15  ;;  %v14783_v36 = vld [vmem:[#allocation12_spill] sm:$0xff] }
 0xa42   :  { %v3031_v17 = vmul.f32 %v3015_v25, %v14761_v54  ;;  %v3496_v13 = vmul.f32 %v3480_v55, %v14762_v44 }
 0xa43   :  { %3993 = vst.msk [vmem:[#allocation3 + $0x40] sm:$0xff] %vm373_vm2, %v3977_v20 }
 0xa44   :  { %v3047_v60 = vadd.f32 %v3031_v17, %v2919_v41  ;;  %v14778_v17 = vld [vmem:[#allocation11_spill] sm:$0xff] }
 0xa45   :  { %v3382_v62 = vld [vmem:[#allocation3 + $0x38] sm:$0xff] }
 0xa46   :  { %v3510_v58 = vadd.f32 %v3494_v35, %v3382_v62  ;;  %3063 = vst.msk [vmem:[#allocation3 + $0x50] sm:$0xff] %vm373_vm2, %v3047_v60  ;;  %v14779_v35 = vld [vmem:[#allocation9_spill] sm:$0xff] }
 0xa47   :  { %v2973_v39 = vpop.permute.xlu1 %2972  ;;  %v12309_v19 = vpop.permute.xlu2 %3919  ;;  %v3946_v60 = vmul.f32 %v12278_v31, %v14779_v35 }
 0xa48   :  { %3526 = vst.msk [vmem:[#allocation3 + $0x38] sm:$0xff] %vm373_vm2, %v3510_v58  ;;  %v3014_v12 = vmul.f32 %v2973_v39, %v14774_v43  ;;  %v2920_v58 = vld [vmem:[#allocation3 + $0x58] sm:$0xff] }
 0xa49   :  { %v3962_v11 = vmul.f32 %v3946_v60, %v14763_v22 }
 0xa4a   :  { %v3030_v51 = vmul.f32 %v3014_v12, %v14761_v54 }
 0xa4c   :  { %v3046_v61 = vadd.f32 %v3030_v51, %v2918_v42  ;;  %v3482_v51 = vmul.f32 %v14781_v34, %v14780_v28 }
 0xa4d   :  { %v3385_v0 = vld [vmem:[#allocation3 + $0x50] sm:$0xff] }
 0xa4e   :  { %3062 = vst.msk [vmem:[#allocation3 + $0x48] sm:$0xff] %vm373_vm2, %v3046_v61  ;;  %v3513_v38 = vadd.f32 %v3497_v21, %v3385_v0  ;;  %v14782_v21 = vld [vmem:[#allocation24_spill] sm:$0xff]  ;;  %v4371_v0 = vpop.permute.xlu0 %4370 }
 0xa4f   :  { %v3910_v9 = vpop.permute.xlu1 %3909  ;;  %v2988_v48 = vpop.permute.xlu2 %2987  ;;  %v3848_v40 = vld [vmem:[#allocation3 + $0x38] sm:$0xff]  ;;  %v4412_v55 = vmul.f32 %v4371_v0, %v14783_v36 }
 0xa50   :  { %3529 = vst.msk [vmem:[#allocation3 + $0x50] sm:$0xff] %vm373_vm2, %v3513_v38  ;;  %v3017_v46 = vmul.f32 %v2988_v48, %v12128_v10  ;;  %v3976_v5 = vadd.f32 %v3960_v14, %v3848_v40  ;;  %v3947_v63 = vmul.f32 %v3910_v9, %v14777_v56  ;;  %v2923_v48 = vld [vmem:[#allocation3 + $0x70] sm:$0xff]  ;;  %v3498_v40 = vmul.f32 %v3482_v51, %v14762_v44 }
 0xa51   :  { %v14787_v51 = vld [vmem:[#allocation18_spill] sm:$0xff] }
 0xa52   :  { %v3033_v27 = vmul.f32 %v3017_v46, %v14761_v54  ;;  %3992 = vst.msk [vmem:[#allocation3 + $0x38] sm:$0xff] %vm373_vm2, %v3976_v5  ;;  %v3963_v25 = vmul.f32 %v3947_v63, %v14763_v22 }
 0xa54   :  { %v3049_v57 = vadd.f32 %v3033_v27, %v2921_v26  ;;  %v4428_v26 = vmul.f32 %v4412_v55, %v14771_v29 }
 0xa55   :  { %v3384_v23 = vld [vmem:[#allocation3 + $0x48] sm:$0xff] }
 0xa56   :  { %v3512_v16 = vadd.f32 %v3496_v13, %v3384_v23  ;;  %3065 = vst.msk [vmem:[#allocation3 + $0x60] sm:$0xff] %vm373_vm2, %v3049_v57  ;;  %v14784_v13 = vld [vmem:[#allocation27_spill] sm:$0xff]  ;;  %v14785_v23 = vld [vmem:[#allocation17_spill] sm:$0xff] }
 0xa57   :  { %v3851_v8 = vld [vmem:[#allocation3 + $0x50] sm:$0xff]  ;;  %v2983_v15 = vpop.permute.xlu1 %2982  ;;  %v12328_v10 = vpop.permute.xlu2 %3458  ;;  %v3949_v57 = vmul.f32 %v12309_v19, %v14784_v13 }
 0xa58   :  { %3528 = vst.msk [vmem:[#allocation3 + $0x48] sm:$0xff] %vm373_vm2, %v3512_v16  ;;  %v3979_v20 = vadd.f32 %v3963_v25, %v3851_v8  ;;  %v3016_v41 = vmul.f32 %v2983_v15, %v14778_v17  ;;  %v3485_v16 = vmul.f32 %v12167_v50, %v14785_v23  ;;  %v14786_v8 = vld [vmem:[#allocation19_spill] sm:$0xff]  ;;  %v4386_v19 = vpop.permute.xlu0 %4385 }
 0xa59   :  { %v3948_v15 = vmul.f32 %v12135_v18, %v14786_v8  ;;  %v3965_v17 = vmul.f32 %v3949_v57, %v14763_v22  ;;  %v9166_v18 = vmov 55  }
 0xa5a   :  { %3995 = vst.msk [vmem:[#allocation3 + $0x50] sm:$0xff] %vm373_vm2, %v3979_v20  ;;  %v3032_v62 = vmul.f32 %v3016_v41, %v14761_v54  ;;  %v3501_v41 = vmul.f32 %v3485_v16, %v14762_v44  ;;  %8110 = vset.pattern.permute.xlu0 %v9166_v18  ;;  %8113 = vset.pattern.permute.xlu1 %v9166_v18  ;;  %v4310_v16 = vld [vmem:[#allocation3 + $0x18] sm:$0xff] }
 0xa5b   :  { %v3964_v60 = vmul.f32 %v3948_v15, %v14763_v22 }
 0xa5c   :  { %v3048_v39 = vadd.f32 %v3032_v62, %v2920_v58 }
 0xa5d   :  { %v3387_v9 = vld [vmem:[#allocation3 + $0x60] sm:$0xff] }
 0xa5e   :  { %3064 = vst.msk [vmem:[#allocation3 + $0x58] sm:$0xff] %vm373_vm2, %v3048_v39 }
 0xa5f   :  { %v3850_v4 = vld [vmem:[#allocation3 + $0x48] sm:$0xff]  ;;  %v3454_v43 = vpop.permute.xlu1 %3453  ;;  %v2998_v12 = vpop.permute.xlu2 %2997 }
 0xa60   :  { %v3978_v42 = vadd.f32 %v3962_v11, %v3850_v4  ;;  %v3483_v61 = vmul.f32 %v3454_v43, %v14782_v21  ;;  %v3019_v31 = vmul.f32 %v2998_v12, %v12181_v53  ;;  %v14606_v4 = vmov 57  }
 0xa61   :  { %8112 = vset.pattern.permute.xlu2 %v14606_v4 }
 0xa62   :  { %3994 = vst.msk [vmem:[#allocation3 + $0x48] sm:$0xff] %vm373_vm2, %v3978_v42  ;;  %v3499_v14 = vmul.f32 %v3483_v61, %v14762_v44  ;;  %v3035_v38 = vmul.f32 %v3019_v31, %v14761_v54  ;;  %v4415_v42 = vmul.f32 %v4386_v19, %v14787_v51  ;;  %v14788_v31 = vld [vmem:[#allocation25_spill] sm:$0xff] }
 0xa63   :  { %v3951_v0 = vmul.f32 %v12186_v3, %v14788_v31 }
 0xa64   :  { %v3515_v46 = vadd.f32 %v3499_v14, %v3387_v9  ;;  %v3051_v5 = vadd.f32 %v3035_v38, %v2923_v48  ;;  %v2922_v14 = vld [vmem:[#allocation3 + $0x68] sm:$0xff]  ;;  %v4431_v9 = vmul.f32 %v4415_v42, %v14771_v29 }
 0xa65   :  { %v3386_v56 = vld [vmem:[#allocation3 + $0x58] sm:$0xff]  ;;  %v3967_v48 = vmul.f32 %v3951_v0, %v14763_v22 }
 0xa66   :  { %v3514_v63 = vadd.f32 %v3498_v40, %v3386_v56  ;;  %3531 = vst.msk [vmem:[#allocation3 + $0x60] sm:$0xff] %vm373_vm2, %v3515_v46  ;;  %v14789_v46 = vld [vmem:[#allocation22_spill] sm:$0xff] }
 0xa67   :  { %3067 = vst.msk [vmem:[#allocation3 + $0x70] sm:$0xff] %vm373_vm2, %v3051_v5  ;;  %v12349_v53 = vpop.permute.xlu1 %3924  ;;  %v12351_v27 = vpop.permute.xlu2 %3934  ;;  %v3484_v5 = vmul.f32 %v12328_v10, %v14789_v46 }
 0xa68   :  { %3530 = vst.msk [vmem:[#allocation3 + $0x58] sm:$0xff] %vm373_vm2, %v3514_v63 }
 0xa69   :  { %v4316_v25 = vld [vmem:[#allocation3 + $0x48] sm:$0xff]  ;;  %v3500_v8 = vmul.f32 %v3484_v5, %v14762_v44 }
 0xa6a   :  { %v4444_v20 = vadd.f32 %v4428_v26, %v4316_v25  ;;  %v4313_v25 = vld [vmem:[#allocation3 + $0x30] sm:$0xff] }
 0xa6c   :  { %4460 = vst.msk [vmem:[#allocation3 + $0x48] sm:$0xff] %vm373_vm2, %v4444_v20 }
 0xa6d   :  { %v3853_v35 = vld [vmem:[#allocation3 + $0x60] sm:$0xff] }
 0xa6e   :  { %v3981_v62 = vadd.f32 %v3965_v17, %v3853_v35  ;;  %v3389_v58 = vld [vmem:[#allocation3 + $0x70] sm:$0xff] }
 0xa6f   :  { %v3517_v39 = vadd.f32 %v3501_v41, %v3389_v58  ;;  %v2993_v11 = vpop.permute.xlu1 %2992  ;;  %v4346_v50 = vpop.permute.xlu2 %4345  ;;  %v3852_v43 = vld [vmem:[#allocation3 + $0x58] sm:$0xff]  ;;  %v14790_v58 = vld [vmem:[#allocation8_spill] sm:$0xff] }
 0xa70   :  { %3997 = vst.msk [vmem:[#allocation3 + $0x60] sm:$0xff] %vm373_vm2, %v3981_v62  ;;  %v3018_v12 = vmul.f32 %v2993_v11, %v12149_v33  ;;  %v4407_v28 = vmul.f32 %v4346_v50, %v12049_v30  ;;  %v3980_v34 = vadd.f32 %v3964_v60, %v3852_v43  ;;  %v4311_v33 = vld [vmem:[#allocation3 + $0x20] sm:$0xff]  ;;  %vm4579_vm13 = vcmp.eq.s32.totalorder %v14790_v58, 48 }
 0xa71   :  { %3533 = vst.msk [vmem:[#allocation3 + $0x70] sm:$0xff] %vm373_vm2, %v3517_v39  ;;  %v14791_v39 = vld [vmem:[#allocation10_spill] sm:$0xff]  ;;  %v4315_v50 = vld [vmem:[#allocation3 + $0x40] sm:$0xff] }
 0xa72   :  { %v3034_v21 = vmul.f32 %v3018_v12, %v14761_v54  ;;  %v4423_v61 = vmul.f32 %v4407_v28, %v14771_v29  ;;  %3996 = vst.msk [vmem:[#allocation3 + $0x58] sm:$0xff] %vm373_vm2, %v3980_v34  ;;  %v3950_v11 = vmul.f32 %v12349_v53, %v14791_v39  ;;  %v14792_v12 = vmov 0.0   ;;  %v4314_v39 = vld [vmem:[#allocation3 + $0x38] sm:$0xff] }
 0xa73   :  { %v12409_v28 = vsel %vm4579_vm13, 1.0, %v14792_v12 }
 0xa74   :  { %v3050_v38 = vadd.f32 %v3034_v21, %v2922_v14  ;;  %v4439_v30 = vadd.f32 %v4423_v61, %v4311_v33  ;;  %v3966_v42 = vmul.f32 %v3950_v11, %v14763_v22 }
 0xa76   :  { %3066 = vst.msk [vmem:[#allocation3 + $0x68] sm:$0xff] %vm373_vm2, %v3050_v38 }
 0xa77   :  { %v4319_v40 = vld [vmem:[#allocation3 + $0x60] sm:$0xff]  ;;  %4455 = vst.msk [vmem:[#allocation3 + $0x20] sm:$0xff] %vm373_vm2, %v4439_v30  ;;  %v4341_v36 = vpop.permute.xlu1 %4340  ;;  %v4356_v55 = vpop.permute.xlu2 %4355 }
 0xa78   :  { %v4447_v56 = vadd.f32 %v4431_v9, %v4319_v40  ;;  %v4406_v3 = vmul.f32 %v4341_v36, %v12043_v47  ;;  %v4409_v63 = vmul.f32 %v4356_v55, %v12059_v37  ;;  %v3855_v26 = vld [vmem:[#allocation3 + $0x70] sm:$0xff]  ;;  %v12395_v37 = vld [vmem:[%s14516_s9] ss:$0 sm:$0xff]  ;;  %s9167_s9 = smov 79  }
 0xa79   :  { %v3983_v13 = vadd.f32 %v3967_v48, %v3855_v26  ;;  %v4312_v48 = vld [vmem:[#allocation3 + $0x28] sm:$0xff]  ;;  %v4318_v36 = vld [vmem:[#allocation3 + $0x58] sm:$0xff] }
 0xa7a   :  { %4463 = vst.msk [vmem:[#allocation3 + $0x60] sm:$0xff] %vm373_vm2, %v4447_v56  ;;  %v4422_v57 = vmul.f32 %v4406_v3, %v14771_v29  ;;  %v4425_v23 = vmul.f32 %v4409_v63, %v14771_v29 }
 0xa7b   :  { %3999 = vst.msk [vmem:[#allocation3 + $0x70] sm:$0xff] %vm373_vm2, %v3983_v13 }
 0xa7c   :  { %v4438_v10 = vadd.f32 %v4422_v57, %v4310_v16  ;;  %v4441_v15 = vadd.f32 %v4425_v23, %v4313_v25  ;;  %v9168_v23 = vmov 56   ;;  %v2924_v16 = vld [vmem:[#allocation3 + $0x78] sm:$0xff] }
 0xa7d   :  { %v3388_v20 = vld [vmem:[#allocation3 + $0x68] sm:$0xff] }
 0xa7e   :  { %v3516_v47 = vadd.f32 %v3500_v8, %v3388_v20  ;;  %4454 = vst.msk [vmem:[#allocation3 + $0x18] sm:$0xff] %vm373_vm2, %v4438_v10 }
 0xa7f   :  { %4457 = vst.msk [vmem:[#allocation3 + $0x30] sm:$0xff] %vm373_vm2, %v4441_v15  ;;  %v12398_v17 = vpop.permute.xlu1 %3468  ;;  %v4366_v41 = vpop.permute.xlu2 %4365 }
 0xa80   :  { %3532 = vst.msk [vmem:[#allocation3 + $0x68] sm:$0xff] %vm373_vm2, %v3516_v47  ;;  %v4411_v35 = vmul.f32 %v4366_v41, %v12071_v49  ;;  %v4829_v60 = vpop.f32.mrf.mxu0  ;;  %v4471_v49 = vld [vmem:[#allocation3 + $0x20] sm:$0xff]  ;;  %v3486_v41 = vmul.f32 %v12398_v17, %v12196_v45 }
 0xa81   :  { %v4830_v19 = vadd.f32 %v12395_v37, %v4829_v60  ;;  %v4507_v33 = vmul.f32 1.442695, %v4471_v49  ;;  %vm4487_vm15 = vcmp.gt.f32.partialorder %v4471_v49, 0.0 }
 0xa82   :  { %v4427_v62 = vmul.f32 %v4411_v35, %v14771_v29  ;;  %v4321_v8 = vld [vmem:[#allocation3 + $0x70] sm:$0xff]  ;;  %v3502_v11 = vmul.f32 %v3486_v41, %v14762_v44 }
 0xa83   :  { %4878 = vst.msk [vmem:[#allocation4] sm:$0xff] %vm4877_vm12, %v4830_v19 }
 0xa84   :  { %v4443_v43 = vadd.f32 %v4427_v62, %v4315_v50 }
 0xa85   :  { %v4470_v34 = vld [vmem:[#allocation3 + $0x18] sm:$0xff]  ;;  %v4646_v21 = vpop.f32.mrf.mxu3 }
 0xa86   :  { %4459 = vst.msk [vmem:[#allocation3 + $0x40] sm:$0xff] %vm373_vm2, %v4443_v43  ;;  %v4505_v51 = vmul.f32 1.442695, %v4470_v34  ;;  %v12414_v0 = vadd.f32 %v4646_v21, %v12409_v28  ;;  %vm4486_vm14 = vcmp.gt.f32.partialorder %v4470_v34, 0.0  ;;  %v4473_v20 = vld [vmem:[#allocation3 + $0x30] sm:$0xff]  ;;  %v3952_v21 = vmul.f32 %v12351_v27, %v12201_v32 }
 0xa87   :  { %v4351_v61 = vpop.permute.xlu1 %4350  ;;  %v3854_v31 = vld [vmem:[#allocation3 + $0x68] sm:$0xff]  ;;  %v4381_v14 = vpop.permute.xlu2 %4380  ;;  %v4511_v60 = vmul.f32 1.442695, %v4473_v20  ;;  %vm4489_vm1 = vcmp.gt.f32.partialorder %v4473_v20, 0.0 }
 0xa88   :  { %v4408_v53 = vmul.f32 %v4351_v61, %v12055_v2  ;;  %8716 = vpow2.f32 %v4505_v51  ;;  %v4414_v38 = vmul.f32 %v4381_v14, %v12090_v7  ;;  %v3982_v30 = vadd.f32 %v3966_v42, %v3854_v31  ;;  %5827 = vperm.xlu2 %8112, %v12414_v0   ;;  %4895 = vperm.xlu0 %8110, %v12414_v0   ;;  %v4317_v61 = vld [vmem:[#allocation3 + $0x50] sm:$0xff] }
 0xa89   :  { %4710 = vrot.lane.b32.xlu1 %v12414_v0, %s9167_s9  ;;  %8718 = vpow2.f32 %v4507_v33 }
 0xa8a   :  { %v4424_v9 = vmul.f32 %v4408_v53, %v14771_v29  ;;  %v4430_v40 = vmul.f32 %v4414_v38, %v14771_v29  ;;  %3998 = vst.msk [vmem:[#allocation3 + $0x68] sm:$0xff] %vm373_vm2, %v3982_v30 }
 0xa8c   :  { %v4440_v2 = vadd.f32 %v4424_v9, %v4312_v48  ;;  %v4446_v7 = vadd.f32 %v4430_v40, %v4318_v36  ;;  %v4401_v36 = vpop.permute.xlu0 %4400 }
 0xa8d   :  { %v4475_v38 = vld [vmem:[#allocation3 + $0x40] sm:$0xff] }
 0xa8e   :  { %v8717_v55 = vpop.eup %8716  ;;  %4456 = vst.msk [vmem:[#allocation3 + $0x28] sm:$0xff] %vm373_vm2, %v4440_v2  ;;  %v4515_v2 = vmul.f32 1.442695, %v4475_v38  ;;  %vm4491_vm9 = vcmp.gt.f32.partialorder %v4475_v38, 0.0 }
 0xa8f   :  { %4462 = vst.msk [vmem:[#allocation3 + $0x58] sm:$0xff] %vm373_vm2, %v4446_v7  ;;  %v3003_v46 = vpop.permute.xlu1 %3002  ;;  %v7914_v5 = vadd.f32 -1.0, %v8717_v55  ;;  %v4396_v3 = vpop.permute.xlu2 %4395 }
 0xa90   :  { %v3020_v56 = vmul.f32 %v3003_v46, %v12229_v59  ;;  %v4417_v63 = vmul.f32 %v4396_v3, %v12117_v1  ;;  %v8719_v13 = vpop.eup %8718  ;;  %8111 = vset.pattern.permute.xlu0 %v9168_v23 }
 0xa91   :  { %v4550_v26 = vsel %vm4486_vm14, %v4470_v34, %v7914_v5  ;;  %5361 = vperm.xlu0 %8111, %v12414_v0   ;;  %v7915_v1 = vadd.f32 -1.0, %v8719_v13  ;;  %v4320_v55 = vld [vmem:[#allocation3 + $0x68] sm:$0xff]  ;;  %v14793_v5 = vld [vmem:[#allocation16_spill] sm:$0xff] }
 0xa92   :  { %v3036_v57 = vmul.f32 %v3020_v56, %v14761_v54  ;;  %7930 = vmatmul.msk.f32.gmra.mxu3 %vm373_vm2, %v4550_v26  ;;  %v4433_v25 = vmul.f32 %v4417_v63, %v14771_v29  ;;  %7946 = vmatmul.msk.f32.gmra.mxu0 %vm373_vm2, %v4550_v26  ;;  %v4418_v56 = vmul.f32 %v4401_v36, %v14793_v5  ;;  %v4476_v26 = vld [vmem:[#allocation3 + $0x48] sm:$0xff] }
 0xa93   :  { %v4551_v19 = vsel %vm4487_vm15, %v4471_v49, %v7915_v1  ;;  %vm4492_vm10 = vcmp.gt.f32.partialorder %v4476_v26, 0.0 }
 0xa94   :  { %v3052_v59 = vadd.f32 %v3036_v57, %v2924_v16  ;;  %v4449_v10 = vadd.f32 %v4433_v25, %v4321_v8  ;;  %v4434_v25 = vmul.f32 %v4418_v56, %v14771_v29 }
 0xa95   :  { %v4472_v15 = vld [vmem:[#allocation3 + $0x28] sm:$0xff] }
 0xa96   :  { %3068 = vst.msk [vmem:[#allocation3 + $0x78] sm:$0xff] %vm373_vm2, %v3052_v59  ;;  %v4509_v54 = vmul.f32 1.442695, %v4472_v15  ;;  %vm4488_vm0 = vcmp.gt.f32.partialorder %v4472_v15, 0.0  ;;  %v4517_v59 = vmul.f32 1.442695, %v4476_v26 }
 0xa97   :  { %4465 = vst.msk [vmem:[#allocation3 + $0x70] sm:$0xff] %vm373_vm2, %v4449_v10  ;;  %v4361_v47 = vpop.permute.xlu1 %4360 }
 0xa98   :  { %v4410_v35 = vmul.f32 %v4361_v47, %v12065_v24  ;;  %8720 = vpow2.f32 %v4509_v54 }
 0xa99   :  { %8118 = vset.pattern.permute.xlu0 %v14606_v4  ;;  %8722 = vpow2.f32 %v4511_v60 }
 0xa9a   :  { %v4426_v62 = vmul.f32 %v4410_v35, %v14771_v29  ;;  %7931 = vmatmul.msk.f32.gmra.mxu3 %vm373_vm2, %v4551_v19  ;;  %7947 = vmatmul.msk.f32.gmra.mxu0 %vm373_vm2, %v4551_v19 }
 0xa9c   :  { %v4442_v50 = vadd.f32 %v4426_v62, %v4314_v39  ;;  %v4478_v62 = vld [vmem:[#allocation3 + $0x58] sm:$0xff] }
 0xa9d   :  { %v3390_v43 = vld [vmem:[#allocation3 + $0x78] sm:$0xff]  ;;  %v4521_v39 = vmul.f32 1.442695, %v4478_v62  ;;  %vm4494_vm13 = vcmp.gt.f32.partialorder %v4478_v62, 0.0 }
 0xa9e   :  { %v8721_v45 = vpop.eup %8720  ;;  %v3518_v17 = vadd.f32 %v3502_v11, %v3390_v43  ;;  %4458 = vst.msk [vmem:[#allocation3 + $0x38] sm:$0xff] %vm373_vm2, %v4442_v50 }
 0xa9f   :  { %v4376_v24 = vpop.permute.xlu1 %4375  ;;  %v7916_v34 = vadd.f32 -1.0, %v8721_v45  ;;  %v8723_v42 = vpop.eup %8722  ;;  %v4479_v45 = vld [vmem:[#allocation3 + $0x60] sm:$0xff] }
 0xaa0   :  { %3534 = vst.msk [vmem:[#allocation3 + $0x78] sm:$0xff] %vm373_vm2, %v3518_v17  ;;  %v4413_v49 = vmul.f32 %v4376_v24, %v12084_v6  ;;  %v7917_v14 = vadd.f32 -1.0, %v8723_v42  ;;  %v3968_v6 = vmul.f32 %v3952_v21, %v14763_v22  ;;  %v4523_v17 = vmul.f32 1.442695, %v4479_v45 }
 0xaa1   :  { %v4552_v51 = vsel %vm4488_vm0, %v4472_v15, %v7916_v34  ;;  %vm4495_vm14 = vcmp.gt.f32.partialorder %v4479_v45, 0.0 }
 0xaa2   :  { %v4429_v44 = vmul.f32 %v4413_v49, %v14771_v29  ;;  %7932 = vmatmul.msk.f32.gmra.mxu3 %vm373_vm2, %v4552_v51  ;;  %7948 = vmatmul.msk.f32.gmra.mxu0 %vm373_vm2, %v4552_v51  ;;  %v4553_v7 = vsel %vm4489_vm1, %v4473_v20, %v7917_v14 }
 0xaa4   :  { %v4445_v31 = vadd.f32 %v4429_v44, %v4317_v61 }
 0xaa5   :  { %v4832_v53 = vpop.f32.mrf.mxu0  ;;  %v4474_v33 = vld [vmem:[#allocation3 + $0x38] sm:$0xff] }
 0xaa6   :  { %4461 = vst.msk [vmem:[#allocation3 + $0x50] sm:$0xff] %vm373_vm2, %v4445_v31  ;;  %v4833_v30 = vadd.f32 %v12395_v37, %v4832_v53  ;;  %v4513_v9 = vmul.f32 1.442695, %v4474_v33  ;;  %vm4490_vm6 = vcmp.gt.f32.partialorder %v4474_v33, 0.0  ;;  %v4481_v31 = vld [vmem:[#allocation3 + $0x70] sm:$0xff] }
 0xaa7   :  { %v3856_v32 = vld [vmem:[#allocation3 + $0x78] sm:$0xff]  ;;  %v4391_v27 = vpop.permute.xlu1 %4390  ;;  %v4527_v53 = vmul.f32 1.442695, %v4481_v31  ;;  %vm4497_vm0 = vcmp.gt.f32.partialorder %v4481_v31, 0.0 }
 0xaa8   :  { %v3984_v48 = vadd.f32 %v3968_v6, %v3856_v32  ;;  %4879 = vst.msk [vmem:[#allocation4 + $0x8] sm:$0xff] %vm4877_vm12, %v4833_v30  ;;  %v4416_v40 = vmul.f32 %v4391_v27, %v12107_v52  ;;  %8724 = vpow2.f32 %v4513_v9 }
 0xaa9   :  { %8726 = vpow2.f32 %v4515_v2 }
 0xaaa   :  { %4000 = vst.msk [vmem:[#allocation3 + $0x78] sm:$0xff] %vm373_vm2, %v3984_v48  ;;  %v4432_v22 = vmul.f32 %v4416_v40, %v14771_v29  ;;  %7933 = vmatmul.msk.f32.gmra.mxu3 %vm373_vm2, %v4553_v7  ;;  %7949 = vmatmul.msk.f32.gmra.mxu0 %vm373_vm2, %v4553_v7  ;;  %8728 = vpow2.f32 %v4517_v59 }
 0xaab   :  { %v4649_v46 = vpop.f32.mrf.mxu3 }
 0xaac   :  { %v4448_v3 = vadd.f32 %v4432_v22, %v4320_v55  ;;  %v12464_v63 = vadd.f32 %v4649_v46, %v12409_v28 }
 0xaad   :  { %v4835_v52 = vpop.f32.mrf.mxu0  ;;  %v4477_v47 = vld [vmem:[#allocation3 + $0x50] sm:$0xff] }
 0xaae   :  { %14794 = vst [vmem:[#allocation26_spill] sm:$0xff] %v12464_v63  ;;  %v8725_v13 = vpop.eup %8724  ;;  %v4836_v57 = vadd.f32 %v12395_v37, %v4835_v52  ;;  %4899 = vperm.xlu1 %8113, %v12464_v63   ;;  %4712 = vrot.lane.b32.xlu2 %v12464_v63, %s9167_s9  ;;  %v4519_v41 = vmul.f32 1.442695, %v4477_v47  ;;  %vm4493_vm11 = vcmp.gt.f32.partialorder %v4477_v47, 0.0 }
 0xaaf   :  { %4464 = vst.msk [vmem:[#allocation3 + $0x68] sm:$0xff] %vm373_vm2, %v4448_v3  ;;  %v7918_v16 = vadd.f32 -1.0, %v8725_v13  ;;  %v8727_v1 = vpop.eup %8726 }
 0xab0   :  { %4880 = vst.msk [vmem:[#allocation4 + $0x10] sm:$0xff] %vm4877_vm12, %v4836_v57  ;;  %v7919_v29 = vadd.f32 -1.0, %v8727_v1  ;;  %v8729_v60 = vpop.eup %8728  ;;  %8730 = vpow2.f32 %v4519_v41 }
 0xab1   :  { %v4322_v8 = vld [vmem:[#allocation3 + $0x78] sm:$0xff]  ;;  %v4554_v10 = vsel %vm4490_vm6, %v4474_v33, %v7918_v16  ;;  %v7920_v19 = vadd.f32 -1.0, %v8729_v60  ;;  %8732 = vpow2.f32 %v4521_v39 }
 0xab2   :  { %v4450_v15 = vadd.f32 %v4434_v25, %v4322_v8  ;;  %7934 = vmatmul.msk.f32.gmra.mxu3 %vm373_vm2, %v4554_v10  ;;  %7950 = vmatmul.msk.f32.gmra.mxu0 %vm373_vm2, %v4554_v10  ;;  %v4555_v35 = vsel %vm4491_vm9, %v4475_v38, %v7919_v29  ;;  %8734 = vpow2.f32 %v4523_v17 }
 0xab3   :  { %v4652_v20 = vpop.f32.mrf.mxu3  ;;  %v4556_v11 = vsel %vm4492_vm10, %v4476_v26, %v7920_v19 }
 0xab4   :  { %4466 = vst.msk [vmem:[#allocation3 + $0x78] sm:$0xff] %vm373_vm2, %v4450_v15  ;;  %v12477_v54 = vadd.f32 %v4652_v20, %v12409_v28 }
 0xab6   :  { %14795 = vst [vmem:[#allocation23_spill] sm:$0xff] %v12477_v54  ;;  %8114 = vset.pattern.permute.xlu1 %v9168_v23  ;;  %4714 = vrot.lane.b32.xlu0 %v12477_v54, %s9167_s9  ;;  %v8731_v50 = vpop.eup %8730  ;;  %v4480_v51 = vld [vmem:[#allocation3 + $0x68] sm:$0xff] }
 0xab7   :  { %5365 = vperm.xlu1 %8114, %v12464_v63   ;;  %v7921_v43 = vadd.f32 -1.0, %v8731_v50  ;;  %v8733_v34 = vpop.eup %8732  ;;  %v4525_v42 = vmul.f32 1.442695, %v4480_v51  ;;  %vm4496_vm15 = vcmp.gt.f32.partialorder %v4480_v51, 0.0 }
 0xab8   :  { %v7922_v49 = vadd.f32 -1.0, %v8733_v34  ;;  %v8735_v44 = vpop.eup %8734 }
 0xab9   :  { %v4557_v24 = vsel %vm4493_vm11, %v4477_v47, %v7921_v43  ;;  %8736 = vpow2.f32 %v4525_v42  ;;  %v7923_v61 = vadd.f32 -1.0, %v8735_v44 }
 0xaba   :  { %7935 = vmatmul.msk.f32.gmra.mxu3 %vm373_vm2, %v4555_v35  ;;  %7951 = vmatmul.msk.f32.gmra.mxu0 %vm373_vm2, %v4555_v35  ;;  %v4558_v21 = vsel %vm4494_vm13, %v4478_v62, %v7922_v49  ;;  %8738 = vpow2.f32 %v4527_v53 }
 0xabb   :  { %v4559_v14 = vsel %vm4495_vm14, %v4479_v45, %v7923_v61  ;;  %v4482_v6 = vld [vmem:[#allocation3 + $0x78] sm:$0xff] }
 0xabc   :  { %v4529_v30 = vmul.f32 1.442695, %v4482_v6  ;;  %vm4498_vm1 = vcmp.gt.f32.partialorder %v4482_v6, 0.0 }
 0xabe   :  { %5835 = vperm.xlu0 %8118, %v12477_v54   ;;  %8740 = vpow2.f32 %v4529_v30 }
 0xabf   :  { %8115 = vset.pattern.permute.xlu1 %v14606_v4  ;;  %v8737_v33 = vpop.eup %8736 }
 0xac0   :  { %5831 = vperm.xlu1 %8115, %v12464_v63   ;;  %v7924_v38 = vadd.f32 -1.0, %v8737_v33  ;;  %v8739_v32 = vpop.eup %8738 }
 0xac1   :  { %v7925_v27 = vadd.f32 -1.0, %v8739_v32 }
 0xac2   :  { %7936 = vmatmul.msk.f32.gmra.mxu3 %vm373_vm2, %v4556_v11  ;;  %7952 = vmatmul.msk.f32.gmra.mxu0 %vm373_vm2, %v4556_v11  ;;  %v4560_v9 = vsel %vm4496_vm15, %v4480_v51, %v7924_v38 }
 0xac3   :  { %v4561_v48 = vsel %vm4497_vm0, %v4481_v31, %v7925_v27 }
 0xac4   :  { %v8741_v40 = vpop.eup %8740 }
 0xac5   :  { %v7926_v2 = vadd.f32 -1.0, %v8741_v40 }
 0xac6   :  { %8119 = vset.pattern.permute.xlu0 %v9166_v18 }
 0xac7   :  { %v4562_v36 = vsel %vm4498_vm1, %v4482_v6, %v7926_v2 }
 0xac8   :  { %8116 = vset.pattern.permute.xlu1 %v9166_v18 }
 0xac9   :  { %4903 = vperm.xlu1 %8116, %v12477_v54  }
 0xaca   :  { %7937 = vmatmul.msk.f32.gmra.mxu3 %vm373_vm2, %v4557_v24  ;;  %7953 = vmatmul.msk.f32.gmra.mxu0 %vm373_vm2, %v4557_v24 }
 0xad1   :  { %8117 = vset.pattern.permute.xlu1 %v9168_v23 }
 0xad2   :  { %5369 = vperm.xlu1 %8117, %v12477_v54   ;;  %7938 = vmatmul.msk.f32.gmra.mxu3 %vm373_vm2, %v4558_v21 }
 0xad3   :  { %7954 = vmatmul.msk.f32.gmra.mxu0 %vm373_vm2, %v4558_v21 }
 0xada   :  { %7939 = vmatmul.msk.f32.gmra.mxu3 %vm373_vm2, %v4559_v14  ;;  %8121 = vset.pattern.permute.xlu1 %v9166_v18 }
 0xadb   :  { %7955 = vmatmul.msk.f32.gmra.mxu0 %vm373_vm2, %v4559_v14 }
 0xae2   :  { %7940 = vmatmul.msk.f32.gmra.mxu3 %vm373_vm2, %v4560_v9 }
 0xae3   :  { %7956 = vmatmul.msk.f32.gmra.mxu0 %vm373_vm2, %v4560_v9 }
 0xaea   :  { %7941 = vmatmul.msk.f32.gmra.mxu3 %vm373_vm2, %v4561_v48 }
 0xaeb   :  { %7957 = vmatmul.msk.f32.gmra.mxu0 %vm373_vm2, %v4561_v48 }
 0xaf2   :  { %7942 = vmatmul.msk.f32.gmra.mxu3 %vm373_vm2, %v4562_v36 }
 0xaf3   :  { %7958 = vmatmul.msk.f32.gmra.mxu0 %vm373_vm2, %v4562_v36 }
 0xafa   :  { %v12611_v6 = vpop.permute.xlu0 %4895 }
 0xafb   :  { %v12582_v34 = vpop.permute.xlu1 %4710 }
 0xb03   :  { %v12630_v2 = vpop.permute.xlu0 %5361 }
 0xb0f   :  { %v4838_v7 = vpop.f32.mrf.mxu0 }
 0xb10   :  { %v4839_v22 = vadd.f32 %v12395_v37, %v4838_v7 }
 0xb12   :  { %4881 = vst.msk [vmem:[#allocation4 + $0x18] sm:$0xff] %vm4877_vm12, %v4839_v22 }
 0xb15   :  { %v4655_v55 = vpop.f32.mrf.mxu3 }
 0xb16   :  { %v12511_v46 = vadd.f32 %v4655_v55, %v12409_v28 }
 0xb17   :  { %v4841_v5 = vpop.f32.mrf.mxu0 }
 0xb18   :  { %5839 = vperm.xlu2 %8112, %v12511_v46   ;;  %4907 = vperm.xlu0 %8119, %v12511_v46   ;;  %v4842_v56 = vadd.f32 %v12395_v37, %v4841_v5 }
 0xb19   :  { %4716 = vrot.lane.b32.xlu1 %v12511_v46, %s9167_s9 }
 0xb1a   :  { %4882 = vst.msk [vmem:[#allocation4 + $0x20] sm:$0xff] %vm4877_vm12, %v4842_v56 }
 0xb1d   :  { %v4658_v3 = vpop.f32.mrf.mxu3 }
 0xb1e   :  { %v12520_v52 = vadd.f32 %v4658_v3, %v12409_v28 }
 0xb1f   :  { %v4844_v26 = vpop.f32.mrf.mxu0 }
 0xb20   :  { %14796 = vst [vmem:[#allocation20_spill] sm:$0xff] %v12520_v52  ;;  %8120 = vset.pattern.permute.xlu0 %v9168_v23  ;;  %4718 = vrot.lane.b32.xlu2 %v12520_v52, %s9167_s9  ;;  %v4845_v13 = vadd.f32 %v12395_v37, %v4844_v26  ;;  %v12592_v44 = vpop.permute.xlu1 %4899 }
 0xb21   :  { %4911 = vperm.xlu1 %8121, %v12520_v52   ;;  %5373 = vperm.xlu0 %8120, %v12511_v46  }
 0xb22   :  { %8125 = vset.pattern.permute.xlu2 %v9168_v23  ;;  %4883 = vst.msk [vmem:[#allocation4 + $0x28] sm:$0xff] %vm4877_vm12, %v4845_v13 }
 0xb25   :  { %v4661_v57 = vpop.f32.mrf.mxu3 }
 0xb26   :  { %v12531_v16 = vadd.f32 %v4661_v57, %v12409_v28 }
 0xb27   :  { %v4847_v25 = vpop.f32.mrf.mxu0 }
 0xb28   :  { %5381 = vperm.xlu2 %8125, %v12531_v16   ;;  %v4848_v59 = vadd.f32 %v12395_v37, %v4847_v25  ;;  %v12640_v5 = vpop.permute.xlu0 %4714 }
 0xb29   :  { %8122 = vset.pattern.permute.xlu1 %v9168_v23  ;;  %4720 = vrot.lane.b32.xlu0 %v12531_v16, %s9167_s9  ;;  %v12607_v33 = vpop.permute.xlu1 %5365 }
 0xb2a   :  { %5377 = vperm.xlu1 %8122, %v12520_v52   ;;  %8124 = vset.pattern.permute.xlu0 %v9166_v18  ;;  %4884 = vst.msk [vmem:[#allocation4 + $0x30] sm:$0xff] %vm4877_vm12, %v4848_v59 }
 0xb2d   :  { %v4664_v8 = vpop.f32.mrf.mxu3 }
 0xb2e   :  { %v12550_v29 = vadd.f32 %v4664_v8, %v12409_v28 }
 0xb2f   :  { %v4850_v10 = vpop.f32.mrf.mxu0 }
 0xb30   :  { %v4851_v1 = vadd.f32 %v12395_v37, %v4850_v10  ;;  %14797 = vst [vmem:[#allocation21_spill] sm:$0xff] %v12550_v29 }
 0xb31   :  { %4915 = vperm.xlu0 %8124, %v12531_v16  }
 0xb32   :  { %8123 = vset.pattern.permute.xlu1 %v14606_v4  ;;  %4885 = vst.msk [vmem:[#allocation4 + $0x38] sm:$0xff] %vm4877_vm12, %v4851_v1  ;;  %v12628_v40 = vpop.permute.xlu1 %5831 }
 0xb33   :  { %5843 = vperm.xlu1 %8123, %v12520_v52  }
 0xb35   :  { %v4667_v15 = vpop.f32.mrf.mxu3 }
 0xb36   :  { %v12547_v20 = vadd.f32 %v4667_v15, %v12409_v28 }
 0xb37   :  { %v4853_v47 = vpop.f32.mrf.mxu0 }
 0xb38   :  { %4724 = vrot.lane.b32.xlu2 %v12547_v20, %s9167_s9  ;;  %v4854_v41 = vadd.f32 %v12395_v37, %v4853_v47 }
 0xb39   :  { %8127 = vset.pattern.permute.xlu0 %v9168_v23 }
 0xb3a   :  { %5385 = vperm.xlu0 %8127, %v12550_v29   ;;  %4886 = vst.msk [vmem:[#allocation4 + $0x40] sm:$0xff] %vm4877_vm12, %v4854_v41 }
 0xb3b   :  { %4722 = vrot.lane.b32.xlu1 %v12550_v29, %s9167_s9 }
 0xb3c   :  { %8126 = vset.pattern.permute.xlu1 %v9166_v18 }
 0xb3d   :  { %v4670_v35 = vpop.f32.mrf.mxu3 }
 0xb3e   :  { %v12567_v11 = vadd.f32 %v4670_v35, %v12409_v28 }
 0xb3f   :  { %v4856_v60 = vpop.f32.mrf.mxu0 }
 0xb40   :  { %v4857_v19 = vadd.f32 %v12395_v37, %v4856_v60 }
 0xb42   :  { %8128 = vset.pattern.permute.xlu0 %v9166_v18  ;;  %4887 = vst.msk [vmem:[#allocation4 + $0x48] sm:$0xff] %vm4877_vm12, %v4857_v19 }
 0xb43   :  { %4919 = vperm.xlu1 %8126, %v12550_v29   ;;  %4923 = vperm.xlu0 %8128, %v12547_v20  }
 0xb45   :  { %v4673_v62 = vpop.f32.mrf.mxu3 }
 0xb46   :  { %v12590_v21 = vadd.f32 %v4673_v62, %v12409_v28 }
 0xb47   :  { %v4859_v39 = vpop.f32.mrf.mxu0 }
 0xb48   :  { %v4860_v50 = vadd.f32 %v12395_v37, %v4859_v39  ;;  %14798 = vst [vmem:[#allocation14_spill] sm:$0xff] %v12590_v21 }
 0xb4a   :  { %4888 = vst.msk [vmem:[#allocation4 + $0x50] sm:$0xff] %vm4877_vm12, %v4860_v50 }
 0xb4b   :  { %8129 = vset.pattern.permute.xlu1 %v9168_v23  ;;  %4726 = vrot.lane.b32.xlu0 %v12567_v11, %s9167_s9 }
 0xb4c   :  { %5389 = vperm.xlu1 %8129, %v12547_v20   ;;  %8131 = vset.pattern.permute.xlu0 %v9168_v23 }
 0xb4d   :  { %v4676_v43 = vpop.f32.mrf.mxu3 }
 0xb4e   :  { %v12577_v45 = vadd.f32 %v4676_v43, %v12409_v28 }
 0xb50   :  { %v4862_v17 = vpop.f32.mrf.mxu0  ;;  %4730 = vrot.lane.b32.xlu2 %v12577_v45, %s9167_s9 }
 0xb51   :  { %v4863_v24 = vadd.f32 %v12395_v37, %v4862_v17 }
 0xb53   :  { %4889 = vst.msk [vmem:[#allocation4 + $0x58] sm:$0xff] %vm4877_vm12, %v4863_v24  ;;  %5393 = vperm.xlu0 %8131, %v12567_v11  }
 0xb54   :  { %8130 = vset.pattern.permute.xlu1 %v9166_v18 }
 0xb55   :  { %4927 = vperm.xlu1 %8130, %v12567_v11   ;;  %v4679_v49 = vpop.f32.mrf.mxu3 }
 0xb56   :  { %v12620_v27 = vadd.f32 %v4679_v49, %v12409_v28 }
 0xb58   :  { %v4865_v51 = vpop.f32.mrf.mxu0 }
 0xb59   :  { %v4866_v42 = vadd.f32 %v12395_v37, %v4865_v51 }
 0xb5b   :  { %4890 = vst.msk [vmem:[#allocation4 + $0x60] sm:$0xff] %vm4877_vm12, %v4866_v42  ;;  %8132 = vset.pattern.permute.xlu0 %v9166_v18 }
 0xb5c   :  { %4931 = vperm.xlu0 %8132, %v12590_v21  }
 0xb5d   :  { %4728 = vrot.lane.b32.xlu1 %v12590_v21, %s9167_s9  ;;  %v4682_v61 = vpop.f32.mrf.mxu3 }
 0xb5e   :  { %v12600_v31 = vadd.f32 %v4682_v61, %v12409_v28  ;;  %8133 = vset.pattern.permute.xlu1 %v9168_v23 }
 0xb60   :  { %14799 = vst [vmem:[#allocation28_spill] sm:$0xff] %v12600_v31  ;;  %v4868_v53 = vpop.f32.mrf.mxu0  ;;  %5409 = vperm.xlu2 %8125, %v12600_v31  }
 0xb61   :  { %v4869_v14 = vadd.f32 %v12395_v37, %v4868_v53 }
 0xb63   :  { %4891 = vst.msk [vmem:[#allocation4 + $0x68] sm:$0xff] %vm4877_vm12, %v4869_v14 }
 0xb64   :  { %8135 = vset.pattern.permute.xlu0 %v9168_v23 }
 0xb65   :  { %5397 = vperm.xlu1 %8133, %v12590_v21   ;;  %5401 = vperm.xlu0 %8135, %v12577_v45   ;;  %v4685_v38 = vpop.f32.mrf.mxu3 }
 0xb66   :  { %v12614_v30 = vadd.f32 %v4685_v38, %v12409_v28 }
 0xb68   :  { %14800 = vst [vmem:[#allocation29_spill] sm:$0xff] %v12614_v30  ;;  %v4871_v9 = vpop.f32.mrf.mxu0  ;;  %4736 = vrot.lane.b32.xlu2 %v12614_v30, %s9167_s9 }
 0xb69   :  { %v4872_v32 = vadd.f32 %v12395_v37, %v4871_v9 }
 0xb6b   :  { %4892 = vst.msk [vmem:[#allocation4 + $0x70] sm:$0xff] %vm4877_vm12, %v4872_v32 }
 0xb6d   :  { %8134 = vset.pattern.permute.xlu1 %v9166_v18  ;;  %4732 = vrot.lane.b32.xlu0 %v12620_v27, %s9167_s9  ;;  %v4688_v48 = vpop.f32.mrf.mxu3 }
 0xb6e   :  { %4935 = vperm.xlu1 %8134, %v12577_v45   ;;  %8136 = vset.pattern.permute.xlu0 %v9166_v18  ;;  %v12643_v56 = vadd.f32 %v4688_v48, %v12409_v28 }
 0xb70   :  { %v4874_v36 = vpop.f32.mrf.mxu0  ;;  %14802 = vst [vmem:[#allocation9_spill] sm:$0xff] %v12643_v56 }
 0xb71   :  { %v4875_v7 = vadd.f32 %v12395_v37, %v4874_v36  ;;  %v12647_v37 = vpop.permute.xlu1 %4903 }
 0xb73   :  { %4893 = vst.msk [vmem:[#allocation4 + $0x78] sm:$0xff] %vm4877_vm12, %v4875_v7 }
 0xb75   :  { %4939 = vperm.xlu0 %8136, %v12620_v27   ;;  %v4691_v22 = vpop.f32.mrf.mxu3 }
 0xb76   :  { %8137 = vset.pattern.permute.xlu1 %v9168_v23  ;;  %v12637_v55 = vadd.f32 %v4691_v22, %v12409_v28  ;;  %v12668_v28 = vpop.permute.xlu0 %5835 }
 0xb77   :  { %5405 = vperm.xlu1 %8137, %v12620_v27  }
 0xb78   :  { %14801 = vst [vmem:[#allocation11_spill] sm:$0xff] %v12637_v55  ;;  %5421 = vperm.xlu2 %8125, %v12637_v55   ;;  %5119 = vmatpush.msrb.mxu1 %v12637_v55 }
 0xb79   :  { %5585 = vmatpush.msrb.mxu2 %v12637_v55  ;;  %6051 = vmatpush.msrb.mxu3 %v12637_v55  ;;  %v12672_v3 = vpop.permute.xlu1 %5369 }
 0xb7a   :  { %6517 = vmatpush.msra.mxu0 %v12637_v55  ;;  %5120 = vmatpush.msrb.mxu1 %v12643_v56 }
 0xb7b   :  { %5586 = vmatpush.msrb.mxu2 %v12643_v56  ;;  %6052 = vmatpush.msrb.mxu3 %v12643_v56 }
 0xb7c   :  { %6518 = vmatpush.msra.mxu0 %v12643_v56  ;;  %5121 = vmatpush.msrb.mxu1 %v12614_v30 }
 0xb7d   :  { %5587 = vmatpush.msrb.mxu2 %v12614_v30  ;;  %6053 = vmatpush.msrb.mxu3 %v12614_v30 }
 0xb7e   :  { %6519 = vmatpush.msra.mxu0 %v12614_v30  ;;  %4947 = vperm.xlu0 %8136, %v12614_v30  }
 0xb7f   :  { %4734 = vrot.lane.b32.xlu1 %v12600_v31, %s9167_s9  ;;  %5122 = vmatpush.msrb.mxu1 %v12600_v31 }
 0xb80   :  { %5588 = vmatpush.msrb.mxu2 %v12600_v31  ;;  %6054 = vmatpush.msrb.mxu3 %v12600_v31 }
 0xb81   :  { %6520 = vmatpush.msra.mxu0 %v12600_v31  ;;  %5123 = vmatpush.msrb.mxu1 %v12620_v27 }
 0xb82   :  { %5589 = vmatpush.msrb.mxu2 %v12620_v27  ;;  %6055 = vmatpush.msrb.mxu3 %v12620_v27 }
 0xb83   :  { %6521 = vmatpush.msra.mxu0 %v12620_v27  ;;  %5124 = vmatpush.msrb.mxu1 %v12577_v45 }
 0xb84   :  { %5590 = vmatpush.msrb.mxu2 %v12577_v45  ;;  %6056 = vmatpush.msrb.mxu3 %v12577_v45 }
 0xb85   :  { %6522 = vmatpush.msra.mxu0 %v12577_v45  ;;  %5125 = vmatpush.msrb.mxu1 %v12590_v21 }
 0xb86   :  { %5591 = vmatpush.msrb.mxu2 %v12590_v21  ;;  %6057 = vmatpush.msrb.mxu3 %v12590_v21 }
 0xb87   :  { %6523 = vmatpush.msra.mxu0 %v12590_v21  ;;  %8138 = vset.pattern.permute.xlu1 %v9166_v18 }
 0xb88   :  { %8139 = vset.pattern.permute.xlu0 %v9168_v23  ;;  %4943 = vperm.xlu1 %8138, %v12600_v31  }
 0xb89   :  { %5413 = vperm.xlu0 %8139, %v12614_v30   ;;  %5126 = vmatpush.msrb.mxu1 %v12567_v11 }
 0xb8a   :  { %5592 = vmatpush.msrb.mxu2 %v12567_v11  ;;  %6058 = vmatpush.msrb.mxu3 %v12567_v11  ;;  %v12690_v26 = vpop.permute.xlu0 %4907 }
 0xb8b   :  { %6524 = vmatpush.msra.mxu0 %v12567_v11  ;;  %5127 = vmatpush.msrb.mxu1 %v12547_v20  ;;  %v12694_v13 = vpop.permute.xlu1 %4716 }
 0xb8c   :  { %5593 = vmatpush.msrb.mxu2 %v12547_v20  ;;  %6059 = vmatpush.msrb.mxu3 %v12547_v20 }
 0xb8d   :  { %6525 = vmatpush.msra.mxu0 %v12547_v20  ;;  %5128 = vmatpush.msrb.mxu1 %v12550_v29 }
 0xb8e   :  { %5594 = vmatpush.msrb.mxu2 %v12550_v29  ;;  %6060 = vmatpush.msrb.mxu3 %v12550_v29 }
 0xb8f   :  { %6526 = vmatpush.msra.mxu0 %v12550_v29  ;;  %5129 = vmatpush.msrb.mxu1 %v12531_v16 }
 0xb90   :  { %5595 = vmatpush.msrb.mxu2 %v12531_v16  ;;  %6061 = vmatpush.msrb.mxu3 %v12531_v16 }
 0xb91   :  { %6527 = vmatpush.msra.mxu0 %v12531_v16  ;;  %4951 = vperm.xlu1 %8138, %v12643_v56  }
 0xb92   :  { %4738 = vrot.lane.b32.xlu0 %v12643_v56, %s9167_s9  ;;  %5130 = vmatpush.msrb.mxu1 %v12520_v52 }
 0xb93   :  { %5596 = vmatpush.msrb.mxu2 %v12520_v52  ;;  %6062 = vmatpush.msrb.mxu3 %v12520_v52  ;;  %v12713_v57 = vpop.permute.xlu1 %4911  ;;  %v12715_v25 = vpop.permute.xlu0 %5373 }
 0xb94   :  { %6528 = vmatpush.msra.mxu0 %v12520_v52  ;;  %5131 = vmatpush.msrb.mxu1 %v12511_v46 }
 0xb95   :  { %5597 = vmatpush.msrb.mxu2 %v12511_v46  ;;  %6063 = vmatpush.msrb.mxu3 %v12511_v46 }
 0xb96   :  { %6529 = vmatpush.msra.mxu0 %v12511_v46  ;;  %5132 = vmatpush.msrb.mxu1 %v12477_v54 }
 0xb97   :  { %5598 = vmatpush.msrb.mxu2 %v12477_v54  ;;  %6064 = vmatpush.msrb.mxu3 %v12477_v54 }
 0xb98   :  { %6530 = vmatpush.msra.mxu0 %v12477_v54  ;;  %5133 = vmatpush.msrb.mxu1 %v12464_v63 }
 0xb99   :  { %5599 = vmatpush.msrb.mxu2 %v12464_v63  ;;  %6065 = vmatpush.msrb.mxu3 %v12464_v63 }
 0xb9a   :  { %6531 = vmatpush.msra.mxu0 %v12464_v63  ;;  %8141 = vset.pattern.permute.xlu0 %v9166_v18  ;;  %v12743_v18 = vpop.permute.xlu2 %5827 }
 0xb9b   :  { %8140 = vset.pattern.permute.xlu1 %v9168_v23  ;;  %4955 = vperm.xlu0 %8141, %v12637_v55   ;;  %v12733_v59 = vpop.permute.xlu0 %4720 }
 0xb9c   :  { %5134 = vmatpush.msrb.mxu1 %v12414_v0  ;;  %5600 = vmatpush.msrb.mxu2 %v12414_v0  ;;  %v12737_v8 = vpop.permute.xlu1 %5377 }
 0xb9d   :  { %6066 = vmatpush.msrb.mxu3 %v12414_v0  ;;  %6532 = vmatpush.msra.mxu0 %v12414_v0 }
 0xb9e   :  { %5417 = vperm.xlu1 %8140, %v12643_v56   ;;  %6983 = vmatpush.msra.mxu1 %v12637_v55 }
 0xb9f   :  { %7449 = vmatpush.msrb.mxu0 %v12637_v55  ;;  %7975 = vmatpush.msra.mxu2 %v12637_v55 }
 0xba0   :  { %6984 = vmatpush.msra.mxu1 %v12643_v56  ;;  %4758 = vxpose.xlu2.b32.start [1/16] (narrow) %v12582_v34, 8 }
 0xba1   :  { %7450 = vmatpush.msrb.mxu0 %v12643_v56  ;;  %7976 = vmatpush.msra.mxu2 %v12643_v56 }
 0xba2   :  { %6985 = vmatpush.msra.mxu1 %v12614_v30  ;;  %v4713_v1 = vpop.permute.xlu2 %4712 }
 0xba3   :  { %7451 = vmatpush.msrb.mxu0 %v12614_v30  ;;  %7977 = vmatpush.msra.mxu2 %v12614_v30  ;;  %v12754_v23 = vpop.permute.xlu0 %4915 }
 0xba4   :  { %6986 = vmatpush.msra.mxu1 %v12600_v31  ;;  %8144 = vset.pattern.permute.xlu0 %v14606_v4 }
 0xba5   :  { %7452 = vmatpush.msrb.mxu0 %v12600_v31  ;;  %7978 = vmatpush.msra.mxu2 %v12600_v31  ;;  %v12760_v10 = vpop.permute.xlu1 %5843 }
 0xba6   :  { %4740 = vrot.lane.b32.xlu1 %v12637_v55, %s9167_s9  ;;  %6987 = vmatpush.msra.mxu1 %v12620_v27 }
 0xba7   :  { %7453 = vmatpush.msrb.mxu0 %v12620_v27  ;;  %7979 = vmatpush.msra.mxu2 %v12620_v27 }
 0xba8   :  { %6988 = vmatpush.msra.mxu1 %v12577_v45  ;;  %4759 = vxpose.xlu2.b32.cont [2/16] (narrow) %v4713_v1, 8 }
 0xba9   :  { %7454 = vmatpush.msrb.mxu0 %v12577_v45  ;;  %7980 = vmatpush.msra.mxu2 %v12577_v45 }
 0xbaa   :  { %6989 = vmatpush.msra.mxu1 %v12590_v21  ;;  %8143 = vset.pattern.permute.xlu1 %v14606_v4  ;;  %v12789_v41 = vpop.permute.xlu2 %5839 }
 0xbab   :  { %7455 = vmatpush.msrb.mxu0 %v12590_v21  ;;  %7981 = vmatpush.msra.mxu2 %v12590_v21 }
 0xbac   :  { %6990 = vmatpush.msra.mxu1 %v12567_v11  ;;  %v12775_v15 = vpop.permute.xlu0 %5385 }
 0xbad   :  { %7456 = vmatpush.msrb.mxu0 %v12567_v11  ;;  %7982 = vmatpush.msra.mxu2 %v12567_v11  ;;  %v4723_v47 = vpop.permute.xlu1 %4722 }
 0xbae   :  { %6991 = vmatpush.msra.mxu1 %v12547_v20 }
 0xbaf   :  { %7457 = vmatpush.msrb.mxu0 %v12547_v20  ;;  %7983 = vmatpush.msra.mxu2 %v12547_v20 }
 0xbb0   :  { %6992 = vmatpush.msra.mxu1 %v12550_v29  ;;  %4760 = vxpose.xlu2.b32.cont [3/16] (narrow) %v12640_v5, 8 }
 0xbb1   :  { %7458 = vmatpush.msrb.mxu0 %v12550_v29  ;;  %7984 = vmatpush.msra.mxu2 %v12550_v29 }
 0xbb2   :  { %6993 = vmatpush.msra.mxu1 %v12531_v16  ;;  %v4719_v62 = vpop.permute.xlu2 %4718 }
 0xbb3   :  { %7459 = vmatpush.msrb.mxu0 %v12531_v16  ;;  %7985 = vmatpush.msra.mxu2 %v12531_v16 }
 0xbb4   :  { %6994 = vmatpush.msra.mxu1 %v12520_v52 }
 0xbb5   :  { %7460 = vmatpush.msrb.mxu0 %v12520_v52  ;;  %7986 = vmatpush.msra.mxu2 %v12520_v52  ;;  %v12794_v35 = vpop.permute.xlu1 %4919  ;;  %v12796_v60 = vpop.permute.xlu0 %4923 }
 0xbb6   :  { %6995 = vmatpush.msra.mxu1 %v12511_v46 }
 0xbb7   :  { %7461 = vmatpush.msrb.mxu0 %v12511_v46  ;;  %7987 = vmatpush.msra.mxu2 %v12511_v46 }
 0xbb8   :  { %6996 = vmatpush.msra.mxu1 %v12477_v54  ;;  %4761 = vxpose.xlu2.b32.cont [4/16] (narrow) %v12694_v13, 8 }
 0xbb9   :  { %7462 = vmatpush.msrb.mxu0 %v12477_v54  ;;  %7988 = vmatpush.msra.mxu2 %v12477_v54 }
 0xbba   :  { %6997 = vmatpush.msra.mxu1 %v12464_v63  ;;  %v12818_v17 = vpop.permute.xlu2 %5381 }
 0xbbb   :  { %7463 = vmatpush.msrb.mxu0 %v12464_v63  ;;  %7989 = vmatpush.msra.mxu2 %v12464_v63 }
 0xbbc   :  { %6998 = vmatpush.msra.mxu1 %v12414_v0 }
 0xbbd   :  { %7464 = vmatpush.msrb.mxu0 %v12414_v0  ;;  %7990 = vmatpush.msra.mxu2 %v12414_v0  ;;  %v4727_v39 = vpop.permute.xlu0 %4726 }
 0xbbe   :  { %v12811_v19 = vpop.permute.xlu1 %5389 }
 0xbc0   :  { %4762 = vxpose.xlu2.b32.cont [5/16] (narrow) %v4719_v62, 8 }
 0xbc2   :  { %v4725_v49 = vpop.permute.xlu2 %4724 }
 0xbc5   :  { %v12816_v43 = vpop.permute.xlu0 %5393 }
 0xbc7   :  { %v12813_v50 = vpop.permute.xlu1 %4927 }
 0xbc8   :  { %4763 = vxpose.xlu2.b32.cont [6/16] (narrow) %v12733_v59, 8 }
 0xbca   :  { %v4731_v38 = vpop.permute.xlu2 %4730 }
 0xbce   :  { %v4932_v34 = vpop.permute.xlu0 %4931 }
 0xbcf   :  { %v4729_v24 = vpop.permute.xlu1 %4728 }
 0xbd0   :  { %4764 = vxpose.xlu2.b32.cont [7/16] (narrow) %v4723_v47, 8 }
 0xbd2   :  { %v12828_v7 = vpop.permute.xlu2 %5409 }
 0xbd7   :  { %v12820_v51 = vpop.permute.xlu1 %5397  ;;  %v12822_v42 = vpop.permute.xlu0 %5401 }
 0xbd8   :  { %4765 = vxpose.xlu2.b32.cont [8/16] (narrow) %v4725_v49, 8 }
 0xbda   :  { %v4737_v13 = vpop.permute.xlu2 %4736 }
 0xbdf   :  { %v4733_v53 = vpop.permute.xlu0 %4732 }
 0xbe0   :  { %4766 = vxpose.xlu2.b32.cont [9/16] (narrow) %v4727_v39, 8  ;;  %v12824_v61 = vpop.permute.xlu1 %4935 }
 0xbe2   :  { %v12836_v62 = vpop.permute.xlu2 %5421 }
 0xbe7   :  { %v4940_v9 = vpop.permute.xlu0 %4939 }
 0xbe8   :  { %4767 = vxpose.xlu2.b32.cont [10/16] (narrow) %v4729_v24, 8 }
 0xbe9   :  { %v12826_v14 = vpop.permute.xlu1 %5405 }
 0xbf0   :  { %4768 = vxpose.xlu2.b32.cont [11/16] (narrow) %v4731_v38, 8  ;;  %v4948_v48 = vpop.permute.xlu0 %4947 }
 0xbf1   :  { %v4735_v32 = vpop.permute.xlu1 %4734 }
 0xbf8   :  { %4769 = vxpose.xlu2.b32.cont [12/16] (narrow) %v4733_v53, 8 }
 0xbfa   :  { %v4944_v36 = vpop.permute.xlu1 %4943 }
 0xbfb   :  { %v12830_v22 = vpop.permute.xlu0 %5413 }
 0xc00   :  { %4770 = vxpose.xlu2.b32.cont [13/16] (narrow) %v4735_v32, 8 }
 0xc03   :  { %v12832_v5 = vpop.permute.xlu1 %4951 }
 0xc04   :  { %v4739_v59 = vpop.permute.xlu0 %4738 }
 0xc08   :  { %4771 = vxpose.xlu2.b32.cont [14/16] (narrow) %v4737_v13, 8 }
 0xc10   :  { %v12834_v1 = vpop.permute.xlu1 %5417  ;;  %4772 = vxpose.xlu2.b32.cont [15/16] (narrow) %v4739_v59, 8 }
 0xc18   :  { %v4741_v47 = vpop.permute.xlu1 %4740 }
 0xc19   :  { %4773 = vxpose.xlu2.b32.end [16/16] (narrow) %v4741_v47, 8 }
 0xc3a   :  { %v12838_v39 = vpop.trf.xlu2 }
 0xc3b   :  { %14803 = vst [vmem:[#allocation13_spill] sm:$0xff] %v12838_v39  ;;  %v12841_v24 = vperm.slane %v12838_v39, 0 }
 0xc3d   :  { %v4960_v49 = vadd.f32 %v12841_v24, %v12592_v44  ;;  %v4959_v53 = vadd.f32 %v12841_v24, %v12611_v6  ;;  %v4962_v47 = vadd.f32 %v12841_v24, %v12690_v26  ;;  %v4961_v4 = vadd.f32 %v12841_v24, %v12647_v37 }
 0xc3f   :  { %v4976_v38 = vmul.f32 0.2, %v4960_v49  ;;  %v4975_v32 = vmul.f32 0.2, %v4959_v53  ;;  %v4978_v44 = vmul.f32 0.2, %v4962_v47 }
 0xc40   :  { %v4977_v12 = vmul.f32 0.2, %v4961_v4 }
 0xc41   :  { %v12847_v13 = vmax.f32 %v4960_v49, %v4976_v38  ;;  %v12849_v59 = vmax.f32 %v4959_v53, %v4975_v32  ;;  %v12857_v58 = vmax.f32 %v4962_v47, %v4978_v44  ;;  %v4964_v49 = vadd.f32 %v12841_v24, %v12754_v23 }
 0xc42   :  { %v12859_v6 = vmax.f32 %v4961_v4, %v4977_v12  ;;  %v4963_v53 = vadd.f32 %v12841_v24, %v12713_v57  ;;  %v4966_v4 = vadd.f32 %v12841_v24, %v12796_v60  ;;  %v4965_v12 = vadd.f32 %v12841_v24, %v12794_v35 }
 0xc43   :  { %5009 = vmax.xlane.f32.xlu0 %v12847_v13  ;;  %5007 = vmax.xlane.f32.xlu1 %v12849_v59  ;;  %v4980_v37 = vmul.f32 0.2, %v4964_v49 }
 0xc44   :  { %v4979_v26 = vmul.f32 0.2, %v4963_v53  ;;  %v4982_v57 = vmul.f32 0.2, %v4966_v4  ;;  %v4981_v23 = vmul.f32 0.2, %v4965_v12 }
 0xc45   :  { %v12867_v38 = vmax.f32 %v4964_v49, %v4980_v37  ;;  %v4968_v49 = vadd.f32 %v12841_v24, %v4932_v34 }
 0xc46   :  { %v12869_v32 = vmax.f32 %v4963_v53, %v4979_v26  ;;  %v12877_v47 = vmax.f32 %v4966_v4, %v4982_v57  ;;  %v12879_v44 = vmax.f32 %v4965_v12, %v4981_v23  ;;  %v4967_v53 = vadd.f32 %v12841_v24, %v12813_v50 }
 0xc47   :  { %v4984_v35 = vmul.f32 0.2, %v4968_v49  ;;  %v4970_v4 = vadd.f32 %v12841_v24, %v4940_v9  ;;  %v4969_v12 = vadd.f32 %v12841_v24, %v12824_v61  ;;  %v12904_v61 = vperm.slane %v12838_v39, 1 }
 0xc48   :  { %v4983_v60 = vmul.f32 0.2, %v4967_v53 }
 0xc49   :  { %v12886_v37 = vmax.f32 %v4968_v49, %v4984_v35  ;;  %v4986_v50 = vmul.f32 0.2, %v4970_v4  ;;  %v4985_v34 = vmul.f32 0.2, %v4969_v12  ;;  %v4972_v49 = vadd.f32 %v12841_v24, %v4948_v48 }
 0xc4a   :  { %v12888_v26 = vmax.f32 %v4967_v53, %v4983_v60  ;;  %v4971_v53 = vadd.f32 %v12841_v24, %v4944_v36  ;;  %v4973_v48 = vadd.f32 %v12841_v24, %v12832_v5 }
 0xc4b   :  { %5013 = vmax.xlane.f32.xlu0 %v12857_v58  ;;  %5011 = vmax.xlane.f32.xlu1 %v12859_v6  ;;  %v12895_v57 = vmax.f32 %v4970_v4, %v4986_v50  ;;  %v12897_v23 = vmax.f32 %v4969_v12, %v4985_v34  ;;  %v4988_v9 = vmul.f32 0.2, %v4972_v49  ;;  %v5425_v4 = vadd.f32 %v12904_v61, %v12630_v2 }
 0xc4c   :  { %v4987_v35 = vmul.f32 0.2, %v4971_v53  ;;  %v4989_v12 = vmul.f32 0.2, %v4973_v48  ;;  %v14804_v2 = vmov 57  }
 0xc4d   :  { %v12906_v60 = vmax.f32 %v4972_v49, %v4988_v9  ;;  %v5441_v36 = vmul.f32 0.2, %v5425_v4  ;;  %v5428_v49 = vadd.f32 %v12904_v61, %v12715_v25  ;;  %v5431_v25 = vadd.f32 %v12904_v61, %v12775_v15 }
 0xc4e   :  { %v12908_v52 = vmax.f32 %v4971_v53, %v4987_v35  ;;  %v12918_v34 = vmax.f32 %v4973_v48, %v4989_v12  ;;  %v5426_v53 = vadd.f32 %v12904_v61, %v12607_v33  ;;  %v4956_v35 = vpop.permute.xlu0 %4955  ;;  %v5430_v33 = vadd.f32 %v12904_v61, %v12818_v17 }
 0xc4f   :  { %v12916_v50 = vmax.f32 %v5425_v4, %v5441_v36  ;;  %v5444_v5 = vmul.f32 0.2, %v5428_v49  ;;  %v4974_v4 = vadd.f32 %v12841_v24, %v4956_v35  ;;  %v5427_v24 = vadd.f32 %v12904_v61, %v12672_v3 }
 0xc50   :  { %v5442_v9 = vmul.f32 0.2, %v5426_v53  ;;  %v5446_v63 = vmul.f32 0.2, %v5430_v33  ;;  %v5434_v15 = vadd.f32 %v12904_v61, %v12820_v51  ;;  %v5433_v17 = vadd.f32 %v12904_v61, %v12816_v43 }
 0xc51   :  { %v12928_v36 = vmax.f32 %v5428_v49, %v5444_v5  ;;  %v4990_v12 = vmul.f32 0.2, %v4974_v4  ;;  %v5443_v5 = vmul.f32 0.2, %v5427_v24  ;;  %v5437_v43 = vadd.f32 %v12904_v61, %v12828_v7 }
 0xc52   :  { %v12930_v48 = vmax.f32 %v5426_v53, %v5442_v9  ;;  %v12944_v53 = vmax.f32 %v5430_v33, %v5446_v63  ;;  %v5450_v9 = vmul.f32 0.2, %v5434_v15  ;;  %v5449_v35 = vmul.f32 0.2, %v5433_v17 }
 0xc53   :  { %5017 = vmax.xlane.f32.xlu0 %v12867_v38  ;;  %5015 = vmax.xlane.f32.xlu1 %v12869_v32  ;;  %v12938_v54 = vmax.f32 %v4974_v4, %v4990_v12  ;;  %v12953_v3 = vmax.f32 %v5427_v24, %v5443_v5  ;;  %v5429_v63 = vadd.f32 %v12904_v61, %v12737_v8  ;;  %v5453_v12 = vmul.f32 0.2, %v5437_v43 }
 0xc54   :  { %v12957_v4 = vmax.f32 %v5434_v15, %v5450_v9  ;;  %v12959_v51 = vmax.f32 %v5433_v17, %v5449_v35  ;;  %v5432_v24 = vadd.f32 %v12904_v61, %v12811_v19  ;;  %v5435_v5 = vadd.f32 %v12904_v61, %v12822_v42 }
 0xc55   :  { %v5445_v33 = vmul.f32 0.2, %v5429_v63  ;;  %v12972_v15 = vmax.f32 %v5437_v43, %v5453_v12  ;;  %v5438_v35 = vadd.f32 %v12904_v61, %v12830_v22 }
 0xc56   :  { %v5451_v9 = vmul.f32 0.2, %v5435_v5 }
 0xc57   :  { %v12968_v8 = vmax.f32 %v5429_v63, %v5445_v33  ;;  %v5454_v63 = vmul.f32 0.2, %v5438_v35 }
 0xc58   :  { %v12984_v19 = vmax.f32 %v5435_v5, %v5451_v9  ;;  %v13002_v5 = vld [vmem:[%s14508_s1] sm:$0xff] }
 0xc59   :  { %v12990_v43 = vmax.f32 %v5438_v35, %v5454_v63 }
 0xc5b   :  { %5021 = vmax.xlane.f32.xlu0 %v12877_v47  ;;  %5019 = vmax.xlane.f32.xlu1 %v12879_v44 }
 0xc63   :  { %5025 = vmax.xlane.f32.xlu0 %v12886_v37  ;;  %5023 = vmax.xlane.f32.xlu1 %v12888_v26 }
 0xc6b   :  { %5029 = vmax.xlane.f32.xlu0 %v12895_v57  ;;  %5027 = vmax.xlane.f32.xlu1 %v12897_v23 }
 0xc73   :  { %5033 = vmax.xlane.f32.xlu0 %v12906_v60  ;;  %5031 = vmax.xlane.f32.xlu1 %v12908_v52 }
 0xc7b   :  { %5473 = vmax.xlane.f32.xlu0 %v12916_v50  ;;  %5035 = vmax.xlane.f32.xlu1 %v12918_v34 }
 0xc7c   :  { %8142 = vset.pattern.permute.xlu2 %v14804_v2  ;;  %v5447_v2 = vmul.f32 0.2, %v5431_v25 }
 0xc7e   :  { %v12942_v49 = vmax.f32 %v5431_v25, %v5447_v2  ;;  %v5436_v25 = vadd.f32 %v12904_v61, %v12826_v14  ;;  %v5448_v14 = vmul.f32 0.2, %v5432_v24 }
 0xc80   :  { %v5452_v2 = vmul.f32 0.2, %v5436_v25  ;;  %v12979_v17 = vmax.f32 %v5432_v24, %v5448_v14 }
 0xc82   :  { %v12974_v7 = vmax.f32 %v5436_v25, %v5452_v2 }
 0xc83   :  { %5479 = vmax.xlane.f32.xlu0 %v12928_v36  ;;  %5475 = vmax.xlane.f32.xlu1 %v12930_v48 }
 0xc8a   :  { %5037 = vmax.xlane.f32.xlu2 %v12938_v54 }
 0xc8b   :  { %5485 = vmax.xlane.f32.xlu0 %v12942_v49  ;;  %5483 = vmax.xlane.f32.xlu1 %v12944_v53 }
 0xc92   :  { %5477 = vmax.xlane.f32.xlu2 %v12953_v3 }
 0xc93   :  { %5491 = vmax.xlane.f32.xlu0 %v12957_v4  ;;  %5489 = vmax.xlane.f32.xlu1 %v12959_v51 }
 0xc9a   :  { %5481 = vmax.xlane.f32.xlu2 %v12968_v8 }
 0xc9b   :  { %5497 = vmax.xlane.f32.xlu0 %v12972_v15  ;;  %5495 = vmax.xlane.f32.xlu1 %v12974_v7 }
 0xca2   :  { %5487 = vmax.xlane.f32.xlu2 %v12979_v17 }
 0xcaa   :  { %5493 = vmax.xlane.f32.xlu2 %v12984_v19 }
 0xcaf   :  { %5855 = vperm.xlu0 %8144, %v12547_v20  }
 0xcb2   :  { %5499 = vmax.xlane.f32.xlu2 %v12990_v43 }
 0xcb4   :  { %5851 = vperm.xlu1 %8143, %v12550_v29  }
 0xcb6   :  { %v5010_v42 = vpop.xlane.xlu0 %5009  ;;  %v5008_v25 = vpop.xlane.xlu1 %5007 }
 0xcb7   :  { %v5039_v33 = vsub.f32 %v12849_v59, %v5008_v25  ;;  %5867 = vperm.xlu0 %8144, %v12577_v45   ;;  %v5040_v22 = vsub.f32 %v12847_v13, %v5010_v42 }
 0xcb9   :  { %v5055_v12 = vmul.f32 1.442695, %v5039_v33  ;;  %v5057_v2 = vmul.f32 1.442695, %v5040_v22  ;;  %v13010_v33 = vld [vmem:[%s14508_s1 + $0x8] sm:$0xff] }
 0xcbb   :  { %8742 = vpow2.f32 %v5055_v12 }
 0xcbc   :  { %5863 = vperm.xlu1 %8143, %v12590_v21   ;;  %8744 = vpow2.f32 %v5057_v2 }
 0xcbe   :  { %v5014_v24 = vpop.xlane.xlu0 %5013  ;;  %v5012_v14 = vpop.xlane.xlu1 %5011 }
 0xcbf   :  { %5879 = vperm.xlu0 %8144, %v12614_v30   ;;  %v5041_v59 = vsub.f32 %v12859_v6, %v5012_v14  ;;  %v5042_v12 = vsub.f32 %v12857_v58, %v5014_v24 }
 0xcc1   :  { %v8743_v9 = vpop.eup %8742  ;;  %v5059_v13 = vmul.f32 1.442695, %v5041_v59  ;;  %v5061_v22 = vmul.f32 1.442695, %v5042_v12  ;;  %v13019_v59 = vld [vmem:[%s14508_s1 + $0x10] sm:$0xff] }
 0xcc2   :  { %v5103_v35 = vmul.f32 %v8743_v9, %v13002_v5  ;;  %v8745_v25 = vpop.eup %8744 }
 0xcc3   :  { %8746 = vpow2.f32 %v5059_v13  ;;  %v5104_v6 = vmul.f32 %v8745_v25, %v13010_v33 }
 0xcc4   :  { %5875 = vperm.xlu1 %8143, %v12600_v31   ;;  %5135 = vmatmul.f32.vlgmr.msrb.gmra.mxu1 %v5103_v35  ;;  %8748 = vpow2.f32 %v5061_v22  ;;  %v13043_v31 = vld [vmem:[%s14508_s1 + $0x20] sm:$0xff] }
 0xcc6   :  { %v5018_v63 = vpop.xlane.xlu0 %5017  ;;  %v5016_v42 = vpop.xlane.xlu1 %5015 }
 0xcc7   :  { %v5043_v58 = vsub.f32 %v12869_v32, %v5016_v42 }
 0xcc9   :  { %v8747_v9 = vpop.eup %8746  ;;  %v5063_v35 = vmul.f32 1.442695, %v5043_v58  ;;  %v5440_v58 = vadd.f32 %v12904_v61, %v12836_v62 }
 0xcca   :  { %5847 = vperm.xlu2 %8142, %v12531_v16   ;;  %v5105_v24 = vmul.f32 %v8747_v9, %v13019_v59  ;;  %v8749_v12 = vpop.eup %8748 }
 0xccb   :  { %8750 = vpow2.f32 %v5063_v35  ;;  %v5456_v35 = vmul.f32 0.2, %v5440_v58 }
 0xccc   :  { %5887 = vperm.xlu1 %8143, %v12637_v55   ;;  %5138 = vmatmul.f32.gmra.mxu1 %v5104_v6  ;;  %v13029_v6 = vld [vmem:[%s14508_s1 + $0x18] sm:$0xff]  ;;  %v5044_v55 = vsub.f32 %v12867_v38, %v5018_v63 }
 0xccd   :  { %v5106_v32 = vmul.f32 %v8749_v12, %v13029_v6  ;;  %v13055_v21 = vmax.f32 %v5440_v58, %v5456_v35  ;;  %v5439_v58 = vadd.f32 %v12904_v61, %v12834_v1 }
 0xcce   :  { %v5022_v2 = vpop.xlane.xlu0 %5021  ;;  %v5020_v14 = vpop.xlane.xlu1 %5019  ;;  %v5065_v42 = vmul.f32 1.442695, %v5044_v55  ;;  %v13048_v55 = vperm.slane %v12838_v39, 2 }
 0xccf   :  { %v5045_v38 = vsub.f32 %v12879_v44, %v5020_v14  ;;  %v13062_v14 = vld [vmem:[%s14508_s1 + $0x28] sm:$0xff] }
 0xcd0   :  { %8752 = vpow2.f32 %v5065_v42  ;;  %v5891_v42 = vadd.f32 %v13048_v55, %v12743_v18  ;;  %v5894_v30 = vadd.f32 %v13048_v55, %v12789_v41  ;;  %v5893_v41 = vadd.f32 %v13048_v55, %v12668_v28 }
 0xcd1   :  { %v5067_v12 = vmul.f32 1.442695, %v5045_v38 }
 0xcd2   :  { %5859 = vperm.xlu2 %8142, %v12567_v11  }
 0xcd3   :  { %8754 = vpow2.f32 %v5067_v12  ;;  %v5455_v12 = vmul.f32 0.2, %v5439_v58 }
 0xcd4   :  { %5141 = vmatmul.f32.gmra.mxu1 %v5105_v24  ;;  %v8751_v24 = vpop.eup %8750 }
 0xcd5   :  { %v5107_v63 = vmul.f32 %v8751_v24, %v13043_v31  ;;  %v5046_v24 = vsub.f32 %v12877_v47, %v5022_v2  ;;  %v13079_v2 = vld [vmem:[%s14508_s1 + $0x30] sm:$0xff] }
 0xcd6   :  { %v13024_v13 = vpop.xlane.xlu0 %5025  ;;  %v5024_v25 = vpop.xlane.xlu1 %5023 }
 0xcd7   :  { %v8753_v44 = vpop.eup %8752  ;;  %v5069_v35 = vmul.f32 1.442695, %v5046_v24  ;;  %v5047_v61 = vsub.f32 %v12888_v26, %v5024_v25  ;;  %v13095_v26 = vld [vmem:[%s14508_s1 + $0x38] sm:$0xff]  ;;  %v5909_v25 = vmul.f32 0.2, %v5893_v41  ;;  %v5048_v28 = vsub.f32 %v12886_v37, %v13024_v13  ;;  %v13110_v37 = vld [vmem:[%s14508_s1 + $0x40] sm:$0xff] }
 0xcd8   :  { %v5108_v38 = vmul.f32 %v8753_v44, %v13062_v14  ;;  %v13084_v44 = vmax.f32 %v5439_v58, %v5455_v12 }
 0xcd9   :  { %v8755_v47 = vpop.eup %8754  ;;  %8756 = vpow2.f32 %v5069_v35  ;;  %v5071_v24 = vmul.f32 1.442695, %v5047_v61  ;;  %v13102_v12 = vmax.f32 %v5893_v41, %v5909_v25  ;;  %v5073_v61 = vmul.f32 1.442695, %v5048_v28 }
 0xcda   :  { %5871 = vperm.xlu2 %8142, %v12620_v27  }
 0xcdc   :  { %5144 = vmatmul.f32.gmra.mxu1 %v5106_v32 }
 0xcde   :  { %v13034_v22 = vpop.xlane.xlu0 %5029  ;;  %v13036_v9 = vpop.xlane.xlu1 %5027 }
 0xcdf   :  { %v8757_v35 = vpop.eup %8756  ;;  %v5049_v13 = vsub.f32 %v12897_v23, %v13036_v9 }
 0xce2   :  { %5883 = vperm.xlu2 %8142, %v12643_v56  }
 0xce4   :  { %5147 = vmatmul.f32.gmra.mxu1 %v5107_v63  ;;  %v5907_v63 = vmul.f32 0.2, %v5891_v42 }
 0xce6   :  { %v13051_v62 = vpop.xlane.xlu0 %5033  ;;  %v13053_v32 = vpop.xlane.xlu1 %5031  ;;  %v13072_v29 = vmax.f32 %v5891_v42, %v5907_v63  ;;  %v5910_v42 = vmul.f32 0.2, %v5894_v30 }
 0xce8   :  { %v13090_v63 = vmax.f32 %v5894_v30, %v5910_v42  ;;  %v5110_v30 = vmul.f32 %v8757_v35, %v13095_v26  ;;  %v5892_v42 = vadd.f32 %v13048_v55, %v12628_v40  ;;  %v13125_v40 = vld [vmem:[%s14508_s1 + $0x48] sm:$0xff] }
 0xce9   :  { %5503 = vmax.xlane.f32.xlu0 %v13055_v21 }
 0xcec   :  { %5150 = vmatmul.f32.gmra.mxu1 %v5108_v38 }
 0xcee   :  { %v5474_v18 = vpop.xlane.xlu0 %5473  ;;  %v13069_v39 = vpop.xlane.xlu1 %5035 }
 0xcef   :  { %v5505_v56 = vsub.f32 %v12916_v50, %v5474_v18  ;;  %v5109_v50 = vmul.f32 %v8755_v47, %v13079_v2 }
 0xcf1   :  { %v5521_v1 = vmul.f32 1.442695, %v5505_v56  ;;  %5939 = vmax.xlane.f32.xlu0 %v13072_v29 }
 0xcf3   :  { %8758 = vpow2.f32 %v5521_v1 }
 0xcf4   :  { %5153 = vmatmul.f32.gmra.mxu1 %v5109_v50  ;;  %8760 = vpow2.f32 %v5071_v24 }
 0xcf6   :  { %5501 = vmax.xlane.f32.xlu1 %v13084_v44  ;;  %v5476_v38 = vpop.xlane.xlu1 %5475 }
 0xcf7   :  { %v5506_v56 = vsub.f32 %v12930_v48, %v5476_v38  ;;  %v5480_v48 = vpop.xlane.xlu0 %5479 }
 0xcf8   :  { %v5508_v23 = vsub.f32 %v12928_v36, %v5480_v48 }
 0xcf9   :  { %v8759_v58 = vpop.eup %8758  ;;  %v5523_v18 = vmul.f32 1.442695, %v5506_v56  ;;  %5945 = vmax.xlane.f32.xlu0 %v13090_v63  ;;  %v5075_v56 = vmul.f32 1.442695, %v5049_v13 }
 0xcfa   :  { %v5569_v47 = vmul.f32 %v8759_v58, %v13002_v5  ;;  %v8761_v50 = vpop.eup %8760  ;;  %v5908_v58 = vmul.f32 0.2, %v5892_v42 }
 0xcfb   :  { %8762 = vpow2.f32 %v5523_v18  ;;  %v5111_v24 = vmul.f32 %v8761_v50, %v13110_v37 }
 0xcfc   :  { %5601 = vmatmul.f32.vlgmr.msrb.gmra.mxu2 %v5569_v47  ;;  %5156 = vmatmul.f32.gmra.mxu1 %v5110_v30  ;;  %8764 = vpow2.f32 %v5073_v61  ;;  %v13127_v47 = vmax.f32 %v5892_v42, %v5908_v58  ;;  %v5895_v30 = vadd.f32 %v13048_v55, %v12760_v10  ;;  %v5050_v61 = vsub.f32 %v12895_v57, %v13034_v22  ;;  %v13141_v57 = vld [vmem:[%s14508_s1 + $0x50] sm:$0xff] }
 0xcfd   :  { %v13104_v1 = vpop.xlane.xlu2 %5037  ;;  %8766 = vpow2.f32 %v5075_v56 }
 0xcfe   :  { %5943 = vmax.xlane.f32.xlu1 %v13102_v12  ;;  %v5484_v50 = vpop.xlane.xlu1 %5483  ;;  %v5911_v13 = vmul.f32 0.2, %v5895_v30 }
 0xcff   :  { %v13118_v35 = vpop.xlane.xlu0 %5485 }
 0xd00   :  { %v13143_v22 = vmax.f32 %v5895_v30, %v5911_v13 }
 0xd01   :  { %v8763_v41 = vpop.eup %8762 }
 0xd02   :  { %v5570_v38 = vmul.f32 %v8763_v41, %v13010_v33  ;;  %v8765_v28 = vpop.eup %8764  ;;  %v5077_v41 = vmul.f32 1.442695, %v5050_v61  ;;  %v5510_v61 = vsub.f32 %v12944_v53, %v5484_v50 }
 0xd03   :  { %v5112_v36 = vmul.f32 %v8765_v28, %v13125_v40 }
 0xd04   :  { %5159 = vmatmul.f32.gmra.mxu1 %v5111_v24  ;;  %5604 = vmatmul.f32.gmra.mxu2 %v5570_v38  ;;  %v8767_v24 = vpop.eup %8766  ;;  %v5531_v13 = vmul.f32 1.442695, %v5510_v61 }
 0xd05   :  { %v5478_v25 = vpop.xlane.xlu2 %5477  ;;  %v5113_v58 = vmul.f32 %v8767_v24, %v13141_v57 }
 0xd06   :  { %v5507_v18 = vsub.f32 %v12953_v3, %v5478_v25  ;;  %v5527_v3 = vmul.f32 1.442695, %v5508_v23  ;;  %v5051_v25 = vsub.f32 %v12908_v52, %v13053_v32  ;;  %v13156_v52 = vld [vmem:[%s14508_s1 + $0x58] sm:$0xff] }
 0xd07   :  { %v13135_v42 = vpop.xlane.xlu0 %5491 }
 0xd08   :  { %v5525_v9 = vmul.f32 1.442695, %v5507_v18  ;;  %v13150_v18 = vpop.xlane.xlu1 %5489 }
 0xd0a   :  { %8768 = vpow2.f32 %v5525_v9  ;;  %v5079_v9 = vmul.f32 1.442695, %v5051_v25  ;;  %v5053_v25 = vsub.f32 %v12918_v34, %v13069_v39  ;;  %v13190_v34 = vld [vmem:[%s14508_s1 + $0x68] sm:$0xff] }
 0xd0b   :  { %5941 = vmax.xlane.f32.xlu2 %v13127_v47  ;;  %8770 = vpow2.f32 %v5527_v3  ;;  %v5052_v3 = vsub.f32 %v12906_v60, %v13051_v62  ;;  %v13173_v60 = vld [vmem:[%s14508_s1 + $0x60] sm:$0xff] }
 0xd0c   :  { %5162 = vmatmul.f32.gmra.mxu1 %v5112_v36  ;;  %8772 = vpow2.f32 %v5077_v41 }
 0xd0d   :  { %v5482_v48 = vpop.xlane.xlu2 %5481  ;;  %v5081_v41 = vmul.f32 1.442695, %v5052_v3 }
 0xd0e   :  { %v5509_v10 = vsub.f32 %v12968_v8, %v5482_v48 }
 0xd0f   :  { %v13158_v32 = vpop.xlane.xlu0 %5497 }
 0xd10   :  { %v8769_v38 = vpop.eup %8768  ;;  %v5529_v8 = vmul.f32 1.442695, %v5509_v10  ;;  %v13166_v24 = vpop.xlane.xlu1 %5495  ;;  %v5511_v10 = vsub.f32 %v12942_v49, %v13118_v35 }
 0xd11   :  { %v5571_v56 = vmul.f32 %v8769_v38, %v13019_v59  ;;  %v8771_v23 = vpop.eup %8770 }
 0xd12   :  { %v8773_v30 = vpop.eup %8772  ;;  %8774 = vpow2.f32 %v5529_v8  ;;  %v5572_v36 = vmul.f32 %v8771_v23, %v13029_v6  ;;  %v5533_v23 = vmul.f32 1.442695, %v5511_v10 }
 0xd13   :  { %5947 = vmax.xlane.f32.xlu2 %v13143_v22  ;;  %5607 = vmatmul.f32.gmra.mxu2 %v5571_v56  ;;  %8776 = vpow2.f32 %v5079_v9  ;;  %v5114_v48 = vmul.f32 %v8773_v30, %v13156_v52  ;;  %v5083_v30 = vmul.f32 1.442695, %v5053_v25 }
 0xd14   :  { %5165 = vmatmul.f32.gmra.mxu1 %v5113_v58  ;;  %8778 = vpow2.f32 %v5531_v13 }
 0xd15   :  { %v5488_v28 = vpop.xlane.xlu2 %5487  ;;  %8780 = vpow2.f32 %v5081_v41 }
 0xd16   :  { %8782 = vpow2.f32 %v5533_v23  ;;  %v5512_v39 = vsub.f32 %v12979_v17, %v5488_v28 }
 0xd17   :  { %8784 = vpow2.f32 %v5083_v30 }
 0xd18   :  { %v8775_v50 = vpop.eup %8774  ;;  %v5535_v28 = vmul.f32 1.442695, %v5512_v39 }
 0xd19   :  { %v8777_v38 = vpop.eup %8776  ;;  %v5573_v56 = vmul.f32 %v8775_v50, %v13043_v31 }
 0xd1a   :  { %v5115_v8 = vmul.f32 %v8777_v38, %v13173_v60  ;;  %v8779_v9 = vpop.eup %8778  ;;  %v5054_v38 = vsub.f32 %v12938_v54, %v13104_v1  ;;  %v9169_v1 = vmov 58   ;;  %8786 = vpow2.f32 %v5535_v28 }
 0xd1b   :  { %5610 = vmatmul.f32.gmra.mxu2 %v5572_v36  ;;  %v5574_v41 = vmul.f32 %v8779_v9, %v13062_v14  ;;  %8145 = vset.pattern.permute.xlu2 %v9169_v1 }
 0xd1c   :  { %5168 = vmatmul.f32.gmra.mxu1 %v5114_v48  ;;  %v8781_v48 = vpop.eup %8780  ;;  %8147 = vset.pattern.permute.xlu0 %v9169_v1 }
 0xd1d   :  { %v13164_v53 = vpop.xlane.xlu2 %5493  ;;  %v5116_v17 = vmul.f32 %v8781_v48, %v13190_v34  ;;  %8146 = vset.pattern.permute.xlu1 %v9169_v1  ;;  %v13210_v48 = vld [vmem:[%s14508_s1 + $0x70] sm:$0xff]  ;;  %v5514_v1 = vsub.f32 %v12957_v4, %v13135_v42 }
 0xd1f   :  { %v5539_v4 = vmul.f32 1.442695, %v5514_v1 }
 0xd21   :  { %v5856_v62 = vpop.permute.xlu0 %5855 }
 0xd22   :  { %v5898_v58 = vadd.f32 %v13048_v55, %v5856_v62 }
 0xd23   :  { %5613 = vmatmul.f32.gmra.mxu2 %v5573_v56 }
 0xd24   :  { %v5914_v49 = vmul.f32 0.2, %v5898_v58  ;;  %5171 = vmatmul.f32.gmra.mxu1 %v5115_v8  ;;  %v5085_v8 = vmul.f32 1.442695, %v5054_v38 }
 0xd25   :  { %v13180_v35 = vpop.xlane.xlu2 %5499 }
 0xd26   :  { %v13182_v61 = vmax.f32 %v5898_v58, %v5914_v49  ;;  %v5852_v36 = vpop.permute.xlu1 %5851  ;;  %v8783_v58 = vpop.eup %8782  ;;  %8788 = vpow2.f32 %v5085_v8 }
 0xd27   :  { %v5897_v3 = vadd.f32 %v13048_v55, %v5852_v36  ;;  %v8785_v30 = vpop.eup %8784  ;;  %v5513_v36 = vsub.f32 %v12959_v51, %v13150_v18 }
 0xd28   :  { %5953 = vmax.xlane.f32.xlu2 %v13182_v61  ;;  %v5117_v51 = vmul.f32 %v8785_v30, %v13210_v48  ;;  %v13231_v30 = vld [vmem:[%s14508_s1 + $0x78] sm:$0xff] }
 0xd29   :  { %v5913_v13 = vmul.f32 0.2, %v5897_v3  ;;  %v5868_v50 = vpop.permute.xlu0 %5867  ;;  %v5537_v18 = vmul.f32 1.442695, %v5513_v36 }
 0xd2a   :  { %v5901_v10 = vadd.f32 %v13048_v55, %v5868_v50  ;;  %v5575_v50 = vmul.f32 %v8783_v58, %v13079_v2 }
 0xd2b   :  { %v13196_v62 = vmax.f32 %v5897_v3, %v5913_v13  ;;  %5616 = vmatmul.f32.gmra.mxu2 %v5574_v41  ;;  %8790 = vpow2.f32 %v5537_v18 }
 0xd2c   :  { %v5917_v56 = vmul.f32 0.2, %v5901_v10  ;;  %5174 = vmatmul.f32.gmra.mxu1 %v5116_v17  ;;  %8792 = vpow2.f32 %v5539_v4 }
 0xd2d   :  { %v5848_v25 = vpop.permute.xlu2 %5847  ;;  %5951 = vmax.xlane.f32.xlu0 %v13196_v62 }
 0xd2e   :  { %v13200_v23 = vmax.f32 %v5901_v10, %v5917_v56  ;;  %v5896_v49 = vadd.f32 %v13048_v55, %v5848_v25  ;;  %v5864_v54 = vpop.permute.xlu1 %5863  ;;  %v8787_v56 = vpop.eup %8786 }
 0xd2f   :  { %v5900_v9 = vadd.f32 %v13048_v55, %v5864_v54  ;;  %v8789_v54 = vpop.eup %8788 }
 0xd30   :  { %v5912_v3 = vmul.f32 0.2, %v5896_v49  ;;  %5959 = vmax.xlane.f32.xlu2 %v13200_v23 }
 0xd31   :  { %v5916_v39 = vmul.f32 0.2, %v5900_v9  ;;  %v5880_v13 = vpop.permute.xlu0 %5879 }
 0xd32   :  { %v13213_v41 = vmax.f32 %v5896_v49, %v5912_v3  ;;  %v5904_v38 = vadd.f32 %v13048_v55, %v5880_v13  ;;  %v5576_v3 = vmul.f32 %v8787_v56, %v13095_v26 }
 0xd33   :  { %v13216_v10 = vmax.f32 %v5900_v9, %v5916_v39  ;;  %5619 = vmatmul.f32.gmra.mxu2 %v5575_v50  ;;  %v5118_v50 = vmul.f32 %v8789_v54, %v13231_v30 }
 0xd34   :  { %v5920_v17 = vmul.f32 0.2, %v5904_v38  ;;  %5949 = vmax.xlane.f32.xlu1 %v13213_v41  ;;  %5177 = vmatmul.f32.gmra.mxu1 %v5117_v51 }
 0xd35   :  { %v5860_v28 = vpop.permute.xlu2 %5859  ;;  %5957 = vmax.xlane.f32.xlu0 %v13216_v10 }
 0xd36   :  { %v13221_v25 = vmax.f32 %v5904_v38, %v5920_v17  ;;  %v5899_v58 = vadd.f32 %v13048_v55, %v5860_v28  ;;  %v5876_v8 = vpop.permute.xlu1 %5875  ;;  %v8791_v38 = vpop.eup %8790  ;;  %v5515_v28 = vsub.f32 %v12984_v19, %v13164_v53  ;;  %v5516_v19 = vsub.f32 %v12974_v7, %v13166_v24 }
 0xd37   :  { %v5903_v49 = vadd.f32 %v13048_v55, %v5876_v8  ;;  %v5577_v8 = vmul.f32 %v8791_v38, %v13110_v37 }
 0xd38   :  { %v5915_v9 = vmul.f32 0.2, %v5899_v58  ;;  %5965 = vmax.xlane.f32.xlu2 %v13221_v25  ;;  %v5541_v1 = vmul.f32 1.442695, %v5515_v28 }
 0xd39   :  { %v5919_v36 = vmul.f32 0.2, %v5903_v49 }
 0xd3a   :  { %v13234_v39 = vmax.f32 %v5899_v58, %v5915_v9  ;;  %8794 = vpow2.f32 %v5541_v1 }
 0xd3b   :  { %v13236_v13 = vmax.f32 %v5903_v49, %v5919_v36  ;;  %5622 = vmatmul.f32.gmra.mxu2 %v5576_v3  ;;  %v8793_v36 = vpop.eup %8792 }
 0xd3c   :  { %5955 = vmax.xlane.f32.xlu1 %v13234_v39  ;;  %5180 = vmatmul.f32.gmra.mxu1 %v5118_v50  ;;  %v5578_v50 = vmul.f32 %v8793_v36, %v13125_v40 }
 0xd3d   :  { %v5872_v42 = vpop.permute.xlu2 %5871  ;;  %5963 = vmax.xlane.f32.xlu0 %v13236_v13 }
 0xd3e   :  { %v5902_v51 = vadd.f32 %v13048_v55, %v5872_v42  ;;  %v5888_v18 = vpop.permute.xlu1 %5887  ;;  %v5543_v42 = vmul.f32 1.442695, %v5516_v19 }
 0xd3f   :  { %v5906_v17 = vadd.f32 %v13048_v55, %v5888_v18  ;;  %v5518_v18 = vsub.f32 %v12990_v43, %v13180_v35  ;;  %v14806_v35 = vld [vmem:[#allocation26_spill] sm:$0xff] }
 0xd40   :  { %v5918_v56 = vmul.f32 0.2, %v5902_v51  ;;  %v8795_v38 = vpop.eup %8794  ;;  %8796 = vpow2.f32 %v5543_v42  ;;  %v14807_v42 = vld [vmem:[#allocation20_spill] sm:$0xff] }
 0xd41   :  { %v5922_v58 = vmul.f32 0.2, %v5906_v17 }
 0xd42   :  { %v13246_v49 = vmax.f32 %v5902_v51, %v5918_v56  ;;  %v5517_v51 = vsub.f32 %v12972_v15, %v13158_v32  ;;  %v5547_v15 = vmul.f32 1.442695, %v5518_v18 }
 0xd43   :  { %v13248_v54 = vmax.f32 %v5906_v17, %v5922_v58  ;;  %5625 = vmatmul.f32.gmra.mxu2 %v5577_v8  ;;  %v14805_v17 = vld [vmem:[#allocation23_spill] sm:$0xff] }
 0xd44   :  { %5961 = vmax.xlane.f32.xlu1 %v13246_v49  ;;  %v5545_v7 = vmul.f32 1.442695, %v5517_v51 }
 0xd45   :  { %v5884_v9 = vpop.permute.xlu2 %5883  ;;  %5969 = vmax.xlane.f32.xlu0 %v13248_v54 }
 0xd46   :  { %v5905_v3 = vadd.f32 %v13048_v55, %v5884_v9  ;;  %v5579_v55 = vmul.f32 %v8795_v38, %v13141_v57  ;;  %v8797_v24 = vpop.eup %8796  ;;  %8798 = vpow2.f32 %v5545_v7 }
 0xd47   :  { %v5580_v28 = vmul.f32 %v8797_v24, %v13156_v52  ;;  %8800 = vpow2.f32 %v5547_v15  ;;  %v14809_v24 = vld [vmem:[#allocation21_spill] sm:$0xff] }
 0xd48   :  { %v5921_v53 = vmul.f32 0.2, %v5905_v3 }
 0xd4a   :  { %v13256_v4 = vmax.f32 %v5905_v3, %v5921_v53 }
 0xd4b   :  { %5628 = vmatmul.f32.gmra.mxu2 %v5578_v50 }
 0xd4c   :  { %5967 = vmax.xlane.f32.xlu1 %v13256_v4  ;;  %v8799_v56 = vpop.eup %8798 }
 0xd4d   :  { %v5581_v58 = vmul.f32 %v8799_v56, %v13173_v60  ;;  %v8801_v1 = vpop.eup %8800 }
 0xd4e   :  { %v5582_v3 = vmul.f32 %v8801_v1, %v13190_v34  ;;  %v14812_v1 = vld [vmem:[#allocation28_spill] sm:$0xff] }
 0xd50   :  { %6293 = vperm.xlu2 %8145, %v12414_v0  }
 0xd53   :  { %5631 = vmatmul.f32.gmra.mxu2 %v5579_v55  ;;  %v14808_v55 = vld [vmem:[#allocation29_spill] sm:$0xff] }
 0xd58   :  { %6305 = vperm.xlu2 %8145, %v12511_v46  }
 0xd59   :  { %6301 = vperm.xlu0 %8147, %v14805_v17  }
 0xd5b   :  { %5634 = vmatmul.f32.gmra.mxu2 %v5580_v28  ;;  %v14811_v28 = vld [vmem:[#allocation14_spill] sm:$0xff] }
 0xd5c   :  { %v5504_v32 = vpop.xlane.xlu0 %5503 }
 0xd5d   :  { %v5520_v53 = vsub.f32 %v13055_v21, %v5504_v32  ;;  %v14810_v21 = vld [vmem:[#allocation9_spill] sm:$0xff] }
 0xd5f   :  { %v5551_v38 = vmul.f32 1.442695, %v5520_v53 }
 0xd60   :  { %6313 = vperm.xlu2 %8145, %v12531_v16  }
 0xd61   :  { %6321 = vperm.xlu0 %8147, %v12547_v20  }
 0xd63   :  { %5637 = vmatmul.f32.gmra.mxu2 %v5581_v58 }
 0xd64   :  { %v5940_v8 = vpop.xlane.xlu0 %5939 }
 0xd65   :  { %v5971_v43 = vsub.f32 %v13072_v29, %v5940_v8  ;;  %6297 = vperm.xlu1 %8146, %v14806_v35  }
 0xd67   :  { %v5987_v9 = vmul.f32 1.442695, %v5971_v43 }
 0xd68   :  { %6325 = vperm.xlu2 %8145, %v12567_v11  }
 0xd69   :  { %8802 = vpow2.f32 %v5987_v9  ;;  %6333 = vperm.xlu0 %8147, %v12577_v45   ;;  %v5502_v36 = vpop.xlane.xlu1 %5501 }
 0xd6a   :  { %v5519_v19 = vsub.f32 %v13084_v44, %v5502_v36 }
 0xd6b   :  { %5640 = vmatmul.f32.gmra.mxu2 %v5582_v3 }
 0xd6c   :  { %v5549_v50 = vmul.f32 1.442695, %v5519_v19  ;;  %v5946_v9 = vpop.xlane.xlu0 %5945 }
 0xd6d   :  { %6309 = vperm.xlu1 %8146, %v14807_v42   ;;  %v5974_v3 = vsub.f32 %v13090_v63, %v5946_v9  ;;  %v14814_v9 = vld [vmem:[#allocation13_spill] sm:$0xff] }
 0xd6e   :  { %8804 = vpow2.f32 %v5549_v50  ;;  %v14813_v50 = vld [vmem:[#allocation11_spill] sm:$0xff] }
 0xd6f   :  { %v8803_v29 = vpop.eup %8802  ;;  %8806 = vpow2.f32 %v5551_v38  ;;  %v5993_v53 = vmul.f32 1.442695, %v5974_v3 }
 0xd70   :  { %v6035_v51 = vmul.f32 %v8803_v29, %v13002_v5  ;;  %6337 = vperm.xlu2 %8145, %v12620_v27  }
 0xd71   :  { %6345 = vperm.xlu0 %8147, %v14808_v55   ;;  %v5944_v5 = vpop.xlane.xlu1 %5943 }
 0xd72   :  { %6067 = vmatmul.f32.vlgmr.msrb.gmra.mxu3 %v6035_v51  ;;  %v5973_v58 = vsub.f32 %v13102_v12, %v5944_v5 }
 0xd74   :  { %v8805_v7 = vpop.eup %8804  ;;  %v5991_v43 = vmul.f32 1.442695, %v5973_v58 }
 0xd75   :  { %6317 = vperm.xlu1 %8146, %v14809_v24   ;;  %v5583_v44 = vmul.f32 %v8805_v7, %v13210_v48  ;;  %v8807_v18 = vpop.eup %8806 }
 0xd76   :  { %v5584_v15 = vmul.f32 %v8807_v18, %v13231_v30 }
 0xd77   :  { %5643 = vmatmul.f32.gmra.mxu2 %v5583_v44 }
 0xd78   :  { %6349 = vperm.xlu2 %8145, %v14810_v21  }
 0xd7d   :  { %6329 = vperm.xlu1 %8146, %v14811_v28  }
 0xd7e   :  { %v5942_v32 = vpop.xlane.xlu2 %5941 }
 0xd7f   :  { %v5972_v56 = vsub.f32 %v13127_v47, %v5942_v32  ;;  %5646 = vmatmul.f32.gmra.mxu2 %v5584_v15 }
 0xd81   :  { %v5989_v8 = vmul.f32 1.442695, %v5972_v56 }
 0xd83   :  { %8808 = vpow2.f32 %v5989_v8 }
 0xd84   :  { %8810 = vpow2.f32 %v5991_v43 }
 0xd85   :  { %6341 = vperm.xlu1 %8146, %v14812_v1   ;;  %8812 = vpow2.f32 %v5993_v53 }
 0xd86   :  { %v5948_v47 = vpop.xlane.xlu2 %5947 }
 0xd87   :  { %v5975_v12 = vsub.f32 %v13143_v22, %v5948_v47 }
 0xd89   :  { %v8809_v36 = vpop.eup %8808  ;;  %v5995_v51 = vmul.f32 1.442695, %v5975_v12 }
 0xd8a   :  { %v6036_v19 = vmul.f32 %v8809_v36, %v13010_v33  ;;  %v8811_v29 = vpop.eup %8810  ;;  %v13302_v36 = vperm.slane %v14814_v9, 3 }
 0xd8b   :  { %v6037_v38 = vmul.f32 %v8811_v29, %v13019_v59  ;;  %v8813_v7 = vpop.eup %8812  ;;  %8814 = vpow2.f32 %v5995_v51 }
 0xd8c   :  { %6070 = vmatmul.f32.gmra.mxu3 %v6036_v19  ;;  %v6038_v63 = vmul.f32 %v8813_v7, %v13029_v6 }
 0xd8d   :  { %6353 = vperm.xlu1 %8146, %v14813_v50  }
 0xd91   :  { %v8815_v33 = vpop.eup %8814 }
 0xd92   :  { %v6039_v18 = vmul.f32 %v8815_v33, %v13043_v31 }
 0xd94   :  { %6073 = vmatmul.f32.gmra.mxu3 %v6037_v38 }
 0xd9b   :  { %v5954_v44 = vpop.xlane.xlu2 %5953 }
 0xd9c   :  { %6076 = vmatmul.f32.gmra.mxu3 %v6038_v63  ;;  %v5978_v31 = vsub.f32 %v13182_v61, %v5954_v44 }
 0xda0   :  { %v5952_v5 = vpop.xlane.xlu0 %5951 }
 0xda1   :  { %v5977_v22 = vsub.f32 %v13196_v62, %v5952_v5  ;;  %v6001_v62 = vmul.f32 1.442695, %v5978_v31 }
 0xda3   :  { %v5960_v15 = vpop.xlane.xlu2 %5959  ;;  %v5999_v8 = vmul.f32 1.442695, %v5977_v22 }
 0xda4   :  { %6079 = vmatmul.f32.gmra.mxu3 %v6039_v18 }
 0xda7   :  { %v5950_v32 = vpop.xlane.xlu1 %5949 }
 0xda8   :  { %v5976_v56 = vsub.f32 %v13213_v41, %v5950_v32  ;;  %v5958_v43 = vpop.xlane.xlu0 %5957 }
 0xda9   :  { %v5980_v5 = vsub.f32 %v13216_v10, %v5958_v43 }
 0xdaa   :  { %v5997_v59 = vmul.f32 1.442695, %v5976_v56 }
 0xdab   :  { %v13299_v58 = vpop.xlane.xlu2 %5965 }
 0xdac   :  { %8816 = vpow2.f32 %v5997_v59 }
 0xdad   :  { %8818 = vpow2.f32 %v5999_v8  ;;  %v5981_v8 = vsub.f32 %v13200_v23, %v5960_v15 }
 0xdae   :  { %8820 = vpow2.f32 %v6001_v62 }
 0xdaf   :  { %v5956_v47 = vpop.xlane.xlu1 %5955  ;;  %v6007_v43 = vmul.f32 1.442695, %v5981_v8  ;;  %v5984_v8 = vsub.f32 %v13221_v25, %v13299_v58 }
 0xdb0   :  { %v5964_v38 = vpop.xlane.xlu0 %5963  ;;  %v5979_v51 = vsub.f32 %v13234_v39, %v5956_v47 }
 0xdb2   :  { %v8817_v6 = vpop.eup %8816  ;;  %v6003_v63 = vmul.f32 1.442695, %v5979_v51 }
 0xdb3   :  { %v6294_v3 = vpop.permute.xlu2 %6293  ;;  %v6040_v19 = vmul.f32 %v8817_v6, %v13062_v14  ;;  %v8819_v29 = vpop.eup %8818 }
 0xdb4   :  { %v6357_v41 = vadd.f32 %v13302_v36, %v6294_v3  ;;  %v6041_v7 = vmul.f32 %v8819_v29, %v13079_v2  ;;  %v8821_v33 = vpop.eup %8820  ;;  %8822 = vpow2.f32 %v6003_v63  ;;  %v6005_v2 = vmul.f32 1.442695, %v5980_v5 }
 0xdb5   :  { %6082 = vmatmul.f32.gmra.mxu3 %v6040_v19  ;;  %v6042_v39 = vmul.f32 %v8821_v33, %v13095_v26  ;;  %v5983_v63 = vsub.f32 %v13236_v13, %v5964_v38 }
 0xdb6   :  { %v6373_v53 = vmul.f32 0.2, %v6357_v41  ;;  %8824 = vpow2.f32 %v6005_v2 }
 0xdb7   :  { %v5962_v56 = vpop.xlane.xlu1 %5961  ;;  %8826 = vpow2.f32 %v6007_v43 }
 0xdb8   :  { %v13307_v12 = vmax.f32 %v6357_v41, %v6373_v53  ;;  %v13317_v32 = vpop.xlane.xlu0 %5969  ;;  %v5982_v23 = vsub.f32 %v13246_v49, %v5962_v56  ;;  %v6011_v56 = vmul.f32 1.442695, %v5983_v63 }
 0xdba   :  { %6405 = vmax.xlane.f32.xlu0 %v13307_v12  ;;  %v8823_v59 = vpop.eup %8822  ;;  %v6009_v47 = vmul.f32 1.442695, %v5982_v23  ;;  %v9170_v23 = vmov 60  }
 0xdbb   :  { %v6306_v61 = vpop.permute.xlu2 %6305  ;;  %v6043_v31 = vmul.f32 %v8823_v59, %v13110_v37  ;;  %8150 = vset.pattern.permute.xlu1 %v9170_v23 }
 0xdbc   :  { %v6360_v14 = vadd.f32 %v13302_v36, %v6306_v61  ;;  %v8825_v41 = vpop.eup %8824  ;;  %8828 = vpow2.f32 %v6009_v47 }
 0xdbd   :  { %6085 = vmatmul.f32.gmra.mxu3 %v6041_v7  ;;  %v6044_v37 = vmul.f32 %v8825_v41, %v13125_v40  ;;  %v8827_v51 = vpop.eup %8826  ;;  %8830 = vpow2.f32 %v6011_v56  ;;  %v6013_v41 = vmul.f32 1.442695, %v5984_v8  ;;  %v5986_v56 = vsub.f32 %v13248_v54, %v13317_v32 }
 0xdbe   :  { %v6376_v44 = vmul.f32 0.2, %v6360_v14  ;;  %v6045_v40 = vmul.f32 %v8827_v51, %v13141_v57 }
 0xdbf   :  { %v13323_v19 = vpop.xlane.xlu1 %5967  ;;  %8832 = vpow2.f32 %v6013_v41 }
 0xdc0   :  { %v13313_v18 = vmax.f32 %v6360_v14, %v6376_v44  ;;  %v5985_v47 = vsub.f32 %v13256_v4, %v13323_v19 }
 0xdc2   :  { %6411 = vmax.xlane.f32.xlu0 %v13313_v18 }
 0xdc3   :  { %v6314_v22 = vpop.permute.xlu2 %6313 }
 0xdc4   :  { %v6362_v26 = vadd.f32 %v13302_v36, %v6314_v22  ;;  %v8829_v22 = vpop.eup %8828 }
 0xdc5   :  { %6088 = vmatmul.f32.gmra.mxu3 %v6042_v39  ;;  %v8831_v25 = vpop.eup %8830 }
 0xdc6   :  { %v6378_v15 = vmul.f32 0.2, %v6362_v26  ;;  %v6047_v51 = vmul.f32 %v8831_v25, %v13173_v60  ;;  %v8833_v4 = vpop.eup %8832 }
 0xdc8   :  { %v13331_v61 = vmax.f32 %v6362_v26, %v6378_v15 }
 0xdcb   :  { %v6302_v6 = vpop.permute.xlu0 %6301  ;;  %v6326_v53 = vpop.permute.xlu2 %6325 }
 0xdcc   :  { %v6359_v10 = vadd.f32 %v13302_v36, %v6302_v6  ;;  %v6365_v7 = vadd.f32 %v13302_v36, %v6326_v53  ;;  %v6046_v6 = vmul.f32 %v8829_v22, %v13156_v52  ;;  %v6048_v22 = vmul.f32 %v8833_v4, %v13190_v34 }
 0xdcd   :  { %6091 = vmatmul.f32.gmra.mxu3 %v6043_v31 }
 0xdce   :  { %v6375_v3 = vmul.f32 0.2, %v6359_v10  ;;  %v6381_v33 = vmul.f32 0.2, %v6365_v7 }
 0xdd0   :  { %v13326_v62 = vmax.f32 %v6359_v10, %v6375_v3  ;;  %v13341_v59 = vmax.f32 %v6365_v7, %v6381_v33 }
 0xdd2   :  { %6409 = vmax.xlane.f32.xlu1 %v13326_v62 }
 0xdd3   :  { %v6338_v49 = vpop.permute.xlu2 %6337  ;;  %v6322_v39 = vpop.permute.xlu0 %6321 }
 0xdd4   :  { %v6368_v13 = vadd.f32 %v13302_v36, %v6338_v49  ;;  %v6364_v10 = vadd.f32 %v13302_v36, %v6322_v39  ;;  %v6015_v49 = vmul.f32 1.442695, %v5985_v47 }
 0xdd5   :  { %6094 = vmatmul.f32.gmra.mxu3 %v6044_v37 }
 0xdd6   :  { %v6384_v31 = vmul.f32 0.2, %v6368_v13  ;;  %v6380_v37 = vmul.f32 0.2, %v6364_v10  ;;  %8834 = vpow2.f32 %v6015_v49 }
 0xdd7   :  { %v6298_v29 = vpop.permute.xlu1 %6297 }
 0xdd8   :  { %v6358_v14 = vadd.f32 %v13302_v36, %v6298_v29  ;;  %v13354_v58 = vmax.f32 %v6368_v13, %v6384_v31  ;;  %v13362_v7 = vmax.f32 %v6364_v10, %v6380_v37 }
 0xdda   :  { %v6374_v44 = vmul.f32 0.2, %v6358_v14  ;;  %6415 = vmax.xlane.f32.xlu1 %v13331_v61 }
 0xddb   :  { %v6350_v3 = vpop.permute.xlu2 %6349  ;;  %v6334_v26 = vpop.permute.xlu0 %6333 }
 0xddc   :  { %v13338_v5 = vmax.f32 %v6358_v14, %v6374_v44  ;;  %v6371_v52 = vadd.f32 %v13302_v36, %v6350_v3  ;;  %v6367_v63 = vadd.f32 %v13302_v36, %v6334_v26  ;;  %v8835_v32 = vpop.eup %8834 }
 0xddd   :  { %6097 = vmatmul.f32.gmra.mxu3 %v6045_v40  ;;  %v6049_v3 = vmul.f32 %v8835_v32, %v13210_v48 }
 0xdde   :  { %6407 = vmax.xlane.f32.xlu2 %v13338_v5  ;;  %v6387_v14 = vmul.f32 0.2, %v6371_v52  ;;  %v6383_v33 = vmul.f32 0.2, %v6367_v63 }
 0xddf   :  { %v6310_v2 = vpop.permute.xlu1 %6309 }
 0xde0   :  { %v6361_v38 = vadd.f32 %v13302_v36, %v6310_v2  ;;  %v13369_v19 = vmax.f32 %v6371_v52, %v6387_v14  ;;  %v13376_v13 = vmax.f32 %v6367_v63, %v6383_v33  ;;  %v13428_v33 = vld [vmem:[%s14508_s1 + $0x8] sm:$0xff] }
 0xde2   :  { %v6377_v57 = vmul.f32 0.2, %v6361_v38  ;;  %6421 = vmax.xlane.f32.xlu1 %v13341_v59 }
 0xde3   :  { %v6346_v39 = vpop.permute.xlu0 %6345 }
 0xde4   :  { %v13350_v43 = vmax.f32 %v6361_v38, %v6377_v57  ;;  %v6370_v38 = vadd.f32 %v13302_v36, %v6346_v39  ;;  %v9171_v57 = vmov 59  }
 0xde5   :  { %6100 = vmatmul.f32.gmra.mxu3 %v6046_v6  ;;  %8149 = vset.pattern.permute.xlu2 %v9171_v57  ;;  %v6017_v6 = vmul.f32 1.442695, %v5986_v56 }
 0xde6   :  { %6413 = vmax.xlane.f32.xlu2 %v13350_v43  ;;  %8148 = vset.pattern.permute.xlu0 %v9171_v57  ;;  %v6386_v34 = vmul.f32 0.2, %v6370_v38 }
 0xde7   :  { %v6318_v53 = vpop.permute.xlu1 %6317  ;;  %8836 = vpow2.f32 %v6017_v6 }
 0xde8   :  { %v6363_v15 = vadd.f32 %v13302_v36, %v6318_v53  ;;  %v13387_v41 = vmax.f32 %v6370_v38, %v6386_v34 }
 0xdea   :  { %v6379_v29 = vmul.f32 0.2, %v6363_v15  ;;  %6427 = vmax.xlane.f32.xlu1 %v13354_v58 }
 0xdec   :  { %v13365_v44 = vmax.f32 %v6363_v15, %v6379_v29 }
 0xded   :  { %6103 = vmatmul.f32.gmra.mxu3 %v6047_v51  ;;  %v8837_v25 = vpop.eup %8836 }
 0xdee   :  { %6419 = vmax.xlane.f32.xlu2 %v13362_v7  ;;  %6417 = vmax.xlane.f32.xlu0 %v13365_v44  ;;  %v6050_v15 = vmul.f32 %v8837_v25, %v13231_v30 }
 0xdef   :  { %v6330_v40 = vpop.permute.xlu1 %6329 }
 0xdf0   :  { %v6366_v60 = vadd.f32 %v13302_v36, %v6330_v40 }
 0xdf2   :  { %v6382_v2 = vmul.f32 0.2, %v6366_v60  ;;  %6433 = vmax.xlane.f32.xlu1 %v13369_v19 }
 0xdf4   :  { %v13379_v8 = vmax.f32 %v6366_v60, %v6382_v2 }
 0xdf5   :  { %6106 = vmatmul.f32.gmra.mxu3 %v6048_v22  ;;  %v13435_v22 = vld [vmem:[%s14508_s1 + $0x10] sm:$0xff] }
 0xdf6   :  { %6425 = vmax.xlane.f32.xlu2 %v13376_v13  ;;  %6423 = vmax.xlane.f32.xlu0 %v13379_v8 }
 0xdf7   :  { %v6342_v54 = vpop.permute.xlu1 %6341 }
 0xdf8   :  { %v6369_v31 = vadd.f32 %v13302_v36, %v6342_v54 }
 0xdfa   :  { %v6385_v10 = vmul.f32 0.2, %v6369_v31 }
 0xdfc   :  { %v13389_v26 = vmax.f32 %v6369_v31, %v6385_v10  ;;  %v13444_v31 = vld [vmem:[%s14508_s1 + $0x18] sm:$0xff] }
 0xdfd   :  { %6109 = vmatmul.f32.gmra.mxu3 %v6049_v3 }
 0xdfe   :  { %6431 = vmax.xlane.f32.xlu2 %v13387_v41  ;;  %6429 = vmax.xlane.f32.xlu0 %v13389_v26 }
 0xdff   :  { %v6354_v53 = vpop.permute.xlu1 %6353 }
 0xe00   :  { %v6372_v37 = vadd.f32 %v13302_v36, %v6354_v53 }
 0xe02   :  { %v6388_v52 = vmul.f32 0.2, %v6372_v37 }
 0xe04   :  { %v13395_v47 = vmax.f32 %v6372_v37, %v6388_v52 }
 0xe05   :  { %6112 = vmatmul.f32.gmra.mxu3 %v6050_v15  ;;  %v13455_v15 = vld [vmem:[%s14508_s1 + $0x20] sm:$0xff] }
 0xe06   :  { %6435 = vmax.xlane.f32.xlu0 %v13395_v47 }
 0xe0b   :  { %7229 = vperm.xlu1 %8150, %v14806_v35  }
 0xe13   :  { %7233 = vperm.xlu1 %8150, %v14805_v17  }
 0xe16   :  { %6763 = vperm.xlu2 %8149, %v14806_v35  }
 0xe1a   :  { %6759 = vperm.xlu0 %8148, %v12414_v0  }
 0xe1b   :  { %8151 = vset.pattern.permute.xlu1 %v9171_v57 }
 0xe1c   :  { %6775 = vperm.xlu1 %8151, %v14807_v42  }
 0xe1e   :  { %6767 = vperm.xlu2 %8149, %v14805_v17  }
 0xe22   :  { %6771 = vperm.xlu0 %8148, %v12511_v46  }
 0xe24   :  { %8152 = vset.pattern.permute.xlu1 %v9170_v23 }
 0xe25   :  { %7245 = vperm.xlu1 %8152, %v12531_v16  }
 0xe26   :  { %6779 = vperm.xlu2 %8149, %v12531_v16   ;;  %v13419_v16 = vld [vmem:[%s14508_s1] sm:$0xff] }
 0xe2a   :  { %6787 = vperm.xlu0 %8148, %v12547_v20  }
 0xe2d   :  { %8153 = vset.pattern.permute.xlu1 %v9171_v57  ;;  %v6406_v48 = vpop.xlane.xlu0 %6405 }
 0xe2e   :  { %v6437_v30 = vsub.f32 %v13307_v12, %v6406_v48  ;;  %6783 = vperm.xlu1 %8153, %v14809_v24   ;;  %8155 = vset.pattern.permute.xlu2 %v9170_v23 }
 0xe30   :  { %v6453_v17 = vmul.f32 1.442695, %v6437_v30 }
 0xe32   :  { %8838 = vpow2.f32 %v6453_v17  ;;  %8154 = vset.pattern.permute.xlu0 %v9170_v23  ;;  %v13462_v17 = vperm.slane %v14814_v9, 4 }
 0xe33   :  { %7241 = vperm.xlu0 %8154, %v14807_v42  }
 0xe35   :  { %v6412_v40 = vpop.xlane.xlu0 %6411 }
 0xe38   :  { %v8839_v35 = vpop.eup %8838 }
 0xe39   :  { %v6501_v36 = vmul.f32 %v8839_v35, %v13419_v16 }
 0xe3b   :  { %6533 = vmatmul.f32.vlgmr.msra.gmra.mxu0 %v6501_v36  ;;  %7249 = vperm.xlu0 %8154, %v14809_v24   ;;  %v6440_v24 = vsub.f32 %v13313_v18, %v6412_v40 }
 0xe45   :  { %v6410_v12 = vpop.xlane.xlu1 %6409 }
 0xe46   :  { %v6439_v14 = vsub.f32 %v13326_v62, %v6410_v12 }
 0xe48   :  { %v6457_v49 = vmul.f32 1.442695, %v6439_v14  ;;  %v13470_v14 = vld [vmem:[%s14508_s1 + $0x28] sm:$0xff] }
 0xe4d   :  { %v6416_v42 = vpop.xlane.xlu1 %6415 }
 0xe4e   :  { %v6442_v3 = vsub.f32 %v13331_v61, %v6416_v42 }
 0xe50   :  { %v6463_v53 = vmul.f32 1.442695, %v6442_v3 }
 0xe51   :  { %v6408_v29 = vpop.xlane.xlu2 %6407 }
 0xe52   :  { %v6438_v51 = vsub.f32 %v13338_v5, %v6408_v29  ;;  %v6459_v5 = vmul.f32 1.442695, %v6440_v24 }
 0xe54   :  { %v6455_v63 = vmul.f32 1.442695, %v6438_v51 }
 0xe55   :  { %v6422_v62 = vpop.xlane.xlu1 %6421 }
 0xe56   :  { %8840 = vpow2.f32 %v6455_v63 }
 0xe57   :  { %8842 = vpow2.f32 %v6457_v49 }
 0xe58   :  { %8844 = vpow2.f32 %v6459_v5 }
 0xe59   :  { %v6414_v4 = vpop.xlane.xlu2 %6413 }
 0xe5a   :  { %v6441_v38 = vsub.f32 %v13350_v43, %v6414_v4 }
 0xe5c   :  { %v8841_v60 = vpop.eup %8840  ;;  %v6461_v18 = vmul.f32 1.442695, %v6441_v38  ;;  %v6445_v38 = vsub.f32 %v13341_v59, %v6422_v62 }
 0xe5d   :  { %v6502_v39 = vmul.f32 %v8841_v60, %v13428_v33  ;;  %v8843_v2 = vpop.eup %8842  ;;  %v13446_v10 = vpop.xlane.xlu1 %6427 }
 0xe5e   :  { %v6503_v6 = vmul.f32 %v8843_v2, %v13435_v22  ;;  %v8845_v34 = vpop.eup %8844  ;;  %8846 = vpow2.f32 %v6461_v18  ;;  %v6469_v3 = vmul.f32 1.442695, %v6445_v38 }
 0xe5f   :  { %6536 = vmatmul.f32.gmra.mxu0 %v6502_v39  ;;  %v6504_v43 = vmul.f32 %v8845_v34, %v13444_v31  ;;  %8848 = vpow2.f32 %v6463_v53  ;;  %v13500_v53 = vld [vmem:[%s14508_s1 + $0x38] sm:$0xff] }
 0xe61   :  { %v6420_v56 = vpop.xlane.xlu2 %6419  ;;  %v6418_v54 = vpop.xlane.xlu0 %6417 }
 0xe62   :  { %v6443_v48 = vsub.f32 %v13365_v44, %v6418_v54  ;;  %v13473_v44 = vperm.slane %v14814_v9, 5  ;;  %v6444_v63 = vsub.f32 %v13362_v7, %v6420_v56  ;;  %v13487_v56 = vld [vmem:[%s14508_s1 + $0x30] sm:$0xff] }
 0xe64   :  { %v8847_v52 = vpop.eup %8846  ;;  %v6465_v35 = vmul.f32 1.442695, %v6443_v48  ;;  %v6467_v24 = vmul.f32 1.442695, %v6444_v63 }
 0xe65   :  { %v13458_v30 = vpop.xlane.xlu1 %6433  ;;  %v6505_v61 = vmul.f32 %v8847_v52, %v13455_v15  ;;  %v8849_v12 = vpop.eup %8848 }
 0xe66   :  { %8850 = vpow2.f32 %v6465_v35  ;;  %v6506_v40 = vmul.f32 %v8849_v12, %v13470_v14 }
 0xe67   :  { %6539 = vmatmul.f32.gmra.mxu0 %v6503_v6  ;;  %8852 = vpow2.f32 %v6467_v24 }
 0xe68   :  { %8854 = vpow2.f32 %v6469_v3 }
 0xe69   :  { %v13439_v32 = vpop.xlane.xlu2 %6425  ;;  %v6424_v25 = vpop.xlane.xlu0 %6423 }
 0xe6a   :  { %v6446_v59 = vsub.f32 %v13379_v8, %v6424_v25  ;;  %v6447_v8 = vsub.f32 %v13376_v13, %v13439_v32  ;;  %v13526_v13 = vld [vmem:[%s14508_s1 + $0x48] sm:$0xff]  ;;  %v6448_v32 = vsub.f32 %v13354_v58, %v13446_v10 }
 0xe6c   :  { %v8851_v2 = vpop.eup %8850 }
 0xe6d   :  { %v6507_v18 = vmul.f32 %v8851_v2, %v13487_v56 }
 0xe6f   :  { %6542 = vmatmul.f32.gmra.mxu0 %v6504_v43  ;;  %v8853_v43 = vpop.eup %8852 }
 0xe70   :  { %v8855_v63 = vpop.eup %8854 }
 0xe71   :  { %v13450_v37 = vpop.xlane.xlu2 %6431  ;;  %v13464_v29 = vpop.xlane.xlu0 %6429 }
 0xe72   :  { %v6449_v58 = vsub.f32 %v13389_v26, %v13464_v29  ;;  %v6450_v26 = vsub.f32 %v13387_v41, %v13450_v37  ;;  %v6451_v41 = vsub.f32 %v13369_v19, %v13458_v30 }
 0xe77   :  { %6545 = vmatmul.f32.gmra.mxu0 %v6505_v61  ;;  %v6508_v61 = vmul.f32 %v8853_v43, %v13500_v53 }
 0xe79   :  { %v6764_v36 = vpop.permute.xlu2 %6763  ;;  %v13490_v6 = vpop.xlane.xlu0 %6435 }
 0xe7a   :  { %v6824_v51 = vadd.f32 %v13462_v17, %v6764_v36  ;;  %v6471_v36 = vmul.f32 1.442695, %v6446_v59  ;;  %v6475_v59 = vmul.f32 1.442695, %v6448_v32  ;;  %v13565_v32 = vld [vmem:[%s14508_s1 + $0x60] sm:$0xff] }
 0xe7c   :  { %v6840_v42 = vmul.f32 0.2, %v6824_v51  ;;  %8856 = vpow2.f32 %v6471_v36 }
 0xe7d   :  { %v7230_v49 = vpop.permute.xlu1 %7229 }
 0xe7e   :  { %v13477_v4 = vmax.f32 %v6824_v51, %v6840_v42  ;;  %v7290_v60 = vadd.f32 %v13473_v44, %v7230_v49  ;;  %v13511_v42 = vld [vmem:[%s14508_s1 + $0x40] sm:$0xff] }
 0xe7f   :  { %6548 = vmatmul.f32.gmra.mxu0 %v6506_v40 }
 0xe80   :  { %v7306_v39 = vmul.f32 0.2, %v7290_v60  ;;  %6873 = vmax.xlane.f32.xlu1 %v13477_v4 }
 0xe81   :  { %v6768_v5 = vpop.permute.xlu2 %6767 }
 0xe82   :  { %v13481_v9 = vmax.f32 %v7290_v60, %v7306_v39  ;;  %v6825_v7 = vadd.f32 %v13462_v17, %v6768_v5  ;;  %v6509_v60 = vmul.f32 %v8855_v63, %v13511_v42  ;;  %v6473_v5 = vmul.f32 1.442695, %v6447_v8 }
 0xe84   :  { %v6841_v54 = vmul.f32 0.2, %v6825_v7  ;;  %7339 = vmax.xlane.f32.xlu0 %v13481_v9  ;;  %8858 = vpow2.f32 %v6473_v5 }
 0xe85   :  { %v7234_v62 = vpop.permute.xlu1 %7233  ;;  %8860 = vpow2.f32 %v6475_v59 }
 0xe86   :  { %v13494_v34 = vmax.f32 %v6825_v7, %v6841_v54  ;;  %v7291_v12 = vadd.f32 %v13473_v44, %v7234_v62  ;;  %v8857_v54 = vpop.eup %8856 }
 0xe87   :  { %6551 = vmatmul.f32.gmra.mxu0 %v6507_v18  ;;  %v6510_v43 = vmul.f32 %v8857_v54, %v13526_v13 }
 0xe88   :  { %6875 = vmax.xlane.f32.xlu1 %v13494_v34  ;;  %v7307_v49 = vmul.f32 0.2, %v7291_v12 }
 0xe89   :  { %v6780_v36 = vpop.permute.xlu2 %6779 }
 0xe8a   :  { %v13518_v2 = vmax.f32 %v7291_v12, %v7307_v49  ;;  %v6477_v12 = vmul.f32 1.442695, %v6449_v58  ;;  %v13577_v58 = vld [vmem:[%s14508_s1 + $0x68] sm:$0xff] }
 0xe8c   :  { %v6760_v52 = vpop.permute.xlu0 %6759  ;;  %8862 = vpow2.f32 %v6477_v12 }
 0xe8d   :  { %v6823_v48 = vadd.f32 %v13462_v17, %v6760_v52  ;;  %v8859_v52 = vpop.eup %8858 }
 0xe8e   :  { %v6776_v24 = vpop.permute.xlu1 %6775  ;;  %v8861_v8 = vpop.eup %8860 }
 0xe8f   :  { %v6839_v35 = vmul.f32 0.2, %v6823_v48  ;;  %6554 = vmatmul.f32.gmra.mxu0 %v6508_v61  ;;  %v6827_v7 = vadd.f32 %v13462_v17, %v6776_v24 }
 0xe91   :  { %v13506_v51 = vmax.f32 %v6823_v48, %v6839_v35  ;;  %v6843_v3 = vmul.f32 0.2, %v6827_v7  ;;  %v13540_v48 = vld [vmem:[%s14508_s1 + $0x50] sm:$0xff] }
 0xe92   :  { %v6511_v61 = vmul.f32 %v8859_v52, %v13540_v48  ;;  %v8863_v5 = vpop.eup %8862 }
 0xe93   :  { %6871 = vmax.xlane.f32.xlu2 %v13506_v51  ;;  %v13535_v62 = vmax.f32 %v6827_v7, %v6843_v3  ;;  %v6513_v37 = vmul.f32 %v8863_v5, %v13565_v32 }
 0xe94   :  { %v6772_v25 = vpop.permute.xlu0 %6771 }
 0xe95   :  { %v6826_v40 = vadd.f32 %v13462_v17, %v6772_v25  ;;  %v6828_v25 = vadd.f32 %v13462_v17, %v6780_v36 }
 0xe97   :  { %v6842_v39 = vmul.f32 0.2, %v6826_v40  ;;  %6557 = vmatmul.f32.gmra.mxu0 %v6509_v60  ;;  %v6844_v60 = vmul.f32 0.2, %v6828_v25  ;;  %v7246_v36 = vpop.permute.xlu1 %7245 }
 0xe99   :  { %v13521_v38 = vmax.f32 %v6826_v40, %v6842_v39  ;;  %v13553_v40 = vld [vmem:[%s14508_s1 + $0x58] sm:$0xff]  ;;  %v6479_v39 = vmul.f32 1.442695, %v6450_v26  ;;  %v13559_v7 = vmax.f32 %v6828_v25, %v6844_v60 }
 0xe9a   :  { %v6512_v29 = vmul.f32 %v8861_v8, %v13553_v40 }
 0xe9b   :  { %6877 = vmax.xlane.f32.xlu1 %v13521_v38  ;;  %7341 = vmax.xlane.f32.xlu2 %v13518_v2  ;;  %8864 = vpow2.f32 %v6479_v39 }
 0xe9c   :  { %v13532_v18 = vpop.permute.xlu0 %6787 }
 0xe9d   :  { %v6830_v25 = vadd.f32 %v13462_v17, %v13532_v18 }
 0xe9f   :  { %6560 = vmatmul.f32.gmra.mxu0 %v6510_v43  ;;  %v6481_v43 = vmul.f32 1.442695, %v6451_v41 }
 0xea0   :  { %v6784_v12 = vpop.permute.xlu1 %6783 }
 0xea1   :  { %v8865_v59 = vpop.eup %8864  ;;  %8866 = vpow2.f32 %v6481_v43 }
 0xea2   :  { %v6514_v19 = vmul.f32 %v8865_v59, %v13577_v58 }
 0xea3   :  { %6879 = vmax.xlane.f32.xlu1 %v13535_v62 }
 0xea5   :  { %v7242_v10 = vpop.permute.xlu0 %7241 }
 0xea6   :  { %v7293_v35 = vadd.f32 %v13473_v44, %v7242_v10 }
 0xea7   :  { %6563 = vmatmul.f32.gmra.mxu0 %v6511_v61  ;;  %v8867_v10 = vpop.eup %8866  ;;  %v6499_v61 = vld [vmem:[%s14508_s1 + $0x70] sm:$0xff] }
 0xea8   :  { %v7309_v63 = vmul.f32 0.2, %v7293_v35 }
 0xeaa   :  { %v13548_v49 = vmax.f32 %v7293_v35, %v7309_v63  ;;  %v6515_v35 = vmul.f32 %v8867_v10, %v6499_v61  ;;  %v6829_v63 = vadd.f32 %v13462_v17, %v6784_v12 }
 0xeac   :  { %7345 = vmax.xlane.f32.xlu1 %v13548_v49  ;;  %v6845_v8 = vmul.f32 0.2, %v6829_v63 }
 0xead   :  { %v7250_v24 = vpop.permute.xlu0 %7249 }
 0xeae   :  { %v7295_v54 = vadd.f32 %v13473_v44, %v7250_v24  ;;  %v13598_v26 = vmax.f32 %v6829_v63, %v6845_v8 }
 0xeaf   :  { %6566 = vmatmul.f32.gmra.mxu0 %v6512_v29  ;;  %v6846_v29 = vmul.f32 0.2, %v6830_v25 }
 0xeb0   :  { %v7311_v3 = vmul.f32 0.2, %v7295_v54 }
 0xeb1   :  { %v13601_v60 = vmax.f32 %v6830_v25, %v6846_v29 }
 0xeb2   :  { %v13572_v52 = vmax.f32 %v7295_v54, %v7311_v3 }
 0xeb3   :  { %7237 = vperm.xlu2 %8155, %v12511_v46   ;;  %v6452_v46 = vsub.f32 %v13395_v47, %v13490_v6  ;;  %v6500_v47 = vld [vmem:[%s14508_s1 + $0x78] sm:$0xff] }
 0xeb4   :  { %6881 = vmax.xlane.f32.xlu1 %v13559_v7 }
 0xeb5   :  { %v6483_v30 = vmul.f32 1.442695, %v6452_v46 }
 0xeb7   :  { %6569 = vmatmul.f32.gmra.mxu0 %v6513_v37  ;;  %8868 = vpow2.f32 %v6483_v30 }
 0xebb   :  { %7253 = vperm.xlu2 %8155, %v12547_v20  }
 0xebc   :  { %7349 = vmax.xlane.f32.xlu1 %v13572_v52 }
 0xebd   :  { %v8869_v20 = vpop.eup %8868 }
 0xebe   :  { %v6516_v6 = vmul.f32 %v8869_v20, %v6500_v47 }
 0xebf   :  { %6572 = vmatmul.f32.gmra.mxu0 %v6514_v19 }
 0xec3   :  { %7261 = vperm.xlu2 %8155, %v14811_v28  }
 0xec7   :  { %6575 = vmatmul.f32.gmra.mxu0 %v6515_v35 }
 0xecb   :  { %8156 = vset.pattern.permute.xlu2 %v9171_v57 }
 0xecf   :  { %6578 = vmatmul.f32.gmra.mxu0 %v6516_v6 }
 0xed5   :  { %6791 = vperm.xlu1 %8153, %v12567_v11  }
 0xedd   :  { %6815 = vperm.xlu1 %8153, %v14810_v21  }
 0xee5   :  { %8159 = vset.pattern.permute.xlu1 %v9170_v23 }
 0xeec   :  { %6883 = vmax.xlane.f32.xlu2 %v13598_v26 }
 0xef3   :  { %v6874_v54 = vpop.xlane.xlu1 %6873 }
 0xef4   :  { %6885 = vmax.xlane.f32.xlu2 %v13601_v60  ;;  %v6904_v46 = vsub.f32 %v13477_v4, %v6874_v54 }
 0xef6   :  { %v6921_v19 = vmul.f32 1.442695, %v6904_v46 }
 0xef7   :  { %v7340_v24 = vpop.xlane.xlu0 %7339 }
 0xef8   :  { %v7370_v39 = vsub.f32 %v13481_v9, %v7340_v24 }
 0xefa   :  { %v7387_v5 = vmul.f32 1.442695, %v7370_v39 }
 0xefb   :  { %v6876_v18 = vpop.xlane.xlu1 %6875 }
 0xefc   :  { %8870 = vpow2.f32 %v7387_v5  ;;  %v6905_v20 = vsub.f32 %v13494_v34, %v6876_v18  ;;  %v7294_v34 = vadd.f32 %v13473_v44, %v7246_v36 }
 0xefe   :  { %v6923_v4 = vmul.f32 1.442695, %v6905_v20  ;;  %v7310_v39 = vmul.f32 0.2, %v7294_v34 }
 0xf00   :  { %v13625_v36 = vmax.f32 %v7294_v34, %v7310_v39 }
 0xf02   :  { %v8871_v41 = vpop.eup %8870 }
 0xf03   :  { %v7434_v37 = vmul.f32 %v8871_v41, %v13428_v33 }
 0xf05   :  { %7468 = vmatmul.f32.vlgmr.msra.gmra.mxu2 %v7434_v37 }
 0xf06   :  { %v6872_v3 = vpop.xlane.xlu2 %6871 }
 0xf07   :  { %v6903_v43 = vsub.f32 %v13506_v51, %v6872_v3 }
 0xf09   :  { %v6919_v59 = vmul.f32 1.442695, %v6903_v43 }
 0xf0b   :  { %8872 = vpow2.f32 %v6919_v59 }
 0xf0c   :  { %6795 = vperm.xlu2 %8156, %v14811_v28   ;;  %8874 = vpow2.f32 %v6921_v19 }
 0xf0e   :  { %v7342_v30 = vpop.xlane.xlu2 %7341  ;;  %v6878_v9 = vpop.xlane.xlu1 %6877 }
 0xf0f   :  { %v7371_v10 = vsub.f32 %v13518_v2, %v7342_v30  ;;  %v6906_v2 = vsub.f32 %v13521_v38, %v6878_v9 }
 0xf11   :  { %v8873_v61 = vpop.eup %8872  ;;  %v7389_v35 = vmul.f32 1.442695, %v7371_v10  ;;  %v6925_v24 = vmul.f32 1.442695, %v6906_v2 }
 0xf12   :  { %v6967_v47 = vmul.f32 %v8873_v61, %v13419_v16  ;;  %v8875_v12 = vpop.eup %8874 }
 0xf13   :  { %8876 = vpow2.f32 %v7389_v35  ;;  %v6968_v29 = vmul.f32 %v8875_v12, %v13428_v33 }
 0xf14   :  { %6999 = vmatmul.f32.vlgmr.msra.gmra.mxu1 %v6967_v47  ;;  %6799 = vperm.xlu2 %8156, %v12577_v45   ;;  %8878 = vpow2.f32 %v6923_v4 }
 0xf15   :  { %8880 = vpow2.f32 %v6925_v24 }
 0xf16   :  { %v7238_v51 = vpop.permute.xlu2 %7237  ;;  %v6880_v6 = vpop.xlane.xlu1 %6879 }
 0xf17   :  { %v7292_v28 = vadd.f32 %v13473_v44, %v7238_v51  ;;  %v6907_v41 = vsub.f32 %v13535_v62, %v6880_v6 }
 0xf19   :  { %v8877_v63 = vpop.eup %8876  ;;  %v7308_v8 = vmul.f32 0.2, %v7292_v28  ;;  %v6927_v18 = vmul.f32 1.442695, %v6907_v41 }
 0xf1a   :  { %v7435_v25 = vmul.f32 %v8877_v63, %v13435_v22  ;;  %v8879_v54 = vpop.eup %8878 }
 0xf1b   :  { %v13617_v16 = vmax.f32 %v7292_v28, %v7308_v8  ;;  %v6969_v33 = vmul.f32 %v8879_v54, %v13435_v22  ;;  %v8881_v59 = vpop.eup %8880  ;;  %8882 = vpow2.f32 %v6927_v18 }
 0xf1c   :  { %7471 = vmatmul.f32.gmra.mxu2 %v7435_v25  ;;  %6803 = vperm.xlu2 %8156, %v12620_v27   ;;  %v6970_v62 = vmul.f32 %v8881_v59, %v13444_v31 }
 0xf1d   :  { %7002 = vmatmul.f32.gmra.mxu1 %v6968_v29  ;;  %7343 = vmax.xlane.f32.xlu0 %v13617_v16 }
 0xf1e   :  { %v7254_v38 = vpop.permute.xlu2 %7253 }
 0xf1f   :  { %v13622_v5 = vpop.xlane.xlu1 %7345  ;;  %v7296_v37 = vadd.f32 %v13473_v44, %v7254_v38 }
 0xf20   :  { %v7373_v18 = vsub.f32 %v13548_v49, %v13622_v5 }
 0xf21   :  { %v7312_v3 = vmul.f32 0.2, %v7296_v37  ;;  %v8883_v30 = vpop.eup %8882 }
 0xf22   :  { %v6971_v9 = vmul.f32 %v8883_v30, %v13455_v15 }
 0xf23   :  { %v13632_v19 = vmax.f32 %v7296_v37, %v7312_v3 }
 0xf24   :  { %6811 = vperm.xlu2 %8156, %v14808_v55  }
 0xf25   :  { %7005 = vmatmul.f32.gmra.mxu1 %v6969_v33  ;;  %7347 = vmax.xlane.f32.xlu0 %v13625_v36 }
 0xf26   :  { %v7262_v4 = vpop.permute.xlu2 %7261 }
 0xf27   :  { %v6882_v43 = vpop.xlane.xlu1 %6881  ;;  %v7298_v34 = vadd.f32 %v13473_v44, %v7262_v4 }
 0xf28   :  { %v6908_v46 = vsub.f32 %v13559_v7, %v6882_v43  ;;  %v7393_v43 = vmul.f32 1.442695, %v7373_v18 }
 0xf2a   :  { %v6929_v22 = vmul.f32 1.442695, %v6908_v46 }
 0xf2c   :  { %8158 = vset.pattern.permute.xlu2 %v9170_v23  ;;  %8884 = vpow2.f32 %v6929_v22 }
 0xf2d   :  { %7008 = vmatmul.f32.gmra.mxu1 %v6970_v62  ;;  %7351 = vmax.xlane.f32.xlu0 %v13632_v19 }
 0xf2f   :  { %v7350_v7 = vpop.xlane.xlu1 %7349 }
 0xf32   :  { %v8885_v10 = vpop.eup %8884 }
 0xf33   :  { %v6972_v61 = vmul.f32 %v8885_v10, %v13470_v14 }
 0xf35   :  { %7011 = vmatmul.f32.gmra.mxu1 %v6971_v9  ;;  %v7375_v9 = vsub.f32 %v13572_v52, %v7350_v7 }
 0xf3d   :  { %7014 = vmatmul.f32.gmra.mxu1 %v6972_v61 }
 0xf41   :  { %7257 = vperm.xlu0 %8154, %v12567_v11  }
 0xf47   :  { %v6792_v35 = vpop.permute.xlu1 %6791 }
 0xf48   :  { %v6831_v20 = vadd.f32 %v13462_v17, %v6792_v35 }
 0xf49   :  { %7273 = vperm.xlu0 %8154, %v14812_v1  }
 0xf4a   :  { %v6847_v23 = vmul.f32 0.2, %v6831_v20 }
 0xf4c   :  { %v13642_v47 = vmax.f32 %v6831_v20, %v6847_v23 }
 0xf4e   :  { %6887 = vmax.xlane.f32.xlu2 %v13642_v47 }
 0xf51   :  { %7281 = vperm.xlu0 %8154, %v14810_v21  }
 0xf59   :  { %8157 = vset.pattern.permute.xlu0 %v9171_v57 }
 0xf5a   :  { %6807 = vperm.xlu0 %8157, %v14812_v1  }
 0xf5f   :  { %v6884_v51 = vpop.xlane.xlu2 %6883 }
 0xf60   :  { %v6909_v11 = vsub.f32 %v13598_v26, %v6884_v51 }
 0xf62   :  { %v6931_v6 = vmul.f32 1.442695, %v6909_v11  ;;  %6819 = vperm.xlu0 %8157, %v14813_v50  }
 0xf64   :  { %8886 = vpow2.f32 %v6931_v6 }
 0xf67   :  { %v6886_v28 = vpop.xlane.xlu2 %6885 }
 0xf68   :  { %v6910_v12 = vsub.f32 %v13601_v60, %v6886_v28  ;;  %v7314_v60 = vmul.f32 0.2, %v7298_v34 }
 0xf6a   :  { %v8887_v63 = vpop.eup %8886  ;;  %v6933_v8 = vmul.f32 1.442695, %v6910_v12  ;;  %v13658_v24 = vmax.f32 %v7298_v34, %v7314_v60 }
 0xf6b   :  { %v6973_v2 = vmul.f32 %v8887_v63, %v13487_v56 }
 0xf6c   :  { %8888 = vpow2.f32 %v6933_v8 }
 0xf6d   :  { %7017 = vmatmul.f32.gmra.mxu1 %v6973_v2 }
 0xf6f   :  { %v6796_v21 = vpop.permute.xlu2 %6795 }
 0xf70   :  { %v6832_v57 = vadd.f32 %v13462_v17, %v6796_v21 }
 0xf72   :  { %v8889_v1 = vpop.eup %8888  ;;  %v6848_v25 = vmul.f32 0.2, %v6832_v57 }
 0xf73   :  { %v6974_v26 = vmul.f32 %v8889_v1, %v13500_v53  ;;  %v13689_v1 = vpop.f32.mrf.mxu1 }
 0xf74   :  { %v13655_v29 = vmax.f32 %v6832_v57, %v6848_v25 }
 0xf75   :  { %7020 = vmatmul.f32.gmra.mxu1 %v6974_v26 }
 0xf76   :  { %6889 = vmax.xlane.f32.xlu2 %v13655_v29 }
 0xf77   :  { %v6800_v39 = vpop.permute.xlu2 %6799 }
 0xf78   :  { %v6833_v54 = vadd.f32 %v13462_v17, %v6800_v39 }
 0xf7a   :  { %v6849_v38 = vmul.f32 0.2, %v6833_v54 }
 0xf7c   :  { %v13662_v41 = vmax.f32 %v6833_v54, %v6849_v38 }
 0xf7e   :  { %7355 = vmax.xlane.f32.xlu2 %v13658_v24 }
 0xf8c   :  { %6891 = vmax.xlane.f32.xlu0 %v13662_v41 }
 0xf90   :  { %v7344_v37 = vpop.xlane.xlu0 %7343 }
 0xf91   :  { %v7372_v33 = vsub.f32 %v13617_v16, %v7344_v37  ;;  %v13695_v37 = vpop.f32.mrf.mxu1 }
 0xf93   :  { %v7391_v3 = vmul.f32 1.442695, %v7372_v33 }
 0xf95   :  { %8890 = vpow2.f32 %v7391_v3 }
 0xf96   :  { %7265 = vperm.xlu2 %8158, %v12577_v45   ;;  %8892 = vpow2.f32 %v7393_v43  ;;  %v7397_v45 = vmul.f32 1.442695, %v7375_v9 }
 0xf98   :  { %v7348_v59 = vpop.xlane.xlu0 %7347 }
 0xf99   :  { %v7374_v62 = vsub.f32 %v13625_v36, %v7348_v59 }
 0xf9b   :  { %v8891_v46 = vpop.eup %8890  ;;  %v7395_v30 = vmul.f32 1.442695, %v7374_v62 }
 0xf9c   :  { %v7436_v22 = vmul.f32 %v8891_v46, %v13444_v31  ;;  %v8893_v16 = vpop.eup %8892  ;;  %v6804_v31 = vpop.permute.xlu2 %6803 }
 0xf9d   :  { %8894 = vpow2.f32 %v7395_v30  ;;  %v7437_v49 = vmul.f32 %v8893_v16, %v13455_v15  ;;  %v6834_v59 = vadd.f32 %v13462_v17, %v6804_v31 }
 0xf9e   :  { %7474 = vmatmul.f32.gmra.mxu2 %v7436_v22  ;;  %7285 = vperm.xlu2 %8158, %v14813_v50   ;;  %8896 = vpow2.f32 %v7397_v45  ;;  %v13703_v45 = vpop.f32.mrf.mxu1 }
 0xf9f   :  { %v6850_v22 = vmul.f32 0.2, %v6834_v59 }
 0xfa0   :  { %v7352_v5 = vpop.xlane.xlu0 %7351 }
 0xfa1   :  { %v7376_v61 = vsub.f32 %v13632_v19, %v7352_v5  ;;  %v6866_v16 = vmax.f32 %v6834_v59, %v6850_v22  ;;  %v13706_v5 = vpop.permute.xlu1 %6815 }
 0xfa3   :  { %v8895_v10 = vpop.eup %8894  ;;  %v7399_v35 = vmul.f32 1.442695, %v7376_v61 }
 0xfa4   :  { %v7438_v36 = vmul.f32 %v8895_v10, %v13470_v14  ;;  %v8897_v50 = vpop.eup %8896  ;;  %v6812_v51 = vpop.permute.xlu2 %6811 }
 0xfa5   :  { %8898 = vpow2.f32 %v7399_v35  ;;  %v7439_v7 = vmul.f32 %v8897_v50, %v13487_v56  ;;  %v6836_v28 = vadd.f32 %v13462_v17, %v6812_v51 }
 0xfa6   :  { %7477 = vmatmul.f32.gmra.mxu2 %v7437_v49  ;;  %v13711_v31 = vpop.f32.mrf.mxu1 }
 0xfa7   :  { %v6852_v8 = vmul.f32 0.2, %v6836_v28 }
 0xfa9   :  { %v13685_v21 = vmax.f32 %v6836_v28, %v6852_v8 }
 0xfab   :  { %v8899_v4 = vpop.eup %8898 }
 0xfac   :  { %v7440_v14 = vmul.f32 %v8899_v4, %v13500_v53 }
 0xfae   :  { %7480 = vmatmul.f32.gmra.mxu2 %v7438_v36 }
 0xfb3   :  { %v7258_v20 = vpop.permute.xlu0 %7257 }
 0xfb4   :  { %v7297_v52 = vadd.f32 %v13473_v44, %v7258_v20 }
 0xfb6   :  { %v7313_v15 = vmul.f32 0.2, %v7297_v52  ;;  %7483 = vmatmul.f32.gmra.mxu2 %v7439_v7  ;;  %v13717_v7 = vpop.f32.mrf.mxu2 }
 0xfb8   :  { %v7329_v23 = vmax.f32 %v7297_v52, %v7313_v15  ;;  %v9172_v52 = vmov 48  }
 0xfb9   :  { %8161 = vset.pattern.permute.xlu0 %v9172_v52  ;;  %8162 = vset.pattern.permute.xlu2 %v9172_v52 }
 0xfba   :  { %7353 = vmax.xlane.f32.xlu1 %v7329_v23 }
 0xfbb   :  { %v7274_v11 = vpop.permute.xlu0 %7273 }
 0xfbc   :  { %v7301_v19 = vadd.f32 %v13473_v44, %v7274_v11 }
 0xfbe   :  { %v7317_v6 = vmul.f32 0.2, %v7301_v19  ;;  %7486 = vmatmul.f32.gmra.mxu2 %v7440_v14  ;;  %v13729_v11 = vpop.f32.mrf.mxu2 }
 0xfc0   :  { %v13681_v12 = vmax.f32 %v7301_v19, %v7317_v6 }
 0xfc1   :  { %v6888_v63 = vpop.xlane.xlu2 %6887 }
 0xfc2   :  { %v6911_v56 = vsub.f32 %v13642_v47, %v6888_v63  ;;  %7361 = vmax.xlane.f32.xlu0 %v13681_v12 }
 0xfc3   :  { %v13691_v25 = vpop.permute.xlu0 %7281 }
 0xfc4   :  { %v6935_v2 = vmul.f32 1.442695, %v6911_v56 }
 0xfc6   :  { %8900 = vpow2.f32 %v6935_v2 }
 0xfca   :  { %6897 = vmax.xlane.f32.xlu0 %v13685_v21 }
 0xfcc   :  { %v8901_v57 = vpop.eup %8900  ;;  %v6808_v60 = vpop.permute.xlu0 %6807 }
 0xfcd   :  { %v6975_v53 = vmul.f32 %v8901_v57, %v13511_v42 }
 0xfcf   :  { %7023 = vmatmul.f32.gmra.mxu1 %v6975_v53 }
 0xfd4   :  { %v13697_v33 = vpop.permute.xlu0 %6819 }
 0xfe9   :  { %v6890_v26 = vpop.xlane.xlu2 %6889 }
 0xfea   :  { %v6912_v47 = vsub.f32 %v13655_v29, %v6890_v26 }
 0xfec   :  { %v6937_v34 = vmul.f32 1.442695, %v6912_v47 }
 0xfee   :  { %8902 = vpow2.f32 %v6937_v34 }
 0xff1   :  { %v7356_v39 = vpop.xlane.xlu2 %7355 }
 0xff2   :  { %v7378_v61 = vsub.f32 %v13658_v24, %v7356_v39 }
 0xff4   :  { %v8903_v54 = vpop.eup %8902  ;;  %v7403_v35 = vmul.f32 1.442695, %v7378_v61 }
 0xff5   :  { %v6976_v38 = vmul.f32 %v8903_v54, %v13526_v13  ;;  %v13747_v54 = vpop.f32.mrf.mxu3 }
 0xff7   :  { %7026 = vmatmul.f32.gmra.mxu1 %v6976_v38 }
 0xff9   :  { %v7266_v18 = vpop.permute.xlu2 %7265 }
 0xffa   :  { %v7299_v3 = vadd.f32 %v13473_v44, %v7266_v18 }
 0xffc   :  { %v7315_v43 = vmul.f32 0.2, %v7299_v3 }
 0xffe   :  { %v7331_v46 = vmax.f32 %v7299_v3, %v7315_v43 }
 0xfff   :  { %v6892_v29 = vpop.xlane.xlu0 %6891 }
0x1000   :  { %v6913_v62 = vsub.f32 %v13662_v41, %v6892_v29  ;;  %7357 = vmax.xlane.f32.xlu1 %v7331_v46 }
0x1002   :  { %v6939_v30 = vmul.f32 1.442695, %v6913_v62 }
0x1004   :  { %8904 = vpow2.f32 %v6939_v30 }
0x1008   :  { %6893 = vmax.xlane.f32.xlu1 %v6866_v16 }
0x100a   :  { %v8905_v9 = vpop.eup %8904 }
0x100b   :  { %v6977_v49 = vmul.f32 %v8905_v9, %v13540_v48 }
0x100d   :  { %7029 = vmatmul.f32.gmra.mxu1 %v6977_v49 }
0x1021   :  { %7269 = vperm.xlu1 %8159, %v12620_v27   ;;  %v13714_v27 = vpop.f32.mrf.mxu1 }
0x1029   :  { %7277 = vperm.xlu1 %8159, %v14808_v55  }
0x102d   :  { %v7354_v10 = vpop.xlane.xlu1 %7353 }
0x102e   :  { %v7377_v41 = vsub.f32 %v7329_v23, %v7354_v10  ;;  %v6835_v23 = vadd.f32 %v13462_v17, %v6808_v60 }
0x1030   :  { %v7401_v36 = vmul.f32 1.442695, %v7377_v41  ;;  %v6837_v41 = vadd.f32 %v13462_v17, %v13706_v5 }
0x1031   :  { %7225 = vperm.xlu1 %8159, %v12414_v0   ;;  %v13719_v0 = vpop.f32.mrf.mxu1 }
0x1032   :  { %8906 = vpow2.f32 %v7401_v36 }
0x1033   :  { %8908 = vpow2.f32 %v7403_v35 }
0x1034   :  { %8910 = vrcp.f32 %v13695_v37 }
0x1035   :  { %8912 = vrcp.f32 %v13703_v45 }
0x1038   :  { %v8907_v50 = vpop.eup %8906 }
0x1039   :  { %v7441_v20 = vmul.f32 %v8907_v50, %v13511_v42  ;;  %8160 = vset.pattern.permute.xlu1 %v9172_v52  ;;  %v8909_v55 = vpop.eup %8908  ;;  %v13721_v15 = vpop.f32.mrf.mxu1  ;;  %v6851_v42 = vmul.f32 0.2, %v6835_v23  ;;  %v6853_v50 = vmul.f32 0.2, %v6837_v41 }
0x103a   :  { %v7442_v24 = vmul.f32 %v8909_v55, %v13526_v13  ;;  %v13733_v13 = vpop.f32.mrf.mxu2  ;;  %v8911_v28 = vpop.eup %8910 }
0x103b   :  { %7489 = vmatmul.f32.gmra.mxu2 %v7441_v20  ;;  %v13724_v4 = vmax.f32 %v6835_v23, %v6851_v42  ;;  %v8913_v53 = vpop.eup %8912  ;;  %v13783_v5 = vmax.f32 %v6837_v41, %v6853_v50  ;;  %v7303_v42 = vadd.f32 %v13473_v44, %v13691_v25 }
0x1041   :  { %v13726_v51 = vpop.f32.mrf.mxu1 }
0x1042   :  { %v13738_v6 = vpop.f32.mrf.mxu2 }
0x1043   :  { %7492 = vmatmul.f32.gmra.mxu2 %v7442_v24 }
0x1049   :  { %v13731_v19 = vpop.f32.mrf.mxu1 }
0x104a   :  { %v13743_v57 = vpop.f32.mrf.mxu2 }
0x1051   :  { %v13736_v14 = vpop.f32.mrf.mxu1 }
0x1052   :  { %v13751_v18 = vpop.f32.mrf.mxu2 }
0x1059   :  { %v13741_v2 = vpop.f32.mrf.mxu1 }
0x105a   :  { %14815 = vst [vmem:[#allocation15_spill] sm:$0xff] %v13741_v2  ;;  %v13759_v62 = vpop.f32.mrf.mxu2 }
0x105b   :  { %6895 = vmax.xlane.f32.xlu1 %v13724_v4 }
0x1061   :  { %v13749_v38 = vpop.f32.mrf.mxu1 }
0x1062   :  { %v13768_v49 = vpop.f32.mrf.mxu2 }
0x106a   :  { %v13781_v23 = vpop.f32.mrf.mxu2 }
0x1073   :  { %v7358_v63 = vpop.xlane.xlu1 %7357 }
0x1074   :  { %v7379_v56 = vsub.f32 %v7331_v46, %v7358_v63  ;;  %5223 = vperm.xlu1 %8160, %v8911_v28   ;;  %v13755_v46 = vpop.f32.mrf.mxu3  ;;  %v6838_v28 = vadd.f32 %v13462_v17, %v13697_v33 }
0x1075   :  { %14816 = vst [vmem:[#allocation24_spill] sm:$0xff] %v13755_v46 }
0x1076   :  { %v7405_v8 = vmul.f32 1.442695, %v7379_v56 }
0x1078   :  { %8914 = vpow2.f32 %v7405_v8  ;;  %v7319_v8 = vmul.f32 0.2, %v7303_v42 }
0x1079   :  { %8916 = vrcp.f32 %v13711_v31 }
0x107a   :  { %v13796_v25 = vmax.f32 %v7303_v42, %v7319_v8 }
0x107b   :  { %v6894_v26 = vpop.xlane.xlu1 %6893 }
0x107c   :  { %v6914_v47 = vsub.f32 %v6866_v16, %v6894_v26  ;;  %5228 = vperm.xlu1 %8160, %v8913_v53   ;;  %v13762_v30 = vpop.f32.mrf.mxu3  ;;  %v6854_v53 = vmul.f32 0.2, %v6838_v28  ;;  %v7286_v26 = vpop.permute.xlu2 %7285 }
0x107d   :  { %v7304_v17 = vadd.f32 %v13473_v44, %v7286_v26 }
0x107e   :  { %v8915_v34 = vpop.eup %8914  ;;  %v6941_v60 = vmul.f32 1.442695, %v6914_v47 }
0x107f   :  { %v7443_v39 = vmul.f32 %v8915_v34, %v13540_v48  ;;  %v8917_v3 = vpop.eup %8916  ;;  %v13757_v48 = vpop.f32.mrf.mxu1 }
0x1080   :  { %8918 = vpow2.f32 %v6941_v60  ;;  %14817 = vst [vmem:[#allocation12_spill] sm:$0xff] %v13757_v48  ;;  %v13798_v60 = vmax.f32 %v6838_v28, %v6854_v53  ;;  %v13832_v28 = vpop.f32.mrf.mxu0 }
0x1081   :  { %7495 = vmatmul.f32.gmra.mxu2 %v7443_v39  ;;  %8920 = vrcp.f32 %v13719_v0 }
0x1082   :  { %8922 = vrcp.f32 %v13726_v51 }
0x1083   :  { %8924 = vrcp.f32 %v13736_v14 }
0x1084   :  { %5233 = vperm.xlu1 %8160, %v8917_v3   ;;  %8926 = vrcp.f32 %v13749_v38  ;;  %v13777_v52 = vpop.f32.mrf.mxu3  ;;  %v13804_v3 = vpop.f32.mrf.mxu2 }
0x1085   :  { %14818 = vst [vmem:[#allocation27_spill] sm:$0xff] %v13804_v3 }
0x1086   :  { %v8919_v43 = vpop.eup %8918 }
0x1087   :  { %v6978_v59 = vmul.f32 %v8919_v43, %v13553_v40  ;;  %v8921_v29 = vpop.eup %8920  ;;  %v13766_v40 = vpop.f32.mrf.mxu1 }
0x1088   :  { %v8923_v22 = vpop.eup %8922  ;;  %8928 = vrcp.f32 %v13766_v40 }
0x1089   :  { %7032 = vmatmul.f32.gmra.mxu1 %v6978_v59  ;;  %v8925_v36 = vpop.eup %8924  ;;  %v7320_v59 = vmul.f32 0.2, %v7304_v17 }
0x108a   :  { %v8927_v56 = vpop.eup %8926 }
0x108c   :  { %5243 = vperm.xlu1 %8160, %v8921_v29   ;;  %v13794_v34 = vpop.f32.mrf.mxu3 }
0x108e   :  { %v8929_v43 = vpop.eup %8928 }
0x108f   :  { %v13779_v24 = vpop.f32.mrf.mxu1 }
0x1093   :  { %v7270_v16 = vpop.permute.xlu1 %7269 }
0x1094   :  { %v7300_v9 = vadd.f32 %v13473_v44, %v7270_v16  ;;  %5253 = vperm.xlu1 %8160, %v8923_v22   ;;  %v13809_v22 = vpop.f32.mrf.mxu3  ;;  %v13811_v16 = vmax.f32 %v7304_v17, %v7320_v59  ;;  %v13841_v17 = vpop.f32.mrf.mxu0 }
0x1096   :  { %v7316_v10 = vmul.f32 0.2, %v7300_v9 }
0x1097   :  { %v13802_v39 = vpop.f32.mrf.mxu1 }
0x1098   :  { %v13772_v61 = vmax.f32 %v7300_v9, %v7316_v10  ;;  %8930 = vrcp.f32 %v13802_v39  ;;  %v13817_v10 = vpop.f32.mrf.mxu2 }
0x1099   :  { %14819 = vst [vmem:[#allocation17_spill] sm:$0xff] %v13817_v10  ;;  %8932 = vrcp.f32 %v13729_v11 }
0x109a   :  { %7359 = vmax.xlane.f32.xlu2 %v13772_v61  ;;  %8934 = vrcp.f32 %v13743_v57 }
0x109b   :  { %v7278_v35 = vpop.permute.xlu1 %7277  ;;  %8936 = vrcp.f32 %v13689_v1 }
0x109c   :  { %v7302_v20 = vadd.f32 %v13473_v44, %v7278_v35  ;;  %5263 = vperm.xlu1 %8160, %v8925_v36   ;;  %v13820_v41 = vpop.f32.mrf.mxu3  ;;  %8938 = vrcp.f32 %v13717_v7 }
0x109d   :  { %14820 = vst [vmem:[#allocation19_spill] sm:$0xff] %v13820_v41  ;;  %8940 = vrcp.f32 %v13759_v62 }
0x109e   :  { %v7318_v55 = vmul.f32 0.2, %v7302_v20  ;;  %8942 = vrcp.f32 %v13714_v27 }
0x109f   :  { %8944 = vrcp.f32 %v13738_v6 }
0x10a0   :  { %v13789_v63 = vmax.f32 %v7302_v20, %v7318_v55  ;;  %v13823_v35 = vpop.f32.mrf.mxu2  ;;  %v13829_v55 = vpop.xlane.xlu0 %7361  ;;  %8946 = vrcp.f32 %v13781_v23 }
0x10a1   :  { %8948 = vrcp.f32 %v13721_v15 }
0x10a2   :  { %6899 = vmax.xlane.f32.xlu2 %v13783_v5  ;;  %7363 = vmax.xlane.f32.xlu0 %v13789_v63  ;;  %8950 = vrcp.f32 %v13751_v18 }
0x10a3   :  { %v7226_v47 = vpop.permute.xlu1 %7225 }
0x10a4   :  { %5273 = vperm.xlu1 %8160, %v8927_v56   ;;  %v7289_v33 = vadd.f32 %v13473_v44, %v7226_v47  ;;  %v8931_v44 = vpop.eup %8930  ;;  %v13827_v20 = vpop.f32.mrf.mxu3 }
0x10a5   :  { %v8933_v36 = vpop.eup %8932 }
0x10a6   :  { %v7305_v29 = vmul.f32 0.2, %v7289_v33  ;;  %v8935_v50 = vpop.eup %8934 }
0x10a7   :  { %v8937_v42 = vpop.eup %8936 }
0x10a8   :  { %v13813_v9 = vmax.f32 %v7289_v33, %v7305_v29  ;;  %v13835_v56 = vpop.f32.mrf.mxu2  ;;  %v8939_v8 = vpop.eup %8938 }
0x10a9   :  { %14821 = vst [vmem:[#allocation18_spill] sm:$0xff] %v13835_v56  ;;  %v8941_v53 = vpop.eup %8940  ;;  %v6898_v33 = vpop.xlane.xlu0 %6897 }
0x10aa   :  { %6901 = vmax.xlane.f32.xlu2 %v13798_v60  ;;  %7365 = vmax.xlane.f32.xlu0 %v13796_v25  ;;  %v8943_v26 = vpop.eup %8942 }
0x10ab   :  { %v8945_v29 = vpop.eup %8944 }
0x10ac   :  { %5283 = vperm.xlu1 %8160, %v8929_v43   ;;  %v13839_v47 = vpop.f32.mrf.mxu3 }
0x10b2   :  { %7367 = vmax.xlane.f32.xlu0 %v13811_v16  ;;  %7337 = vmax.xlane.f32.xlu2 %v13813_v9 }
0x10b4   :  { %5293 = vperm.xlu1 %8160, %v8931_v44   ;;  %v6916_v44 = vsub.f32 %v13685_v21, %v6898_v33  ;;  %v13853_v21 = vpop.f32.mrf.mxu0 }
0x10bc   :  { %5689 = vperm.xlu1 %8160, %v8933_v36  }
0x10c4   :  { %5704 = vperm.xlu1 %8160, %v8935_v50   ;;  %v13847_v50 = vpop.f32.mrf.mxu2 }
0x10c6   :  { %5218 = vperm.xlu0 %8161, %v8937_v42   ;;  %v8947_v42 = vpop.eup %8946 }
0x10ca   :  { %5684 = vperm.xlu2 %8162, %v8939_v8   ;;  %v8949_v8 = vpop.eup %8948 }
0x10cc   :  { %5714 = vperm.xlu1 %8160, %v8941_v53   ;;  %v6945_v53 = vmul.f32 1.442695, %v6916_v44 }
0x10ce   :  { %5238 = vperm.xlu0 %8161, %v8943_v26   ;;  %v6896_v43 = vpop.xlane.xlu1 %6895  ;;  %v8951_v26 = vpop.eup %8950 }
0x10cf   :  { %v6915_v59 = vsub.f32 %v13724_v4, %v6896_v43  ;;  %v13851_v4 = vpop.f32.mrf.mxu3  ;;  %v13855_v43 = vpop.f32.mrf.mxu2 }
0x10d0   :  { %14822 = vst [vmem:[#allocation25_spill] sm:$0xff] %v13855_v43 }
0x10d1   :  { %v6943_v36 = vmul.f32 1.442695, %v6915_v59 }
0x10d2   :  { %5699 = vperm.xlu2 %8162, %v8945_v29  }
0x10d3   :  { %8952 = vpow2.f32 %v6943_v36 }
0x10d4   :  { %5724 = vperm.xlu1 %8160, %v8947_v42   ;;  %8954 = vrcp.f32 %v13823_v35 }
0x10d5   :  { %8956 = vrcp.f32 %v13731_v19 }
0x10d6   :  { %5248 = vperm.xlu0 %8161, %v8949_v8   ;;  %8958 = vpow2.f32 %v6945_v53  ;;  %v13863_v53 = vpop.f32.mrf.mxu0 }
0x10d7   :  { %8960 = vrcp.f32 %v13768_v49  ;;  %v13861_v8 = vpop.f32.mrf.mxu3 }
0x10d8   :  { %8962 = vrcp.f32 %v13855_v43 }
0x10d9   :  { %v8953_v33 = vpop.eup %8952  ;;  %8964 = vrcp.f32 %v13741_v2 }
0x10da   :  { %5709 = vperm.xlu2 %8162, %v8951_v26   ;;  %v6979_v59 = vmul.f32 %v8953_v33, %v13565_v32  ;;  %v8955_v29 = vpop.eup %8954  ;;  %8966 = vrcp.f32 %v13817_v10  ;;  %v14823_v33 = vld [vmem:[#allocation8_spill] sm:$0xff]  ;;  %v5201_v10 = vld [vmem:[#allocation4 + $0x8] sm:$0xff] }
0x10db   :  { %v8957_v44 = vpop.eup %8956  ;;  %vm4790_vm2 = vcmp.lt.s32.totalorder %v14823_v33, 8  ;;  %8968 = vrcp.f32 %v13755_v46  ;;  %vm4793_vm6 = vcmp.ge.s32.totalorder %v14823_v33, 8 }
0x10dc   :  { %5739 = vperm.xlu1 %8160, %v8955_v29   ;;  %7035 = vmatmul.f32.gmra.mxu1 %v6979_v59  ;;  %v8959_v36 = vpop.eup %8958  ;;  %v14824_v29 = vmov 0.0   ;;  %8970 = vrcp.f32 %v13757_v48  ;;  %v5202_v48 = vld [vmem:[#allocation4 + $0x10] sm:$0xff]  ;;  %vm4794_vm9 = vmand %vm4793_vm6, %vm289_vm3  ;;  %vm4796_vm3 = vcmp.lt.s32.totalorder %v14823_v33, 24 }
0x10dd   :  { %v8961_v42 = vpop.eup %8960  ;;  %v6980_v32 = vmul.f32 %v8959_v36, %v13577_v58  ;;  %8972 = vrcp.f32 %v13847_v50  ;;  %vm4797_vm10 = vmand %vm292_vm4, %vm4796_vm3  ;;  %vm4799_vm4 = vcmp.ge.s32.totalorder %v14823_v33, 24 }
0x10de   :  { %5258 = vperm.xlu0 %8161, %v8957_v44   ;;  %v8963_v26 = vpop.eup %8962  ;;  %v13870_v44 = vsel %vm4790_vm2, 1.0, %v14824_v29  ;;  %8974 = vrcp.f32 %v13794_v34  ;;  %vm4800_vm11 = vmand %vm4799_vm4, %vm293_vm5  ;;  %vm4802_vm5 = vcmp.lt.s32.totalorder %v14823_v33, 40 }
0x10df   :  { %v8965_v59 = vpop.eup %8964  ;;  %8976 = vrcp.f32 %v13779_v24  ;;  %vm4803_vm13 = vmand %vm296_vm7, %vm4802_vm5  ;;  %vm4805_vm7 = vcmp.ge.s32.totalorder %v14823_v33, 40 }
0x10e0   :  { %v8967_v58 = vpop.eup %8966  ;;  %8978 = vrcp.f32 %v13747_v54  ;;  %vm4806_vm14 = vmand %vm4805_vm7, %vm297_vm8  ;;  %vm7825_vm8 = vcmask 64512  }
0x10e1   :  { %v8969_v2 = vpop.eup %8968  ;;  %8980 = vrcp.f32 %v13820_v41 }
0x10e2   :  { %5719 = vperm.xlu2 %8162, %v8961_v42   ;;  %v8971_v46 = vpop.eup %8970  ;;  %8982 = vrcp.f32 %v13733_v13 }
0x10e3   :  { %8984 = vrcp.f32 %v13777_v52 }
0x10e4   :  { %5754 = vperm.xlu1 %8160, %v8963_v26   ;;  %7038 = vmatmul.f32.gmra.mxu1 %v6980_v32  ;;  %v13876_v32 = vpop.f32.mrf.mxu3  ;;  %8986 = vrcp.f32 %v13839_v47 }
0x10e5   :  { %8988 = vrcp.f32 %v13804_v3 }
0x10e6   :  { %5268 = vperm.xlu0 %8161, %v8965_v59   ;;  %v5224_v43 = vpop.permute.xlu1 %5223  ;;  %v13878_v59 = vpop.f32.mrf.mxu0  ;;  %8990 = vrcp.f32 %v13809_v22 }
0x10e7   :  { %v5297_v42 = vmul.f32 %v5224_v43, %v13695_v37  ;;  %8992 = vrcp.f32 %v13876_v32 }
0x10e8   :  { %8994 = vrcp.f32 %v13835_v56 }
0x10e9   :  { %v5313_v36 = vmul.f32 %v5297_v42, %v13870_v44  ;;  %v8973_v42 = vpop.eup %8972  ;;  %8996 = vrcp.f32 %v13827_v20 }
0x10ea   :  { %5734 = vperm.xlu2 %8162, %v8967_v58  }
0x10eb   :  { %v5329_v26 = vadd.f32 %v5313_v36, %v5201_v10  ;;  %v8975_v10 = vpop.eup %8974 }
0x10ec   :  { %6155 = vperm.xlu1 %8160, %v8969_v2   ;;  %v8977_v36 = vpop.eup %8976 }
0x10ed   :  { %5345 = vst.msk [vmem:[#allocation4 + $0x8] sm:$0xff] %vm4877_vm12, %v5329_v26  ;;  %v13887_v26 = vpop.f32.mrf.mxu3 }
0x10ee   :  { %5278 = vperm.xlu0 %8161, %v8971_v46   ;;  %v5229_v37 = vpop.permute.xlu1 %5228  ;;  %14825 = vst [vmem:[#allocation22_spill] sm:$0xff] %v13887_v26  ;;  %v13890_v46 = vpop.f32.mrf.mxu0 }
0x10ef   :  { %v5298_v43 = vmul.f32 %v5229_v37, %v13703_v45 }
0x10f1   :  { %v5314_v58 = vmul.f32 %v5298_v43, %v13870_v44  ;;  %v8979_v43 = vpop.eup %8978 }
0x10f2   :  { %5749 = vperm.xlu2 %8162, %v8973_v42  }
0x10f3   :  { %v5330_v2 = vadd.f32 %v5314_v58, %v5202_v48  ;;  %v5203_v48 = vld [vmem:[#allocation4 + $0x18] sm:$0xff]  ;;  %v8981_v58 = vpop.eup %8980 }
0x10f4   :  { %6170 = vperm.xlu1 %8160, %v8975_v10   ;;  %v8983_v41 = vpop.eup %8982 }
0x10f5   :  { %5346 = vst.msk [vmem:[#allocation4 + $0x10] sm:$0xff] %vm4877_vm12, %v5330_v2 }
0x10f6   :  { %5288 = vperm.xlu0 %8161, %v8977_v36   ;;  %v5234_v45 = vpop.permute.xlu1 %5233 }
0x10f7   :  { %v5299_v37 = vmul.f32 %v5234_v45, %v13711_v31  ;;  %v13899_v31 = vpop.f32.mrf.mxu3  ;;  %v13902_v45 = vpop.f32.mrf.mxu0 }
0x10f8   :  { %14826 = vst [vmem:[#allocation10_spill] sm:$0xff] %v13902_v45 }
0x10f9   :  { %v5315_v42 = vmul.f32 %v5299_v37, %v13870_v44  ;;  %v8985_v37 = vpop.eup %8984 }
0x10fa   :  { %6150 = vperm.xlu2 %8162, %v8979_v43  }
0x10fb   :  { %v5331_v10 = vadd.f32 %v5315_v42, %v5203_v48  ;;  %v5205_v42 = vld [vmem:[#allocation4 + $0x28] sm:$0xff]  ;;  %v8987_v48 = vpop.eup %8986 }
0x10fc   :  { %6180 = vperm.xlu1 %8160, %v8981_v58  }
0x10fd   :  { %5347 = vst.msk [vmem:[#allocation4 + $0x18] sm:$0xff] %vm4877_vm12, %v5331_v10 }
0x10fe   :  { %5694 = vperm.xlu0 %8161, %v8983_v41   ;;  %v5244_v2 = vpop.permute.xlu1 %5243  ;;  %v8989_v41 = vpop.eup %8988 }
0x10ff   :  { %v5301_v36 = vmul.f32 %v5244_v2, %v13719_v0  ;;  %v8991_v2 = vpop.eup %8990  ;;  %v13913_v3 = vpop.f32.mrf.mxu0 }
0x1101   :  { %v5317_v43 = vmul.f32 %v5301_v36, %v13870_v44  ;;  %v13910_v36 = vpop.f32.mrf.mxu3 }
0x1102   :  { %6165 = vperm.xlu2 %8162, %v8985_v37   ;;  %14827 = vst [vmem:[#allocation16_spill] sm:$0xff] %v13910_v36  ;;  %8998 = vrcp.f32 %v13910_v36  ;;  %v5209_v36 = vld [vmem:[#allocation4 + $0x48] sm:$0xff] }
0x1103   :  { %v5333_v58 = vadd.f32 %v5317_v43, %v5205_v42  ;;  %v13915_v43 = vpop.f32.mrf.mxu1  ;;  %v5207_v42 = vld [vmem:[#allocation4 + $0x38] sm:$0xff] }
0x1104   :  { %6190 = vperm.xlu1 %8160, %v8987_v48   ;;  %14828 = vst [vmem:[#allocation23_spill] sm:$0xff] %v13915_v43  ;;  %v8993_v48 = vpop.eup %8992 }
0x1105   :  { %5349 = vst.msk [vmem:[#allocation4 + $0x28] sm:$0xff] %vm4877_vm12, %v5333_v58  ;;  %v8995_v56 = vpop.eup %8994 }
0x1106   :  { %5729 = vperm.xlu0 %8161, %v8989_v41   ;;  %v5254_v10 = vpop.permute.xlu1 %5253  ;;  %v13918_v41 = vpop.f32.mrf.mxu2 }
0x1107   :  { %v5303_v0 = vmul.f32 %v5254_v10, %v13726_v51  ;;  %14829 = vst [vmem:[#allocation26_spill] sm:$0xff] %v13918_v41  ;;  %9000 = vrcp.f32 %v13918_v41  ;;  %v8997_v43 = vpop.eup %8996 }
0x1109   :  { %v5319_v37 = vmul.f32 %v5303_v0, %v13870_v44 }
0x110a   :  { %6175 = vperm.xlu2 %8162, %v8991_v2  }
0x110b   :  { %v5335_v58 = vadd.f32 %v5319_v37, %v5207_v42  ;;  %v7381_v37 = vsub.f32 %v13681_v12, %v13829_v55 }
0x110c   :  { %6205 = vperm.xlu1 %8160, %v8993_v48  }
0x110d   :  { %5351 = vst.msk [vmem:[#allocation4 + $0x38] sm:$0xff] %vm4877_vm12, %v5335_v58  ;;  %v7360_v51 = vpop.xlane.xlu2 %7359  ;;  %v8999_v58 = vpop.eup %8998  ;;  %v7409_v41 = vmul.f32 1.442695, %v7381_v37 }
0x110e   :  { %v7380_v10 = vsub.f32 %v13772_v61, %v7360_v51  ;;  %5744 = vperm.xlu0 %8161, %v8995_v56   ;;  %v5264_v0 = vpop.permute.xlu1 %5263  ;;  %v13929_v56 = vpop.f32.mrf.mxu0 }
0x110f   :  { %v5305_v2 = vmul.f32 %v5264_v0, %v13736_v14  ;;  %14830 = vst [vmem:[#allocation20_spill] sm:$0xff] %v13929_v56  ;;  %v13931_v51 = vpop.f32.mrf.mxu1  ;;  %v9001_v14 = vpop.eup %9000 }
0x1110   :  { %v7407_v42 = vmul.f32 1.442695, %v7380_v10 }
0x1111   :  { %v5321_v48 = vmul.f32 %v5305_v2, %v13870_v44 }
0x1112   :  { %9002 = vpow2.f32 %v7407_v42  ;;  %6185 = vperm.xlu2 %8162, %v8997_v43  }
0x1113   :  { %9004 = vrcp.f32 %v13861_v8  ;;  %v5337_v61 = vadd.f32 %v5321_v48, %v5209_v36 }
0x1114   :  { %6220 = vperm.xlu1 %8160, %v8999_v58   ;;  %9006 = vrcp.f32 %v13841_v17  ;;  %v9126_v58 = vld [vmem:[%s14508_s1 + $0x58] sm:$0xff] }
0x1115   :  { %5353 = vst.msk [vmem:[#allocation4 + $0x48] sm:$0xff] %vm4877_vm12, %v5337_v61  ;;  %v6900_v12 = vpop.xlane.xlu2 %6899  ;;  %v7364_v55 = vpop.xlane.xlu0 %7363  ;;  %9008 = vrcp.f32 %v13762_v30 }
0x1116   :  { %v6917_v10 = vsub.f32 %v13783_v5, %v6900_v12  ;;  %5759 = vperm.xlu0 %8161, %v9001_v14   ;;  %v5274_v43 = vpop.permute.xlu1 %5273  ;;  %9010 = vpow2.f32 %v7409_v41  ;;  %v7382_v37 = vsub.f32 %v13789_v63, %v7364_v55  ;;  %v5211_v5 = vld [vmem:[#allocation4 + $0x58] sm:$0xff] }
0x1117   :  { %v5307_v36 = vmul.f32 %v5274_v43, %v13749_v38  ;;  %v13946_v43 = vpop.f32.mrf.mxu0 }
0x1118   :  { %v9003_v0 = vpop.eup %9002  ;;  %v6947_v2 = vmul.f32 1.442695, %v6917_v10  ;;  %v7411_v41 = vmul.f32 1.442695, %v7382_v37 }
0x1119   :  { %v9005_v42 = vpop.eup %9004  ;;  %v5323_v48 = vmul.f32 %v5307_v36, %v13870_v44  ;;  %v7444_v61 = vmul.f32 %v9126_v58, %v9003_v0 }
0x111a   :  { %9012 = vpow2.f32 %v6947_v2  ;;  %6200 = vperm.xlu2 %8162, %v9005_v42   ;;  %v9007_v14 = vpop.eup %9006  ;;  %v13950_v2 = vpop.f32.mrf.mxu1 }
0x111b   :  { %9014 = vrcp.f32 %v13899_v31  ;;  %v5339_v38 = vadd.f32 %v5323_v48, %v5211_v5  ;;  %7498 = vmatmul.f32.gmra.mxu2 %v7444_v61  ;;  %v9009_v12 = vpop.eup %9008 }
0x111c   :  { %6621 = vperm.xlu1 %8160, %v9007_v14   ;;  %9016 = vrcp.f32 %v13878_v59  ;;  %v9011_v10 = vpop.eup %9010 }
0x111d   :  { %5355 = vst.msk [vmem:[#allocation4 + $0x58] sm:$0xff] %vm4877_vm12, %v5339_v38  ;;  %v6902_v63 = vpop.xlane.xlu2 %6901  ;;  %v7366_v55 = vpop.xlane.xlu0 %7365  ;;  %9018 = vrcp.f32 %v13851_v4  ;;  %v9128_v38 = vld [vmem:[%s14508_s1 + $0x60] sm:$0xff] }
0x111e   :  { %v6918_v36 = vsub.f32 %v13798_v60, %v6902_v63  ;;  %6160 = vperm.xlu0 %8161, %v9009_v12   ;;  %v5284_v0 = vpop.permute.xlu1 %5283  ;;  %9020 = vpow2.f32 %v7411_v41  ;;  %v7383_v58 = vsub.f32 %v13796_v25, %v7366_v55  ;;  %v9127_v60 = vld [vmem:[%s14508_s1 + $0x70] sm:$0xff]  ;;  %v7445_v12 = vmul.f32 %v9128_v38, %v9011_v10  ;;  %v13962_v63 = vpop.f32.mrf.mxu2 }
0x111f   :  { %v5309_v37 = vmul.f32 %v5284_v0, %v13766_v40  ;;  %v5213_v40 = vld [vmem:[#allocation4 + $0x68] sm:$0xff] }
0x1120   :  { %v9013_v42 = vpop.eup %9012  ;;  %v6949_v48 = vmul.f32 1.442695, %v6918_v36  ;;  %v7413_v55 = vmul.f32 1.442695, %v7383_v58  ;;  %v7430_v58 = vld [vmem:[%s14508_s1 + $0x68] sm:$0xff] }
0x1121   :  { %v9015_v61 = vpop.eup %9014  ;;  %v5325_v5 = vmul.f32 %v5309_v37, %v13870_v44  ;;  %v6981_v14 = vmul.f32 %v9127_v60, %v9013_v42 }
0x1122   :  { %9022 = vpow2.f32 %v6949_v48  ;;  %6215 = vperm.xlu2 %8162, %v9015_v61   ;;  %v9017_v41 = vpop.eup %9016  ;;  %v13970_v61 = vld [vmem:[%s14508_s1 + $0x78] sm:$0xff] }
0x1123   :  { %9024 = vrcp.f32 %v13832_v28  ;;  %v5341_v25 = vadd.f32 %v5325_v5, %v5213_v40  ;;  %7041 = vmatmul.f32.gmra.mxu1 %v6981_v14  ;;  %7501 = vmatmul.f32.gmra.mxu2 %v7445_v12  ;;  %v9019_v36 = vpop.eup %9018  ;;  %v13977_v14 = vpop.f32.mrf.mxu0 }
0x1124   :  { %6636 = vperm.xlu1 %8160, %v9017_v41   ;;  %9026 = vrcp.f32 %v13902_v45  ;;  %v9021_v37 = vpop.eup %9020  ;;  %v13981_v40 = vpop.f32.mrf.mxu1 }
0x1125   :  { %5357 = vst.msk [vmem:[#allocation4 + $0x68] sm:$0xff] %vm4877_vm12, %v5341_v25  ;;  %v7368_v0 = vpop.xlane.xlu0 %7367  ;;  %v7338_v10 = vpop.xlane.xlu2 %7337  ;;  %9028 = vrcp.f32 %v13887_v26 }
0x1126   :  { %v7369_v42 = vsub.f32 %v13813_v9, %v7338_v10  ;;  %6195 = vperm.xlu0 %8161, %v9019_v36   ;;  %v5294_v48 = vpop.permute.xlu1 %5293  ;;  %9030 = vpow2.f32 %v7413_v55  ;;  %v7384_v9 = vsub.f32 %v13811_v16, %v7368_v0  ;;  %v7446_v36 = vmul.f32 %v9021_v37, %v7430_v58  ;;  %v13988_v16 = vpop.f32.mrf.mxu3 }
0x1127   :  { %v5311_v5 = vmul.f32 %v5294_v48, %v13802_v39  ;;  %9032 = vrcp.f32 %v13863_v53  ;;  %v5215_v39 = vld [vmem:[#allocation4 + $0x78] sm:$0xff]  ;;  %14831 = vst [vmem:[#allocation29_spill] sm:$0xff] %v13988_v16  ;;  %v13990_v0 = vpop.f32.mrf.mxu2 }
0x1128   :  { %v9023_v60 = vpop.eup %9022  ;;  %v7385_v38 = vmul.f32 1.442695, %v7369_v42  ;;  %v7415_v42 = vmul.f32 1.442695, %v7384_v9  ;;  %v7417_v9 = vld [vmem:[%s14508_s1] sm:$0xff] }
0x1129   :  { %v9025_v12 = vpop.eup %9024  ;;  %v5327_v41 = vmul.f32 %v5311_v5, %v13870_v44  ;;  %v6982_v25 = vmul.f32 %v9023_v60, %v13970_v61  ;;  %v13997_v5 = vsel %vm4794_vm9, 1.0, %v14824_v29 }
0x112a   :  { %6616 = vperm.xlu2 %8162, %v9025_v12   ;;  %v9027_v10 = vpop.eup %9026  ;;  %9034 = vpow2.f32 %v7385_v38  ;;  %v7431_v38 = vld [vmem:[%s14508_s1 + $0x70] sm:$0xff] }
0x112b   :  { %v5343_v55 = vadd.f32 %v5327_v41, %v5215_v39  ;;  %7044 = vmatmul.f32.gmra.mxu1 %v6982_v25  ;;  %7504 = vmatmul.f32.gmra.mxu2 %v7446_v36  ;;  %v9029_v48 = vpop.eup %9028  ;;  %9036 = vrcp.f32 %v13929_v56 }
0x112c   :  { %6646 = vperm.xlu1 %8160, %v9027_v10   ;;  %v9031_v58 = vpop.eup %9030  ;;  %9038 = vrcp.f32 %v13988_v16  ;;  %v14008_v10 = vpop.f32.mrf.mxu0 }
0x112d   :  { %5359 = vst.msk [vmem:[#allocation4 + $0x78] sm:$0xff] %vm4877_vm12, %v5343_v55  ;;  %v13994_v37 = vpop.permute.xlu2 %5684  ;;  %v9033_v41 = vpop.eup %9032  ;;  %9040 = vpow2.f32 %v7415_v42  ;;  %v7447_v39 = vmul.f32 %v9031_v58, %v7431_v38 }
0x112e   :  { %6210 = vperm.xlu0 %8161, %v9029_v48   ;;  %v5690_v60 = vpop.permute.xlu1 %5689  ;;  %v5667_v48 = vld [vmem:[#allocation4 + $0x8] sm:$0xff]  ;;  %9042 = vrcp.f32 %v13890_v46  ;;  %v14011_v16 = vpop.f32.mrf.mxu1 }
0x112f   :  { %v5763_v12 = vmul.f32 %v5690_v60, %v13729_v11  ;;  %v14013_v45 = vpop.f32.mrf.mxu2  ;;  %9044 = vrcp.f32 %v14008_v10 }
0x1130   :  { %v9035_v25 = vpop.eup %9034  ;;  %9046 = vrcp.f32 %v13853_v21 }
0x1131   :  { %v5779_v36 = vmul.f32 %v5763_v12, %v13997_v5  ;;  %v7433_v55 = vmul.f32 %v9035_v25, %v7417_v9  ;;  %v9037_v56 = vpop.eup %9036  ;;  %v5669_v25 = vld [vmem:[#allocation4 + $0x18] sm:$0xff]  ;;  %9048 = vrcp.f32 %v13913_v3 }
0x1132   :  { %6631 = vperm.xlu2 %8162, %v9033_v41   ;;  %v9039_v11 = vpop.eup %9038  ;;  %9050 = vrcp.f32 %v13950_v2 }
0x1133   :  { %v5795_v26 = vadd.f32 %v5779_v36, %v5667_v48  ;;  %7507 = vmatmul.f32.gmra.mxu2 %v7447_v39  ;;  %7465 = vmatmul.f32.vlgmr.msrb.gmra.mxu0 %v7433_v55  ;;  %v9041_v58 = vpop.eup %9040  ;;  %v5200_v55 = vld [vmem:[#allocation4] sm:$0xff]  ;;  %9052 = vrcp.f32 %v13946_v43 }
0x1134   :  { %6656 = vperm.xlu1 %8160, %v9037_v56   ;;  %v9043_v41 = vpop.eup %9042  ;;  %v7448_v36 = vmul.f32 %v9041_v58, %v13970_v61  ;;  %9054 = vrcp.f32 %v13977_v14 }
0x1135   :  { %5811 = vst.msk [vmem:[#allocation4 + $0x8] sm:$0xff] %vm4877_vm12, %v5795_v26  ;;  %v5700_v42 = vpop.permute.xlu2 %5699  ;;  %v9045_v26 = vpop.eup %9044  ;;  %9056 = vrcp.f32 %v13981_v40 }
0x1136   :  { %v5765_v60 = vmul.f32 %v5700_v42, %v13738_v6  ;;  %6225 = vperm.xlu0 %8161, %v9039_v11   ;;  %v5705_v38 = vpop.permute.xlu1 %5704  ;;  %v9047_v48 = vpop.eup %9046  ;;  %9058 = vrcp.f32 %v13931_v51 }
0x1137   :  { %v14026_v11 = vpop.f32.mrf.mxu1  ;;  %v14028_v61 = vpop.f32.mrf.mxu2  ;;  %9060 = vrcp.f32 %v13962_v63 }
0x1138   :  { %v5781_v9 = vmul.f32 %v5765_v60, %v13997_v5  ;;  %v5219_v12 = vpop.permute.xlu0 %5218  ;;  %9062 = vrcp.f32 %v14011_v16 }
0x1139   :  { %v5296_v56 = vmul.f32 %v5219_v12, %v13689_v1  ;;  %9064 = vrcp.f32 %v14026_v11 }
0x113a   :  { %v5797_v39 = vadd.f32 %v5781_v9, %v5669_v25  ;;  %6641 = vperm.xlu2 %8162, %v9043_v41   ;;  %v7711_v9 = vld [vmem:[%s14517_s10 + $0x28] sm:$0xff]  ;;  %v9049_v25 = vpop.eup %9048  ;;  %9066 = vrcp.f32 %v13990_v0 }
0x113b   :  { %v5312_v6 = vmul.f32 %v5296_v56, %v13870_v44  ;;  %7510 = vmatmul.f32.gmra.mxu2 %v7448_v36  ;;  %7991 = vmatpush.msra.mxu3 %v7711_v9  ;;  %v5671_v56 = vld [vmem:[#allocation4 + $0x28] sm:$0xff]  ;;  %9068 = vrcp.f32 %v14028_v61 }
0x113c   :  { %5813 = vst.msk [vmem:[#allocation4 + $0x18] sm:$0xff] %vm4877_vm12, %v5797_v39  ;;  %6671 = vperm.xlu1 %8160, %v9045_v26   ;;  %7770 = vmatpush.msrb.mxu1 %v7711_v9  ;;  %v9051_v26 = vpop.eup %9050 }
0x113d   :  { %v5328_v1 = vadd.f32 %v5312_v6, %v5200_v55  ;;  %v5710_v42 = vpop.permute.xlu2 %5709  ;;  %v5204_v55 = vld [vmem:[#allocation4 + $0x20] sm:$0xff] }
0x113e   :  { %v5767_v58 = vmul.f32 %v5710_v42, %v13751_v18  ;;  %6626 = vperm.xlu0 %8161, %v9047_v48   ;;  %v14031_v60 = vpop.permute.xlu1 %5714  ;;  %v5762_v18 = vmul.f32 %v13994_v37, %v13717_v7  ;;  %v9053_v48 = vpop.eup %9052 }
0x113f   :  { %5344 = vst.msk [vmem:[#allocation4] sm:$0xff] %vm4877_vm12, %v5328_v1  ;;  %v14047_v42 = vpop.f32.mrf.mxu1 }
0x1140   :  { %v5783_v12 = vmul.f32 %v5767_v58, %v13997_v5  ;;  %v5239_v41 = vpop.permute.xlu0 %5238  ;;  %v5778_v1 = vmul.f32 %v5762_v18, %v13997_v5 }
0x1141   :  { %v5300_v36 = vmul.f32 %v5239_v41, %v13714_v27  ;;  %v14054_v41 = vpop.f32.mrf.mxu2 }
0x1142   :  { %v5799_v39 = vadd.f32 %v5783_v12, %v5671_v56  ;;  %6651 = vperm.xlu2 %8162, %v9049_v25   ;;  %v9055_v56 = vpop.eup %9054  ;;  %9070 = vrcp.f32 %v14054_v41 }
0x1143   :  { %v5316_v6 = vmul.f32 %v5300_v36, %v13870_v44  ;;  %v5766_v36 = vmul.f32 %v5705_v38, %v13743_v57  ;;  %9072 = vrcp.f32 %v14013_v45 }
0x1144   :  { %5815 = vst.msk [vmem:[#allocation4 + $0x28] sm:$0xff] %vm4877_vm12, %v5799_v39  ;;  %7092 = vperm.xlu1 %8160, %v9051_v26   ;;  %v5673_v39 = vld [vmem:[#allocation4 + $0x38] sm:$0xff] }
0x1145   :  { %v5332_v7 = vadd.f32 %v5316_v6, %v5204_v55  ;;  %v5720_v37 = vpop.permute.xlu2 %5719  ;;  %v9057_v6 = vpop.eup %9056  ;;  %v5782_v57 = vmul.f32 %v5766_v36, %v13997_v5 }
0x1146   :  { %v5769_v27 = vmul.f32 %v5720_v37, %v13768_v49  ;;  %6661 = vperm.xlu0 %8161, %v9053_v48   ;;  %v14050_v58 = vpop.permute.xlu1 %5724  ;;  %v5666_v9 = vld [vmem:[#allocation4] sm:$0xff]  ;;  %v5206_v48 = vld [vmem:[#allocation4 + $0x30] sm:$0xff] }
0x1147   :  { %5348 = vst.msk [vmem:[#allocation4 + $0x20] sm:$0xff] %vm4877_vm12, %v5332_v7  ;;  %v5794_v12 = vadd.f32 %v5778_v1, %v5666_v9  ;;  %v9059_v1 = vpop.eup %9058 }
0x1148   :  { %v5785_v25 = vmul.f32 %v5769_v27, %v13997_v5  ;;  %v5249_v18 = vpop.permute.xlu0 %5248 }
0x1149   :  { %v5302_v49 = vmul.f32 %v5249_v18, %v13721_v15  ;;  %5810 = vst.msk [vmem:[#allocation4] sm:$0xff] %vm4877_vm12, %v5794_v12  ;;  %v14070_v12 = vpop.f32.mrf.mxu1  ;;  %v9061_v18 = vpop.eup %9060 }
0x114a   :  { %v5801_v26 = vadd.f32 %v5785_v25, %v5673_v39  ;;  %6666 = vperm.xlu2 %8162, %v9055_v56   ;;  %v5768_v56 = vmul.f32 %v14031_v60, %v13759_v62  ;;  %9074 = vrcp.f32 %v14070_v12 }
0x114b   :  { %v5318_v55 = vmul.f32 %v5302_v49, %v13870_v44  ;;  %v14077_v49 = vpop.f32.mrf.mxu2 }
0x114c   :  { %5817 = vst.msk [vmem:[#allocation4 + $0x38] sm:$0xff] %vm4877_vm12, %v5801_v26  ;;  %7097 = vperm.xlu1 %8160, %v9057_v6   ;;  %v5677_v26 = vld [vmem:[#allocation4 + $0x58] sm:$0xff]  ;;  %v9063_v6 = vpop.eup %9062  ;;  %v5784_v62 = vmul.f32 %v5768_v56, %v13997_v5 }
0x114d   :  { %v5334_v38 = vadd.f32 %v5318_v55, %v5206_v48  ;;  %v14065_v15 = vpop.permute.xlu2 %5734  ;;  %v5208_v48 = vld [vmem:[#allocation4 + $0x40] sm:$0xff] }
0x114e   :  { %7087 = vperm.xlu0 %8161, %v9059_v1   ;;  %v5740_v7 = vpop.permute.xlu1 %5739  ;;  %v5670_v37 = vld [vmem:[#allocation4 + $0x20] sm:$0xff]  ;;  %v9065_v1 = vpop.eup %9064 }
0x114f   :  { %5350 = vst.msk [vmem:[#allocation4 + $0x30] sm:$0xff] %vm4877_vm12, %v5334_v38  ;;  %v5773_v27 = vmul.f32 %v5740_v7, %v13823_v35  ;;  %v5798_v9 = vadd.f32 %v5782_v57, %v5670_v37  ;;  %v7710_v57 = vld [vmem:[%s14517_s10 + $0x20] sm:$0xff]  ;;  %v9067_v56 = vpop.eup %9066 }
0x1150   :  { %v5259_v25 = vpop.permute.xlu0 %5258  ;;  %7992 = vmatpush.msra.mxu3 %v7710_v57  ;;  %7771 = vmatpush.msrb.mxu1 %v7710_v57 }
0x1151   :  { %v5789_v36 = vmul.f32 %v5773_v27, %v13997_v5  ;;  %v5304_v39 = vmul.f32 %v5259_v25, %v13731_v19  ;;  %5814 = vst.msk [vmem:[#allocation4 + $0x20] sm:$0xff] %vm4877_vm12, %v5798_v9  ;;  %v14093_v9 = vpop.f32.mrf.mxu1 }
0x1152   :  { %7553 = vperm.xlu2 %8162, %v9061_v18   ;;  %9076 = vrcp.f32 %v14093_v9 }
0x1153   :  { %v5805_v35 = vadd.f32 %v5789_v36, %v5677_v26  ;;  %v5320_v55 = vmul.f32 %v5304_v39, %v13870_v44  ;;  %v5679_v36 = vld [vmem:[#allocation4 + $0x68] sm:$0xff]  ;;  %v14832_v39 = vld [vmem:[#allocation15_spill] sm:$0xff]  ;;  %9078 = vrcp.f32 %v14047_v42 }
0x1154   :  { %7102 = vperm.xlu1 %8160, %v9063_v6  }
0x1155   :  { %5821 = vst.msk [vmem:[#allocation4 + $0x58] sm:$0xff] %vm4877_vm12, %v5805_v35  ;;  %v5336_v19 = vadd.f32 %v5320_v55, %v5208_v48  ;;  %v5750_v60 = vpop.permute.xlu2 %5749  ;;  %v9069_v35 = vpop.eup %9068 }
0x1156   :  { %v5775_v38 = vmul.f32 %v5750_v60, %v13847_v50  ;;  %7107 = vperm.xlu0 %8161, %v9065_v1   ;;  %v14088_v7 = vpop.permute.xlu1 %5754  ;;  %v5672_v37 = vld [vmem:[#allocation4 + $0x30] sm:$0xff]  ;;  %v5770_v50 = vmul.f32 %v14050_v58, %v13781_v23  ;;  %v14104_v48 = vpop.f32.mrf.mxu2 }
0x1157   :  { %5352 = vst.msk [vmem:[#allocation4 + $0x40] sm:$0xff] %vm4877_vm12, %v5336_v19  ;;  %v5800_v27 = vadd.f32 %v5784_v62, %v5672_v37  ;;  %v5210_v23 = vld [vmem:[#allocation4 + $0x50] sm:$0xff]  ;;  %v9071_v58 = vpop.eup %9070  ;;  %v14110_v19 = vsel %vm4797_vm10, 1.0, %v14824_v29  ;;  %9080 = vrcp.f32 %v14104_v48 }
0x1158   :  { %v5791_v25 = vmul.f32 %v5775_v38, %v13997_v5  ;;  %v5269_v18 = vpop.permute.xlu0 %5268  ;;  %v5786_v1 = vmul.f32 %v5770_v50, %v13997_v5 }
0x1159   :  { %v5306_v26 = vmul.f32 %v5269_v18, %v14832_v39  ;;  %5816 = vst.msk [vmem:[#allocation4 + $0x30] sm:$0xff] %vm4877_vm12, %v5800_v27  ;;  %v14833_v27 = vld [vmem:[#allocation24_spill] sm:$0xff]  ;;  %v9073_v39 = vpop.eup %9072 }
0x115a   :  { %v5807_v6 = vadd.f32 %v5791_v25, %v5679_v36  ;;  %7558 = vperm.xlu2 %8162, %v9067_v56   ;;  %v14116_v56 = vpop.f32.mrf.mxu1 }
0x115b   :  { %v5322_v55 = vmul.f32 %v5306_v26, %v13870_v44  ;;  %v14834_v26 = vld [vmem:[#allocation17_spill] sm:$0xff] }
0x115c   :  { %5823 = vst.msk [vmem:[#allocation4 + $0x68] sm:$0xff] %vm4877_vm12, %v5807_v6  ;;  %7568 = vperm.xlu1 %8160, %v9069_v35   ;;  %v5772_v6 = vmul.f32 %v14065_v15, %v14834_v26  ;;  %v5212_v15 = vld [vmem:[#allocation4 + $0x60] sm:$0xff] }
0x115d   :  { %v5338_v62 = vadd.f32 %v5322_v55, %v5210_v23  ;;  %v6151_v60 = vpop.permute.xlu2 %6150  ;;  %v14835_v55 = vld [vmem:[#allocation12_spill] sm:$0xff] }
0x115e   :  { %v6228_v57 = vmul.f32 %v6151_v60, %v13747_v54  ;;  %7573 = vperm.xlu0 %8161, %v9071_v58   ;;  %v6156_v38 = vpop.permute.xlu1 %6155  ;;  %v5674_v37 = vld [vmem:[#allocation4 + $0x40] sm:$0xff] }
0x115f   :  { %5354 = vst.msk [vmem:[#allocation4 + $0x50] sm:$0xff] %vm4877_vm12, %v5338_v62  ;;  %v6229_v25 = vmul.f32 %v6156_v38, %v14833_v27  ;;  %v5802_v18 = vadd.f32 %v5786_v1, %v5674_v37  ;;  %v6132_v54 = vld [vmem:[#allocation4] sm:$0xff]  ;;  %v6133_v62 = vld [vmem:[#allocation4 + $0x8] sm:$0xff]  ;;  %v9075_v1 = vpop.eup %9074  ;;  %v14126_v38 = vpop.f32.mrf.mxu2 }
0x1160   :  { %v6244_v50 = vmul.f32 %v6228_v57, %v14110_v19  ;;  %v5279_v36 = vpop.permute.xlu0 %5278  ;;  %v9077_v37 = vpop.eup %9076  ;;  %9082 = vrcp.f32 %v14126_v38 }
0x1161   :  { %v6245_v35 = vmul.f32 %v6229_v25, %v14110_v19  ;;  %v5308_v23 = vmul.f32 %v5279_v36, %v14835_v55  ;;  %5818 = vst.msk [vmem:[#allocation4 + $0x40] sm:$0xff] %vm4877_vm12, %v5802_v18  ;;  %v14129_v27 = vpop.f32.mrf.mxu0  ;;  %v5788_v25 = vmul.f32 %v5772_v6, %v13997_v5  ;;  %v7709_v6 = vld [vmem:[%s14517_s10 + $0x18] sm:$0xff]  ;;  %9084 = vrcp.f32 %v14077_v49 }
0x1162   :  { %v6260_v58 = vadd.f32 %v6244_v50, %v6132_v54  ;;  %7563 = vperm.xlu2 %8162, %v9073_v39   ;;  %v14141_v55 = vpop.f32.mrf.mxu1  ;;  %7993 = vmatpush.msra.mxu3 %v7709_v6 }
0x1163   :  { %v6261_v60 = vadd.f32 %v6245_v35, %v6133_v62  ;;  %v5324_v57 = vmul.f32 %v5308_v23, %v13870_v44  ;;  %7772 = vmatpush.msrb.mxu1 %v7709_v6  ;;  %v6135_v62 = vld [vmem:[#allocation4 + $0x18] sm:$0xff]  ;;  %9086 = vrcp.f32 %v14141_v55 }
0x1164   :  { %6276 = vst.msk [vmem:[#allocation4] sm:$0xff] %vm4877_vm12, %v6260_v58  ;;  %7117 = vperm.xlu1 %8160, %v9075_v1   ;;  %9088 = vrcp.f32 %v14129_v27 }
0x1165   :  { %6277 = vst.msk [vmem:[#allocation4 + $0x8] sm:$0xff] %vm4877_vm12, %v6261_v60  ;;  %v5340_v18 = vadd.f32 %v5324_v57, %v5212_v15  ;;  %v6166_v50 = vpop.permute.xlu2 %6165  ;;  %v6136_v57 = vld [vmem:[#allocation4 + $0x20] sm:$0xff]  ;;  %9090 = vrcp.f32 %v14116_v56 }
0x1166   :  { %v6231_v36 = vmul.f32 %v6166_v50, %v13777_v52  ;;  %7122 = vperm.xlu0 %8161, %v9077_v37   ;;  %v6171_v39 = vpop.permute.xlu1 %6170  ;;  %v5676_v26 = vld [vmem:[#allocation4 + $0x50] sm:$0xff]  ;;  %v9079_v52 = vpop.eup %9078 }
0x1167   :  { %5356 = vst.msk [vmem:[#allocation4 + $0x60] sm:$0xff] %vm4877_vm12, %v5340_v18  ;;  %v6232_v54 = vmul.f32 %v6171_v39, %v13794_v34  ;;  %v5804_v35 = vadd.f32 %v5788_v25, %v5676_v26  ;;  %v9081_v15 = vpop.eup %9080  ;;  %v5214_v18 = vld [vmem:[#allocation4 + $0x70] sm:$0xff] }
0x1168   :  { %v6247_v23 = vmul.f32 %v6231_v36, %v14110_v19  ;;  %v5289_v58 = vpop.permute.xlu0 %5288  ;;  %v9083_v50 = vpop.eup %9082 }
0x1169   :  { %v6248_v1 = vmul.f32 %v6232_v54, %v14110_v19  ;;  %v5310_v60 = vmul.f32 %v5289_v58, %v13779_v24  ;;  %5820 = vst.msk [vmem:[#allocation4 + $0x50] sm:$0xff] %vm4877_vm12, %v5804_v35  ;;  %v14154_v54 = vpop.f32.mrf.mxu0 }
0x116a   :  { %v6263_v34 = vadd.f32 %v6247_v23, %v6135_v62  ;;  %7112 = vperm.xlu2 %8162, %v9079_v52   ;;  %v14158_v6 = vpop.f32.mrf.mxu1  ;;  %v9085_v52 = vpop.eup %9084  ;;  %v14837_v62 = vld [vmem:[#allocation25_spill] sm:$0xff] }
0x116b   :  { %v6264_v37 = vadd.f32 %v6248_v1, %v6136_v57  ;;  %v5326_v25 = vmul.f32 %v5310_v60, %v13870_v44  ;;  %v14836_v44 = vld [vmem:[#allocation19_spill] sm:$0xff]  ;;  %v5776_v1 = vmul.f32 %v14088_v7, %v14837_v62  ;;  %9092 = vrcp.f32 %v14158_v6 }
0x116c   :  { %6279 = vst.msk [vmem:[#allocation4 + $0x18] sm:$0xff] %vm4877_vm12, %v6263_v34  ;;  %7583 = vperm.xlu1 %8160, %v9081_v15   ;;  %v6138_v15 = vld [vmem:[#allocation4 + $0x30] sm:$0xff]  ;;  %9094 = vrcp.f32 %v14154_v54 }
0x116d   :  { %6280 = vst.msk [vmem:[#allocation4 + $0x20] sm:$0xff] %vm4877_vm12, %v6264_v37  ;;  %v5342_v24 = vadd.f32 %v5326_v25, %v5214_v18  ;;  %v6176_v36 = vpop.permute.xlu2 %6175  ;;  %v9087_v37 = vpop.eup %9086  ;;  %v5792_v7 = vmul.f32 %v5776_v1, %v13997_v5 }
0x116e   :  { %v6233_v39 = vmul.f32 %v6176_v36, %v13809_v22  ;;  %7588 = vperm.xlu0 %8161, %v9083_v50   ;;  %v6181_v26 = vpop.permute.xlu1 %6180  ;;  %v6137_v22 = vld [vmem:[#allocation4 + $0x28] sm:$0xff]  ;;  %v5668_v50 = vld [vmem:[#allocation4 + $0x10] sm:$0xff] }
0x116f   :  { %5358 = vst.msk [vmem:[#allocation4 + $0x70] sm:$0xff] %vm4877_vm12, %v5342_v24  ;;  %v6234_v35 = vmul.f32 %v6181_v26, %v14836_v44  ;;  %v9089_v24 = vpop.eup %9088 }
0x1170   :  { %v6249_v23 = vmul.f32 %v6233_v39, %v14110_v19  ;;  %v5695_v58 = vpop.permute.xlu0 %5694 }
0x1171   :  { %v6250_v60 = vmul.f32 %v6234_v35, %v14110_v19  ;;  %v5764_v34 = vmul.f32 %v5695_v58, %v13733_v13  ;;  %v14173_v35 = vpop.f32.mrf.mxu2 }
0x1172   :  { %v6265_v57 = vadd.f32 %v6249_v23, %v6137_v22  ;;  %7578 = vperm.xlu2 %8162, %v9085_v52   ;;  %v14177_v52 = vpop.f32.mrf.mxu1  ;;  %v9091_v22 = vpop.eup %9090  ;;  %9096 = vrcp.f32 %v14173_v35 }
0x1173   :  { %v6266_v25 = vadd.f32 %v6250_v60, %v6138_v15  ;;  %v5780_v18 = vmul.f32 %v5764_v34, %v13997_v5  ;;  %v6139_v60 = vld [vmem:[#allocation4 + $0x38] sm:$0xff]  ;;  %v14183_v15 = vpop.f32.mrf.mxu0  ;;  %9098 = vrcp.f32 %v14177_v52 }
0x1174   :  { %6281 = vst.msk [vmem:[#allocation4 + $0x28] sm:$0xff] %vm4877_vm12, %v6265_v57  ;;  %7132 = vperm.xlu1 %8160, %v9087_v37   ;;  %v14838_v34 = vld [vmem:[#allocation27_spill] sm:$0xff]  ;;  %9100 = vrcp.f32 %v14183_v15 }
0x1175   :  { %6282 = vst.msk [vmem:[#allocation4 + $0x30] sm:$0xff] %vm4877_vm12, %v6266_v25  ;;  %v5796_v13 = vadd.f32 %v5780_v18, %v5668_v50  ;;  %v6186_v36 = vpop.permute.xlu2 %6185  ;;  %v6140_v25 = vld [vmem:[#allocation4 + $0x40] sm:$0xff] }
0x1176   :  { %v6235_v39 = vmul.f32 %v6186_v36, %v13827_v20  ;;  %6676 = vperm.xlu0 %8161, %v9089_v24   ;;  %v6191_v26 = vpop.permute.xlu1 %6190  ;;  %v5680_v44 = vld [vmem:[#allocation4 + $0x70] sm:$0xff]  ;;  %v5675_v24 = vld [vmem:[#allocation4 + $0x48] sm:$0xff] }
0x1177   :  { %5812 = vst.msk [vmem:[#allocation4 + $0x10] sm:$0xff] %vm4877_vm12, %v5796_v13  ;;  %v6236_v23 = vmul.f32 %v6191_v26, %v13839_v47  ;;  %v5808_v58 = vadd.f32 %v5792_v7, %v5680_v44  ;;  %v9093_v47 = vpop.eup %9092 }
0x1178   :  { %v6251_v62 = vmul.f32 %v6235_v39, %v14110_v19  ;;  %v5730_v1 = vpop.permute.xlu0 %5729  ;;  %v9095_v7 = vpop.eup %9094 }
0x1179   :  { %v6252_v20 = vmul.f32 %v6236_v23, %v14110_v19  ;;  %v5771_v57 = vmul.f32 %v5730_v1, %v14838_v34  ;;  %5824 = vst.msk [vmem:[#allocation4 + $0x70] sm:$0xff] %vm4877_vm12, %v5808_v58  ;;  %v7708_v23 = vld [vmem:[%s14517_s10 + $0x10] sm:$0xff]  ;;  %v14197_v58 = vpop.f32.mrf.mxu2 }
0x117a   :  { %v6267_v37 = vadd.f32 %v6251_v62, %v6139_v60  ;;  %7127 = vperm.xlu2 %8162, %v9091_v22   ;;  %7994 = vmatpush.msra.mxu3 %v7708_v23  ;;  %v6142_v22 = vld [vmem:[#allocation4 + $0x50] sm:$0xff]  ;;  %9102 = vrcp.f32 %v14197_v58 }
0x117b   :  { %v6268_v18 = vadd.f32 %v6252_v20, %v6140_v25  ;;  %v5787_v50 = vmul.f32 %v5771_v57, %v13997_v5  ;;  %7773 = vmatpush.msrb.mxu1 %v7708_v23  ;;  %v14839_v20 = vld [vmem:[#allocation18_spill] sm:$0xff]  ;;  %v14202_v57 = vpop.f32.mrf.mxu1 }
0x117c   :  { %6283 = vst.msk [vmem:[#allocation4 + $0x38] sm:$0xff] %vm4877_vm12, %v6267_v37  ;;  %7137 = vperm.xlu1 %8160, %v9093_v47   ;;  %v6143_v37 = vld [vmem:[#allocation4 + $0x58] sm:$0xff]  ;;  %9104 = vrcp.f32 %v14202_v57 }
0x117d   :  { %6284 = vst.msk [vmem:[#allocation4 + $0x40] sm:$0xff] %vm4877_vm12, %v6268_v18  ;;  %v5803_v13 = vadd.f32 %v5787_v50, %v5675_v24  ;;  %v6201_v36 = vpop.permute.xlu2 %6200  ;;  %v14206_v50 = vpop.f32.mrf.mxu0  ;;  %v5678_v24 = vld [vmem:[#allocation4 + $0x60] sm:$0xff] }
0x117e   :  { %v6238_v39 = vmul.f32 %v6201_v36, %v13861_v8  ;;  %6681 = vperm.xlu0 %8161, %v9095_v7   ;;  %v6206_v26 = vpop.permute.xlu1 %6205  ;;  %v9097_v8 = vpop.eup %9096  ;;  %9106 = vrcp.f32 %v14206_v50 }
0x117f   :  { %5819 = vst.msk [vmem:[#allocation4 + $0x48] sm:$0xff] %vm4877_vm12, %v5803_v13  ;;  %v6239_v44 = vmul.f32 %v6206_v26, %v13876_v32  ;;  %v9099_v25 = vpop.eup %9098 }
0x1180   :  { %v6254_v62 = vmul.f32 %v6238_v39, %v14110_v19  ;;  %v5745_v1 = vpop.permute.xlu0 %5744  ;;  %v9101_v7 = vpop.eup %9100 }
0x1181   :  { %v6255_v60 = vmul.f32 %v6239_v44, %v14110_v19  ;;  %v5774_v34 = vmul.f32 %v5745_v1, %v14839_v20  ;;  %v14840_v44 = vld [vmem:[#allocation16_spill] sm:$0xff]  ;;  %v14841_v20 = vld [vmem:[#allocation26_spill] sm:$0xff] }
0x1182   :  { %v6270_v32 = vadd.f32 %v6254_v62, %v6142_v22  ;;  %7593 = vperm.xlu2 %8162, %v9097_v8   ;;  %v9103_v8 = vpop.eup %9102  ;;  %v6145_v22 = vld [vmem:[#allocation4 + $0x68] sm:$0xff] }
0x1183   :  { %v6271_v47 = vadd.f32 %v6255_v60, %v6143_v37  ;;  %v5790_v18 = vmul.f32 %v5774_v34, %v13997_v5  ;;  %v9105_v37 = vpop.eup %9104 }
0x1184   :  { %6286 = vst.msk [vmem:[#allocation4 + $0x50] sm:$0xff] %vm4877_vm12, %v6270_v32  ;;  %7142 = vperm.xlu1 %8160, %v9099_v25   ;;  %v6146_v32 = vld [vmem:[#allocation4 + $0x70] sm:$0xff] }
0x1185   :  { %6287 = vst.msk [vmem:[#allocation4 + $0x58] sm:$0xff] %vm4877_vm12, %v6271_v47  ;;  %v5806_v13 = vadd.f32 %v5790_v18, %v5678_v24  ;;  %v6216_v36 = vpop.permute.xlu2 %6215  ;;  %v5681_v18 = vld [vmem:[#allocation4 + $0x78] sm:$0xff]  ;;  %v9107_v24 = vpop.eup %9106 }
0x1186   :  { %v6241_v39 = vmul.f32 %v6216_v36, %v13899_v31  ;;  %6686 = vperm.xlu0 %8161, %v9101_v7   ;;  %v6221_v26 = vpop.permute.xlu1 %6220 }
0x1187   :  { %5822 = vst.msk [vmem:[#allocation4 + $0x60] sm:$0xff] %vm4877_vm12, %v5806_v13  ;;  %v6242_v23 = vmul.f32 %v6221_v26, %v14840_v44  ;;  %v14225_v13 = vsel %vm4800_vm11, 1.0, %v14824_v29 }
0x1188   :  { %v6257_v62 = vmul.f32 %v6241_v39, %v14110_v19  ;;  %v5760_v1 = vpop.permute.xlu0 %5759 }
0x1189   :  { %v6258_v60 = vmul.f32 %v6242_v23, %v14110_v19  ;;  %v5777_v34 = vmul.f32 %v5760_v1, %v14841_v20 }
0x118a   :  { %v6273_v31 = vadd.f32 %v6257_v62, %v6145_v22  ;;  %7598 = vperm.xlu2 %8162, %v9103_v8   ;;  %v6598_v62 = vld [vmem:[#allocation4] sm:$0xff] }
0x118b   :  { %v6274_v25 = vadd.f32 %v6258_v60, %v6146_v32  ;;  %v5793_v47 = vmul.f32 %v5777_v34, %v13997_v5  ;;  %v6599_v60 = vld [vmem:[#allocation4 + $0x8] sm:$0xff] }
0x118c   :  { %6289 = vst.msk [vmem:[#allocation4 + $0x68] sm:$0xff] %vm4877_vm12, %v6273_v31  ;;  %7147 = vperm.xlu1 %8160, %v9105_v37   ;;  %v7707_v32 = vld [vmem:[%s14517_s10 + $0x8] sm:$0xff] }
0x118d   :  { %6290 = vst.msk [vmem:[#allocation4 + $0x70] sm:$0xff] %vm4877_vm12, %v6274_v25  ;;  %v5809_v7 = vadd.f32 %v5793_v47, %v5681_v18  ;;  %v6617_v36 = vpop.permute.xlu2 %6616  ;;  %7995 = vmatpush.msra.mxu3 %v7707_v32  ;;  %7774 = vmatpush.msrb.mxu1 %v7707_v32 }
0x118e   :  { %v6694_v39 = vmul.f32 %v6617_v36, %v13832_v28  ;;  %6691 = vperm.xlu0 %8161, %v9107_v24   ;;  %v6622_v26 = vpop.permute.xlu1 %6621  ;;  %v6134_v28 = vld [vmem:[#allocation4 + $0x10] sm:$0xff]  ;;  %v6601_v24 = vld [vmem:[#allocation4 + $0x18] sm:$0xff] }
0x118f   :  { %5825 = vst.msk [vmem:[#allocation4 + $0x78] sm:$0xff] %vm4877_vm12, %v5809_v7  ;;  %v6695_v5 = vmul.f32 %v6622_v26, %v13841_v17  ;;  %v6602_v26 = vld [vmem:[#allocation4 + $0x20] sm:$0xff] }
0x1190   :  { %v6710_v44 = vmul.f32 %v6694_v39, %v14225_v13  ;;  %v6161_v23 = vpop.permute.xlu0 %6160 }
0x1191   :  { %v6711_v1 = vmul.f32 %v6695_v5, %v14225_v13  ;;  %v6230_v8 = vmul.f32 %v6161_v23, %v13762_v30 }
0x1192   :  { %v6726_v22 = vadd.f32 %v6710_v44, %v6598_v62  ;;  %v6141_v44 = vld [vmem:[#allocation4 + $0x48] sm:$0xff] }
0x1193   :  { %v6727_v20 = vadd.f32 %v6711_v1, %v6599_v60  ;;  %v6246_v34 = vmul.f32 %v6230_v8, %v14110_v19 }
0x1194   :  { %6742 = vst.msk [vmem:[#allocation4] sm:$0xff] %vm4877_vm12, %v6726_v22 }
0x1195   :  { %6743 = vst.msk [vmem:[#allocation4 + $0x8] sm:$0xff] %vm4877_vm12, %v6727_v20  ;;  %v6262_v31 = vadd.f32 %v6246_v34, %v6134_v28  ;;  %v6632_v17 = vpop.permute.xlu2 %6631  ;;  %v6603_v28 = vld [vmem:[#allocation4 + $0x28] sm:$0xff] }
0x1196   :  { %v6697_v37 = vmul.f32 %v6632_v17, %v13863_v53  ;;  %v6637_v25 = vpop.permute.xlu1 %6636  ;;  %v14843_v17 = vld [vmem:[#allocation22_spill] sm:$0xff] }
0x1197   :  { %6278 = vst.msk [vmem:[#allocation4 + $0x10] sm:$0xff] %vm4877_vm12, %v6262_v31  ;;  %v6698_v30 = vmul.f32 %v6637_v25, %v13878_v59 }
0x1198   :  { %v6713_v47 = vmul.f32 %v6697_v37, %v14225_v13  ;;  %v6196_v18 = vpop.permute.xlu0 %6195  ;;  %v6604_v37 = vld [vmem:[#allocation4 + $0x30] sm:$0xff] }
0x1199   :  { %v6714_v7 = vmul.f32 %v6698_v30, %v14225_v13  ;;  %v6237_v36 = vmul.f32 %v6196_v18, %v13851_v4  ;;  %v14842_v4 = vld [vmem:[#allocation10_spill] sm:$0xff] }
0x119a   :  { %v6729_v39 = vadd.f32 %v6713_v47, %v6601_v24  ;;  %v6144_v47 = vld [vmem:[#allocation4 + $0x60] sm:$0xff] }
0x119b   :  { %v6730_v5 = vadd.f32 %v6714_v7, %v6602_v26  ;;  %v6253_v53 = vmul.f32 %v6237_v36, %v14110_v19 }
0x119c   :  { %6745 = vst.msk [vmem:[#allocation4 + $0x18] sm:$0xff] %vm4877_vm12, %v6729_v39 }
0x119d   :  { %6746 = vst.msk [vmem:[#allocation4 + $0x20] sm:$0xff] %vm4877_vm12, %v6730_v5  ;;  %v6269_v23 = vadd.f32 %v6253_v53, %v6141_v44  ;;  %v6642_v59 = vpop.permute.xlu2 %6641  ;;  %v14844_v53 = vld [vmem:[#allocation20_spill] sm:$0xff] }
0x119e   :  { %v6699_v62 = vmul.f32 %v6642_v59, %v13890_v46  ;;  %v14249_v1 = vpop.f32.mrf.mxu2  ;;  %v6647_v8 = vpop.permute.xlu1 %6646 }
0x119f   :  { %6285 = vst.msk [vmem:[#allocation4 + $0x48] sm:$0xff] %vm4877_vm12, %v6269_v23  ;;  %9108 = vrcp.f32 %v14249_v1  ;;  %v6700_v22 = vmul.f32 %v6647_v8, %v14842_v4  ;;  %v6605_v8 = vld [vmem:[#allocation4 + $0x38] sm:$0xff]  ;;  %v14845_v4 = vld [vmem:[#allocation29_spill] sm:$0xff] }
0x11a0   :  { %v6715_v60 = vmul.f32 %v6699_v62, %v14225_v13  ;;  %v6211_v20 = vpop.permute.xlu0 %6210  ;;  %v14255_v34 = vpop.f32.mrf.mxu1 }
0x11a1   :  { %v6716_v31 = vmul.f32 %v6700_v22, %v14225_v13  ;;  %v6240_v32 = vmul.f32 %v6211_v20, %v14843_v17  ;;  %9110 = vrcp.f32 %v14255_v34  ;;  %v6606_v20 = vld [vmem:[#allocation4 + $0x40] sm:$0xff]  ;;  %v6147_v17 = vld [vmem:[#allocation4 + $0x78] sm:$0xff] }
0x11a2   :  { %v6731_v46 = vadd.f32 %v6715_v60, %v6603_v28 }
0x11a3   :  { %v6732_v25 = vadd.f32 %v6716_v31, %v6604_v37  ;;  %v6256_v30 = vmul.f32 %v6240_v32, %v14110_v19 }
0x11a4   :  { %6747 = vst.msk [vmem:[#allocation4 + $0x28] sm:$0xff] %vm4877_vm12, %v6731_v46 }
0x11a5   :  { %v9109_v18 = vpop.eup %9108  ;;  %6748 = vst.msk [vmem:[#allocation4 + $0x30] sm:$0xff] %vm4877_vm12, %v6732_v25  ;;  %v6272_v24 = vadd.f32 %v6256_v30, %v6144_v47  ;;  %v6652_v7 = vpop.permute.xlu2 %6651 }
0x11a6   :  { %v6701_v36 = vmul.f32 %v6652_v7, %v13913_v3  ;;  %v14264_v39 = vpop.f32.mrf.mxu2  ;;  %7603 = vperm.xlu2 %8162, %v9109_v18   ;;  %v6657_v26 = vpop.permute.xlu1 %6656 }
0x11a7   :  { %v9111_v5 = vpop.eup %9110  ;;  %6288 = vst.msk [vmem:[#allocation4 + $0x60] sm:$0xff] %vm4877_vm12, %v6272_v24  ;;  %9112 = vrcp.f32 %v14264_v39  ;;  %v6702_v44 = vmul.f32 %v6657_v26, %v14844_v53 }
0x11a8   :  { %v6717_v23 = vmul.f32 %v6701_v36, %v14225_v13  ;;  %v6226_v59 = vpop.permute.xlu0 %6225  ;;  %7152 = vperm.xlu1 %8160, %v9111_v5   ;;  %v14270_v62 = vpop.f32.mrf.mxu1  ;;  %v6608_v36 = vld [vmem:[#allocation4 + $0x50] sm:$0xff]  ;;  %v7706_v5 = vld [vmem:[%s14517_s10] sm:$0xff] }
0x11a9   :  { %v6718_v3 = vmul.f32 %v6702_v44, %v14225_v13  ;;  %v6243_v22 = vmul.f32 %v6226_v59, %v14845_v4  ;;  %9114 = vrcp.f32 %v14270_v62  ;;  %v6609_v44 = vld [vmem:[#allocation4 + $0x58] sm:$0xff]  ;;  %7996 = vmatpush.msra.mxu3 %v7706_v5  ;;  %7775 = vmatpush.msrb.mxu1 %v7706_v5  ;;  %v6600_v59 = vld [vmem:[#allocation4 + $0x10] sm:$0xff] }
0x11aa   :  { %v6733_v60 = vadd.f32 %v6717_v23, %v6605_v8  ;;  %v14846_v4 = vld [vmem:[#allocation23_spill] sm:$0xff] }
0x11ab   :  { %v6734_v28 = vadd.f32 %v6718_v3, %v6606_v20  ;;  %v6259_v31 = vmul.f32 %v6243_v22, %v14110_v19 }
0x11ac   :  { %6749 = vst.msk [vmem:[#allocation4 + $0x38] sm:$0xff] %vm4877_vm12, %v6733_v60 }
0x11ad   :  { %v9113_v32 = vpop.eup %9112  ;;  %6750 = vst.msk [vmem:[#allocation4 + $0x40] sm:$0xff] %vm4877_vm12, %v6734_v28  ;;  %v6275_v46 = vadd.f32 %v6259_v31, %v6147_v17  ;;  %v6667_v37 = vpop.permute.xlu2 %6666  ;;  %v14304_v17 = vsel %vm4803_vm13, 1.0, %v14824_v29 }
0x11ae   :  { %v6704_v25 = vmul.f32 %v6667_v37, %v13977_v14  ;;  %v14279_v30 = vpop.f32.mrf.mxu2  ;;  %7608 = vperm.xlu2 %8162, %v9113_v32   ;;  %v6672_v47 = vpop.permute.xlu1 %6671 }
0x11af   :  { %v9115_v18 = vpop.eup %9114  ;;  %6291 = vst.msk [vmem:[#allocation4 + $0x78] sm:$0xff] %vm4877_vm12, %v6275_v46  ;;  %9116 = vrcp.f32 %v14279_v30  ;;  %v6705_v19 = vmul.f32 %v6672_v47, %v14008_v10 }
0x11b0   :  { %v6720_v24 = vmul.f32 %v6704_v25, %v14225_v13  ;;  %v6627_v7 = vpop.permute.xlu0 %6626  ;;  %7157 = vperm.xlu0 %8161, %v9115_v18   ;;  %9118 = vrcp.f32 %v14846_v4  ;;  %v14306_v32 = vpop.f32.mrf.mxu0  ;;  %v6607_v25 = vld [vmem:[#allocation4 + $0x48] sm:$0xff] }
0x11b1   :  { %v6721_v26 = vmul.f32 %v6705_v19, %v14225_v13  ;;  %v6696_v14 = vmul.f32 %v6627_v7, %v13853_v21 }
0x11b2   :  { %v6736_v53 = vadd.f32 %v6720_v24, %v6608_v36 }
0x11b3   :  { %v6737_v23 = vadd.f32 %v6721_v26, %v6609_v44  ;;  %v6712_v10 = vmul.f32 %v6696_v14, %v14225_v13  ;;  %v7067_v44 = vld [vmem:[#allocation4 + $0x18] sm:$0xff] }
0x11b4   :  { %6752 = vst.msk [vmem:[#allocation4 + $0x50] sm:$0xff] %vm4877_vm12, %v6736_v53 }
0x11b5   :  { %v9117_v8 = vpop.eup %9116  ;;  %6753 = vst.msk [vmem:[#allocation4 + $0x58] sm:$0xff] %vm4877_vm12, %v6737_v23  ;;  %v6728_v21 = vadd.f32 %v6712_v10, %v6600_v59  ;;  %v7554_v3 = vpop.permute.xlu2 %7553 }
0x11b6   :  { %v14295_v22 = vpop.f32.mrf.mxu2  ;;  %7613 = vperm.xlu2 %8162, %v9117_v8   ;;  %v7093_v60 = vpop.permute.xlu1 %7092 }
0x11b7   :  { %6744 = vst.msk [vmem:[#allocation4 + $0x10] sm:$0xff] %vm4877_vm12, %v6728_v21  ;;  %9120 = vrcp.f32 %v14295_v22  ;;  %v7162_v28 = vmul.f32 %v7093_v60, %v13950_v2  ;;  %v9119_v37 = vpop.eup %9118 }
0x11b8   :  { %v6662_v20 = vpop.permute.xlu0 %6661  ;;  %9122 = vrcp.f32 %v14306_v32 }
0x11b9   :  { %v6703_v31 = vmul.f32 %v6662_v20, %v13946_v43  ;;  %v7178_v18 = vmul.f32 %v7162_v28, %v14304_v17  ;;  %v14326_v28 = vsel %vm4806_vm14, 1.0, %v14824_v29 }
0x11bb   :  { %v6719_v46 = vmul.f32 %v6703_v31, %v14225_v13 }
0x11bd   :  { %v9121_v47 = vpop.eup %9120  ;;  %v6735_v19 = vadd.f32 %v6719_v46, %v6607_v25  ;;  %v7559_v24 = vpop.permute.xlu2 %7558  ;;  %v7627_v25 = vmul.f32 %v7554_v3, %v13962_v63 }
0x11be   :  { %v7066_v7 = vld [vmem:[#allocation4 + $0x10] sm:$0xff]  ;;  %v14311_v2 = vpop.f32.mrf.mxu2  ;;  %7082 = vperm.xlu2 %8162, %v9119_v37   ;;  %7618 = vperm.xlu1 %8160, %v9121_v47   ;;  %v7098_v43 = vpop.permute.xlu1 %7097  ;;  %v7628_v23 = vmul.f32 %v7559_v24, %v13990_v0 }
0x11bf   :  { %v7194_v36 = vadd.f32 %v7178_v18, %v7066_v7  ;;  %6751 = vst.msk [vmem:[#allocation4 + $0x48] sm:$0xff] %vm4877_vm12, %v6735_v19  ;;  %9124 = vrcp.f32 %v14311_v2  ;;  %v7163_v26 = vmul.f32 %v7098_v43, %v13981_v40  ;;  %v9123_v8 = vpop.eup %9122  ;;  %v7065_v40 = vld [vmem:[#allocation4 + $0x8] sm:$0xff]  ;;  %v7068_v19 = vld [vmem:[#allocation4 + $0x20] sm:$0xff] }
0x11c0   :  { %v7088_v14 = vpop.permute.xlu0 %7087  ;;  %v7644_v33 = vmul.f32 %v7628_v23, %v14326_v28 }
0x11c1   :  { %7210 = vst.msk [vmem:[#allocation4 + $0x10] sm:$0xff] %vm4877_vm12, %v7194_v36  ;;  %v7179_v5 = vmul.f32 %v7163_v26, %v14304_v17  ;;  %v7161_v53 = vmul.f32 %v7088_v14, %v13931_v51  ;;  %v7069_v36 = vld [vmem:[#allocation4 + $0x28] sm:$0xff] }
0x11c3   :  { %v7195_v10 = vadd.f32 %v7179_v5, %v7067_v44  ;;  %v7177_v59 = vmul.f32 %v7161_v53, %v14304_v17 }
0x11c5   :  { %v9125_v21 = vpop.eup %9124  ;;  %7211 = vst.msk [vmem:[#allocation4 + $0x18] sm:$0xff] %vm4877_vm12, %v7195_v10  ;;  %v7193_v60 = vadd.f32 %v7177_v59, %v7065_v40  ;;  %v7564_v20 = vpop.permute.xlu2 %7563  ;;  %v7070_v59 = vld [vmem:[#allocation4 + $0x30] sm:$0xff] }
0x11c6   :  { %7548 = vperm.xlu1 %8160, %v9123_v8   ;;  %7623 = vperm.xlu0 %8161, %v9125_v21   ;;  %v7103_v51 = vpop.permute.xlu1 %7102  ;;  %v7629_v0 = vmul.f32 %v7564_v20, %v14013_v45 }
0x11c7   :  { %7209 = vst.msk [vmem:[#allocation4 + $0x8] sm:$0xff] %vm4877_vm12, %v7193_v60  ;;  %v7164_v31 = vmul.f32 %v7103_v51, %v14011_v16  ;;  %v7643_v16 = vmul.f32 %v7627_v25, %v14326_v28 }
0x11c8   :  { %v7532_v46 = vld [vmem:[#allocation4 + $0x10] sm:$0xff]  ;;  %v7108_v37 = vpop.permute.xlu0 %7107  ;;  %v7645_v24 = vmul.f32 %v7629_v0, %v14326_v28 }
0x11c9   :  { %v7660_v47 = vadd.f32 %v7644_v33, %v7532_v46  ;;  %v7180_v18 = vmul.f32 %v7164_v31, %v14304_v17  ;;  %v7165_v29 = vmul.f32 %v7108_v37, %v14026_v11 }
0x11cb   :  { %7676 = vst.msk [vmem:[#allocation4 + $0x10] sm:$0xff] %vm4877_vm12, %v7660_v47  ;;  %v7196_v7 = vadd.f32 %v7180_v18, %v7068_v19  ;;  %v7181_v43 = vmul.f32 %v7165_v29, %v14304_v17 }
0x11cc   :  { %v7533_v45 = vld [vmem:[#allocation4 + $0x18] sm:$0xff] }
0x11cd   :  { %v7661_v26 = vadd.f32 %v7645_v24, %v7533_v45  ;;  %7212 = vst.msk [vmem:[#allocation4 + $0x20] sm:$0xff] %vm4877_vm12, %v7196_v7  ;;  %v7197_v63 = vadd.f32 %v7181_v43, %v7069_v36  ;;  %v7113_v3 = vpop.permute.xlu2 %7112 }
0x11ce   :  { %v7531_v14 = vld [vmem:[#allocation4 + $0x8] sm:$0xff]  ;;  %v7166_v11 = vmul.f32 %v7113_v3, %v14047_v42  ;;  %v7569_v5 = vpop.permute.xlu1 %7568 }
0x11cf   :  { %v7659_v53 = vadd.f32 %v7643_v16, %v7531_v14  ;;  %7677 = vst.msk [vmem:[#allocation4 + $0x18] sm:$0xff] %vm4877_vm12, %v7661_v26  ;;  %v7630_v44 = vmul.f32 %v7569_v5, %v14028_v61  ;;  %v7073_v14 = vld [vmem:[#allocation4 + $0x48] sm:$0xff] }
0x11d0   :  { %7213 = vst.msk [vmem:[#allocation4 + $0x28] sm:$0xff] %vm4877_vm12, %v7197_v63  ;;  %v7182_v23 = vmul.f32 %v7166_v11, %v14304_v17  ;;  %v7574_v10 = vpop.permute.xlu0 %7573 }
0x11d1   :  { %7675 = vst.msk [vmem:[#allocation4 + $0x8] sm:$0xff] %vm4877_vm12, %v7659_v53  ;;  %v7631_v40 = vmul.f32 %v7574_v10, %v14054_v41  ;;  %v7646_v21 = vmul.f32 %v7630_v44, %v14326_v28 }
0x11d2   :  { %v7198_v8 = vadd.f32 %v7182_v23, %v7070_v59  ;;  %v7692_v3 = vld [vmem:[#allocation4 + $0x10] sm:$0xff] }
0x11d3   :  { %v7647_v61 = vmul.f32 %v7631_v40, %v14326_v28 }
0x11d4   :  { %7214 = vst.msk [vmem:[#allocation4 + $0x30] sm:$0xff] %vm4877_vm12, %v7198_v8  ;;  %v7534_v42 = vld [vmem:[#allocation4 + $0x20] sm:$0xff] }
0x11d5   :  { %v7662_v60 = vadd.f32 %v7646_v21, %v7534_v42  ;;  %v7579_v20 = vpop.permute.xlu2 %7578 }
0x11d6   :  { %v7632_v51 = vmul.f32 %v7579_v20, %v14077_v49  ;;  %v7118_v33 = vpop.permute.xlu1 %7117  ;;  %v7071_v49 = vld [vmem:[#allocation4 + $0x38] sm:$0xff] }
0x11d7   :  { %7678 = vst.msk [vmem:[#allocation4 + $0x20] sm:$0xff] %vm4877_vm12, %v7662_v60  ;;  %v7535_v0 = vld [vmem:[#allocation4 + $0x28] sm:$0xff]  ;;  %v7167_v31 = vmul.f32 %v7118_v33, %v14070_v12  ;;  %v7072_v12 = vld [vmem:[#allocation4 + $0x40] sm:$0xff]  ;;  %v7693_v42 = vld [vmem:[#allocation4 + $0x18] sm:$0xff] }
0x11d8   :  { %v7663_v46 = vadd.f32 %v7647_v61, %v7535_v0  ;;  %v7123_v37 = vpop.permute.xlu0 %7122  ;;  %v7691_v41 = vld [vmem:[#allocation4 + $0x8] sm:$0xff]  ;;  %v7648_v18 = vmul.f32 %v7632_v51, %v14326_v28  ;;  %v7074_v51 = vld [vmem:[#allocation4 + $0x50] sm:$0xff] }
0x11d9   :  { %v7183_v25 = vmul.f32 %v7167_v31, %v14304_v17  ;;  %v7168_v47 = vmul.f32 %v7123_v37, %v14093_v9  ;;  %7960 = vmatmul.msk.f32.vlgmr.msra.gmra.mxu3 %vm4877_vm12, %v7691_v41 }
0x11da   :  { %7679 = vst.msk [vmem:[#allocation4 + $0x28] sm:$0xff] %vm4877_vm12, %v7663_v46  ;;  %v6610_v46 = vld [vmem:[#allocation4 + $0x60] sm:$0xff] }
0x11db   :  { %v7536_v29 = vld [vmem:[#allocation4 + $0x30] sm:$0xff]  ;;  %v7199_v19 = vadd.f32 %v7183_v25, %v7071_v49  ;;  %v7184_v24 = vmul.f32 %v7168_v47, %v14304_v17 }
0x11dc   :  { %v7664_v7 = vadd.f32 %v7648_v18, %v7536_v29 }
0x11dd   :  { %7215 = vst.msk [vmem:[#allocation4 + $0x38] sm:$0xff] %vm4877_vm12, %v7199_v19  ;;  %v7200_v43 = vadd.f32 %v7184_v24, %v7072_v12  ;;  %v7128_v45 = vpop.permute.xlu2 %7127  ;;  %v7075_v19 = vld [vmem:[#allocation4 + $0x58] sm:$0xff] }
0x11de   :  { %7680 = vst.msk [vmem:[#allocation4 + $0x30] sm:$0xff] %vm4877_vm12, %v7664_v7  ;;  %v7169_v9 = vmul.f32 %v7128_v45, %v14116_v56  ;;  %v7584_v36 = vpop.permute.xlu1 %7583  ;;  %v7694_v18 = vld [vmem:[#allocation4 + $0x20] sm:$0xff]  ;;  %v6611_v45 = vld [vmem:[#allocation4 + $0x68] sm:$0xff] }
0x11df   :  { %7216 = vst.msk [vmem:[#allocation4 + $0x40] sm:$0xff] %vm4877_vm12, %v7200_v43  ;;  %v7633_v16 = vmul.f32 %v7584_v36, %v14104_v48 }
0x11e0   :  { %v7185_v26 = vmul.f32 %v7169_v9, %v14304_v17  ;;  %v7589_v63 = vpop.permute.xlu0 %7588 }
0x11e1   :  { %v7634_v11 = vmul.f32 %v7589_v63, %v14126_v38  ;;  %7961 = vmatmul.msk.f32.gmra.mxu3 %vm4877_vm12, %v7692_v3  ;;  %v7649_v53 = vmul.f32 %v7633_v16, %v14326_v28  ;;  %v7695_v16 = vld [vmem:[#allocation4 + $0x28] sm:$0xff] }
0x11e2   :  { %v7201_v5 = vadd.f32 %v7185_v26, %v7073_v14 }
0x11e3   :  { %v7650_v23 = vmul.f32 %v7634_v11, %v14326_v28 }
0x11e4   :  { %7217 = vst.msk [vmem:[#allocation4 + $0x48] sm:$0xff] %vm4877_vm12, %v7201_v5  ;;  %v7537_v56 = vld [vmem:[#allocation4 + $0x38] sm:$0xff]  ;;  %v6612_v5 = vld [vmem:[#allocation4 + $0x70] sm:$0xff] }
0x11e5   :  { %v7665_v44 = vadd.f32 %v7649_v53, %v7537_v56  ;;  %v7594_v10 = vpop.permute.xlu2 %7593 }
0x11e6   :  { %v7538_v48 = vld [vmem:[#allocation4 + $0x40] sm:$0xff]  ;;  %v7635_v59 = vmul.f32 %v7594_v10, %v14173_v35  ;;  %v7133_v8 = vpop.permute.xlu1 %7132  ;;  %v7696_v10 = vld [vmem:[#allocation4 + $0x30] sm:$0xff] }
0x11e7   :  { %7681 = vst.msk [vmem:[#allocation4 + $0x38] sm:$0xff] %vm4877_vm12, %v7665_v44  ;;  %v7666_v40 = vadd.f32 %v7650_v23, %v7538_v48  ;;  %v7170_v38 = vmul.f32 %v7133_v8, %v14141_v55 }
0x11e8   :  { %v6677_v21 = vpop.permute.xlu0 %6676  ;;  %v7651_v61 = vmul.f32 %v7635_v59, %v14326_v28 }
0x11e9   :  { %7682 = vst.msk [vmem:[#allocation4 + $0x40] sm:$0xff] %vm4877_vm12, %v7666_v40  ;;  %v7186_v60 = vmul.f32 %v7170_v38, %v14304_v17  ;;  %v6706_v20 = vmul.f32 %v6677_v21, %v14129_v27  ;;  %7962 = vmatmul.msk.f32.gmra.mxu3 %vm4877_vm12, %v7693_v42  ;;  %v6613_v42 = vld [vmem:[#allocation4 + $0x78] sm:$0xff] }
0x11eb   :  { %v7539_v35 = vld [vmem:[#allocation4 + $0x48] sm:$0xff]  ;;  %v7202_v33 = vadd.f32 %v7186_v60, %v7074_v51  ;;  %v6722_v0 = vmul.f32 %v6706_v20, %v14225_v13 }
0x11ec   :  { %v7667_v31 = vadd.f32 %v7651_v61, %v7539_v35 }
0x11ed   :  { %7218 = vst.msk [vmem:[#allocation4 + $0x50] sm:$0xff] %vm4877_vm12, %v7202_v33  ;;  %v6738_v55 = vadd.f32 %v6722_v0, %v6610_v46  ;;  %v7599_v37 = vpop.permute.xlu2 %7598 }
0x11ee   :  { %7683 = vst.msk [vmem:[#allocation4 + $0x48] sm:$0xff] %vm4877_vm12, %v7667_v31  ;;  %v7138_v41 = vpop.permute.xlu1 %7137  ;;  %v7636_v27 = vmul.f32 %v7599_v37, %v14197_v58 }
0x11ef   :  { %6754 = vst.msk [vmem:[#allocation4 + $0x60] sm:$0xff] %vm4877_vm12, %v6738_v55  ;;  %v7171_v25 = vmul.f32 %v7138_v41, %v14158_v6 }
0x11f0   :  { %v6682_v47 = vpop.permute.xlu0 %6681  ;;  %v7652_v24 = vmul.f32 %v7636_v27, %v14326_v28  ;;  %v7698_v0 = vld [vmem:[#allocation4 + $0x40] sm:$0xff] }
0x11f1   :  { %v7187_v49 = vmul.f32 %v7171_v25, %v14304_v17  ;;  %v6707_v29 = vmul.f32 %v6682_v47, %v14154_v54  ;;  %7963 = vmatmul.msk.f32.gmra.mxu3 %vm4877_vm12, %v7694_v18 }
0x11f3   :  { %v7203_v7 = vadd.f32 %v7187_v49, %v7075_v19  ;;  %v6723_v12 = vmul.f32 %v6707_v29, %v14225_v13 }
0x11f4   :  { %v7540_v43 = vld [vmem:[#allocation4 + $0x50] sm:$0xff] }
0x11f5   :  { %v7668_v9 = vadd.f32 %v7652_v24, %v7540_v43  ;;  %7219 = vst.msk [vmem:[#allocation4 + $0x58] sm:$0xff] %vm4877_vm12, %v7203_v7  ;;  %v6739_v6 = vadd.f32 %v6723_v12, %v6611_v45  ;;  %v7699_v41 = vld [vmem:[#allocation4 + $0x48] sm:$0xff] }
0x11f6   :  { %v7143_v58 = vpop.permute.xlu1 %7142  ;;  %v7076_v3 = vld [vmem:[#allocation4 + $0x60] sm:$0xff] }
0x11f7   :  { %7684 = vst.msk [vmem:[#allocation4 + $0x50] sm:$0xff] %vm4877_vm12, %v7668_v9  ;;  %v7172_v36 = vmul.f32 %v7143_v58, %v14177_v52 }
0x11f8   :  { %6755 = vst.msk [vmem:[#allocation4 + $0x68] sm:$0xff] %vm4877_vm12, %v6739_v6  ;;  %v6687_v54 = vpop.permute.xlu0 %6686 }
0x11f9   :  { %v7188_v26 = vmul.f32 %v7172_v36, %v14304_v17  ;;  %v6708_v63 = vmul.f32 %v6687_v54, %v14183_v15  ;;  %7964 = vmatmul.msk.f32.gmra.mxu3 %vm4877_vm12, %v7695_v16 }
0x11fb   :  { %v7204_v14 = vadd.f32 %v7188_v26, %v7076_v3  ;;  %v6724_v11 = vmul.f32 %v6708_v63, %v14225_v13 }
0x11fc   :  { %v7541_v60 = vld [vmem:[#allocation4 + $0x58] sm:$0xff] }
0x11fd   :  { %7220 = vst.msk [vmem:[#allocation4 + $0x60] sm:$0xff] %vm4877_vm12, %v7204_v14  ;;  %v6740_v53 = vadd.f32 %v6724_v11, %v6612_v5 }
0x11fe   :  { %v7148_v56 = vpop.permute.xlu1 %7147  ;;  %v7700_v7 = vld [vmem:[#allocation4 + $0x50] sm:$0xff] }
0x11ff   :  { %6756 = vst.msk [vmem:[#allocation4 + $0x70] sm:$0xff] %vm4877_vm12, %v6740_v53  ;;  %v7173_v52 = vmul.f32 %v7148_v56, %v14202_v57  ;;  %v7077_v8 = vld [vmem:[#allocation4 + $0x68] sm:$0xff] }
0x1200   :  { %v6692_v44 = vpop.permute.xlu0 %6691  ;;  %v7604_v23 = vpop.permute.xlu2 %7603 }
0x1201   :  { %v7189_v15 = vmul.f32 %v7173_v52, %v14304_v17  ;;  %v6709_v48 = vmul.f32 %v6692_v44, %v14206_v50  ;;  %v7637_v59 = vmul.f32 %v7604_v23, %v14249_v1  ;;  %7965 = vmatmul.msk.f32.gmra.mxu3 %vm4877_vm12, %v7696_v10  ;;  %v7697_v1 = vld [vmem:[#allocation4 + $0x38] sm:$0xff] }
0x1203   :  { %v7205_v40 = vadd.f32 %v7189_v15, %v7077_v8  ;;  %v6725_v38 = vmul.f32 %v6709_v48, %v14225_v13  ;;  %v7653_v21 = vmul.f32 %v7637_v59, %v14326_v28 }
0x1204   :  { %v7542_v51 = vld [vmem:[#allocation4 + $0x60] sm:$0xff] }
0x1205   :  { %7221 = vst.msk [vmem:[#allocation4 + $0x68] sm:$0xff] %vm4877_vm12, %v7205_v40  ;;  %v6741_v57 = vadd.f32 %v6725_v38, %v6613_v42  ;;  %v7669_v20 = vadd.f32 %v7653_v21, %v7541_v60 }
0x1206   :  { %v7078_v19 = vld [vmem:[#allocation4 + $0x70] sm:$0xff] }
0x1207   :  { %6757 = vst.msk [vmem:[#allocation4 + $0x78] sm:$0xff] %vm4877_vm12, %v6741_v57 }
0x1208   :  { %7685 = vst.msk [vmem:[#allocation4 + $0x58] sm:$0xff] %vm4877_vm12, %v7669_v20  ;;  %v7609_v50 = vpop.permute.xlu2 %7608 }
0x1209   :  { %v7638_v61 = vmul.f32 %v7609_v50, %v14264_v39  ;;  %7966 = vmatmul.msk.f32.gmra.mxu3 %vm4877_vm12, %v7697_v1 }
0x120b   :  { %v7654_v13 = vmul.f32 %v7638_v61, %v14326_v28 }
0x120c   :  { %v7543_v55 = vld [vmem:[#allocation4 + $0x68] sm:$0xff] }
0x120d   :  { %v7670_v35 = vadd.f32 %v7654_v13, %v7542_v51 }
0x120e   :  { %v7079_v45 = vld [vmem:[#allocation4 + $0x78] sm:$0xff] }
0x120f   :  { %7686 = vst.msk [vmem:[#allocation4 + $0x60] sm:$0xff] %vm4877_vm12, %v7670_v35  ;;  %v7701_v9 = vld [vmem:[#allocation4 + $0x58] sm:$0xff] }
0x1210   :  { %v7614_v33 = vpop.permute.xlu2 %7613 }
0x1211   :  { %v7639_v31 = vmul.f32 %v7614_v33, %v14279_v30  ;;  %7967 = vmatmul.msk.f32.gmra.mxu3 %vm4877_vm12, %v7698_v0  ;;  %v7064_v30 = vld [vmem:[#allocation4] sm:$0xff] }
0x1213   :  { %v7655_v46 = vmul.f32 %v7639_v31, %v14326_v28 }
0x1215   :  { %v7671_v37 = vadd.f32 %v7655_v46, %v7543_v55 }
0x1216   :  { %v7702_v58 = vld [vmem:[#allocation4 + $0x60] sm:$0xff] }
0x1217   :  { %7687 = vst.msk [vmem:[#allocation4 + $0x68] sm:$0xff] %vm4877_vm12, %v7671_v37 }
0x1218   :  { %v7083_v39 = vpop.permute.xlu2 %7082 }
0x1219   :  { %v7160_v27 = vmul.f32 %v7083_v39, %v14846_v4  ;;  %7968 = vmatmul.msk.f32.gmra.mxu3 %vm4877_vm12, %v7699_v41 }
0x121a   :  { %v7153_v25 = vpop.permute.xlu1 %7152 }
0x121b   :  { %v7176_v47 = vmul.f32 %v7160_v27, %v14304_v17  ;;  %v7174_v18 = vmul.f32 %v7153_v25, %v14255_v34 }
0x121d   :  { %v7192_v49 = vadd.f32 %v7176_v47, %v7064_v30  ;;  %v7190_v29 = vmul.f32 %v7174_v18, %v14304_v17 }
0x121e   :  { %v7703_v63 = vld [vmem:[#allocation4 + $0x68] sm:$0xff] }
0x121f   :  { %7208 = vst.msk [vmem:[#allocation4] sm:$0xff] %vm4877_vm12, %v7192_v49  ;;  %v7206_v24 = vadd.f32 %v7190_v29, %v7078_v19 }
0x1221   :  { %7222 = vst.msk [vmem:[#allocation4 + $0x70] sm:$0xff] %vm4877_vm12, %v7206_v24  ;;  %7969 = vmatmul.msk.f32.gmra.mxu3 %vm4877_vm12, %v7700_v7 }
0x1222   :  { %v7158_v4 = vpop.permute.xlu0 %7157 }
0x1223   :  { %v7175_v12 = vmul.f32 %v7158_v4, %v14270_v62 }
0x1225   :  { %v7191_v43 = vmul.f32 %v7175_v12, %v14304_v17 }
0x1226   :  { %v7530_v53 = vld [vmem:[#allocation4] sm:$0xff] }
0x1227   :  { %v7207_v34 = vadd.f32 %v7191_v43, %v7079_v45 }
0x1228   :  { %v7544_v16 = vld [vmem:[#allocation4 + $0x70] sm:$0xff] }
0x1229   :  { %7223 = vst.msk [vmem:[#allocation4 + $0x78] sm:$0xff] %vm4877_vm12, %v7207_v34  ;;  %7970 = vmatmul.msk.f32.gmra.mxu3 %vm4877_vm12, %v7701_v9 }
0x1230   :  { %v7619_v6 = vpop.permute.xlu1 %7618  ;;  %v7545_v5 = vld [vmem:[#allocation4 + $0x78] sm:$0xff] }
0x1231   :  { %v7640_v36 = vmul.f32 %v7619_v6, %v14295_v22  ;;  %7971 = vmatmul.msk.f32.gmra.mxu3 %vm4877_vm12, %v7702_v58 }
0x1233   :  { %v7656_v54 = vmul.f32 %v7640_v36, %v14326_v28 }
0x1235   :  { %v7672_v26 = vadd.f32 %v7656_v54, %v7544_v16 }
0x1237   :  { %7688 = vst.msk [vmem:[#allocation4 + $0x70] sm:$0xff] %vm4877_vm12, %v7672_v26 }
0x1238   :  { %v7624_v62 = vpop.permute.xlu0 %7623  ;;  %v7549_v17 = vpop.permute.xlu1 %7548 }
0x1239   :  { %v7641_v3 = vmul.f32 %v7624_v62, %v14311_v2  ;;  %v7626_v14 = vmul.f32 %v7549_v17, %v14306_v32  ;;  %7972 = vmatmul.msk.f32.gmra.mxu3 %vm4877_vm12, %v7703_v63 }
0x123b   :  { %v7657_v11 = vmul.f32 %v7641_v3, %v14326_v28  ;;  %v7642_v22 = vmul.f32 %v7626_v14, %v14326_v28 }
0x123d   :  { %v7673_v56 = vadd.f32 %v7657_v11, %v7545_v5  ;;  %v7658_v52 = vadd.f32 %v7642_v22, %v7530_v53 }
0x123e   :  { %v7704_v44 = vld [vmem:[#allocation4 + $0x70] sm:$0xff] }
0x123f   :  { %7689 = vst.msk [vmem:[#allocation4 + $0x78] sm:$0xff] %vm4877_vm12, %v7673_v56 }
0x1240   :  { %7674 = vst.msk [vmem:[#allocation4] sm:$0xff] %vm4877_vm12, %v7658_v52 }
0x1241   :  { %7973 = vmatmul.msk.f32.gmra.mxu3 %vm4877_vm12, %v7704_v44 }
0x1246   :  { %v7705_v32 = vld [vmem:[#allocation4 + $0x78] sm:$0xff] }
0x1247   :  { %v7690_v2 = vld [vmem:[#allocation4] sm:$0xff] }
0x1248   :  { %7959 = vmatmul.msk.f32.vlgmr.msrb.gmra.mxu1 %vm4877_vm12, %v7690_v2 }
0x1249   :  { %7974 = vmatmul.msk.f32.gmra.mxu3 %vm4877_vm12, %v7705_v32 }
0x125c   :  { %v7780_v23 = vpop.f32.mrf.mxu3 }
0x125d   :  { %7827 = vst.msk [vmem:[%s14518_s11 + $0x8] sm:$0xff] %vm7825_vm8, %v7780_v23 }
0x1264   :  { %v7783_v28 = vpop.f32.mrf.mxu3 }
0x1265   :  { %7828 = vst.msk [vmem:[%s14518_s11 + $0x10] sm:$0xff] %vm7825_vm8, %v7783_v28 }
0x126c   :  { %v7786_v10 = vpop.f32.mrf.mxu3 }
0x126d   :  { %7829 = vst.msk [vmem:[%s14518_s11 + $0x18] sm:$0xff] %vm7825_vm8, %v7786_v10 }
0x1274   :  { %v7789_v15 = vpop.f32.mrf.mxu3 }
0x1275   :  { %7830 = vst.msk [vmem:[%s14518_s11 + $0x20] sm:$0xff] %vm7825_vm8, %v7789_v15 }
0x127c   :  { %v7792_v48 = vpop.f32.mrf.mxu3 }
0x127d   :  { %7831 = vst.msk [vmem:[%s14518_s11 + $0x28] sm:$0xff] %vm7825_vm8, %v7792_v48 }
0x1284   :  { %v7795_v59 = vpop.f32.mrf.mxu3 }
0x1285   :  { %7832 = vst.msk [vmem:[%s14518_s11 + $0x30] sm:$0xff] %vm7825_vm8, %v7795_v59 }
0x128c   :  { %v7798_v8 = vpop.f32.mrf.mxu3 }
0x128d   :  { %7833 = vst.msk [vmem:[%s14518_s11 + $0x38] sm:$0xff] %vm7825_vm8, %v7798_v8 }
0x1294   :  { %v7801_v40 = vpop.f32.mrf.mxu3 }
0x1295   :  { %7834 = vst.msk [vmem:[%s14518_s11 + $0x40] sm:$0xff] %vm7825_vm8, %v7801_v40 }
0x129c   :  { %v7804_v38 = vpop.f32.mrf.mxu3 }
0x129d   :  { %7835 = vst.msk [vmem:[%s14518_s11 + $0x48] sm:$0xff] %vm7825_vm8, %v7804_v38 }
0x12a4   :  { %v7807_v21 = vpop.f32.mrf.mxu3 }
0x12a5   :  { %7836 = vst.msk [vmem:[%s14518_s11 + $0x50] sm:$0xff] %vm7825_vm8, %v7807_v21 }
0x12ac   :  { %v7810_v42 = vpop.f32.mrf.mxu3 }
0x12ad   :  { %7837 = vst.msk [vmem:[%s14518_s11 + $0x58] sm:$0xff] %vm7825_vm8, %v7810_v42 }
0x12b4   :  { %v7813_v60 = vpop.f32.mrf.mxu3 }
0x12b5   :  { %7838 = vst.msk [vmem:[%s14518_s11 + $0x60] sm:$0xff] %vm7825_vm8, %v7813_v60 }
0x12bc   :  { %v7816_v57 = vpop.f32.mrf.mxu3 }
0x12bd   :  { %7839 = vst.msk [vmem:[%s14518_s11 + $0x68] sm:$0xff] %vm7825_vm8, %v7816_v57 }
0x12c4   :  { %v7819_v20 = vpop.f32.mrf.mxu3 }
0x12c5   :  { %v7777_v50 = vpop.f32.mrf.mxu1  ;;  %7840 = vst.msk [vmem:[%s14518_s11 + $0x70] sm:$0xff] %vm7825_vm8, %v7819_v20 }
0x12c6   :  { %7826 = vst.msk [vmem:[%s14518_s11] sm:$0xff] %vm7825_vm8, %v7777_v50 }
0x12cc   :  { %v7822_v1 = vpop.f32.mrf.mxu3 }
0x12cd   :  { %7841 = vst.msk [vmem:[%s14518_s11 + $0x78] sm:$0xff] %vm7825_vm8, %v7822_v1 }
0x12ce   :  { %7846 = vsyncpa [#allocation6], 1 }

</bundles_post_ra>
